<compile_context>
chip_gen: v5e
topology: v5e:2x2
jax: 0.10.0
libtpu: 0.0.40
codegen_flags: <defaults>
</compile_context>

<pallas_src>
import functools

import jax
import jax.numpy as jnp
import numpy as np
from jax.experimental import pallas as pl
from jax.experimental.pallas import tpu as pltpu

EPS = 1e-5  # PyTorch InstanceNorm2d default


def _round_up(x, m):
    return ((x + m - 1) // m) * m


# ----------------------------- Pallas kernel ------------------------------- #
def _make_kernel(H, W, Wp, Th, chunk_rows, Cin, Cout, has_residual):
    """Fused 3x3 conv + InstanceNorm + (residual) + ReLU for one image.

    Grid = (N, 2, H // Th).
      phase 0: 3x3 conv of Th wide rows per step as 9 shifted (chunk, Cin)@(Cin, Cout)
               MXU matmuls (bf16 operands, f32 accumulation), masked per-channel
               sum / sum-of-squares for the InstanceNorm statistics, raw conv rows
               stashed in a whole-image VMEM scratch.
      phase 1: normalize + residual + ReLU, writing one (Th, W, Cout) output tile
               per step (lane/sublane-aligned static slices only).
    """
    M = Th * Wp                   # wide elements per row tile   (multiple of 8)
    CH = chunk_rows * Wp          # wide elements per conv chunk (multiple of 8)
    n_chunks = Th // chunk_rows
    n_valid = float(H * W)        # valid pixels per channel

    def kernel(x_ref, w_ref, *rest):
        if has_residual:
            r_ref, o_ref, raw_ref, sum_ref, ssq_ref = rest
        else:
            o_ref, raw_ref, sum_ref, ssq_ref = rest

        p = pl.program_id(1)
        t = pl.program_id(2)
        base = pl.multiple_of(t * M, 8)      # M, CH are multiples of 8 (Wp % 8 == 0)

        # ----------------------- phase 0: conv + statistics ----------------------- #
        @pl.when(p == 0)
        def _():
            @pl.when(t == 0)
            def _():
                sum_ref[...] = jnp.zeros_like(sum_ref)
                ssq_ref[...] = jnp.zeros_like(ssq_ref)

            # valid-column mask generated in-kernel (wide column index % Wp < W);
            # chunk starts are multiples of Wp so one mask serves every chunk.
            col = jax.lax.broadcasted_iota(jnp.int32, (CH, 1), 0) % Wp
            maskf = (col < W).astype(jnp.float32)

            s_acc = jnp.zeros((1, Cout), jnp.float32)
            q_acc = jnp.zeros((1, Cout), jnp.float32)
            for c in range(n_chunks):
                off = pl.multiple_of(base + c * CH, 8)
                acc = jnp.zeros((CH, Cout), jnp.float32)
                for kh in range(3):
                    # one aligned slab load per kh; the kw = 0,1,2 taps are static
                    # (sublane-shift) slices of the loaded value, not extra VMEM loads.
                    slab = x_ref[0, pl.ds(off + kh * Wp, CH + 8), :]   # (CH+8, Cin) bf16
                    for kw in range(3):
                        tap = slab[kw:kw + CH, :]
                        acc = acc + jnp.dot(tap, w_ref[3 * kh + kw],
                                            preferred_element_type=jnp.float32)
                am = acc * maskf
                s_acc = s_acc + jnp.sum(am, axis=0, keepdims=True)
                q_acc = q_acc + jnp.sum(am * acc, axis=0, keepdims=True)
                raw_ref[pl.ds(off, CH), :] = acc
            sum_ref[...] += s_acc
            ssq_ref[...] += q_acc

        # ------------- phase 1: normalize + residual + ReLU, tiled output ---------- #
        @pl.when(p == 1)
        def _():
            # TODO(synk): one-pass E[x^2]-E[x]^2 can lose precision when |mean| >> std
            # over very large H*W (clamped at 0); fine at these scales.
            mean = sum_ref[...] * (1.0 / n_valid)                       # (1, Cout)
            var = jnp.maximum(ssq_ref[...] * (1.0 / n_valid) - mean * mean, 0.0)
            inv = jax.lax.rsqrt(var + EPS)
            y = (raw_ref[pl.ds(base, M), :] - mean) * inv               # (M, Cout) f32
            for r in range(Th):
                row = y[r * Wp:r * Wp + W, :]                           # aligned static slice
                if has_residual:
                    row = row + r_ref[0, r].astype(jnp.float32)
                o_ref[0, r] = jnp.maximum(row, 0.0).astype(o_ref.dtype)

    return kernel


def _fused_conv3x3_in_relu(x_pad_flat, w_taps, residual, H, W, Wp, row_tile, chunk_rows,
                           out_dtype):
    """Call the fused kernel.

    x_pad_flat : (N, (H+3)*Wp, Cin) bf16  reflection-padded (+guard rows/cols), row-flat
    w_taps     : (9, Cin, Cout) bf16      per-tap weight matrices, (kh, kw) row-major
    residual   : None or (N, H, W, Cout)  added (in f32) before the final ReLU
    returns    : (N, H, W, Cout) out_dtype
    """
    N, P2, Cin = x_pad_flat.shape
    Cout = w_taps.shape[-1]
    Th = row_tile
    assert Wp % 8 == 0 and H % Th == 0 and Th % chunk_rows == 0, (H, Wp, Th, chunk_rows)
    HT = H // Th

    kernel = _make_kernel(H, W, Wp, Th, chunk_rows, Cin, Cout, residual is not None)

    in_specs = [
        pl.BlockSpec((1, P2, Cin), lambda n, p, t: (n, 0, 0)),     # padded image (per-n resident)
        pl.BlockSpec((9, Cin, Cout), lambda n, p, t: (0, 0, 0)),   # weights (resident)
    ]
    args = [x_pad_flat, w_taps]
    if residual is not None:
        # natural-layout residual, tiled over the row axis (only used in phase 1)
        in_specs.append(pl.BlockSpec((1, Th, W, Cout), lambda n, p, t: (n, p * t, 0, 0)))
        args.append(residual)

    # advisory cost estimate for the XLA scheduler
    flops = 2 * N * H * Wp * 9 * Cin * Cout
    bytes_accessed = (sum(int(a.size) * a.dtype.itemsize for a in args)
                      + N * H * W * Cout * jnp.dtype(out_dtype).itemsize)
    cost = pl.CostEstimate(flops=flops, transcendentals=N * HT * Cout,
                           bytes_accessed=bytes_accessed)

    # resident-VMEM estimate (lane padding counted via max(C,128)): double-buffered
    # bf16 padded input + weights + single f32 raw scratch + double-buffered tiles.
    est = (2 * P2 * max(Cin, 128) * 2 + 9 * Cin * max(Cout, 128) * 2
           + H * Wp * max(Cout, 128) * 4
           + 2 * Th * W * max(Cout, 128) * (4 + (4 if residual is not None else 0)))
    ckw = dict(dimension_semantics=("parallel", "arbitrary", "arbitrary"))
    if est > 12 * 1024 * 1024:
        # never shrink below the default scoped budget; cap well under v7x's 64 MiB.
        ckw["vmem_limit_bytes"] = int(min(max(est * 5 // 4, 32 << 20), 48 << 20))

    return pl.pallas_call(
        kernel,
        out_shape=jax.ShapeDtypeStruct((N, H, W, Cout), out_dtype),
        grid=(N, 2, HT),
        in_specs=in_specs,
        out_specs=pl.BlockSpec((1, Th, W, Cout), lambda n, p, t: (n, p * t, 0, 0)),
        scratch_shapes=[pltpu.VMEM((H * Wp, Cout), jnp.float32),   # raw conv rows (wide)
                        pltpu.VMEM((1, Cout), jnp.float32),        # per-channel sum
                        pltpu.VMEM((1, Cout), jnp.float32)],       # per-channel sum of squares
        compiler_params=pltpu.CompilerParams(**ckw),
        cost_estimate=cost,
    )(*args)


# ------------------------------ JAX glue ----------------------------------- #
def _prep_weights(params):
    """One-time (hoisted) weight repack: (Cout, Cin, 3, 3) -> (9, Cin, Cout) bf16."""
    def prep(w):
        cout, cin, _, _ = w.shape
        return jnp.transpose(w, (2, 3, 1, 0)).reshape(9, cin, cout).astype(jnp.bfloat16)
    return {"w1": prep(params["w1"]), "w2": prep(params["w2"])}


def _pad_flat_bf16(x_nhwc, Wp):
    """Reflection-pad(1) + guard rows + zero right-pad to Wp columns, row-flattened bf16.

    (N, H, W, C) -> (N, (H+3)*Wp, C).  The guard rows / extra right columns only feed
    the garbage wide-row outputs, never a valid pixel."""
    N, H, W, C = x_nhwc.shape
    xp = jnp.pad(x_nhwc, ((0, 0), (1, 2), (1, 1), (0, 0)), mode="reflect")
    xp = jnp.pad(xp, ((0, 0), (0, 0), (0, Wp - (W + 2)), (0, 0)))
    return xp.reshape(N, (H + 3) * Wp, C).astype(jnp.bfloat16)


def _choose_row_tile(H, Wp, C):
    """Largest divisor of H whose f32 wide raw-conv tile stays under ~1 MiB."""
    budget = 1 << 20
    best = 1
    for th in range(1, H + 1):
        if H % th == 0 and th * Wp * C * 4 <= budget:
            best = th
    return best


def _choose_chunk_rows(Th, Wp, Cout):
    """Largest divisor of Th keeping the f32 conv accumulator vreg-friendly (<=128 KiB)."""
    budget = 128 << 10
    best = 1
    for ch in range(1, Th + 1):
        if Th % ch == 0 and ch * Wp * Cout * 4 <= budget:
            best = ch
    return best


def basic_block_orj_forward(x_nchw, weights, *, row_tile=None, chunk_rows=None):
    """Forward pass of BasicBlock_orj (stride=1, downsample=None, inplanes == planes)."""
    x = jnp.transpose(x_nchw, (0, 2, 3, 1)).astype(jnp.float32)      # NCHW -> NHWC
    N, H, W, Cin = x.shape
    Cout = weights["w1"].shape[-1]
    assert weights["w1"].shape[1] == Cin
    # TODO(synk): residual path requires Cin == Cout (no downsample support).
    assert Cin == Cout, "downsample / inplanes != planes not supported"

    Wp = _round_up(W + 2, 8)                    # wide row length, sublane aligned
    Th = row_tile if row_tile is not None else _choose_row_tile(H, Wp, Cout)
    CHR = chunk_rows if chunk_rows is not None else _choose_chunk_rows(Th, Wp, Cout)

    # branch 1: reflection pad -> conv1 -> IN -> ReLU  (bf16 intermediate, natural layout;
    # conv bias is a no-op in front of the affine-less InstanceNorm)
    h = _fused_conv3x3_in_relu(_pad_flat_bf16(x, Wp), weights["w1"], None,
                               H, W, Wp, Th, CHR, jnp.bfloat16)

    # branch 2: reflection pad -> conv2 -> IN -> (+residual) -> ReLU
    out = _fused_conv3x3_in_relu(_pad_flat_bf16(h, Wp), weights["w2"], x,
                                 H, W, Wp, Th, CHR, jnp.float32)
    return jnp.transpose(out, (0, 3, 1, 2))                           # NHWC -> NCHW


# --------------------------- pure-JAX reference ----------------------------- #
def _ref_forward(x_nchw, params, *, conv_dtype=jnp.float32):
    """Reference: reflection pad 1 + 'valid' 3x3 conv (+bias) + IN + ReLU + residual.

    conv_dtype=bfloat16 mirrors the kernel's bf16-operand / f32-accumulate matmul policy.
    """
    def conv3x3(x, w, b):
        xp = jnp.pad(x, ((0, 0), (0, 0), (1, 1), (1, 1)), mode="reflect")
        out = jax.lax.conv_general_dilated(
            xp.astype(conv_dtype), w.astype(conv_dtype),
            window_strides=(1, 1), padding="VALID",
            dimension_numbers=("NCHW", "OIHW", "NCHW"),
            preferred_element_type=jnp.float32)
        return out + b[None, :, None, None]

    def inorm(x):
        mean = x.mean(axis=(2, 3), keepdims=True)
        var = ((x - mean) ** 2).mean(axis=(2, 3), keepdims=True)
        return (x - mean) * jax.lax.rsqrt(var + EPS)

    h = jax.nn.relu(inorm(conv3x3(x_nchw, params["w1"], params["b1"])))
    out = inorm(conv3x3(h, params["w2"], params["b2"])) + x_nchw
    return jax.nn.relu(out)


# --------------------------------- main ------------------------------------ #
if __name__ == "__main__":
    # default-ish config: inplanes == planes, stride=1, downsample=None
    N, C, H, W = 2, 4, 16, 16
    inplanes = planes = C

    key = jax.random.PRNGKey(0)
    kx, kw1, kb1, kw2, kb2 = jax.random.split(key, 5)
    params = {
        "w1": jax.random.normal(kw1, (planes, inplanes, 3, 3), jnp.float32)
              / np.sqrt(9 * inplanes),
        "b1": jax.random.normal(kb1, (planes,), jnp.float32) * 0.1,
        "w2": jax.random.normal(kw2, (planes, planes, 3, 3), jnp.float32)
              / np.sqrt(9 * planes),
        "b2": jax.random.normal(kb2, (planes,), jnp.float32) * 0.1,
    }
    x = jax.random.normal(kx, (N, C, H, W), jnp.float32)

    weights = _prep_weights(params)   # hoisted, one-time weight repack (bf16 taps)

    # row_tile=8 -> 2 row tiles (exercises the cross-tile IN-stat accumulation and the
    # per-tile phase-1 output writes); chunk_rows=4 -> 2 conv chunks per tile (exercises
    # the vreg-blocked accumulator path).
    fwd = jax.jit(functools.partial(basic_block_orj_forward, row_tile=8, chunk_rows=4))
    out = jax.block_until_ready(fwd(x, weights))
    assert out.shape == (N, planes, H, W), out.shape

    # validate against (a) a reference with the same bf16-in / f32-accumulate matmul
    # policy (tight) and (b) the full-f32 reference (loose, bf16 rounding of operands).
    ref_bf16 = jax.block_until_ready(_ref_forward(x, params, conv_dtype=jnp.bfloat16))
    ref_f32 = jax.block_until_ready(_ref_forward(x, params, conv_dtype=jnp.float32))
    err_bf16 = float(jnp.max(jnp.abs(out - ref_bf16)))
    err_f32 = float(jnp.max(jnp.abs(out - ref_f32)))
    assert err_bf16 < 2e-2, f"max abs error vs bf16-conv reference: {err_bf16}"
    assert err_f32 < 6e-2, f"max abs error vs f32 reference: {err_f32}"

    print("KERNEL_OK")
</pallas_src>

<mosaic_0001>
module attributes {stable_mosaic.version = 11 : i64} {
  func.func @kernel(%arg0: i32, %arg1: i32, %arg2: i32, %arg3: memref<1x456x4xbf16, #tpu.memory_space<vmem>>, %arg4: memref<9x4x4xbf16, #tpu.memory_space<vmem>>, %arg5: memref<1x8x16x4xbf16, #tpu.memory_space<vmem>>, %arg6: memref<384x4xf32, #tpu.memory_space<vmem>>, %arg7: memref<1x4xf32, #tpu.memory_space<vmem>>, %arg8: memref<1x4xf32, #tpu.memory_space<vmem>>) attributes {dimension_semantics = [#tpu.dimension_semantics<parallel>, #tpu.dimension_semantics<arbitrary>, #tpu.dimension_semantics<arbitrary>], iteration_bounds = array<i64: 2, 2, 2>, scalar_prefetch = 0 : i64, scratch_operands = 3 : i64, tpu.core_type = #tpu.core_type<tc>, window_params = [{transform_indices = @transform_0, window_bounds = array<i64: 1, 456, 4>}, {pipeline_mode = #tpu.pipeline_mode<synchronous>, transform_indices = @transform_1, window_bounds = array<i64: 9, 4, 4>}, {transform_indices = @transform_2, window_bounds = array<i64: 1, 8, 16, 4>}]} {
    %c192_i32 = arith.constant 192 : i32
    %0 = arith.muli %arg2, %c192_i32 : i32
    %1 = tpu.assume_multiple %0, 8 : i32
    %c0_i32 = arith.constant 0 : i32
    %2 = arith.cmpi eq, %arg1, %c0_i32 : i32
    %3 = arith.extui %2 : i1 to i32
    %c0_i32_0 = arith.constant 0 : i32
    %4 = arith.cmpi ne, %3, %c0_i32_0 : i32
    scf.if %4 {
      %c0_i32_2 = arith.constant 0 : i32
      %8 = arith.cmpi eq, %arg2, %c0_i32_2 : i32
      %9 = arith.extui %8 : i1 to i32
      %c0_i32_3 = arith.constant 0 : i32
      %10 = arith.cmpi ne, %9, %c0_i32_3 : i32
      scf.if %10 {
        %cst_107 = arith.constant 0.000000e+00 : f32
        %182 = vector.broadcast %cst_107 : f32 to vector<1x4xf32>
        %c0_108 = arith.constant 0 : index
        %c0_109 = arith.constant 0 : index
        %183 = vector.load %arg7[%c0_108, %c0_109] : memref<1x4xf32, #tpu.memory_space<vmem>>, vector<1x4xf32>
        tpu.vector_store %arg7[%c0_108, %c0_109], %182 {strides = array<i32>} : memref<1x4xf32, #tpu.memory_space<vmem>>, vector<1x4xf32>,
        %cst_110 = arith.constant 0.000000e+00 : f32
        %184 = vector.broadcast %cst_110 : f32 to vector<1x4xf32>
        %c0_111 = arith.constant 0 : index
        %c0_112 = arith.constant 0 : index
        %185 = vector.load %arg8[%c0_111, %c0_112] : memref<1x4xf32, #tpu.memory_space<vmem>>, vector<1x4xf32>
        tpu.vector_store %arg8[%c0_111, %c0_112], %184 {strides = array<i32>} : memref<1x4xf32, #tpu.memory_space<vmem>>, vector<1x4xf32>,
      } else {
      }
      %11 = tpu.iota {dimensions = array<i32: 0>} : vector<96x1xi32>
      %c24_i32 = arith.constant 24 : i32
      %c0_i32_4 = arith.constant 0 : i32
      %12 = arith.cmpi eq, %c24_i32, %c0_i32_4 : i32
      %c1_i32_5 = arith.constant 1 : i32
      %13 = arith.select %12, %c1_i32_5, %c24_i32 : i32
      %14 = vector.broadcast %13 : i32 to vector<96x1xi32>
      %15 = arith.remsi %11, %14 : vector<96x1xi32>
      %c0_i32_6 = arith.constant 0 : i32
      %16 = vector.broadcast %c0_i32_6 : i32 to vector<96x1xi32>
      %17 = arith.cmpi ne, %15, %16 : vector<96x1xi32>
      %c0_i32_7 = arith.constant 0 : i32
      %18 = vector.broadcast %c0_i32_7 : i32 to vector<96x1xi32>
      %19 = arith.cmpi slt, %15, %18 : vector<96x1xi32>
      %c0_i32_8 = arith.constant 0 : i32
      %20 = arith.cmpi slt, %13, %c0_i32_8 : i32
      %21 = vector.broadcast %20 : i1 to vector<96x1xi1>
      %22 = vector.broadcast %21 : vector<96x1xi1> to vector<96x1xi1>
      %23 = arith.xori %19, %22 : vector<96x1xi1>
      %24 = arith.andi %23, %17 : vector<96x1xi1>
      %25 = vector.broadcast %13 : i32 to vector<96x1xi32>
      %26 = arith.addi %15, %25 : vector<96x1xi32>
      %27 = arith.select %24, %26, %15 : vector<96x1xi1>, vector<96x1xi32>
      %c16_i32 = arith.constant 16 : i32
      %28 = vector.broadcast %c16_i32 : i32 to vector<96x1xi32>
      %29 = arith.cmpi slt, %27, %28 : vector<96x1xi32>
      %30 = arith.extui %29 : vector<96x1xi1> to vector<96x1xi32>
      %31 = arith.sitofp %30 : vector<96x1xi32> to vector<96x1xf32>
      %cst = arith.constant 0.000000e+00 : f32
      %32 = vector.broadcast %cst : f32 to vector<1x4xf32>
      %cst_9 = arith.constant 0.000000e+00 : f32
      %33 = vector.broadcast %cst_9 : f32 to vector<1x4xf32>
      %c0_i32_10 = arith.constant 0 : i32
      %34 = arith.addi %1, %c0_i32_10 : i32
      %35 = tpu.assume_multiple %34, 8 : i32
      %cst_11 = arith.constant 0.000000e+00 : f32
      %36 = vector.broadcast %cst_11 : f32 to vector<96x4xf32>
      %c0_i32_12 = arith.constant 0 : i32
      %37 = arith.addi %35, %c0_i32_12 : i32
      %c0 = arith.constant 0 : index
      %38 = arith.index_cast %37 : i32 to index
      %c0_13 = arith.constant 0 : index
      %39 = vector.load %arg3[%c0, %38, %c0_13] : memref<1x456x4xbf16, #tpu.memory_space<vmem>>, vector<1x104x4xbf16>
      %40 = vector.shape_cast %39 : vector<1x104x4xbf16> to vector<104x4xbf16>
      %41 = vector.extract_strided_slice %40 {offsets = [0, 0], sizes = [96, 4], strides = [1, 1]} : vector<104x4xbf16> to vector<96x4xbf16>
      %c0_14 = arith.constant 0 : index
      %c0_15 = arith.constant 0 : index
      %c0_16 = arith.constant 0 : index
      %42 = vector.load %arg4[%c0_14, %c0_15, %c0_16] : memref<9x4x4xbf16, #tpu.memory_space<vmem>>, vector<1x4x4xbf16>
      %43 = vector.shape_cast %42 : vector<1x4x4xbf16> to vector<4x4xbf16>
      %cst_17 = arith.constant dense<0.000000e+00> : vector<96x4xf32>
      %44 = tpu.matmul %41, %43, %cst_17 {dimension_numbers = #tpu.dot_dimension_numbers<[1], [0], [0], [1], [0, 0, 1, 1], [], []>} : vector<96x4xbf16>, vector<4x4xbf16>, vector<96x4xf32> -> vector<96x4xf32>
      %45 = arith.addf %36, %44 : vector<96x4xf32>
      %46 = vector.extract_strided_slice %40 {offsets = [1, 0], sizes = [96, 4], strides = [1, 1]} : vector<104x4xbf16> to vector<96x4xbf16>
      %c1 = arith.constant 1 : index
      %c0_18 = arith.constant 0 : index
      %c0_19 = arith.constant 0 : index
      %47 = vector.load %arg4[%c1, %c0_18, %c0_19] : memref<9x4x4xbf16, #tpu.memory_space<vmem>>, vector<1x4x4xbf16>
      %48 = vector.shape_cast %47 : vector<1x4x4xbf16> to vector<4x4xbf16>
      %cst_20 = arith.constant dense<0.000000e+00> : vector<96x4xf32>
      %49 = tpu.matmul %46, %48, %cst_20 {dimension_numbers = #tpu.dot_dimension_numbers<[1], [0], [0], [1], [0, 0, 1, 1], [], []>} : vector<96x4xbf16>, vector<4x4xbf16>, vector<96x4xf32> -> vector<96x4xf32>
      %50 = arith.addf %45, %49 : vector<96x4xf32>
      %51 = vector.extract_strided_slice %40 {offsets = [2, 0], sizes = [96, 4], strides = [1, 1]} : vector<104x4xbf16> to vector<96x4xbf16>
      %c2 = arith.constant 2 : index
      %c0_21 = arith.constant 0 : index
      %c0_22 = arith.constant 0 : index
      %52 = vector.load %arg4[%c2, %c0_21, %c0_22] : memref<9x4x4xbf16, #tpu.memory_space<vmem>>, vector<1x4x4xbf16>
      %53 = vector.shape_cast %52 : vector<1x4x4xbf16> to vector<4x4xbf16>
      %cst_23 = arith.constant dense<0.000000e+00> : vector<96x4xf32>
      %54 = tpu.matmul %51, %53, %cst_23 {dimension_numbers = #tpu.dot_dimension_numbers<[1], [0], [0], [1], [0, 0, 1, 1], [], []>} : vector<96x4xbf16>, vector<4x4xbf16>, vector<96x4xf32> -> vector<96x4xf32>
      %55 = arith.addf %50, %54 : vector<96x4xf32>
      %c24_i32_24 = arith.constant 24 : i32
      %56 = arith.addi %35, %c24_i32_24 : i32
      %c0_25 = arith.constant 0 : index
      %57 = arith.index_cast %56 : i32 to index
      %c0_26 = arith.constant 0 : index
      %58 = vector.load %arg3[%c0_25, %57, %c0_26] : memref<1x456x4xbf16, #tpu.memory_space<vmem>>, vector<1x104x4xbf16>
      %59 = vector.shape_cast %58 : vector<1x104x4xbf16> to vector<104x4xbf16>
      %60 = vector.extract_strided_slice %59 {offsets = [0, 0], sizes = [96, 4], strides = [1, 1]} : vector<104x4xbf16> to vector<96x4xbf16>
      %c3 = arith.constant 3 : index
      %c0_27 = arith.constant 0 : index
      %c0_28 = arith.constant 0 : index
      %61 = vector.load %arg4[%c3, %c0_27, %c0_28] : memref<9x4x4xbf16, #tpu.memory_space<vmem>>, vector<1x4x4xbf16>
      %62 = vector.shape_cast %61 : vector<1x4x4xbf16> to vector<4x4xbf16>
      %cst_29 = arith.constant dense<0.000000e+00> : vector<96x4xf32>
      %63 = tpu.matmul %60, %62, %cst_29 {dimension_numbers = #tpu.dot_dimension_numbers<[1], [0], [0], [1], [0, 0, 1, 1], [], []>} : vector<96x4xbf16>, vector<4x4xbf16>, vector<96x4xf32> -> vector<96x4xf32>
      %64 = arith.addf %55, %63 : vector<96x4xf32>
      %65 = vector.extract_strided_slice %59 {offsets = [1, 0], sizes = [96, 4], strides = [1, 1]} : vector<104x4xbf16> to vector<96x4xbf16>
      %c4 = arith.constant 4 : index
      %c0_30 = arith.constant 0 : index
      %c0_31 = arith.constant 0 : index
      %66 = vector.load %arg4[%c4, %c0_30, %c0_31] : memref<9x4x4xbf16, #tpu.memory_space<vmem>>, vector<1x4x4xbf16>
      %67 = vector.shape_cast %66 : vector<1x4x4xbf16> to vector<4x4xbf16>
      %cst_32 = arith.constant dense<0.000000e+00> : vector<96x4xf32>
      %68 = tpu.matmul %65, %67, %cst_32 {dimension_numbers = #tpu.dot_dimension_numbers<[1], [0], [0], [1], [0, 0, 1, 1], [], []>} : vector<96x4xbf16>, vector<4x4xbf16>, vector<96x4xf32> -> vector<96x4xf32>
      %69 = arith.addf %64, %68 : vector<96x4xf32>
      %70 = vector.extract_strided_slice %59 {offsets = [2, 0], sizes = [96, 4], strides = [1, 1]} : vector<104x4xbf16> to vector<96x4xbf16>
      %c5 = arith.constant 5 : index
      %c0_33 = arith.constant 0 : index
      %c0_34 = arith.constant 0 : index
      %71 = vector.load %arg4[%c5, %c0_33, %c0_34] : memref<9x4x4xbf16, #tpu.memory_space<vmem>>, vector<1x4x4xbf16>
      %72 = vector.shape_cast %71 : vector<1x4x4xbf16> to vector<4x4xbf16>
      %cst_35 = arith.constant dense<0.000000e+00> : vector<96x4xf32>
      %73 = tpu.matmul %70, %72, %cst_35 {dimension_numbers = #tpu.dot_dimension_numbers<[1], [0], [0], [1], [0, 0, 1, 1], [], []>} : vector<96x4xbf16>, vector<4x4xbf16>, vector<96x4xf32> -> vector<96x4xf32>
      %74 = arith.addf %69, %73 : vector<96x4xf32>
      %c48_i32 = arith.constant 48 : i32
      %75 = arith.addi %35, %c48_i32 : i32
      %c0_36 = arith.constant 0 : index
      %76 = arith.index_cast %75 : i32 to index
      %c0_37 = arith.constant 0 : index
      %77 = vector.load %arg3[%c0_36, %76, %c0_37] : memref<1x456x4xbf16, #tpu.memory_space<vmem>>, vector<1x104x4xbf16>
      %78 = vector.shape_cast %77 : vector<1x104x4xbf16> to vector<104x4xbf16>
      %79 = vector.extract_strided_slice %78 {offsets = [0, 0], sizes = [96, 4], strides = [1, 1]} : vector<104x4xbf16> to vector<96x4xbf16>
      %c6 = arith.constant 6 : index
      %c0_38 = arith.constant 0 : index
      %c0_39 = arith.constant 0 : index
      %80 = vector.load %arg4[%c6, %c0_38, %c0_39] : memref<9x4x4xbf16, #tpu.memory_space<vmem>>, vector<1x4x4xbf16>
      %81 = vector.shape_cast %80 : vector<1x4x4xbf16> to vector<4x4xbf16>
      %cst_40 = arith.constant dense<0.000000e+00> : vector<96x4xf32>
      %82 = tpu.matmul %79, %81, %cst_40 {dimension_numbers = #tpu.dot_dimension_numbers<[1], [0], [0], [1], [0, 0, 1, 1], [], []>} : vector<96x4xbf16>, vector<4x4xbf16>, vector<96x4xf32> -> vector<96x4xf32>
      %83 = arith.addf %74, %82 : vector<96x4xf32>
      %84 = vector.extract_strided_slice %78 {offsets = [1, 0], sizes = [96, 4], strides = [1, 1]} : vector<104x4xbf16> to vector<96x4xbf16>
      %c7 = arith.constant 7 : index
      %c0_41 = arith.constant 0 : index
      %c0_42 = arith.constant 0 : index
      %85 = vector.load %arg4[%c7, %c0_41, %c0_42] : memref<9x4x4xbf16, #tpu.memory_space<vmem>>, vector<1x4x4xbf16>
      %86 = vector.shape_cast %85 : vector<1x4x4xbf16> to vector<4x4xbf16>
      %cst_43 = arith.constant dense<0.000000e+00> : vector<96x4xf32>
      %87 = tpu.matmul %84, %86, %cst_43 {dimension_numbers = #tpu.dot_dimension_numbers<[1], [0], [0], [1], [0, 0, 1, 1], [], []>} : vector<96x4xbf16>, vector<4x4xbf16>, vector<96x4xf32> -> vector<96x4xf32>
      %88 = arith.addf %83, %87 : vector<96x4xf32>
      %89 = vector.extract_strided_slice %78 {offsets = [2, 0], sizes = [96, 4], strides = [1, 1]} : vector<104x4xbf16> to vector<96x4xbf16>
      %c8 = arith.constant 8 : index
      %c0_44 = arith.constant 0 : index
      %c0_45 = arith.constant 0 : index
      %90 = vector.load %arg4[%c8, %c0_44, %c0_45] : memref<9x4x4xbf16, #tpu.memory_space<vmem>>, vector<1x4x4xbf16>
      %91 = vector.shape_cast %90 : vector<1x4x4xbf16> to vector<4x4xbf16>
      %cst_46 = arith.constant dense<0.000000e+00> : vector<96x4xf32>
      %92 = tpu.matmul %89, %91, %cst_46 {dimension_numbers = #tpu.dot_dimension_numbers<[1], [0], [0], [1], [0, 0, 1, 1], [], []>} : vector<96x4xbf16>, vector<4x4xbf16>, vector<96x4xf32> -> vector<96x4xf32>
      %93 = arith.addf %88, %92 : vector<96x4xf32>
      %94 = vector.broadcast %31 : vector<96x1xf32> to vector<96x4xf32>
      %95 = arith.mulf %93, %94 : vector<96x4xf32>
      %cst_47 = arith.constant dense<0.000000e+00> : vector<4xf32>
      %96 = vector.multi_reduction <add>, %95, %cst_47 [0] : vector<96x4xf32> to vector<4xf32>
      %97 = vector.shape_cast %96 : vector<4xf32> to vector<1x4xf32>
      %98 = arith.addf %32, %97 : vector<1x4xf32>
      %99 = arith.mulf %95, %93 : vector<96x4xf32>
      %cst_48 = arith.constant dense<0.000000e+00> : vector<4xf32>
      %100 = vector.multi_reduction <add>, %99, %cst_48 [0] : vector<96x4xf32> to vector<4xf32>
      %101 = vector.shape_cast %100 : vector<4xf32> to vector<1x4xf32>
      %102 = arith.addf %33, %101 : vector<1x4xf32>
      %103 = arith.index_cast %35 : i32 to index
      %c0_49 = arith.constant 0 : index
      %104 = vector.load %arg6[%103, %c0_49] : memref<384x4xf32, #tpu.memory_space<vmem>>, vector<96x4xf32>
      tpu.vector_store %arg6[%103, %c0_49], %93 {strides = array<i32>} : memref<384x4xf32, #tpu.memory_space<vmem>>, vector<96x4xf32>,
      %c96_i32 = arith.constant 96 : i32
      %105 = arith.addi %1, %c96_i32 : i32
      %106 = tpu.assume_multiple %105, 8 : i32
      %cst_50 = arith.constant 0.000000e+00 : f32
      %107 = vector.broadcast %cst_50 : f32 to vector<96x4xf32>
      %c0_i32_51 = arith.constant 0 : i32
      %108 = arith.addi %106, %c0_i32_51 : i32
      %c0_52 = arith.constant 0 : index
      %109 = arith.index_cast %108 : i32 to index
      %c0_53 = arith.constant 0 : index
      %110 = vector.load %arg3[%c0_52, %109, %c0_53] : memref<1x456x4xbf16, #tpu.memory_space<vmem>>, vector<1x104x4xbf16>
      %111 = vector.shape_cast %110 : vector<1x104x4xbf16> to vector<104x4xbf16>
      %112 = vector.extract_strided_slice %111 {offsets = [0, 0], sizes = [96, 4], strides = [1, 1]} : vector<104x4xbf16> to vector<96x4xbf16>
      %c0_54 = arith.constant 0 : index
      %c0_55 = arith.constant 0 : index
      %c0_56 = arith.constant 0 : index
      %113 = vector.load %arg4[%c0_54, %c0_55, %c0_56] : memref<9x4x4xbf16, #tpu.memory_space<vmem>>, vector<1x4x4xbf16>
      %114 = vector.shape_cast %113 : vector<1x4x4xbf16> to vector<4x4xbf16>
      %cst_57 = arith.constant dense<0.000000e+00> : vector<96x4xf32>
      %115 = tpu.matmul %112, %114, %cst_57 {dimension_numbers = #tpu.dot_dimension_numbers<[1], [0], [0], [1], [0, 0, 1, 1], [], []>} : vector<96x4xbf16>, vector<4x4xbf16>, vector<96x4xf32> -> vector<96x4xf32>
      %116 = arith.addf %107, %115 : vector<96x4xf32>
      %117 = vector.extract_strided_slice %111 {offsets = [1, 0], sizes = [96, 4], strides = [1, 1]} : vector<104x4xbf16> to vector<96x4xbf16>
      %c1_58 = arith.constant 1 : index
      %c0_59 = arith.constant 0 : index
      %c0_60 = arith.constant 0 : index
      %118 = vector.load %arg4[%c1_58, %c0_59, %c0_60] : memref<9x4x4xbf16, #tpu.memory_space<vmem>>, vector<1x4x4xbf16>
      %119 = vector.shape_cast %118 : vector<1x4x4xbf16> to vector<4x4xbf16>
      %cst_61 = arith.constant dense<0.000000e+00> : vector<96x4xf32>
      %120 = tpu.matmul %117, %119, %cst_61 {dimension_numbers = #tpu.dot_dimension_numbers<[1], [0], [0], [1], [0, 0, 1, 1], [], []>} : vector<96x4xbf16>, vector<4x4xbf16>, vector<96x4xf32> -> vector<96x4xf32>
      %121 = arith.addf %116, %120 : vector<96x4xf32>
      %122 = vector.extract_strided_slice %111 {offsets = [2, 0], sizes = [96, 4], strides = [1, 1]} : vector<104x4xbf16> to vector<96x4xbf16>
      %c2_62 = arith.constant 2 : index
      %c0_63 = arith.constant 0 : index
      %c0_64 = arith.constant 0 : index
      %123 = vector.load %arg4[%c2_62, %c0_63, %c0_64] : memref<9x4x4xbf16, #tpu.memory_space<vmem>>, vector<1x4x4xbf16>
      %124 = vector.shape_cast %123 : vector<1x4x4xbf16> to vector<4x4xbf16>
      %cst_65 = arith.constant dense<0.000000e+00> : vector<96x4xf32>
      %125 = tpu.matmul %122, %124, %cst_65 {dimension_numbers = #tpu.dot_dimension_numbers<[1], [0], [0], [1], [0, 0, 1, 1], [], []>} : vector<96x4xbf16>, vector<4x4xbf16>, vector<96x4xf32> -> vector<96x4xf32>
      %126 = arith.addf %121, %125 : vector<96x4xf32>
      %c24_i32_66 = arith.constant 24 : i32
      %127 = arith.addi %106, %c24_i32_66 : i32
      %c0_67 = arith.constant 0 : index
      %128 = arith.index_cast %127 : i32 to index
      %c0_68 = arith.constant 0 : index
      %129 = vector.load %arg3[%c0_67, %128, %c0_68] : memref<1x456x4xbf16, #tpu.memory_space<vmem>>, vector<1x104x4xbf16>
      %130 = vector.shape_cast %129 : vector<1x104x4xbf16> to vector<104x4xbf16>
      %131 = vector.extract_strided_slice %130 {offsets = [0, 0], sizes = [96, 4], strides = [1, 1]} : vector<104x4xbf16> to vector<96x4xbf16>
      %c3_69 = arith.constant 3 : index
      %c0_70 = arith.constant 0 : index
      %c0_71 = arith.constant 0 : index
      %132 = vector.load %arg4[%c3_69, %c0_70, %c0_71] : memref<9x4x4xbf16, #tpu.memory_space<vmem>>, vector<1x4x4xbf16>
      %133 = vector.shape_cast %132 : vector<1x4x4xbf16> to vector<4x4xbf16>
      %cst_72 = arith.constant dense<0.000000e+00> : vector<96x4xf32>
      %134 = tpu.matmul %131, %133, %cst_72 {dimension_numbers = #tpu.dot_dimension_numbers<[1], [0], [0], [1], [0, 0, 1, 1], [], []>} : vector<96x4xbf16>, vector<4x4xbf16>, vector<96x4xf32> -> vector<96x4xf32>
      %135 = arith.addf %126, %134 : vector<96x4xf32>
      %136 = vector.extract_strided_slice %130 {offsets = [1, 0], sizes = [96, 4], strides = [1, 1]} : vector<104x4xbf16> to vector<96x4xbf16>
      %c4_73 = arith.constant 4 : index
      %c0_74 = arith.constant 0 : index
      %c0_75 = arith.constant 0 : index
      %137 = vector.load %arg4[%c4_73, %c0_74, %c0_75] : memref<9x4x4xbf16, #tpu.memory_space<vmem>>, vector<1x4x4xbf16>
      %138 = vector.shape_cast %137 : vector<1x4x4xbf16> to vector<4x4xbf16>
      %cst_76 = arith.constant dense<0.000000e+00> : vector<96x4xf32>
      %139 = tpu.matmul %136, %138, %cst_76 {dimension_numbers = #tpu.dot_dimension_numbers<[1], [0], [0], [1], [0, 0, 1, 1], [], []>} : vector<96x4xbf16>, vector<4x4xbf16>, vector<96x4xf32> -> vector<96x4xf32>
      %140 = arith.addf %135, %139 : vector<96x4xf32>
      %141 = vector.extract_strided_slice %130 {offsets = [2, 0], sizes = [96, 4], strides = [1, 1]} : vector<104x4xbf16> to vector<96x4xbf16>
      %c5_77 = arith.constant 5 : index
      %c0_78 = arith.constant 0 : index
      %c0_79 = arith.constant 0 : index
      %142 = vector.load %arg4[%c5_77, %c0_78, %c0_79] : memref<9x4x4xbf16, #tpu.memory_space<vmem>>, vector<1x4x4xbf16>
      %143 = vector.shape_cast %142 : vector<1x4x4xbf16> to vector<4x4xbf16>
      %cst_80 = arith.constant dense<0.000000e+00> : vector<96x4xf32>
      %144 = tpu.matmul %141, %143, %cst_80 {dimension_numbers = #tpu.dot_dimension_numbers<[1], [0], [0], [1], [0, 0, 1, 1], [], []>} : vector<96x4xbf16>, vector<4x4xbf16>, vector<96x4xf32> -> vector<96x4xf32>
      %145 = arith.addf %140, %144 : vector<96x4xf32>
      %c48_i32_81 = arith.constant 48 : i32
      %146 = arith.addi %106, %c48_i32_81 : i32
      %c0_82 = arith.constant 0 : index
      %147 = arith.index_cast %146 : i32 to index
      %c0_83 = arith.constant 0 : index
      %148 = vector.load %arg3[%c0_82, %147, %c0_83] : memref<1x456x4xbf16, #tpu.memory_space<vmem>>, vector<1x104x4xbf16>
      %149 = vector.shape_cast %148 : vector<1x104x4xbf16> to vector<104x4xbf16>
      %150 = vector.extract_strided_slice %149 {offsets = [0, 0], sizes = [96, 4], strides = [1, 1]} : vector<104x4xbf16> to vector<96x4xbf16>
      %c6_84 = arith.constant 6 : index
      %c0_85 = arith.constant 0 : index
      %c0_86 = arith.constant 0 : index
      %151 = vector.load %arg4[%c6_84, %c0_85, %c0_86] : memref<9x4x4xbf16, #tpu.memory_space<vmem>>, vector<1x4x4xbf16>
      %152 = vector.shape_cast %151 : vector<1x4x4xbf16> to vector<4x4xbf16>
      %cst_87 = arith.constant dense<0.000000e+00> : vector<96x4xf32>
      %153 = tpu.matmul %150, %152, %cst_87 {dimension_numbers = #tpu.dot_dimension_numbers<[1], [0], [0], [1], [0, 0, 1, 1], [], []>} : vector<96x4xbf16>, vector<4x4xbf16>, vector<96x4xf32> -> vector<96x4xf32>
      %154 = arith.addf %145, %153 : vector<96x4xf32>
      %155 = vector.extract_strided_slice %149 {offsets = [1, 0], sizes = [96, 4], strides = [1, 1]} : vector<104x4xbf16> to vector<96x4xbf16>
      %c7_88 = arith.constant 7 : index
      %c0_89 = arith.constant 0 : index
      %c0_90 = arith.constant 0 : index
      %156 = vector.load %arg4[%c7_88, %c0_89, %c0_90] : memref<9x4x4xbf16, #tpu.memory_space<vmem>>, vector<1x4x4xbf16>
      %157 = vector.shape_cast %156 : vector<1x4x4xbf16> to vector<4x4xbf16>
      %cst_91 = arith.constant dense<0.000000e+00> : vector<96x4xf32>
      %158 = tpu.matmul %155, %157, %cst_91 {dimension_numbers = #tpu.dot_dimension_numbers<[1], [0], [0], [1], [0, 0, 1, 1], [], []>} : vector<96x4xbf16>, vector<4x4xbf16>, vector<96x4xf32> -> vector<96x4xf32>
      %159 = arith.addf %154, %158 : vector<96x4xf32>
      %160 = vector.extract_strided_slice %149 {offsets = [2, 0], sizes = [96, 4], strides = [1, 1]} : vector<104x4xbf16> to vector<96x4xbf16>
      %c8_92 = arith.constant 8 : index
      %c0_93 = arith.constant 0 : index
      %c0_94 = arith.constant 0 : index
      %161 = vector.load %arg4[%c8_92, %c0_93, %c0_94] : memref<9x4x4xbf16, #tpu.memory_space<vmem>>, vector<1x4x4xbf16>
      %162 = vector.shape_cast %161 : vector<1x4x4xbf16> to vector<4x4xbf16>
      %cst_95 = arith.constant dense<0.000000e+00> : vector<96x4xf32>
      %163 = tpu.matmul %160, %162, %cst_95 {dimension_numbers = #tpu.dot_dimension_numbers<[1], [0], [0], [1], [0, 0, 1, 1], [], []>} : vector<96x4xbf16>, vector<4x4xbf16>, vector<96x4xf32> -> vector<96x4xf32>
      %164 = arith.addf %159, %163 : vector<96x4xf32>
      %165 = vector.broadcast %31 : vector<96x1xf32> to vector<96x4xf32>
      %166 = arith.mulf %164, %165 : vector<96x4xf32>
      %cst_96 = arith.constant dense<0.000000e+00> : vector<4xf32>
      %167 = vector.multi_reduction <add>, %166, %cst_96 [0] : vector<96x4xf32> to vector<4xf32>
      %168 = vector.shape_cast %167 : vector<4xf32> to vector<1x4xf32>
      %169 = arith.addf %98, %168 : vector<1x4xf32>
      %170 = arith.mulf %166, %164 : vector<96x4xf32>
      %cst_97 = arith.constant dense<0.000000e+00> : vector<4xf32>
      %171 = vector.multi_reduction <add>, %170, %cst_97 [0] : vector<96x4xf32> to vector<4xf32>
      %172 = vector.shape_cast %171 : vector<4xf32> to vector<1x4xf32>
      %173 = arith.addf %102, %172 : vector<1x4xf32>
      %174 = arith.index_cast %106 : i32 to index
      %c0_98 = arith.constant 0 : index
      %175 = vector.load %arg6[%174, %c0_98] : memref<384x4xf32, #tpu.memory_space<vmem>>, vector<96x4xf32>
      tpu.vector_store %arg6[%174, %c0_98], %164 {strides = array<i32>} : memref<384x4xf32, #tpu.memory_space<vmem>>, vector<96x4xf32>,
      %c0_99 = arith.constant 0 : index
      %c0_100 = arith.constant 0 : index
      %176 = vector.load %arg7[%c0_99, %c0_100] : memref<1x4xf32, #tpu.memory_space<vmem>>, vector<1x4xf32>
      %177 = arith.addf %176, %169 : vector<1x4xf32>
      %c0_101 = arith.constant 0 : index
      %c0_102 = arith.constant 0 : index
      %178 = vector.load %arg7[%c0_101, %c0_102] : memref<1x4xf32, #tpu.memory_space<vmem>>, vector<1x4xf32>
      tpu.vector_store %arg7[%c0_101, %c0_102], %177 {strides = array<i32>} : memref<1x4xf32, #tpu.memory_space<vmem>>, vector<1x4xf32>,
      %c0_103 = arith.constant 0 : index
      %c0_104 = arith.constant 0 : index
      %179 = vector.load %arg8[%c0_103, %c0_104] : memref<1x4xf32, #tpu.memory_space<vmem>>, vector<1x4xf32>
      %180 = arith.addf %179, %173 : vector<1x4xf32>
      %c0_105 = arith.constant 0 : index
      %c0_106 = arith.constant 0 : index
      %181 = vector.load %arg8[%c0_105, %c0_106] : memref<1x4xf32, #tpu.memory_space<vmem>>, vector<1x4xf32>
      tpu.vector_store %arg8[%c0_105, %c0_106], %180 {strides = array<i32>} : memref<1x4xf32, #tpu.memory_space<vmem>>, vector<1x4xf32>,
    } else {
    }
    %c1_i32 = arith.constant 1 : i32
    %5 = arith.cmpi eq, %arg1, %c1_i32 : i32
    %6 = arith.extui %5 : i1 to i32
    %c0_i32_1 = arith.constant 0 : i32
    %7 = arith.cmpi ne, %6, %c0_i32_1 : i32
    scf.if %7 {
      %c0 = arith.constant 0 : index
      %c0_2 = arith.constant 0 : index
      %8 = vector.load %arg7[%c0, %c0_2] : memref<1x4xf32, #tpu.memory_space<vmem>>, vector<1x4xf32>
      %cst = arith.constant 3.906250e-03 : f32
      %9 = vector.broadcast %cst : f32 to vector<1x4xf32>
      %10 = arith.mulf %8, %9 : vector<1x4xf32>
      %c0_3 = arith.constant 0 : index
      %c0_4 = arith.constant 0 : index
      %11 = vector.load %arg8[%c0_3, %c0_4] : memref<1x4xf32, #tpu.memory_space<vmem>>, vector<1x4xf32>
      %cst_5 = arith.constant 3.906250e-03 : f32
      %12 = vector.broadcast %cst_5 : f32 to vector<1x4xf32>
      %13 = arith.mulf %11, %12 : vector<1x4xf32>
      %14 = arith.mulf %10, %10 : vector<1x4xf32>
      %15 = arith.subf %13, %14 : vector<1x4xf32>
      %cst_6 = arith.constant 0.000000e+00 : f32
      %16 = vector.broadcast %cst_6 : f32 to vector<1x4xf32>
      %17 = arith.maximumf %15, %16 : vector<1x4xf32>
      %cst_7 = arith.constant 9.99999974E-6 : f32
      %18 = vector.broadcast %cst_7 : f32 to vector<1x4xf32>
      %19 = arith.addf %17, %18 : vector<1x4xf32>
      %20 = math.rsqrt %19 : vector<1x4xf32>
      %21 = arith.index_cast %1 : i32 to index
      %c0_8 = arith.constant 0 : index
      %22 = vector.load %arg6[%21, %c0_8] : memref<384x4xf32, #tpu.memory_space<vmem>>, vector<192x4xf32>
      %23 = vector.broadcast %10 : vector<1x4xf32> to vector<192x4xf32>
      %24 = arith.subf %22, %23 : vector<192x4xf32>
      %25 = vector.broadcast %20 : vector<1x4xf32> to vector<192x4xf32>
      %26 = arith.mulf %24, %25 : vector<192x4xf32>
      %27 = vector.extract_strided_slice %26 {offsets = [0, 0], sizes = [16, 4], strides = [1, 1]} : vector<192x4xf32> to vector<16x4xf32>
      %cst_9 = arith.constant 0.000000e+00 : f32
      %28 = vector.broadcast %cst_9 : f32 to vector<16x4xf32>
      %29 = arith.maximumf %27, %28 : vector<16x4xf32>
      %30 = arith.truncf %29 : vector<16x4xf32> to vector<16x4xbf16>
      %c0_10 = arith.constant 0 : index
      %c0_11 = arith.constant 0 : index
      %c0_12 = arith.constant 0 : index
      %c0_13 = arith.constant 0 : index
      %31 = vector.load %arg5[%c0_10, %c0_11, %c0_12, %c0_13] : memref<1x8x16x4xbf16, #tpu.memory_space<vmem>>, vector<1x1x16x4xbf16>
      %32 = vector.shape_cast %31 : vector<1x1x16x4xbf16> to vector<16x4xbf16>
      %33 = vector.shape_cast %30 : vector<16x4xbf16> to vector<1x1x16x4xbf16>
      tpu.vector_store %arg5[%c0_10, %c0_11, %c0_12, %c0_13], %33 {strides = array<i32>} : memref<1x8x16x4xbf16, #tpu.memory_space<vmem>>, vector<1x1x16x4xbf16>,
      %34 = vector.extract_strided_slice %26 {offsets = [24, 0], sizes = [16, 4], strides = [1, 1]} : vector<192x4xf32> to vector<16x4xf32>
      %cst_14 = arith.constant 0.000000e+00 : f32
      %35 = vector.broadcast %cst_14 : f32 to vector<16x4xf32>
      %36 = arith.maximumf %34, %35 : vector<16x4xf32>
      %37 = arith.truncf %36 : vector<16x4xf32> to vector<16x4xbf16>
      %c0_15 = arith.constant 0 : index
      %c1 = arith.constant 1 : index
      %c0_16 = arith.constant 0 : index
      %c0_17 = arith.constant 0 : index
      %38 = vector.load %arg5[%c0_15, %c1, %c0_16, %c0_17] : memref<1x8x16x4xbf16, #tpu.memory_space<vmem>>, vector<1x1x16x4xbf16>
      %39 = vector.shape_cast %38 : vector<1x1x16x4xbf16> to vector<16x4xbf16>
      %40 = vector.shape_cast %37 : vector<16x4xbf16> to vector<1x1x16x4xbf16>
      tpu.vector_store %arg5[%c0_15, %c1, %c0_16, %c0_17], %40 {strides = array<i32>} : memref<1x8x16x4xbf16, #tpu.memory_space<vmem>>, vector<1x1x16x4xbf16>,
      %41 = vector.extract_strided_slice %26 {offsets = [48, 0], sizes = [16, 4], strides = [1, 1]} : vector<192x4xf32> to vector<16x4xf32>
      %cst_18 = arith.constant 0.000000e+00 : f32
      %42 = vector.broadcast %cst_18 : f32 to vector<16x4xf32>
      %43 = arith.maximumf %41, %42 : vector<16x4xf32>
      %44 = arith.truncf %43 : vector<16x4xf32> to vector<16x4xbf16>
      %c0_19 = arith.constant 0 : index
      %c2 = arith.constant 2 : index
      %c0_20 = arith.constant 0 : index
      %c0_21 = arith.constant 0 : index
      %45 = vector.load %arg5[%c0_19, %c2, %c0_20, %c0_21] : memref<1x8x16x4xbf16, #tpu.memory_space<vmem>>, vector<1x1x16x4xbf16>
      %46 = vector.shape_cast %45 : vector<1x1x16x4xbf16> to vector<16x4xbf16>
      %47 = vector.shape_cast %44 : vector<16x4xbf16> to vector<1x1x16x4xbf16>
      tpu.vector_store %arg5[%c0_19, %c2, %c0_20, %c0_21], %47 {strides = array<i32>} : memref<1x8x16x4xbf16, #tpu.memory_space<vmem>>, vector<1x1x16x4xbf16>,
      %48 = vector.extract_strided_slice %26 {offsets = [72, 0], sizes = [16, 4], strides = [1, 1]} : vector<192x4xf32> to vector<16x4xf32>
      %cst_22 = arith.constant 0.000000e+00 : f32
      %49 = vector.broadcast %cst_22 : f32 to vector<16x4xf32>
      %50 = arith.maximumf %48, %49 : vector<16x4xf32>
      %51 = arith.truncf %50 : vector<16x4xf32> to vector<16x4xbf16>
      %c0_23 = arith.constant 0 : index
      %c3 = arith.constant 3 : index
      %c0_24 = arith.constant 0 : index
      %c0_25 = arith.constant 0 : index
      %52 = vector.load %arg5[%c0_23, %c3, %c0_24, %c0_25] : memref<1x8x16x4xbf16, #tpu.memory_space<vmem>>, vector<1x1x16x4xbf16>
      %53 = vector.shape_cast %52 : vector<1x1x16x4xbf16> to vector<16x4xbf16>
      %54 = vector.shape_cast %51 : vector<16x4xbf16> to vector<1x1x16x4xbf16>
      tpu.vector_store %arg5[%c0_23, %c3, %c0_24, %c0_25], %54 {strides = array<i32>} : memref<1x8x16x4xbf16, #tpu.memory_space<vmem>>, vector<1x1x16x4xbf16>,
      %55 = vector.extract_strided_slice %26 {offsets = [96, 0], sizes = [16, 4], strides = [1, 1]} : vector<192x4xf32> to vector<16x4xf32>
      %cst_26 = arith.constant 0.000000e+00 : f32
      %56 = vector.broadcast %cst_26 : f32 to vector<16x4xf32>
      %57 = arith.maximumf %55, %56 : vector<16x4xf32>
      %58 = arith.truncf %57 : vector<16x4xf32> to vector<16x4xbf16>
      %c0_27 = arith.constant 0 : index
      %c4 = arith.constant 4 : index
      %c0_28 = arith.constant 0 : index
      %c0_29 = arith.constant 0 : index
      %59 = vector.load %arg5[%c0_27, %c4, %c0_28, %c0_29] : memref<1x8x16x4xbf16, #tpu.memory_space<vmem>>, vector<1x1x16x4xbf16>
      %60 = vector.shape_cast %59 : vector<1x1x16x4xbf16> to vector<16x4xbf16>
      %61 = vector.shape_cast %58 : vector<16x4xbf16> to vector<1x1x16x4xbf16>
      tpu.vector_store %arg5[%c0_27, %c4, %c0_28, %c0_29], %61 {strides = array<i32>} : memref<1x8x16x4xbf16, #tpu.memory_space<vmem>>, vector<1x1x16x4xbf16>,
      %62 = vector.extract_strided_slice %26 {offsets = [120, 0], sizes = [16, 4], strides = [1, 1]} : vector<192x4xf32> to vector<16x4xf32>
      %cst_30 = arith.constant 0.000000e+00 : f32
      %63 = vector.broadcast %cst_30 : f32 to vector<16x4xf32>
      %64 = arith.maximumf %62, %63 : vector<16x4xf32>
      %65 = arith.truncf %64 : vector<16x4xf32> to vector<16x4xbf16>
      %c0_31 = arith.constant 0 : index
      %c5 = arith.constant 5 : index
      %c0_32 = arith.constant 0 : index
      %c0_33 = arith.constant 0 : index
      %66 = vector.load %arg5[%c0_31, %c5, %c0_32, %c0_33] : memref<1x8x16x4xbf16, #tpu.memory_space<vmem>>, vector<1x1x16x4xbf16>
      %67 = vector.shape_cast %66 : vector<1x1x16x4xbf16> to vector<16x4xbf16>
      %68 = vector.shape_cast %65 : vector<16x4xbf16> to vector<1x1x16x4xbf16>
      tpu.vector_store %arg5[%c0_31, %c5, %c0_32, %c0_33], %68 {strides = array<i32>} : memref<1x8x16x4xbf16, #tpu.memory_space<vmem>>, vector<1x1x16x4xbf16>,
      %69 = vector.extract_strided_slice %26 {offsets = [144, 0], sizes = [16, 4], strides = [1, 1]} : vector<192x4xf32> to vector<16x4xf32>
      %cst_34 = arith.constant 0.000000e+00 : f32
      %70 = vector.broadcast %cst_34 : f32 to vector<16x4xf32>
      %71 = arith.maximumf %69, %70 : vector<16x4xf32>
      %72 = arith.truncf %71 : vector<16x4xf32> to vector<16x4xbf16>
      %c0_35 = arith.constant 0 : index
      %c6 = arith.constant 6 : index
      %c0_36 = arith.constant 0 : index
      %c0_37 = arith.constant 0 : index
      %73 = vector.load %arg5[%c0_35, %c6, %c0_36, %c0_37] : memref<1x8x16x4xbf16, #tpu.memory_space<vmem>>, vector<1x1x16x4xbf16>
      %74 = vector.shape_cast %73 : vector<1x1x16x4xbf16> to vector<16x4xbf16>
      %75 = vector.shape_cast %72 : vector<16x4xbf16> to vector<1x1x16x4xbf16>
      tpu.vector_store %arg5[%c0_35, %c6, %c0_36, %c0_37], %75 {strides = array<i32>} : memref<1x8x16x4xbf16, #tpu.memory_space<vmem>>, vector<1x1x16x4xbf16>,
      %76 = vector.extract_strided_slice %26 {offsets = [168, 0], sizes = [16, 4], strides = [1, 1]} : vector<192x4xf32> to vector<16x4xf32>
      %cst_38 = arith.constant 0.000000e+00 : f32
      %77 = vector.broadcast %cst_38 : f32 to vector<16x4xf32>
      %78 = arith.maximumf %76, %77 : vector<16x4xf32>
      %79 = arith.truncf %78 : vector<16x4xf32> to vector<16x4xbf16>
      %c0_39 = arith.constant 0 : index
      %c7 = arith.constant 7 : index
      %c0_40 = arith.constant 0 : index
      %c0_41 = arith.constant 0 : index
      %80 = vector.load %arg5[%c0_39, %c7, %c0_40, %c0_41] : memref<1x8x16x4xbf16, #tpu.memory_space<vmem>>, vector<1x1x16x4xbf16>
      %81 = vector.shape_cast %80 : vector<1x1x16x4xbf16> to vector<16x4xbf16>
      %82 = vector.shape_cast %79 : vector<16x4xbf16> to vector<1x1x16x4xbf16>
      tpu.vector_store %arg5[%c0_39, %c7, %c0_40, %c0_41], %82 {strides = array<i32>} : memref<1x8x16x4xbf16, #tpu.memory_space<vmem>>, vector<1x1x16x4xbf16>,
    } else {
    }
    return
  }
  func.func @transform_0(%arg0: i32, %arg1: i32, %arg2: i32) -> (i32, i32, i32) {
    %c0_i32 = arith.constant 0 : i32
    %c0_i32_0 = arith.constant 0 : i32
    %c0_i32_1 = arith.constant 0 : i32
    return %arg0, %c0_i32, %c0_i32_0 : i32, i32, i32
  }
  func.func @transform_1(%arg0: i32, %arg1: i32, %arg2: i32) -> (i32, i32, i32) {
    %c0_i32 = arith.constant 0 : i32
    %c0_i32_0 = arith.constant 0 : i32
    %c0_i32_1 = arith.constant 0 : i32
    %c0_i32_2 = arith.constant 0 : i32
    return %c0_i32, %c0_i32_0, %c0_i32_1 : i32, i32, i32
  }
  func.func @transform_2(%arg0: i32, %arg1: i32, %arg2: i32) -> (i32, i32, i32, i32) {
    %0 = arith.muli %arg1, %arg2 : i32
    %c0_i32 = arith.constant 0 : i32
    %c0_i32_0 = arith.constant 0 : i32
    %c0_i32_1 = arith.constant 0 : i32
    return %arg0, %0, %c0_i32, %c0_i32_0 : i32, i32, i32, i32
  }
}

module attributes {stable_mosaic.version = 11 : i64} {
  func.func @kernel(%arg0: i32, %arg1: i32, %arg2: i32, %arg3: memref<1x456x4xbf16, #tpu.memory_space<vmem>>, %arg4: memref<9x4x4xbf16, #tpu.memory_space<vmem>>, %arg5: memref<1x8x16x4xf32, #tpu.memory_space<vmem>>, %arg6: memref<1x8x16x4xf32, #tpu.memory_space<vmem>>, %arg7: memref<384x4xf32, #tpu.memory_space<vmem>>, %arg8: memref<1x4xf32, #tpu.memory_space<vmem>>, %arg9: memref<1x4xf32, #tpu.memory_space<vmem>>) attributes {dimension_semantics = [#tpu.dimension_semantics<parallel>, #tpu.dimension_semantics<arbitrary>, #tpu.dimension_semantics<arbitrary>], iteration_bounds = array<i64: 2, 2, 2>, scalar_prefetch = 0 : i64, scratch_operands = 3 : i64, tpu.core_type = #tpu.core_type<tc>, window_params = [{transform_indices = @transform_0, window_bounds = array<i64: 1, 456, 4>}, {pipeline_mode = #tpu.pipeline_mode<synchronous>, transform_indices = @transform_1, window_bounds = array<i64: 9, 4, 4>}, {transform_indices = @transform_2, window_bounds = array<i64: 1, 8, 16, 4>}, {transform_indices = @transform_3, window_bounds = array<i64: 1, 8, 16, 4>}]} {
    %c192_i32 = arith.constant 192 : i32
    %0 = arith.muli %arg2, %c192_i32 : i32
    %1 = tpu.assume_multiple %0, 8 : i32
    %c0_i32 = arith.constant 0 : i32
    %2 = arith.cmpi eq, %arg1, %c0_i32 : i32
    %3 = arith.extui %2 : i1 to i32
    %c0_i32_0 = arith.constant 0 : i32
    %4 = arith.cmpi ne, %3, %c0_i32_0 : i32
    scf.if %4 {
      %c0_i32_2 = arith.constant 0 : i32
      %8 = arith.cmpi eq, %arg2, %c0_i32_2 : i32
      %9 = arith.extui %8 : i1 to i32
      %c0_i32_3 = arith.constant 0 : i32
      %10 = arith.cmpi ne, %9, %c0_i32_3 : i32
      scf.if %10 {
        %cst_107 = arith.constant 0.000000e+00 : f32
        %182 = vector.broadcast %cst_107 : f32 to vector<1x4xf32>
        %c0_108 = arith.constant 0 : index
        %c0_109 = arith.constant 0 : index
        %183 = vector.load %arg8[%c0_108, %c0_109] : memref<1x4xf32, #tpu.memory_space<vmem>>, vector<1x4xf32>
        tpu.vector_store %arg8[%c0_108, %c0_109], %182 {strides = array<i32>} : memref<1x4xf32, #tpu.memory_space<vmem>>, vector<1x4xf32>,
        %cst_110 = arith.constant 0.000000e+00 : f32
        %184 = vector.broadcast %cst_110 : f32 to vector<1x4xf32>
        %c0_111 = arith.constant 0 : index
        %c0_112 = arith.constant 0 : index
        %185 = vector.load %arg9[%c0_111, %c0_112] : memref<1x4xf32, #tpu.memory_space<vmem>>, vector<1x4xf32>
        tpu.vector_store %arg9[%c0_111, %c0_112], %184 {strides = array<i32>} : memref<1x4xf32, #tpu.memory_space<vmem>>, vector<1x4xf32>,
      } else {
      }
      %11 = tpu.iota {dimensions = array<i32: 0>} : vector<96x1xi32>
      %c24_i32 = arith.constant 24 : i32
      %c0_i32_4 = arith.constant 0 : i32
      %12 = arith.cmpi eq, %c24_i32, %c0_i32_4 : i32
      %c1_i32_5 = arith.constant 1 : i32
      %13 = arith.select %12, %c1_i32_5, %c24_i32 : i32
      %14 = vector.broadcast %13 : i32 to vector<96x1xi32>
      %15 = arith.remsi %11, %14 : vector<96x1xi32>
      %c0_i32_6 = arith.constant 0 : i32
      %16 = vector.broadcast %c0_i32_6 : i32 to vector<96x1xi32>
      %17 = arith.cmpi ne, %15, %16 : vector<96x1xi32>
      %c0_i32_7 = arith.constant 0 : i32
      %18 = vector.broadcast %c0_i32_7 : i32 to vector<96x1xi32>
      %19 = arith.cmpi slt, %15, %18 : vector<96x1xi32>
      %c0_i32_8 = arith.constant 0 : i32
      %20 = arith.cmpi slt, %13, %c0_i32_8 : i32
      %21 = vector.broadcast %20 : i1 to vector<96x1xi1>
      %22 = vector.broadcast %21 : vector<96x1xi1> to vector<96x1xi1>
      %23 = arith.xori %19, %22 : vector<96x1xi1>
      %24 = arith.andi %23, %17 : vector<96x1xi1>
      %25 = vector.broadcast %13 : i32 to vector<96x1xi32>
      %26 = arith.addi %15, %25 : vector<96x1xi32>
      %27 = arith.select %24, %26, %15 : vector<96x1xi1>, vector<96x1xi32>
      %c16_i32 = arith.constant 16 : i32
      %28 = vector.broadcast %c16_i32 : i32 to vector<96x1xi32>
      %29 = arith.cmpi slt, %27, %28 : vector<96x1xi32>
      %30 = arith.extui %29 : vector<96x1xi1> to vector<96x1xi32>
      %31 = arith.sitofp %30 : vector<96x1xi32> to vector<96x1xf32>
      %cst = arith.constant 0.000000e+00 : f32
      %32 = vector.broadcast %cst : f32 to vector<1x4xf32>
      %cst_9 = arith.constant 0.000000e+00 : f32
      %33 = vector.broadcast %cst_9 : f32 to vector<1x4xf32>
      %c0_i32_10 = arith.constant 0 : i32
      %34 = arith.addi %1, %c0_i32_10 : i32
      %35 = tpu.assume_multiple %34, 8 : i32
      %cst_11 = arith.constant 0.000000e+00 : f32
      %36 = vector.broadcast %cst_11 : f32 to vector<96x4xf32>
      %c0_i32_12 = arith.constant 0 : i32
      %37 = arith.addi %35, %c0_i32_12 : i32
      %c0 = arith.constant 0 : index
      %38 = arith.index_cast %37 : i32 to index
      %c0_13 = arith.constant 0 : index
      %39 = vector.load %arg3[%c0, %38, %c0_13] : memref<1x456x4xbf16, #tpu.memory_space<vmem>>, vector<1x104x4xbf16>
      %40 = vector.shape_cast %39 : vector<1x104x4xbf16> to vector<104x4xbf16>
      %41 = vector.extract_strided_slice %40 {offsets = [0, 0], sizes = [96, 4], strides = [1, 1]} : vector<104x4xbf16> to vector<96x4xbf16>
      %c0_14 = arith.constant 0 : index
      %c0_15 = arith.constant 0 : index
      %c0_16 = arith.constant 0 : index
      %42 = vector.load %arg4[%c0_14, %c0_15, %c0_16] : memref<9x4x4xbf16, #tpu.memory_space<vmem>>, vector<1x4x4xbf16>
      %43 = vector.shape_cast %42 : vector<1x4x4xbf16> to vector<4x4xbf16>
      %cst_17 = arith.constant dense<0.000000e+00> : vector<96x4xf32>
      %44 = tpu.matmul %41, %43, %cst_17 {dimension_numbers = #tpu.dot_dimension_numbers<[1], [0], [0], [1], [0, 0, 1, 1], [], []>} : vector<96x4xbf16>, vector<4x4xbf16>, vector<96x4xf32> -> vector<96x4xf32>
      %45 = arith.addf %36, %44 : vector<96x4xf32>
      %46 = vector.extract_strided_slice %40 {offsets = [1, 0], sizes = [96, 4], strides = [1, 1]} : vector<104x4xbf16> to vector<96x4xbf16>
      %c1 = arith.constant 1 : index
      %c0_18 = arith.constant 0 : index
      %c0_19 = arith.constant 0 : index
      %47 = vector.load %arg4[%c1, %c0_18, %c0_19] : memref<9x4x4xbf16, #tpu.memory_space<vmem>>, vector<1x4x4xbf16>
      %48 = vector.shape_cast %47 : vector<1x4x4xbf16> to vector<4x4xbf16>
      %cst_20 = arith.constant dense<0.000000e+00> : vector<96x4xf32>
      %49 = tpu.matmul %46, %48, %cst_20 {dimension_numbers = #tpu.dot_dimension_numbers<[1], [0], [0], [1], [0, 0, 1, 1], [], []>} : vector<96x4xbf16>, vector<4x4xbf16>, vector<96x4xf32> -> vector<96x4xf32>
      %50 = arith.addf %45, %49 : vector<96x4xf32>
      %51 = vector.extract_strided_slice %40 {offsets = [2, 0], sizes = [96, 4], strides = [1, 1]} : vector<104x4xbf16> to vector<96x4xbf16>
      %c2 = arith.constant 2 : index
      %c0_21 = arith.constant 0 : index
      %c0_22 = arith.constant 0 : index
      %52 = vector.load %arg4[%c2, %c0_21, %c0_22] : memref<9x4x4xbf16, #tpu.memory_space<vmem>>, vector<1x4x4xbf16>
      %53 = vector.shape_cast %52 : vector<1x4x4xbf16> to vector<4x4xbf16>
      %cst_23 = arith.constant dense<0.000000e+00> : vector<96x4xf32>
      %54 = tpu.matmul %51, %53, %cst_23 {dimension_numbers = #tpu.dot_dimension_numbers<[1], [0], [0], [1], [0, 0, 1, 1], [], []>} : vector<96x4xbf16>, vector<4x4xbf16>, vector<96x4xf32> -> vector<96x4xf32>
      %55 = arith.addf %50, %54 : vector<96x4xf32>
      %c24_i32_24 = arith.constant 24 : i32
      %56 = arith.addi %35, %c24_i32_24 : i32
      %c0_25 = arith.constant 0 : index
      %57 = arith.index_cast %56 : i32 to index
      %c0_26 = arith.constant 0 : index
      %58 = vector.load %arg3[%c0_25, %57, %c0_26] : memref<1x456x4xbf16, #tpu.memory_space<vmem>>, vector<1x104x4xbf16>
      %59 = vector.shape_cast %58 : vector<1x104x4xbf16> to vector<104x4xbf16>
      %60 = vector.extract_strided_slice %59 {offsets = [0, 0], sizes = [96, 4], strides = [1, 1]} : vector<104x4xbf16> to vector<96x4xbf16>
      %c3 = arith.constant 3 : index
      %c0_27 = arith.constant 0 : index
      %c0_28 = arith.constant 0 : index
      %61 = vector.load %arg4[%c3, %c0_27, %c0_28] : memref<9x4x4xbf16, #tpu.memory_space<vmem>>, vector<1x4x4xbf16>
      %62 = vector.shape_cast %61 : vector<1x4x4xbf16> to vector<4x4xbf16>
      %cst_29 = arith.constant dense<0.000000e+00> : vector<96x4xf32>
      %63 = tpu.matmul %60, %62, %cst_29 {dimension_numbers = #tpu.dot_dimension_numbers<[1], [0], [0], [1], [0, 0, 1, 1], [], []>} : vector<96x4xbf16>, vector<4x4xbf16>, vector<96x4xf32> -> vector<96x4xf32>
      %64 = arith.addf %55, %63 : vector<96x4xf32>
      %65 = vector.extract_strided_slice %59 {offsets = [1, 0], sizes = [96, 4], strides = [1, 1]} : vector<104x4xbf16> to vector<96x4xbf16>
      %c4 = arith.constant 4 : index
      %c0_30 = arith.constant 0 : index
      %c0_31 = arith.constant 0 : index
      %66 = vector.load %arg4[%c4, %c0_30, %c0_31] : memref<9x4x4xbf16, #tpu.memory_space<vmem>>, vector<1x4x4xbf16>
      %67 = vector.shape_cast %66 : vector<1x4x4xbf16> to vector<4x4xbf16>
      %cst_32 = arith.constant dense<0.000000e+00> : vector<96x4xf32>
      %68 = tpu.matmul %65, %67, %cst_32 {dimension_numbers = #tpu.dot_dimension_numbers<[1], [0], [0], [1], [0, 0, 1, 1], [], []>} : vector<96x4xbf16>, vector<4x4xbf16>, vector<96x4xf32> -> vector<96x4xf32>
      %69 = arith.addf %64, %68 : vector<96x4xf32>
      %70 = vector.extract_strided_slice %59 {offsets = [2, 0], sizes = [96, 4], strides = [1, 1]} : vector<104x4xbf16> to vector<96x4xbf16>
      %c5 = arith.constant 5 : index
      %c0_33 = arith.constant 0 : index
      %c0_34 = arith.constant 0 : index
      %71 = vector.load %arg4[%c5, %c0_33, %c0_34] : memref<9x4x4xbf16, #tpu.memory_space<vmem>>, vector<1x4x4xbf16>
      %72 = vector.shape_cast %71 : vector<1x4x4xbf16> to vector<4x4xbf16>
      %cst_35 = arith.constant dense<0.000000e+00> : vector<96x4xf32>
      %73 = tpu.matmul %70, %72, %cst_35 {dimension_numbers = #tpu.dot_dimension_numbers<[1], [0], [0], [1], [0, 0, 1, 1], [], []>} : vector<96x4xbf16>, vector<4x4xbf16>, vector<96x4xf32> -> vector<96x4xf32>
      %74 = arith.addf %69, %73 : vector<96x4xf32>
      %c48_i32 = arith.constant 48 : i32
      %75 = arith.addi %35, %c48_i32 : i32
      %c0_36 = arith.constant 0 : index
      %76 = arith.index_cast %75 : i32 to index
      %c0_37 = arith.constant 0 : index
      %77 = vector.load %arg3[%c0_36, %76, %c0_37] : memref<1x456x4xbf16, #tpu.memory_space<vmem>>, vector<1x104x4xbf16>
      %78 = vector.shape_cast %77 : vector<1x104x4xbf16> to vector<104x4xbf16>
      %79 = vector.extract_strided_slice %78 {offsets = [0, 0], sizes = [96, 4], strides = [1, 1]} : vector<104x4xbf16> to vector<96x4xbf16>
      %c6 = arith.constant 6 : index
      %c0_38 = arith.constant 0 : index
      %c0_39 = arith.constant 0 : index
      %80 = vector.load %arg4[%c6, %c0_38, %c0_39] : memref<9x4x4xbf16, #tpu.memory_space<vmem>>, vector<1x4x4xbf16>
      %81 = vector.shape_cast %80 : vector<1x4x4xbf16> to vector<4x4xbf16>
      %cst_40 = arith.constant dense<0.000000e+00> : vector<96x4xf32>
      %82 = tpu.matmul %79, %81, %cst_40 {dimension_numbers = #tpu.dot_dimension_numbers<[1], [0], [0], [1], [0, 0, 1, 1], [], []>} : vector<96x4xbf16>, vector<4x4xbf16>, vector<96x4xf32> -> vector<96x4xf32>
      %83 = arith.addf %74, %82 : vector<96x4xf32>
      %84 = vector.extract_strided_slice %78 {offsets = [1, 0], sizes = [96, 4], strides = [1, 1]} : vector<104x4xbf16> to vector<96x4xbf16>
      %c7 = arith.constant 7 : index
      %c0_41 = arith.constant 0 : index
      %c0_42 = arith.constant 0 : index
      %85 = vector.load %arg4[%c7, %c0_41, %c0_42] : memref<9x4x4xbf16, #tpu.memory_space<vmem>>, vector<1x4x4xbf16>
      %86 = vector.shape_cast %85 : vector<1x4x4xbf16> to vector<4x4xbf16>
      %cst_43 = arith.constant dense<0.000000e+00> : vector<96x4xf32>
      %87 = tpu.matmul %84, %86, %cst_43 {dimension_numbers = #tpu.dot_dimension_numbers<[1], [0], [0], [1], [0, 0, 1, 1], [], []>} : vector<96x4xbf16>, vector<4x4xbf16>, vector<96x4xf32> -> vector<96x4xf32>
      %88 = arith.addf %83, %87 : vector<96x4xf32>
      %89 = vector.extract_strided_slice %78 {offsets = [2, 0], sizes = [96, 4], strides = [1, 1]} : vector<104x4xbf16> to vector<96x4xbf16>
      %c8 = arith.constant 8 : index
      %c0_44 = arith.constant 0 : index
      %c0_45 = arith.constant 0 : index
      %90 = vector.load %arg4[%c8, %c0_44, %c0_45] : memref<9x4x4xbf16, #tpu.memory_space<vmem>>, vector<1x4x4xbf16>
      %91 = vector.shape_cast %90 : vector<1x4x4xbf16> to vector<4x4xbf16>
      %cst_46 = arith.constant dense<0.000000e+00> : vector<96x4xf32>
      %92 = tpu.matmul %89, %91, %cst_46 {dimension_numbers = #tpu.dot_dimension_numbers<[1], [0], [0], [1], [0, 0, 1, 1], [], []>} : vector<96x4xbf16>, vector<4x4xbf16>, vector<96x4xf32> -> vector<96x4xf32>
      %93 = arith.addf %88, %92 : vector<96x4xf32>
      %94 = vector.broadcast %31 : vector<96x1xf32> to vector<96x4xf32>
      %95 = arith.mulf %93, %94 : vector<96x4xf32>
      %cst_47 = arith.constant dense<0.000000e+00> : vector<4xf32>
      %96 = vector.multi_reduction <add>, %95, %cst_47 [0] : vector<96x4xf32> to vector<4xf32>
      %97 = vector.shape_cast %96 : vector<4xf32> to vector<1x4xf32>
      %98 = arith.addf %32, %97 : vector<1x4xf32>
      %99 = arith.mulf %95, %93 : vector<96x4xf32>
      %cst_48 = arith.constant dense<0.000000e+00> : vector<4xf32>
      %100 = vector.multi_reduction <add>, %99, %cst_48 [0] : vector<96x4xf32> to vector<4xf32>
      %101 = vector.shape_cast %100 : vector<4xf32> to vector<1x4xf32>
      %102 = arith.addf %33, %101 : vector<1x4xf32>
      %103 = arith.index_cast %35 : i32 to index
      %c0_49 = arith.constant 0 : index
      %104 = vector.load %arg7[%103, %c0_49] : memref<384x4xf32, #tpu.memory_space<vmem>>, vector<96x4xf32>
      tpu.vector_store %arg7[%103, %c0_49], %93 {strides = array<i32>} : memref<384x4xf32, #tpu.memory_space<vmem>>, vector<96x4xf32>,
      %c96_i32 = arith.constant 96 : i32
      %105 = arith.addi %1, %c96_i32 : i32
      %106 = tpu.assume_multiple %105, 8 : i32
      %cst_50 = arith.constant 0.000000e+00 : f32
      %107 = vector.broadcast %cst_50 : f32 to vector<96x4xf32>
      %c0_i32_51 = arith.constant 0 : i32
      %108 = arith.addi %106, %c0_i32_51 : i32
      %c0_52 = arith.constant 0 : index
      %109 = arith.index_cast %108 : i32 to index
      %c0_53 = arith.constant 0 : index
      %110 = vector.load %arg3[%c0_52, %109, %c0_53] : memref<1x456x4xbf16, #tpu.memory_space<vmem>>, vector<1x104x4xbf16>
      %111 = vector.shape_cast %110 : vector<1x104x4xbf16> to vector<104x4xbf16>
      %112 = vector.extract_strided_slice %111 {offsets = [0, 0], sizes = [96, 4], strides = [1, 1]} : vector<104x4xbf16> to vector<96x4xbf16>
      %c0_54 = arith.constant 0 : index
      %c0_55 = arith.constant 0 : index
      %c0_56 = arith.constant 0 : index
      %113 = vector.load %arg4[%c0_54, %c0_55, %c0_56] : memref<9x4x4xbf16, #tpu.memory_space<vmem>>, vector<1x4x4xbf16>
      %114 = vector.shape_cast %113 : vector<1x4x4xbf16> to vector<4x4xbf16>
      %cst_57 = arith.constant dense<0.000000e+00> : vector<96x4xf32>
      %115 = tpu.matmul %112, %114, %cst_57 {dimension_numbers = #tpu.dot_dimension_numbers<[1], [0], [0], [1], [0, 0, 1, 1], [], []>} : vector<96x4xbf16>, vector<4x4xbf16>, vector<96x4xf32> -> vector<96x4xf32>
      %116 = arith.addf %107, %115 : vector<96x4xf32>
      %117 = vector.extract_strided_slice %111 {offsets = [1, 0], sizes = [96, 4], strides = [1, 1]} : vector<104x4xbf16> to vector<96x4xbf16>
      %c1_58 = arith.constant 1 : index
      %c0_59 = arith.constant 0 : index
      %c0_60 = arith.constant 0 : index
      %118 = vector.load %arg4[%c1_58, %c0_59, %c0_60] : memref<9x4x4xbf16, #tpu.memory_space<vmem>>, vector<1x4x4xbf16>
      %119 = vector.shape_cast %118 : vector<1x4x4xbf16> to vector<4x4xbf16>
      %cst_61 = arith.constant dense<0.000000e+00> : vector<96x4xf32>
      %120 = tpu.matmul %117, %119, %cst_61 {dimension_numbers = #tpu.dot_dimension_numbers<[1], [0], [0], [1], [0, 0, 1, 1], [], []>} : vector<96x4xbf16>, vector<4x4xbf16>, vector<96x4xf32> -> vector<96x4xf32>
      %121 = arith.addf %116, %120 : vector<96x4xf32>
      %122 = vector.extract_strided_slice %111 {offsets = [2, 0], sizes = [96, 4], strides = [1, 1]} : vector<104x4xbf16> to vector<96x4xbf16>
      %c2_62 = arith.constant 2 : index
      %c0_63 = arith.constant 0 : index
      %c0_64 = arith.constant 0 : index
      %123 = vector.load %arg4[%c2_62, %c0_63, %c0_64] : memref<9x4x4xbf16, #tpu.memory_space<vmem>>, vector<1x4x4xbf16>
      %124 = vector.shape_cast %123 : vector<1x4x4xbf16> to vector<4x4xbf16>
      %cst_65 = arith.constant dense<0.000000e+00> : vector<96x4xf32>
      %125 = tpu.matmul %122, %124, %cst_65 {dimension_numbers = #tpu.dot_dimension_numbers<[1], [0], [0], [1], [0, 0, 1, 1], [], []>} : vector<96x4xbf16>, vector<4x4xbf16>, vector<96x4xf32> -> vector<96x4xf32>
      %126 = arith.addf %121, %125 : vector<96x4xf32>
      %c24_i32_66 = arith.constant 24 : i32
      %127 = arith.addi %106, %c24_i32_66 : i32
      %c0_67 = arith.constant 0 : index
      %128 = arith.index_cast %127 : i32 to index
      %c0_68 = arith.constant 0 : index
      %129 = vector.load %arg3[%c0_67, %128, %c0_68] : memref<1x456x4xbf16, #tpu.memory_space<vmem>>, vector<1x104x4xbf16>
      %130 = vector.shape_cast %129 : vector<1x104x4xbf16> to vector<104x4xbf16>
      %131 = vector.extract_strided_slice %130 {offsets = [0, 0], sizes = [96, 4], strides = [1, 1]} : vector<104x4xbf16> to vector<96x4xbf16>
      %c3_69 = arith.constant 3 : index
      %c0_70 = arith.constant 0 : index
      %c0_71 = arith.constant 0 : index
      %132 = vector.load %arg4[%c3_69, %c0_70, %c0_71] : memref<9x4x4xbf16, #tpu.memory_space<vmem>>, vector<1x4x4xbf16>
      %133 = vector.shape_cast %132 : vector<1x4x4xbf16> to vector<4x4xbf16>
      %cst_72 = arith.constant dense<0.000000e+00> : vector<96x4xf32>
      %134 = tpu.matmul %131, %133, %cst_72 {dimension_numbers = #tpu.dot_dimension_numbers<[1], [0], [0], [1], [0, 0, 1, 1], [], []>} : vector<96x4xbf16>, vector<4x4xbf16>, vector<96x4xf32> -> vector<96x4xf32>
      %135 = arith.addf %126, %134 : vector<96x4xf32>
      %136 = vector.extract_strided_slice %130 {offsets = [1, 0], sizes = [96, 4], strides = [1, 1]} : vector<104x4xbf16> to vector<96x4xbf16>
      %c4_73 = arith.constant 4 : index
      %c0_74 = arith.constant 0 : index
      %c0_75 = arith.constant 0 : index
      %137 = vector.load %arg4[%c4_73, %c0_74, %c0_75] : memref<9x4x4xbf16, #tpu.memory_space<vmem>>, vector<1x4x4xbf16>
      %138 = vector.shape_cast %137 : vector<1x4x4xbf16> to vector<4x4xbf16>
      %cst_76 = arith.constant dense<0.000000e+00> : vector<96x4xf32>
      %139 = tpu.matmul %136, %138, %cst_76 {dimension_numbers = #tpu.dot_dimension_numbers<[1], [0], [0], [1], [0, 0, 1, 1], [], []>} : vector<96x4xbf16>, vector<4x4xbf16>, vector<96x4xf32> -> vector<96x4xf32>
      %140 = arith.addf %135, %139 : vector<96x4xf32>
      %141 = vector.extract_strided_slice %130 {offsets = [2, 0], sizes = [96, 4], strides = [1, 1]} : vector<104x4xbf16> to vector<96x4xbf16>
      %c5_77 = arith.constant 5 : index
      %c0_78 = arith.constant 0 : index
      %c0_79 = arith.constant 0 : index
      %142 = vector.load %arg4[%c5_77, %c0_78, %c0_79] : memref<9x4x4xbf16, #tpu.memory_space<vmem>>, vector<1x4x4xbf16>
      %143 = vector.shape_cast %142 : vector<1x4x4xbf16> to vector<4x4xbf16>
      %cst_80 = arith.constant dense<0.000000e+00> : vector<96x4xf32>
      %144 = tpu.matmul %141, %143, %cst_80 {dimension_numbers = #tpu.dot_dimension_numbers<[1], [0], [0], [1], [0, 0, 1, 1], [], []>} : vector<96x4xbf16>, vector<4x4xbf16>, vector<96x4xf32> -> vector<96x4xf32>
      %145 = arith.addf %140, %144 : vector<96x4xf32>
      %c48_i32_81 = arith.constant 48 : i32
      %146 = arith.addi %106, %c48_i32_81 : i32
      %c0_82 = arith.constant 0 : index
      %147 = arith.index_cast %146 : i32 to index
      %c0_83 = arith.constant 0 : index
      %148 = vector.load %arg3[%c0_82, %147, %c0_83] : memref<1x456x4xbf16, #tpu.memory_space<vmem>>, vector<1x104x4xbf16>
      %149 = vector.shape_cast %148 : vector<1x104x4xbf16> to vector<104x4xbf16>
      %150 = vector.extract_strided_slice %149 {offsets = [0, 0], sizes = [96, 4], strides = [1, 1]} : vector<104x4xbf16> to vector<96x4xbf16>
      %c6_84 = arith.constant 6 : index
      %c0_85 = arith.constant 0 : index
      %c0_86 = arith.constant 0 : index
      %151 = vector.load %arg4[%c6_84, %c0_85, %c0_86] : memref<9x4x4xbf16, #tpu.memory_space<vmem>>, vector<1x4x4xbf16>
      %152 = vector.shape_cast %151 : vector<1x4x4xbf16> to vector<4x4xbf16>
      %cst_87 = arith.constant dense<0.000000e+00> : vector<96x4xf32>
      %153 = tpu.matmul %150, %152, %cst_87 {dimension_numbers = #tpu.dot_dimension_numbers<[1], [0], [0], [1], [0, 0, 1, 1], [], []>} : vector<96x4xbf16>, vector<4x4xbf16>, vector<96x4xf32> -> vector<96x4xf32>
      %154 = arith.addf %145, %153 : vector<96x4xf32>
      %155 = vector.extract_strided_slice %149 {offsets = [1, 0], sizes = [96, 4], strides = [1, 1]} : vector<104x4xbf16> to vector<96x4xbf16>
      %c7_88 = arith.constant 7 : index
      %c0_89 = arith.constant 0 : index
      %c0_90 = arith.constant 0 : index
      %156 = vector.load %arg4[%c7_88, %c0_89, %c0_90] : memref<9x4x4xbf16, #tpu.memory_space<vmem>>, vector<1x4x4xbf16>
      %157 = vector.shape_cast %156 : vector<1x4x4xbf16> to vector<4x4xbf16>
      %cst_91 = arith.constant dense<0.000000e+00> : vector<96x4xf32>
      %158 = tpu.matmul %155, %157, %cst_91 {dimension_numbers = #tpu.dot_dimension_numbers<[1], [0], [0], [1], [0, 0, 1, 1], [], []>} : vector<96x4xbf16>, vector<4x4xbf16>, vector<96x4xf32> -> vector<96x4xf32>
      %159 = arith.addf %154, %158 : vector<96x4xf32>
      %160 = vector.extract_strided_slice %149 {offsets = [2, 0], sizes = [96, 4], strides = [1, 1]} : vector<104x4xbf16> to vector<96x4xbf16>
      %c8_92 = arith.constant 8 : index
      %c0_93 = arith.constant 0 : index
      %c0_94 = arith.constant 0 : index
      %161 = vector.load %arg4[%c8_92, %c0_93, %c0_94] : memref<9x4x4xbf16, #tpu.memory_space<vmem>>, vector<1x4x4xbf16>
      %162 = vector.shape_cast %161 : vector<1x4x4xbf16> to vector<4x4xbf16>
      %cst_95 = arith.constant dense<0.000000e+00> : vector<96x4xf32>
      %163 = tpu.matmul %160, %162, %cst_95 {dimension_numbers = #tpu.dot_dimension_numbers<[1], [0], [0], [1], [0, 0, 1, 1], [], []>} : vector<96x4xbf16>, vector<4x4xbf16>, vector<96x4xf32> -> vector<96x4xf32>
      %164 = arith.addf %159, %163 : vector<96x4xf32>
      %165 = vector.broadcast %31 : vector<96x1xf32> to vector<96x4xf32>
      %166 = arith.mulf %164, %165 : vector<96x4xf32>
      %cst_96 = arith.constant dense<0.000000e+00> : vector<4xf32>
      %167 = vector.multi_reduction <add>, %166, %cst_96 [0] : vector<96x4xf32> to vector<4xf32>
      %168 = vector.shape_cast %167 : vector<4xf32> to vector<1x4xf32>
      %169 = arith.addf %98, %168 : vector<1x4xf32>
      %170 = arith.mulf %166, %164 : vector<96x4xf32>
      %cst_97 = arith.constant dense<0.000000e+00> : vector<4xf32>
      %171 = vector.multi_reduction <add>, %170, %cst_97 [0] : vector<96x4xf32> to vector<4xf32>
      %172 = vector.shape_cast %171 : vector<4xf32> to vector<1x4xf32>
      %173 = arith.addf %102, %172 : vector<1x4xf32>
      %174 = arith.index_cast %106 : i32 to index
      %c0_98 = arith.constant 0 : index
      %175 = vector.load %arg7[%174, %c0_98] : memref<384x4xf32, #tpu.memory_space<vmem>>, vector<96x4xf32>
      tpu.vector_store %arg7[%174, %c0_98], %164 {strides = array<i32>} : memref<384x4xf32, #tpu.memory_space<vmem>>, vector<96x4xf32>,
      %c0_99 = arith.constant 0 : index
      %c0_100 = arith.constant 0 : index
      %176 = vector.load %arg8[%c0_99, %c0_100] : memref<1x4xf32, #tpu.memory_space<vmem>>, vector<1x4xf32>
      %177 = arith.addf %176, %169 : vector<1x4xf32>
      %c0_101 = arith.constant 0 : index
      %c0_102 = arith.constant 0 : index
      %178 = vector.load %arg8[%c0_101, %c0_102] : memref<1x4xf32, #tpu.memory_space<vmem>>, vector<1x4xf32>
      tpu.vector_store %arg8[%c0_101, %c0_102], %177 {strides = array<i32>} : memref<1x4xf32, #tpu.memory_space<vmem>>, vector<1x4xf32>,
      %c0_103 = arith.constant 0 : index
      %c0_104 = arith.constant 0 : index
      %179 = vector.load %arg9[%c0_103, %c0_104] : memref<1x4xf32, #tpu.memory_space<vmem>>, vector<1x4xf32>
      %180 = arith.addf %179, %173 : vector<1x4xf32>
      %c0_105 = arith.constant 0 : index
      %c0_106 = arith.constant 0 : index
      %181 = vector.load %arg9[%c0_105, %c0_106] : memref<1x4xf32, #tpu.memory_space<vmem>>, vector<1x4xf32>
      tpu.vector_store %arg9[%c0_105, %c0_106], %180 {strides = array<i32>} : memref<1x4xf32, #tpu.memory_space<vmem>>, vector<1x4xf32>,
    } else {
    }
    %c1_i32 = arith.constant 1 : i32
    %5 = arith.cmpi eq, %arg1, %c1_i32 : i32
    %6 = arith.extui %5 : i1 to i32
    %c0_i32_1 = arith.constant 0 : i32
    %7 = arith.cmpi ne, %6, %c0_i32_1 : i32
    scf.if %7 {
      %c0 = arith.constant 0 : index
      %c0_2 = arith.constant 0 : index
      %8 = vector.load %arg8[%c0, %c0_2] : memref<1x4xf32, #tpu.memory_space<vmem>>, vector<1x4xf32>
      %cst = arith.constant 3.906250e-03 : f32
      %9 = vector.broadcast %cst : f32 to vector<1x4xf32>
      %10 = arith.mulf %8, %9 : vector<1x4xf32>
      %c0_3 = arith.constant 0 : index
      %c0_4 = arith.constant 0 : index
      %11 = vector.load %arg9[%c0_3, %c0_4] : memref<1x4xf32, #tpu.memory_space<vmem>>, vector<1x4xf32>
      %cst_5 = arith.constant 3.906250e-03 : f32
      %12 = vector.broadcast %cst_5 : f32 to vector<1x4xf32>
      %13 = arith.mulf %11, %12 : vector<1x4xf32>
      %14 = arith.mulf %10, %10 : vector<1x4xf32>
      %15 = arith.subf %13, %14 : vector<1x4xf32>
      %cst_6 = arith.constant 0.000000e+00 : f32
      %16 = vector.broadcast %cst_6 : f32 to vector<1x4xf32>
      %17 = arith.maximumf %15, %16 : vector<1x4xf32>
      %cst_7 = arith.constant 9.99999974E-6 : f32
      %18 = vector.broadcast %cst_7 : f32 to vector<1x4xf32>
      %19 = arith.addf %17, %18 : vector<1x4xf32>
      %20 = math.rsqrt %19 : vector<1x4xf32>
      %21 = arith.index_cast %1 : i32 to index
      %c0_8 = arith.constant 0 : index
      %22 = vector.load %arg7[%21, %c0_8] : memref<384x4xf32, #tpu.memory_space<vmem>>, vector<192x4xf32>
      %23 = vector.broadcast %10 : vector<1x4xf32> to vector<192x4xf32>
      %24 = arith.subf %22, %23 : vector<192x4xf32>
      %25 = vector.broadcast %20 : vector<1x4xf32> to vector<192x4xf32>
      %26 = arith.mulf %24, %25 : vector<192x4xf32>
      %27 = vector.extract_strided_slice %26 {offsets = [0, 0], sizes = [16, 4], strides = [1, 1]} : vector<192x4xf32> to vector<16x4xf32>
      %c0_9 = arith.constant 0 : index
      %c0_10 = arith.constant 0 : index
      %c0_11 = arith.constant 0 : index
      %c0_12 = arith.constant 0 : index
      %28 = vector.load %arg5[%c0_9, %c0_10, %c0_11, %c0_12] : memref<1x8x16x4xf32, #tpu.memory_space<vmem>>, vector<1x1x16x4xf32>
      %29 = vector.shape_cast %28 : vector<1x1x16x4xf32> to vector<16x4xf32>
      %30 = arith.addf %27, %29 : vector<16x4xf32>
      %cst_13 = arith.constant 0.000000e+00 : f32
      %31 = vector.broadcast %cst_13 : f32 to vector<16x4xf32>
      %32 = arith.maximumf %30, %31 : vector<16x4xf32>
      %c0_14 = arith.constant 0 : index
      %c0_15 = arith.constant 0 : index
      %c0_16 = arith.constant 0 : index
      %c0_17 = arith.constant 0 : index
      %33 = vector.load %arg6[%c0_14, %c0_15, %c0_16, %c0_17] : memref<1x8x16x4xf32, #tpu.memory_space<vmem>>, vector<1x1x16x4xf32>
      %34 = vector.shape_cast %33 : vector<1x1x16x4xf32> to vector<16x4xf32>
      %35 = vector.shape_cast %32 : vector<16x4xf32> to vector<1x1x16x4xf32>
      tpu.vector_store %arg6[%c0_14, %c0_15, %c0_16, %c0_17], %35 {strides = array<i32>} : memref<1x8x16x4xf32, #tpu.memory_space<vmem>>, vector<1x1x16x4xf32>,
      %36 = vector.extract_strided_slice %26 {offsets = [24, 0], sizes = [16, 4], strides = [1, 1]} : vector<192x4xf32> to vector<16x4xf32>
      %c0_18 = arith.constant 0 : index
      %c1 = arith.constant 1 : index
      %c0_19 = arith.constant 0 : index
      %c0_20 = arith.constant 0 : index
      %37 = vector.load %arg5[%c0_18, %c1, %c0_19, %c0_20] : memref<1x8x16x4xf32, #tpu.memory_space<vmem>>, vector<1x1x16x4xf32>
      %38 = vector.shape_cast %37 : vector<1x1x16x4xf32> to vector<16x4xf32>
      %39 = arith.addf %36, %38 : vector<16x4xf32>
      %cst_21 = arith.constant 0.000000e+00 : f32
      %40 = vector.broadcast %cst_21 : f32 to vector<16x4xf32>
      %41 = arith.maximumf %39, %40 : vector<16x4xf32>
      %c0_22 = arith.constant 0 : index
      %c1_23 = arith.constant 1 : index
      %c0_24 = arith.constant 0 : index
      %c0_25 = arith.constant 0 : index
      %42 = vector.load %arg6[%c0_22, %c1_23, %c0_24, %c0_25] : memref<1x8x16x4xf32, #tpu.memory_space<vmem>>, vector<1x1x16x4xf32>
      %43 = vector.shape_cast %42 : vector<1x1x16x4xf32> to vector<16x4xf32>
      %44 = vector.shape_cast %41 : vector<16x4xf32> to vector<1x1x16x4xf32>
      tpu.vector_store %arg6[%c0_22, %c1_23, %c0_24, %c0_25], %44 {strides = array<i32>} : memref<1x8x16x4xf32, #tpu.memory_space<vmem>>, vector<1x1x16x4xf32>,
      %45 = vector.extract_strided_slice %26 {offsets = [48, 0], sizes = [16, 4], strides = [1, 1]} : vector<192x4xf32> to vector<16x4xf32>
      %c0_26 = arith.constant 0 : index
      %c2 = arith.constant 2 : index
      %c0_27 = arith.constant 0 : index
      %c0_28 = arith.constant 0 : index
      %46 = vector.load %arg5[%c0_26, %c2, %c0_27, %c0_28] : memref<1x8x16x4xf32, #tpu.memory_space<vmem>>, vector<1x1x16x4xf32>
      %47 = vector.shape_cast %46 : vector<1x1x16x4xf32> to vector<16x4xf32>
      %48 = arith.addf %45, %47 : vector<16x4xf32>
      %cst_29 = arith.constant 0.000000e+00 : f32
      %49 = vector.broadcast %cst_29 : f32 to vector<16x4xf32>
      %50 = arith.maximumf %48, %49 : vector<16x4xf32>
      %c0_30 = arith.constant 0 : index
      %c2_31 = arith.constant 2 : index
      %c0_32 = arith.constant 0 : index
      %c0_33 = arith.constant 0 : index
      %51 = vector.load %arg6[%c0_30, %c2_31, %c0_32, %c0_33] : memref<1x8x16x4xf32, #tpu.memory_space<vmem>>, vector<1x1x16x4xf32>
      %52 = vector.shape_cast %51 : vector<1x1x16x4xf32> to vector<16x4xf32>
      %53 = vector.shape_cast %50 : vector<16x4xf32> to vector<1x1x16x4xf32>
      tpu.vector_store %arg6[%c0_30, %c2_31, %c0_32, %c0_33], %53 {strides = array<i32>} : memref<1x8x16x4xf32, #tpu.memory_space<vmem>>, vector<1x1x16x4xf32>,
      %54 = vector.extract_strided_slice %26 {offsets = [72, 0], sizes = [16, 4], strides = [1, 1]} : vector<192x4xf32> to vector<16x4xf32>
      %c0_34 = arith.constant 0 : index
      %c3 = arith.constant 3 : index
      %c0_35 = arith.constant 0 : index
      %c0_36 = arith.constant 0 : index
      %55 = vector.load %arg5[%c0_34, %c3, %c0_35, %c0_36] : memref<1x8x16x4xf32, #tpu.memory_space<vmem>>, vector<1x1x16x4xf32>
      %56 = vector.shape_cast %55 : vector<1x1x16x4xf32> to vector<16x4xf32>
      %57 = arith.addf %54, %56 : vector<16x4xf32>
      %cst_37 = arith.constant 0.000000e+00 : f32
      %58 = vector.broadcast %cst_37 : f32 to vector<16x4xf32>
      %59 = arith.maximumf %57, %58 : vector<16x4xf32>
      %c0_38 = arith.constant 0 : index
      %c3_39 = arith.constant 3 : index
      %c0_40 = arith.constant 0 : index
      %c0_41 = arith.constant 0 : index
      %60 = vector.load %arg6[%c0_38, %c3_39, %c0_40, %c0_41] : memref<1x8x16x4xf32, #tpu.memory_space<vmem>>, vector<1x1x16x4xf32>
      %61 = vector.shape_cast %60 : vector<1x1x16x4xf32> to vector<16x4xf32>
      %62 = vector.shape_cast %59 : vector<16x4xf32> to vector<1x1x16x4xf32>
      tpu.vector_store %arg6[%c0_38, %c3_39, %c0_40, %c0_41], %62 {strides = array<i32>} : memref<1x8x16x4xf32, #tpu.memory_space<vmem>>, vector<1x1x16x4xf32>,
      %63 = vector.extract_strided_slice %26 {offsets = [96, 0], sizes = [16, 4], strides = [1, 1]} : vector<192x4xf32> to vector<16x4xf32>
      %c0_42 = arith.constant 0 : index
      %c4 = arith.constant 4 : index
      %c0_43 = arith.constant 0 : index
      %c0_44 = arith.constant 0 : index
      %64 = vector.load %arg5[%c0_42, %c4, %c0_43, %c0_44] : memref<1x8x16x4xf32, #tpu.memory_space<vmem>>, vector<1x1x16x4xf32>
      %65 = vector.shape_cast %64 : vector<1x1x16x4xf32> to vector<16x4xf32>
      %66 = arith.addf %63, %65 : vector<16x4xf32>
      %cst_45 = arith.constant 0.000000e+00 : f32
      %67 = vector.broadcast %cst_45 : f32 to vector<16x4xf32>
      %68 = arith.maximumf %66, %67 : vector<16x4xf32>
      %c0_46 = arith.constant 0 : index
      %c4_47 = arith.constant 4 : index
      %c0_48 = arith.constant 0 : index
      %c0_49 = arith.constant 0 : index
      %69 = vector.load %arg6[%c0_46, %c4_47, %c0_48, %c0_49] : memref<1x8x16x4xf32, #tpu.memory_space<vmem>>, vector<1x1x16x4xf32>
      %70 = vector.shape_cast %69 : vector<1x1x16x4xf32> to vector<16x4xf32>
      %71 = vector.shape_cast %68 : vector<16x4xf32> to vector<1x1x16x4xf32>
      tpu.vector_store %arg6[%c0_46, %c4_47, %c0_48, %c0_49], %71 {strides = array<i32>} : memref<1x8x16x4xf32, #tpu.memory_space<vmem>>, vector<1x1x16x4xf32>,
      %72 = vector.extract_strided_slice %26 {offsets = [120, 0], sizes = [16, 4], strides = [1, 1]} : vector<192x4xf32> to vector<16x4xf32>
      %c0_50 = arith.constant 0 : index
      %c5 = arith.constant 5 : index
      %c0_51 = arith.constant 0 : index
      %c0_52 = arith.constant 0 : index
      %73 = vector.load %arg5[%c0_50, %c5, %c0_51, %c0_52] : memref<1x8x16x4xf32, #tpu.memory_space<vmem>>, vector<1x1x16x4xf32>
      %74 = vector.shape_cast %73 : vector<1x1x16x4xf32> to vector<16x4xf32>
      %75 = arith.addf %72, %74 : vector<16x4xf32>
      %cst_53 = arith.constant 0.000000e+00 : f32
      %76 = vector.broadcast %cst_53 : f32 to vector<16x4xf32>
      %77 = arith.maximumf %75, %76 : vector<16x4xf32>
      %c0_54 = arith.constant 0 : index
      %c5_55 = arith.constant 5 : index
      %c0_56 = arith.constant 0 : index
      %c0_57 = arith.constant 0 : index
      %78 = vector.load %arg6[%c0_54, %c5_55, %c0_56, %c0_57] : memref<1x8x16x4xf32, #tpu.memory_space<vmem>>, vector<1x1x16x4xf32>
      %79 = vector.shape_cast %78 : vector<1x1x16x4xf32> to vector<16x4xf32>
      %80 = vector.shape_cast %77 : vector<16x4xf32> to vector<1x1x16x4xf32>
      tpu.vector_store %arg6[%c0_54, %c5_55, %c0_56, %c0_57], %80 {strides = array<i32>} : memref<1x8x16x4xf32, #tpu.memory_space<vmem>>, vector<1x1x16x4xf32>,
      %81 = vector.extract_strided_slice %26 {offsets = [144, 0], sizes = [16, 4], strides = [1, 1]} : vector<192x4xf32> to vector<16x4xf32>
      %c0_58 = arith.constant 0 : index
      %c6 = arith.constant 6 : index
      %c0_59 = arith.constant 0 : index
      %c0_60 = arith.constant 0 : index
      %82 = vector.load %arg5[%c0_58, %c6, %c0_59, %c0_60] : memref<1x8x16x4xf32, #tpu.memory_space<vmem>>, vector<1x1x16x4xf32>
      %83 = vector.shape_cast %82 : vector<1x1x16x4xf32> to vector<16x4xf32>
      %84 = arith.addf %81, %83 : vector<16x4xf32>
      %cst_61 = arith.constant 0.000000e+00 : f32
      %85 = vector.broadcast %cst_61 : f32 to vector<16x4xf32>
      %86 = arith.maximumf %84, %85 : vector<16x4xf32>
      %c0_62 = arith.constant 0 : index
      %c6_63 = arith.constant 6 : index
      %c0_64 = arith.constant 0 : index
      %c0_65 = arith.constant 0 : index
      %87 = vector.load %arg6[%c0_62, %c6_63, %c0_64, %c0_65] : memref<1x8x16x4xf32, #tpu.memory_space<vmem>>, vector<1x1x16x4xf32>
      %88 = vector.shape_cast %87 : vector<1x1x16x4xf32> to vector<16x4xf32>
      %89 = vector.shape_cast %86 : vector<16x4xf32> to vector<1x1x16x4xf32>
      tpu.vector_store %arg6[%c0_62, %c6_63, %c0_64, %c0_65], %89 {strides = array<i32>} : memref<1x8x16x4xf32, #tpu.memory_space<vmem>>, vector<1x1x16x4xf32>,
      %90 = vector.extract_strided_slice %26 {offsets = [168, 0], sizes = [16, 4], strides = [1, 1]} : vector<192x4xf32> to vector<16x4xf32>
      %c0_66 = arith.constant 0 : index
      %c7 = arith.constant 7 : index
      %c0_67 = arith.constant 0 : index
      %c0_68 = arith.constant 0 : index
      %91 = vector.load %arg5[%c0_66, %c7, %c0_67, %c0_68] : memref<1x8x16x4xf32, #tpu.memory_space<vmem>>, vector<1x1x16x4xf32>
      %92 = vector.shape_cast %91 : vector<1x1x16x4xf32> to vector<16x4xf32>
      %93 = arith.addf %90, %92 : vector<16x4xf32>
      %cst_69 = arith.constant 0.000000e+00 : f32
      %94 = vector.broadcast %cst_69 : f32 to vector<16x4xf32>
      %95 = arith.maximumf %93, %94 : vector<16x4xf32>
      %c0_70 = arith.constant 0 : index
      %c7_71 = arith.constant 7 : index
      %c0_72 = arith.constant 0 : index
      %c0_73 = arith.constant 0 : index
      %96 = vector.load %arg6[%c0_70, %c7_71, %c0_72, %c0_73] : memref<1x8x16x4xf32, #tpu.memory_space<vmem>>, vector<1x1x16x4xf32>
      %97 = vector.shape_cast %96 : vector<1x1x16x4xf32> to vector<16x4xf32>
      %98 = vector.shape_cast %95 : vector<16x4xf32> to vector<1x1x16x4xf32>
      tpu.vector_store %arg6[%c0_70, %c7_71, %c0_72, %c0_73], %98 {strides = array<i32>} : memref<1x8x16x4xf32, #tpu.memory_space<vmem>>, vector<1x1x16x4xf32>,
    } else {
    }
    return
  }
  func.func @transform_0(%arg0: i32, %arg1: i32, %arg2: i32) -> (i32, i32, i32) {
    %c0_i32 = arith.constant 0 : i32
    %c0_i32_0 = arith.constant 0 : i32
    %c0_i32_1 = arith.constant 0 : i32
    return %arg0, %c0_i32, %c0_i32_0 : i32, i32, i32
  }
  func.func @transform_1(%arg0: i32, %arg1: i32, %arg2: i32) -> (i32, i32, i32) {
    %c0_i32 = arith.constant 0 : i32
    %c0_i32_0 = arith.constant 0 : i32
    %c0_i32_1 = arith.constant 0 : i32
    %c0_i32_2 = arith.constant 0 : i32
    return %c0_i32, %c0_i32_0, %c0_i32_1 : i32, i32, i32
  }
  func.func @transform_2(%arg0: i32, %arg1: i32, %arg2: i32) -> (i32, i32, i32, i32) {
    %0 = arith.muli %arg1, %arg2 : i32
    %c0_i32 = arith.constant 0 : i32
    %c0_i32_0 = arith.constant 0 : i32
    %c0_i32_1 = arith.constant 0 : i32
    return %arg0, %0, %c0_i32, %c0_i32_0 : i32, i32, i32, i32
  }
  func.func @transform_3(%arg0: i32, %arg1: i32, %arg2: i32) -> (i32, i32, i32, i32) {
    %0 = arith.muli %arg1, %arg2 : i32
    %c0_i32 = arith.constant 0 : i32
    %c0_i32_0 = arith.constant 0 : i32
    %c0_i32_1 = arith.constant 0 : i32
    return %arg0, %0, %c0_i32, %c0_i32_0 : i32, i32, i32, i32
  }
}

</mosaic_0001>

<bundles_post_ra>
// kernel: basic_block_orj_forward.2
= control target key start
LH: loop header
LB: loop body
LE: loop exit
PB: predicated region body
PF: predicated region fallthrough
CT: control target
= control target key end

     0   :  { %s3546_s9 = smov 0   ;;  %s3548_s10 = smov 0   ;;  %s4901_s0 = inlined_call_operand.vmem [shape: bf16[2,456,4], index: 0, kind: input, shape index: {}]   ;;  %s4902_s1 = inlined_call_operand.vmem [shape: bf16[9,4,4], index: 1, kind: input, shape index: {}]   ;;  %s4903_s2 = inlined_call_operand.vmem [shape: bf16[2,16,16,4], index: 2, kind: output, shape index: {}]  }
   0x1   :  { %s3550_s11 = smov 0   ;;  %s3552_s12 = smov 0  }
   0x2   :  { %s3554_s13 = smov 0   ;;  %s3556_s14 = smov 0  }
   0x3   :  { %s3558_s15 = smov 0  }
   0x4 LB: > { %s24_s16 = sadd.s32 1, %s3514_s12  ;;  %s27_s17 = sadd.s32 1, %s3518_s13  ;;  %s3526_s15 = sphi %s3558_s15, %s12_s15   ;;  %s3522_s14 = sphi %s3556_s14, %s4964_s14   ;;  %s3518_s13 = sphi %s3554_s13, %s4963_s13   ;;  %s3514_s12 = sphi %s3552_s12, %s4962_s12   ;;  %s3510_s11 = sphi %s3550_s11, %s4961_s11   ;;  %s3506_s10 = sphi %s3548_s10, %s4960_s10   ;;  %s3502_s9 = sphi %s3546_s9, %s4959_s9  }
   0x5   : > { %p25_p0 = scmp.ge.s32.totalorder %s24_s16, 2  ;;  %p3044_p1 = scmp.ge.s32.totalorder %s3526_s15, 1 }
   0x6   : > { %p135_p2 = scmp.lt.s32.totalorder %s3526_s15, 9  ;;  %s31_s18 = sadd.s32 1, %s3522_s14 }
   0x7   : > { %s4966_s16 = smov (%p25_p0, %s24_s16), 0  ;;  %s4968_s17 = smov (!%p25_p0, %s27_s17), %s3518_s13 }
   0x8   : > { %p136_p3 = pnand %p3044_p1, %p135_p2  ;;  %p29_p4 = scmp.ge.s32.totalorder %s4968_s17, 2 }
   0x9   : > { %p163_p6 = scmp.lt.s32.totalorder (!%p136_p3), %s3510_s11, 1  ;;  %s168_s19 = smul.u32 (!%p136_p3), %s3502_s9, %s3506_s10 }
   0xa   : > { %s4970_s17 = smov (%p29_p4, %s4968_s17), 0  ;;  %s4972_s18 = smov (!%p29_p4, %s31_s18), %s3522_s14 }
   0xb   : > { %p33_p5 = scmp.ge.s32.totalorder %s4972_s18, 2  ;;  %139 = sbr.rel (%p136_p3) target bundleno = 692 (0x2b4), region = 28 }
   0xc   : > { %s3595_s20 = smul.u32 (!%p136_p3), 192, %s3502_s9  ;;  %s3046_s21 = sshll.u32 (!%p136_p3), %s168_s19, 3 }
   0xd   : > { %s4974_s18 = smov (%p33_p5, %s4972_s18), 0  ;;  %p172_p7 = scmp.lt.s32.totalorder (!%p136_p3), %s3046_s21, 15 }
   0xe   : > { %p3050_p8 = scmp.ne.s32.totalorder (!%p136_p3), %s3506_s10, 0 }
  0x10   : > { %s4976_s11 = smov (!%p163_p6, %s3510_s11), 1  ;;  %s4978_s21 = smov (!%p172_p7, %s3046_s21), 15 }
  0x11   : > { %s3405_s22 = smul.u32 228, %s4976_s11  ;;  %s3048_s26 = sshll.u32 %s4976_s11, 5 }
  0x12   : > { %s3047_s27 = sshll.u32 %s4978_s21, 1  ;;  %186 = sbr.rel (%p3050_p8) target bundleno = 632 (0x278), region = 32 }
  0x13   : > { %s3600_s25 = scalar_lea.vmem %s4901_s0, %s3405_s22  ;;  %s176_s28 = sadd.s32 %s3048_s26, %s3047_s27 }
  0x14   : > { %s3049_s29 = sshll.u32 %s176_s28, 2 }
  0x15   : > { %s3605_s4 = scalar_lea.vmem %s4903_s2, %s3049_s29 }
  0x17   : > { %p3051_p9 = scmp.ne.s32.totalorder %s3502_s9, 0 }
  0x19   : > { %190 = sbr.rel (%p3051_p9) target bundleno = 33 (0x21), region = 36 }
  0x1e   : > { %vm191_vm0 = vcmask 24576   ;;  %v3528_v0 = vmov 0.0  }
  0x1f   : > { %192 = vst.msk [vmem:[#allocation3] sm:$0x1] %vm191_vm0, %v3528_v0 }
  0x20   : > { %193 = vst.msk [vmem:[#allocation4] sm:$0x1] %vm191_vm0, %v3528_v0 }
  0x21 PF: > { %v668_v1 = vld [vmem:[%s4902_s1] sm:$0x3]  ;;  %vm776_vm1 = vcmask 1041408   ;;  %s651_s7 = sshra.s32 %s3595_s20, 3  ;;  %v3065_v3 = vld [vmem:[%s4902_s1 + $0x2] sm:$0x3] }
  0x22   : > { %v832_v2 = vsel %vm776_vm1, %v668_v1, 0  ;;  %s3064_s8 = sshll.u32 %s651_s7, 2  ;;  %vm757_vm2 = vcmask 31744   ;;  %v778_v4 = vsel %vm776_vm1, %v3065_v3, 0  ;;  %v3102_v5 = vld [vmem:[%s4902_s1 + $0x4] sm:$0x3] }
  0x23   : > { %3404 = vmatpush.bf16.msra.mxu3 %v832_v2  ;;  %s3618_s9 = scalar_lea.vmem %s3600_s25, %s3064_s8  ;;  %841 = vmatpush.bf16.msra.mxu1 %v832_v2  ;;  %v3110_v6 = vld [vmem:[%s4902_s1 + $0x6] sm:$0x3]  ;;  %v908_v9 = vsel %vm776_vm1, %v3102_v5, 0  ;;  %v3141_v13 = vld [vmem:[%s4902_s1 + $0x8] sm:$0x3]  ;;  %s961_s7 = sadd.s32 24, %s3595_s20 }
  0x24   : > { %v3628_v7 = vld [vmem:[%s3618_s9 + $0x18] sm:$0xff]  ;;  %3403 = vmatpush.bf16.msra.mxu2 %v778_v4  ;;  %787 = vmatpush.bf16.msra.mxu0 %v778_v4  ;;  %v3631_v8 = vld [vmem:[%s3618_s9 + $0x20] sm:$0xff]  ;;  %v1030_v11 = vsel %vm776_vm1, %v3110_v6, 0  ;;  %v3639_v12 = vld [vmem:[%s3618_s9 + $0x8] sm:$0xff]  ;;  %v1153_v21 = vsel %vm776_vm1, %v3141_v13, 0  ;;  %s962_s8 = sshra.s32 %s961_s7, 3 }
  0x25   : > { %v3635_v10 = vld [vmem:[%s3618_s9] sm:$0xff]  ;;  %v3148_v14 = vld [vmem:[%s4902_s1 + $0xa] sm:$0x3]  ;;  %v729_v15 = vshll.u32 %v3628_v7, 16  ;;  %v733_v16 = vshrl.u32 %v3628_v7, 16  ;;  %v737_v17 = vshll.u32 %v3631_v8, 16 }
  0x26   : > { %3099 = vmatmul.msk.bf16.vlgmr.msra.gmra.mxu3 %vm757_vm2, %v3628_v7  ;;  %v706_v18 = vshrl.u32 %v3635_v10, 16  ;;  %3096 = vmatmul.msk.bf16.vlgmr.msra.gmra.mxu1 %vm757_vm2, %v3635_v10  ;;  %v708_v19 = vshll.u32 %v3635_v10, 16  ;;  %v713_v20 = vshll.u32 %v3639_v12, 16  ;;  %v1240_v22 = vsel %vm776_vm1, %v3148_v14, 0  ;;  %v3664_v31 = vld [vmem:[%s3618_s9 + $0x28] sm:$0xff]  ;;  %v3667_v32 = vld [vmem:[%s3618_s9 + $0x10] sm:$0xff] }
  0x27   : > { %1039 = vmatpush.bf16.msrb.mxu3 %v1030_v11  ;;  %v731_v23 = vrot.slane %v729_v15, 1  ;;  %v739_v24 = vrot.slane %v737_v17, 1  ;;  %1249 = vmatpush.bf16.msrb.mxu1 %v1240_v22  ;;  %vm704_vm3 = vsmask.f32 7424  ;;  %v741_v33 = vshrl.u32 %v3631_v8, 16  ;;  %s3109_s11 = sshll.u32 %s962_s8, 2 }
  0x28   : > { %917 = vmatpush.bf16.msrb.mxu2 %v908_v9  ;;  %1162 = vmatpush.bf16.msrb.mxu0 %v1153_v21  ;;  %v710_v25 = vrot.slane %v708_v19, 1  ;;  %v715_v26 = vrot.slane %v713_v20, 1  ;;  %v745_v34 = vshll.u32 %v3664_v31, 16  ;;  %v717_v35 = vshrl.u32 %v3639_v12, 16  ;;  %v667_v41 = vld [vmem:[%s3618_s9 + $0x30] sm:$0xf]  ;;  %s3709_s23 = scalar_lea.vmem %s3600_s25, %s3109_s11 }
  0x29   : > { %v735_v27 = vor.u32 %v733_v16, %v731_v23  ;;  %v721_v36 = vshll.u32 %v3667_v32, 16  ;;  %v743_v37 = vor.u32 %v741_v33, %v739_v24  ;;  %v696_v43 = vunpack.c.l.b16 %v667_v41  ;;  %v3156_v45 = vld [vmem:[%s4902_s1 + $0xc] sm:$0x3]  ;;  %v3187_v48 = vld [vmem:[%s4902_s1 + $0xe] sm:$0x3]  ;;  %v3373_v62 = vld [vmem:[%s3709_s23] sm:$0xff] }
  0x2a   : > { %v711_v28 = vor.u32 %v710_v25, %v706_v18  ;;  %v747_v38 = vrot.slane %v745_v34, 1  ;;  %v719_v39 = vor.u32 %v717_v35, %v715_v26  ;;  %v1362_v47 = vsel %vm776_vm1, %v3156_v45, 0  ;;  %v3194_v55 = vld [vmem:[%s4902_s1 + $0x10] sm:$0x3]  ;;  %v3202_v56 = vld [vmem:[%s4902_s1 + $0x2] sm:$0x3] }
  0x2b   : > { %v740_v29 = vsel %vm704_vm3, %v735_v27, %v739_v24  ;;  %v723_v40 = vrot.slane %v721_v36, 1  ;;  %v3685_v46 = vpack.c.b16 %v696_v43, %v696_v43  ;;  %v1485_v49 = vsel %vm776_vm1, %v3187_v48, 0  ;;  %v3374_v63 = vld [vmem:[%s3709_s23 + $0x8] sm:$0xff]  ;;  %v3375_v17 = vld [vmem:[%s3709_s23 + $0x10] sm:$0xff]  ;;  %v3377_v36 = vld [vmem:[%s3709_s23 + $0x20] sm:$0xff]  ;;  %s1293_s24 = sadd.s32 48, %s3595_s20 }
  0x2c   : > { %3093 = vmatmul.msk.bf16.vlgmr.msra.gmra.mxu2 %vm757_vm2, %v740_v29  ;;  %v716_v30 = vsel %vm704_vm3, %v711_v28, %v715_v26  ;;  %v748_v42 = vsel %vm704_vm3, %v743_v37, %v747_v38  ;;  %1494 = vmatpush.bf16.msra.mxu3 %v1485_v49  ;;  %v749_v50 = vshrl.u32 %v3664_v31, 16  ;;  %v725_v52 = vshrl.u32 %v3667_v32, 16  ;;  %v3376_v28 = vld [vmem:[%s3709_s23 + $0x18] sm:$0xff]  ;;  %s3761_s26 = sadd.s32 96, %s3595_s20  ;;  %s1294_s27 = sshra.s32 %s1293_s24, 3 }
  0x2d   : > { %3090 = vmatmul.msk.bf16.vlgmr.msra.gmra.mxu0 %vm757_vm2, %v716_v30  ;;  %v724_v44 = vsel %vm704_vm3, %v719_v39, %v723_v40  ;;  %1371 = vmatpush.bf16.msra.mxu2 %v1362_v47  ;;  %v753_v51 = vshll.u32 %v3685_v46, 16  ;;  %v1572_v58 = vsel %vm776_vm1, %v3194_v55, 0  ;;  %v1846_v59 = vsel %vm776_vm1, %v3202_v56, 0  ;;  %s1723_s28 = sshra.s32 %s3761_s26, 3  ;;  %s3155_s29 = sshll.u32 %s1294_s27, 2 }
  0x2e   : > { %v751_v53 = vor.u32 %v749_v50, %v747_v38  ;;  %v727_v57 = vor.u32 %v725_v52, %v723_v40  ;;  %1581 = vmatpush.bf16.msra.mxu0 %v1572_v58  ;;  %1855 = vmatpush.bf16.msra.mxu1 %v1846_v59  ;;  %v1090_v0 = vshll.u32 %v3373_v62, 16  ;;  %v1208_v1 = vrot.slane %v3373_v62, 1  ;;  %s3201_s5 = sshll.u32 %s1723_s28, 2  ;;  %v3239_v59 = vld [vmem:[%s4902_s1 + $0x4] sm:$0x3]  ;;  %s3776_s8 = scalar_lea.vmem %s3600_s25, %s3155_s29 }
  0x2f   : > { %v755_v54 = vrot.slane %v753_v51, 1  ;;  %v1209_v2 = vrot.slane %v3374_v63, 1  ;;  %vm875_vm4 = vcmask 1046528   ;;  %v1088_v3 = vshrl.u32 %v3373_v62, 16  ;;  %v978_v51 = vld [vmem:[%s3709_s23 + $0x30] sm:$0xf]  ;;  %s3780_s11 = scalar_lea.vmem %s3600_s25, %s3201_s5 }
  0x30   : > { %v732_v61 = vsel %vm704_vm3, %v727_v57, %v731_v23  ;;  %v1092_v4 = vrot.slane %v1090_v0, 1  ;;  %v1094_v5 = vshll.u32 %v3374_v63, 16  ;;  %v876_v9 = vrot.slane %v3635_v10, 1  ;;  %v1740_v57 = vld [vmem:[%s4902_s1] sm:$0x3]  ;;  %s4247_s9 = scalar_lea.vmem [#allocation2], %s3595_s20 }
  0x31   : > { %v756_v60 = vsel %vm704_vm3, %v751_v53, %v755_v54  ;;  %v1210_v6 = vsel %vm875_vm4, %v1208_v1, %v1209_v2  ;;  %v877_v11 = vrot.slane %v3639_v12, 1  ;;  %v1211_v18 = vrot.slane %v3375_v17, 1  ;;  %v3379_v0 = vld [vmem:[%s3776_s8] sm:$0xff]  ;;  %s2356_s21 = sadd.s32 48, %s3761_s26 }
  0x32   : > { %v1093_v13 = vor.u32 %v1092_v4, %v1088_v3  ;;  %v1096_v14 = vrot.slane %v1094_v5, 1  ;;  %v1098_v19 = vshrl.u32 %v3374_v63, 16  ;;  %v1101_v20 = vshll.u32 %v3375_v17, 16  ;;  %v3785_v3 = vld [vmem:[%s3780_s11] sm:$0xff] }
  0x33   : > { %v878_v15 = vsel %vm875_vm4, %v876_v9, %v877_v11  ;;  %v1212_v10 = vsel %vm875_vm4, %v1209_v2, %v1211_v18  ;;  %v881_v21 = vrot.slane %v3628_v7, 1  ;;  %v883_v22 = vrot.slane %v3631_v8, 1 }
  0x34   : > { %v1097_v16 = vsel %vm704_vm3, %v1093_v13, %v1096_v14  ;;  %v1100_v23 = vor.u32 %v1098_v19, %v1096_v14  ;;  %v1103_v24 = vrot.slane %v1101_v20, 1  ;;  %v1213_v29 = vrot.slane %v3376_v28, 1  ;;  %v3794_v13 = vld [vmem:[%s3776_s8 + $0x8] sm:$0xff] }
  0x35   : > { %v884_v25 = vsel %vm875_vm4, %v881_v21, %v883_v22  ;;  %v1105_v30 = vshrl.u32 %v3375_v17, 16  ;;  %v1215_v37 = vrot.slane %v3377_v36, 1  ;;  %v1112_v38 = vshrl.u32 %v3376_v28, 16  ;;  %v3797_v14 = vld [vmem:[%s3780_s11 + $0x8] sm:$0xff] }
  0x36   : > { %3100 = vmatmul.msk.bf16.gmra.mxu3 %vm757_vm2, %v3631_v8  ;;  %3097 = vmatmul.msk.bf16.gmra.mxu1 %vm757_vm2, %v3639_v12  ;;  %v879_v12 = vrot.slane %v3667_v32, 1  ;;  %v1104_v27 = vsel %vm704_vm3, %v1100_v23, %v1103_v24  ;;  %v1214_v7 = vsel %vm875_vm4, %v1211_v18, %v1213_v29  ;;  %v1115_v39 = vshll.u32 %v3377_v36, 16  ;;  %v3278_v18 = vld [vmem:[%s4902_s1 + $0x8] sm:$0x3] }
  0x37   : > { %v1107_v8 = vor.u32 %v1105_v30, %v1103_v24  ;;  %v1216_v40 = vsel %vm875_vm4, %v1213_v29, %v1215_v37  ;;  %v1119_v47 = vshrl.u32 %v3377_v36, 16  ;;  %v885_v50 = vrot.slane %v3664_v31, 1 }
  0x38   : > { %v880_v26 = vsel %vm875_vm4, %v877_v11, %v879_v12  ;;  %v882_v34 = vsel %vm875_vm4, %v879_v12, %v881_v21  ;;  %v1086_v54 = vunpack.c.l.b16 %v978_v51  ;;  %v1900_v58 = vsel %vm776_vm1, %v1740_v57, 0  ;;  %v3247_v11 = vld [vmem:[%s4902_s1 + $0x6] sm:$0x3] }
  0x39   : > { %v886_v55 = vsel %vm875_vm4, %v883_v22, %v885_v50  ;;  %v887_v4 = vrot.slane %v3685_v46, 1  ;;  %v1422_v9 = vshll.u32 %v3379_v0, 16  ;;  %v1420_v20 = vshrl.u32 %v3379_v0, 16 }
  0x3a   : > { %v2217_v12 = vsel %vm776_vm1, %v3278_v18, 0  ;;  %v1426_v23 = vshll.u32 %v3794_v13, 16  ;;  %v1776_v24 = vshrl.u32 %v3785_v3, 16 }
  0x3c   : > { %3094 = vmatmul.msk.bf16.gmra.mxu2 %vm757_vm2, %v748_v42  ;;  %v1117_v42 = vrot.slane %v1115_v39, 1  ;;  %v1428_v29 = vrot.slane %v1426_v23, 1  ;;  %v1540_v39 = vrot.slane %v3379_v0, 1 }
  0x3d   : > { %3091 = vmatmul.msk.bf16.gmra.mxu0 %vm757_vm2, %v724_v44  ;;  %v3378_v44 = vld [vmem:[%s3709_s23 + $0x28] sm:$0xff]  ;;  %s2027_s23 = sadd.s32 24, %s3761_s26  ;;  %s4298_s26 = sshra.s32 %s2356_s21, 3 }
  0x3e   : > { %v1217_v45 = vrot.slane %v3378_v44, 1  ;;  %v1122_v48 = vshll.u32 %v3378_v44, 16  ;;  %v1121_v52 = vor.u32 %v1119_v47, %v1117_v42  ;;  %s2028_s24 = sshra.s32 %s2027_s23, 3  ;;  %s3292_s22 = sshll.u32 %s4298_s26, 2 }
  0x3f   : > { %s3246_s29 = sshll.u32 %s2028_s24, 2  ;;  %s4329_s23 = scalar_lea.vmem %s3600_s25, %s3292_s22 }
  0x40   : > { %v1218_v49 = vsel %vm875_vm4, %v1215_v37, %v1217_v45  ;;  %v1124_v53 = vrot.slane %v1122_v48, 1  ;;  %s3951_s5 = scalar_lea.vmem %s3600_s25, %s3246_s29 }
  0x42   : > { %v1125_v56 = vsel %vm704_vm3, %v1121_v52, %v1124_v53  ;;  %v1787_v52 = vshrl.u32 %v3797_v14, 16 }
  0x46   : > { %3101 = vmatmul.msk.bf16.gmra.mxu3 %vm757_vm2, %v3664_v31  ;;  %3098 = vmatmul.msk.bf16.gmra.mxu1 %vm757_vm2, %v3667_v32  ;;  %v1108_v32 = vshll.u32 %v3376_v28, 16  ;;  %v1087_v31 = vpack.c.b16 %v1086_v54, %v1086_v54 }
  0x48   : > { %v1110_v33 = vrot.slane %v1108_v32, 1 }
  0x4a   : > { %v1111_v35 = vsel %vm704_vm3, %v1107_v8, %v1110_v33  ;;  %v1114_v41 = vor.u32 %v1112_v38, %v1110_v33 }
  0x4c   : > { %3095 = vmatmul.msk.bf16.gmra.mxu2 %vm757_vm2, %v756_v60  ;;  %v1118_v43 = vsel %vm704_vm3, %v1114_v41, %v1117_v42  ;;  %v1219_v60 = vrot.slane %v1087_v31, 1  ;;  %v3824_v41 = vld [vmem:[%s3776_s8 + $0x10] sm:$0xff] }
  0x4d   : > { %3092 = vmatmul.msk.bf16.gmra.mxu0 %vm757_vm2, %v732_v61  ;;  %v1974_v61 = vsel %vm776_vm1, %v3239_v59, 0  ;;  %v3827_v42 = vld [vmem:[%s3780_s11 + $0x10] sm:$0xff]  ;;  %v1433_v51 = vshll.u32 %v3824_v41, 16 }
  0x4e   : > { %v1220_v2 = vsel %vm875_vm4, %v1217_v45, %v1219_v60 }
  0x56   : > { %3135 = vmatmul.msk.bf16.vlgmr.msrb.gmra.mxu3 %vm757_vm2, %v3373_v62  ;;  %3149 = vmatmul.msk.bf16.vlgmr.msrb.gmra.mxu1 %vm757_vm2, %v1210_v6  ;;  %v1126_v62 = vshrl.u32 %v3378_v44, 16 }
  0x57   : > { %1983 = vmatpush.bf16.msrb.mxu3 %v1974_v61  ;;  %2226 = vmatpush.bf16.msrb.mxu1 %v2217_v12 }
  0x58   : > { %v1128_v5 = vor.u32 %v1126_v62, %v1124_v53  ;;  %v1791_v53 = vshll.u32 %v3827_v42, 16 }
  0x5a   : > { %v1793_v57 = vrot.slane %v1791_v53, 1 }
  0x5c   : > { %3103 = vmatmul.msk.bf16.vlgmr.msrb.gmra.mxu2 %vm757_vm2, %v878_v15  ;;  %v1778_v15 = vshll.u32 %v3785_v3, 16 }
  0x5d   : > { %3142 = vmatmul.msk.bf16.vlgmr.msrb.gmra.mxu0 %vm757_vm2, %v1097_v16  ;;  %1909 = vmatpush.bf16.msrb.mxu2 %v1900_v58  ;;  %v2095_v16 = vsel %vm776_vm1, %v3247_v11, 0 }
  0x5e   : > { %2104 = vmatpush.bf16.msrb.mxu0 %v2095_v16 }
  0x66   : > { %3136 = vmatmul.msk.bf16.gmra.mxu3 %vm757_vm2, %v3374_v63  ;;  %3150 = vmatmul.msk.bf16.gmra.mxu1 %vm757_vm2, %v1212_v10  ;;  %v1130_v63 = vshll.u32 %v1087_v31, 16  ;;  %v1424_v10 = vrot.slane %v1422_v9, 1 }
  0x68   : > { %v1132_v6 = vrot.slane %v1130_v63, 1 }
  0x6a   : > { %v1133_v19 = vsel %vm704_vm3, %v1128_v5, %v1132_v6  ;;  %v3853_v5 = vld [vmem:[%s3780_s11 + $0x18] sm:$0xff] }
  0x6c   : > { %3104 = vmatmul.msk.bf16.gmra.mxu2 %vm757_vm2, %v880_v26  ;;  %v1783_v26 = vshll.u32 %v3797_v14, 16 }
  0x6d   : > { %3143 = vmatmul.msk.bf16.gmra.mxu0 %vm757_vm2, %v1104_v27 }
  0x6e   : > { %v1785_v32 = vrot.slane %v1783_v26, 1 }
  0x70   : > { %v1789_v31 = vor.u32 %v1787_v52, %v1785_v32 }
  0x76   : > { %3137 = vmatmul.msk.bf16.gmra.mxu3 %vm757_vm2, %v3375_v17  ;;  %3151 = vmatmul.msk.bf16.gmra.mxu1 %vm757_vm2, %v1214_v7  ;;  %v888_v17 = vsel %vm875_vm4, %v885_v50, %v887_v4  ;;  %v1430_v50 = vshrl.u32 %v3794_v13, 16  ;;  %v3850_v4 = vld [vmem:[%s3776_s8 + $0x18] sm:$0xff] }
  0x77   : > { %v1440_v18 = vshll.u32 %v3850_v4, 16 }
  0x7c   : > { %3105 = vmatmul.msk.bf16.gmra.mxu2 %vm757_vm2, %v882_v34 }
  0x7d   : > { %3144 = vmatmul.msk.bf16.gmra.mxu0 %vm757_vm2, %v1111_v35 }
  0x86   : > { %3138 = vmatmul.msk.bf16.gmra.mxu3 %vm757_vm2, %v3376_v28  ;;  %3152 = vmatmul.msk.bf16.gmra.mxu1 %vm757_vm2, %v1216_v40  ;;  %v1425_v28 = vor.u32 %v1424_v10, %v1420_v20  ;;  %v1541_v40 = vrot.slane %v3794_v13, 1  ;;  %v1799_v20 = vshll.u32 %v3853_v5, 16 }
  0x88   : > { %v1429_v35 = vsel %vm704_vm3, %v1425_v28, %v1428_v29  ;;  %v1542_v47 = vsel %vm875_vm4, %v1540_v39, %v1541_v40  ;;  %v1801_v23 = vrot.slane %v1799_v20, 1 }
  0x8c   : > { %3106 = vmatmul.msk.bf16.gmra.mxu2 %vm757_vm2, %v884_v25  ;;  %v1780_v25 = vrot.slane %v1778_v15, 1 }
  0x8d   : > { %3145 = vmatmul.msk.bf16.gmra.mxu0 %vm757_vm2, %v1118_v43 }
  0x8e   : > { %v1781_v30 = vor.u32 %v1780_v25, %v1776_v24 }
  0x90   : > { %v1786_v37 = vsel %vm704_vm3, %v1781_v30, %v1785_v32 }
  0x96   : > { %3139 = vmatmul.msk.bf16.gmra.mxu3 %vm757_vm2, %v3377_v36  ;;  %3153 = vmatmul.msk.bf16.gmra.mxu1 %vm757_vm2, %v1218_v49 }
  0x9c   : > { %3107 = vmatmul.msk.bf16.gmra.mxu2 %vm757_vm2, %v886_v55  ;;  %v1432_v55 = vor.u32 %v1430_v50, %v1428_v29 }
  0x9d   : > { %3146 = vmatmul.msk.bf16.gmra.mxu0 %vm757_vm2, %v1125_v56  ;;  %v1435_v56 = vrot.slane %v1433_v51, 1 }
  0x9f   : > { %v1436_v62 = vsel %vm704_vm3, %v1432_v55, %v1435_v56 }
  0xa3   : > { %v843_v1 = vpop.f32.mrf.mxu1 }
  0xa6   : > { %3140 = vmatmul.msk.bf16.gmra.mxu3 %vm757_vm2, %v3378_v44  ;;  %3154 = vmatmul.msk.bf16.gmra.mxu1 %vm757_vm2, %v1220_v2 }
  0xa9   : > { %v858_v46 = vpop.f32.mrf.mxu3 }
  0xaa   : > { %v789_v21 = vpop.f32.mrf.mxu0 }
  0xab   : > { %v845_v22 = vpop.f32.mrf.mxu1  ;;  %v3810_v27 = vadd.f32 %v843_v1, %v789_v21  ;;  %v1794_v1 = vsel %vm704_vm3, %v1789_v31, %v1793_v57  ;;  %v1442_v21 = vrot.slane %v1440_v18, 1 }
  0xac   : > { %3108 = vmatmul.msk.bf16.gmra.mxu2 %vm757_vm2, %v888_v17  ;;  %v1437_v17 = vshrl.u32 %v3824_v41, 16 }
  0xad   : > { %3147 = vmatmul.msk.bf16.gmra.mxu0 %vm757_vm2, %v1133_v19  ;;  %v1795_v19 = vshrl.u32 %v3827_v42, 16 }
  0xae   : > { %v1439_v12 = vor.u32 %v1437_v17, %v1435_v56 }
  0xaf   : > { %v804_v7 = vpop.f32.mrf.mxu2 }
  0xb0   : > { %v3814_v8 = vadd.f32 %v858_v46, %v804_v7  ;;  %v1443_v29 = vsel %vm704_vm3, %v1439_v12, %v1442_v21 }
  0xb1   : > { %v860_v33 = vpop.f32.mrf.mxu3 }
  0xb2   : > { %v791_v34 = vpop.f32.mrf.mxu0 }
  0xb3   : > { %v848_v36 = vpop.f32.mrf.mxu1  ;;  %v3818_v38 = vadd.f32 %v845_v22, %v791_v34  ;;  %v1797_v22 = vor.u32 %v1795_v19, %v1793_v57  ;;  %v3880_v34 = vld [vmem:[%s3780_s11 + $0x20] sm:$0xff] }
  0xb4   : > { %v1811_v12 = vshrl.u32 %v3880_v34, 16 }
  0xb5   : > { %v1802_v32 = vsel %vm704_vm3, %v1797_v22, %v1801_v23 }
  0xb6   : > { %3188 = vmatmul.msk.bf16.vlgmr.msra.gmra.mxu3 %vm757_vm2, %v1429_v35  ;;  %3227 = vmatmul.msk.bf16.vlgmr.msra.gmra.mxu1 %vm757_vm2, %v1786_v37 }
  0xb7   : > { %v806_v43 = vpop.f32.mrf.mxu2 }
  0xb8   : > { %v3829_v44 = vadd.f32 %v860_v33, %v806_v43  ;;  %v3877_v33 = vld [vmem:[%s3776_s8 + $0x20] sm:$0xff] }
  0xb9   : > { %v863_v45 = vpop.f32.mrf.mxu3 }
  0xba   : > { %v794_v48 = vpop.f32.mrf.mxu0 }
  0xbb   : > { %v850_v49 = vpop.f32.mrf.mxu1  ;;  %v3836_v54 = vadd.f32 %v848_v36, %v794_v48  ;;  %v1803_v48 = vshrl.u32 %v3853_v5, 16 }
  0xbc   : > { %3181 = vmatmul.msk.bf16.vlgmr.msra.gmra.mxu2 %vm757_vm2, %v3379_v0  ;;  %v1543_v0 = vrot.slane %v3824_v41, 1 }
  0xbd   : > { %3195 = vmatmul.msk.bf16.vlgmr.msra.gmra.mxu0 %vm757_vm2, %v1542_v47  ;;  %v1447_v47 = vshll.u32 %v3877_v33, 16  ;;  %v1805_v52 = vor.u32 %v1803_v48, %v1801_v23 }
  0xbe   : > { %v1544_v15 = vsel %vm875_vm4, %v1541_v40, %v1543_v0 }
  0xbf   : > { %v809_v58 = vpop.f32.mrf.mxu2  ;;  %v1449_v51 = vrot.slane %v1447_v47, 1 }
  0xc0   : > { %v3840_v59 = vadd.f32 %v863_v45, %v809_v58  ;;  %v1444_v45 = vshrl.u32 %v3850_v4, 16 }
  0xc1   : > { %v865_v60 = vpop.f32.mrf.mxu3 }
  0xc2   : > { %v796_v61 = vpop.f32.mrf.mxu0  ;;  %v1446_v50 = vor.u32 %v1444_v45, %v1442_v21 }
  0xc3   : > { %v853_v63 = vpop.f32.mrf.mxu1  ;;  %v3844_v2 = vadd.f32 %v850_v49, %v796_v61  ;;  %v1807_v49 = vshll.u32 %v3880_v34, 16 }
  0xc5   : > { %v1809_v53 = vrot.slane %v1807_v49, 1 }
  0xc6   : > { %3189 = vmatmul.msk.bf16.gmra.mxu3 %vm757_vm2, %v1436_v62  ;;  %3228 = vmatmul.msk.bf16.gmra.mxu1 %vm757_vm2, %v1794_v1  ;;  %v3899_v1 = vld [vmem:[%s3776_s8 + $0x28] sm:$0xff] }
  0xc7   : > { %v811_v6 = vpop.f32.mrf.mxu2  ;;  %v1810_v62 = vsel %vm704_vm3, %v1805_v52, %v1809_v53  ;;  %v1454_v20 = vshll.u32 %v3899_v1, 16 }
  0xc8   : > { %v3855_v9 = vadd.f32 %v865_v60, %v811_v6  ;;  %v1450_v60 = vsel %vm704_vm3, %v1446_v50, %v1449_v51  ;;  %v1549_v50 = vrot.slane %v3899_v1, 1 }
  0xc9   : > { %v868_v11 = vpop.f32.mrf.mxu3  ;;  %v1456_v23 = vrot.slane %v1454_v20, 1 }
  0xca   : > { %v799_v16 = vpop.f32.mrf.mxu0 }
  0xcb   : > { %v855_v46 = vpop.f32.mrf.mxu1  ;;  %v3862_v10 = vadd.f32 %v853_v63, %v799_v16  ;;  %v1547_v63 = vrot.slane %v3877_v33, 1 }
  0xcc   : > { %3182 = vmatmul.msk.bf16.gmra.mxu2 %vm757_vm2, %v3794_v13  ;;  %v1545_v13 = vrot.slane %v3850_v4, 1 }
  0xcd   : > { %3196 = vmatmul.msk.bf16.gmra.mxu0 %vm757_vm2, %v1544_v15 }
  0xce   : > { %v1546_v39 = vsel %vm875_vm4, %v1543_v0, %v1545_v13  ;;  %v3902_v0 = vld [vmem:[%s3780_s11 + $0x28] sm:$0xff]  ;;  %v1548_v16 = vsel %vm875_vm4, %v1545_v13, %v1547_v63 }
  0xcf   : > { %v814_v24 = vpop.f32.mrf.mxu2  ;;  %v1815_v21 = vshll.u32 %v3902_v0, 16 }
  0xd0   : > { %v3867_v25 = vadd.f32 %v868_v11, %v814_v24  ;;  %v1813_v24 = vor.u32 %v1811_v12, %v1809_v53 }
  0xd1   : > { %v870_v26 = vpop.f32.mrf.mxu3 }
  0xd2   : > { %v801_v28 = vpop.f32.mrf.mxu0 }
  0xd3   : > { %v1251_v30 = vpop.f32.mrf.mxu1  ;;  %v3871_v7 = vadd.f32 %v855_v46, %v801_v28  ;;  %v1451_v46 = vshrl.u32 %v3877_v33, 16  ;;  %v1310_v28 = vld [vmem:[%s3776_s8 + $0x30] sm:$0xf] }
  0xd5   : > { %v1453_v22 = vor.u32 %v1451_v46, %v1449_v51 }
  0xd6   : > { %3190 = vmatmul.msk.bf16.gmra.mxu3 %vm757_vm2, %v1443_v29  ;;  %3229 = vmatmul.msk.bf16.gmra.mxu1 %vm757_vm2, %v1802_v32  ;;  %v1739_v32 = vld [vmem:[%s3780_s11 + $0x30] sm:$0xf] }
  0xd7   : > { %v816_v35 = vpop.f32.mrf.mxu2  ;;  %v1767_v48 = vunpack.c.l.b16 %v1739_v32  ;;  %v3967_v32 = vld [vmem:[%s3951_s5 + $0x8] sm:$0xff] }
  0xd8   : > { %v3882_v36 = vadd.f32 %v870_v26, %v816_v35  ;;  %v1817_v26 = vrot.slane %v1815_v21, 1 }
  0xd9   : > { %v1041_v37 = vpop.f32.mrf.mxu3  ;;  %v3925_v51 = vpack.c.b16 %v1767_v48, %v1767_v48 }
  0xda   : > { %v1164_v40 = vpop.f32.mrf.mxu0  ;;  %v1818_v47 = vsel %vm704_vm3, %v1813_v24, %v1817_v26 }
  0xdb   : > { %v1253_v43 = vpop.f32.mrf.mxu1 }
  0xdc   : > { %3183 = vmatmul.msk.bf16.gmra.mxu2 %vm757_vm2, %v3824_v41 }
  0xdd   : > { %3197 = vmatmul.msk.bf16.gmra.mxu0 %vm757_vm2, %v1546_v39 }
  0xdf   : > { %v919_v55 = vpop.f32.mrf.mxu2 }
  0xe0   : > { %v949_v56 = vadd.f32 %v919_v55, %v3810_v27 }
  0xe1   : > { %v1043_v31 = vpop.f32.mrf.mxu3 }
  0xe2   : > { %v1071_v57 = vadd.f32 %v1041_v37, %v949_v56  ;;  %v1166_v58 = vpop.f32.mrf.mxu0  ;;  %v1418_v37 = vunpack.c.l.b16 %v1310_v28  ;;  %v1458_v56 = vshrl.u32 %v3899_v1, 16  ;;  %v3959_v28 = vld [vmem:[%s3951_s5] sm:$0xff] }
  0xe3   : > { %v1256_v61 = vpop.f32.mrf.mxu1 }
  0xe4   : > { %v1194_v41 = vadd.f32 %v1164_v40, %v1071_v57 }
  0xe6   : > { %3191 = vmatmul.msk.bf16.gmra.mxu3 %vm757_vm2, %v1450_v60  ;;  %3230 = vmatmul.msk.bf16.gmra.mxu1 %vm757_vm2, %v1810_v62  ;;  %v3904_v27 = vadd.f32 %v1251_v30, %v1194_v41  ;;  %v1550_v60 = vsel %vm875_vm4, %v1547_v63, %v1549_v50  ;;  %v1819_v41 = vshrl.u32 %v3902_v0, 16 }
  0xe7   : > { %v921_v6 = vpop.f32.mrf.mxu2 }
  0xe8   : > { %v950_v11 = vadd.f32 %v921_v6, %v3818_v38  ;;  %v1823_v6 = vshll.u32 %v3925_v51, 16  ;;  %v1821_v46 = vor.u32 %v1819_v41, %v1817_v26 }
  0xe9   : > { %v1046_v15 = vpop.f32.mrf.mxu3 }
  0xea   : > { %v1072_v17 = vadd.f32 %v1043_v31, %v950_v11  ;;  %v1169_v18 = vpop.f32.mrf.mxu0  ;;  %v1460_v11 = vor.u32 %v1458_v56, %v1456_v23 }
  0xeb   : > { %v1258_v19 = vpop.f32.mrf.mxu1 }
  0xec   : > { %3184 = vmatmul.msk.bf16.gmra.mxu2 %vm757_vm2, %v3850_v4  ;;  %v1195_v38 = vadd.f32 %v1166_v58, %v1072_v17  ;;  %v1457_v4 = vsel %vm704_vm3, %v1453_v22, %v1456_v23  ;;  %v1825_v17 = vrot.slane %v1823_v6, 1 }
  0xed   : > { %3198 = vmatmul.msk.bf16.gmra.mxu0 %vm757_vm2, %v1548_v16  ;;  %v3293_v16 = vld [vmem:[%s4902_s1 + $0xc] sm:$0x3] }
  0xee   : > { %v3916_v29 = vadd.f32 %v1253_v43, %v1195_v38  ;;  %v1419_v43 = vpack.c.b16 %v1418_v37, %v1418_v37  ;;  %v1826_v26 = vsel %vm704_vm3, %v1821_v46, %v1825_v17 }
  0xef   : > { %v924_v30 = vpop.f32.mrf.mxu2 }
  0xf0   : > { %v951_v13 = vadd.f32 %v924_v30, %v3836_v54  ;;  %v1462_v31 = vshll.u32 %v1419_v43, 16  ;;  %v1551_v30 = vrot.slane %v1419_v43, 1 }
  0xf1   : > { %v1048_v35 = vpop.f32.mrf.mxu3 }
  0xf2   : > { %v1073_v39 = vadd.f32 %v1046_v15, %v951_v13  ;;  %v1171_v40 = vpop.f32.mrf.mxu0  ;;  %v1464_v63 = vrot.slane %v1462_v31, 1  ;;  %v2154_v13 = vshll.u32 %v3959_v28, 16  ;;  %v1552_v48 = vsel %vm875_vm4, %v1549_v50, %v1551_v30  ;;  %v3331_v31 = vld [vmem:[%s4902_s1 + $0x10] sm:$0x3] }
  0xf3   : > { %v1261_v45 = vpop.f32.mrf.mxu1  ;;  %v1942_v50 = vrot.slane %v3785_v3, 1 }
  0xf4   : > { %v1196_v49 = vadd.f32 %v1169_v18, %v1073_v39  ;;  %v1465_v23 = vsel %vm704_vm3, %v1460_v11, %v1464_v63  ;;  %v2156_v56 = vrot.slane %v2154_v13, 1  ;;  %v2162_v13 = vshrl.u32 %v3967_v32, 16 }
  0xf6   : > { %3192 = vmatmul.msk.bf16.gmra.mxu3 %vm757_vm2, %v1457_v4  ;;  %3231 = vmatmul.msk.bf16.gmra.mxu1 %vm757_vm2, %v1818_v47  ;;  %v3928_v54 = vadd.f32 %v1256_v61, %v1196_v49 }
  0xf7   : > { %v926_v52 = vpop.f32.mrf.mxu2 }
  0xf8   : > { %v952_v53 = vadd.f32 %v926_v52, %v3844_v2  ;;  %v3285_v2 = vld [vmem:[%s4902_s1 + $0xa] sm:$0x3] }
  0xf9   : > { %v1051_v55 = vpop.f32.mrf.mxu3  ;;  %v2303_v15 = vsel %vm776_vm1, %v3285_v2, 0 }
  0xfa   : > { %v1074_v57 = vadd.f32 %v1048_v35, %v952_v53  ;;  %v1174_v58 = vpop.f32.mrf.mxu0  ;;  %2312 = vmatpush.bf16.msra.mxu2 %v2303_v15 }
  0xfb   : > { %v3933_v62 = vpop.f32.mrf.mxu1 }
  0xfc   : > { %3185 = vmatmul.msk.bf16.gmra.mxu2 %vm757_vm2, %v3877_v33  ;;  %v1197_v61 = vadd.f32 %v1171_v40, %v1074_v57  ;;  %v2424_v33 = vsel %vm776_vm1, %v3293_v16, 0  ;;  %v194_v40 = vlaneseq }
  0xfd   : > { %3199 = vmatmul.msk.bf16.gmra.mxu0 %vm757_vm2, %v1550_v60  ;;  %2433 = vmatpush.bf16.msra.mxu3 %v2424_v33 }
  0xfe   : > { %v3948_v18 = vadd.f32 %v1258_v19, %v1197_v61  ;;  %v3975_v49 = vshrl.u32 %v194_v40, 7 }
  0xff   : > { %v929_v20 = vpop.f32.mrf.mxu2 }
 0x100   : > { %v953_v12 = vadd.f32 %v929_v20, %v3862_v10  ;;  %v3324_v10 = vld [vmem:[%s4902_s1 + $0xe] sm:$0x3]  ;;  %v210_v57 = vand.u32 65535, %v3975_v49  ;;  %v211_v41 = vshrl.u32 %v3975_v49, 16  ;;  %v4000_v20 = vld [vmem:[%s3951_s5 + $0x10] sm:$0xff] }
 0x101   : > { %v1053_v21 = vpop.f32.mrf.mxu3  ;;  %v2546_v35 = vsel %vm776_vm1, %v3324_v10, 0  ;;  %v4007_v10 = vadd.s32 8, %v3975_v49 }
 0x102   : > { %v1075_v38 = vadd.f32 %v1051_v55, %v953_v12  ;;  %v1176_v22 = vpop.f32.mrf.mxu0  ;;  %2555 = vmatpush.bf16.msra.mxu0 %v2546_v35  ;;  %v2152_v55 = vshrl.u32 %v3959_v28, 16  ;;  %v214_v6 = vmul.u32 43690, %v210_v57  ;;  %v213_v15 = vmul.u32 43691, %v210_v57 }
 0x103   : > { %v3955_v24 = vpop.f32.mrf.mxu1  ;;  %v216_v12 = vmul.u32 43690, %v211_v41  ;;  %v2165_v35 = vshll.u32 %v4000_v20, 16 }
 0x104   : > { %v1198_v19 = vadd.f32 %v1174_v58, %v1075_v38  ;;  %v1943_v58 = vrot.slane %v3797_v14, 1  ;;  %v2157_v2 = vor.u32 %v2156_v56, %v2152_v55  ;;  %v217_v16 = vshll.u32 %v214_v6, 16 }
 0x105   : > { %v218_v40 = vshrl.u32 %v214_v6, 16 }
 0x106   : > { %3193 = vmatmul.msk.bf16.gmra.mxu3 %vm757_vm2, %v1465_v23  ;;  %3232 = vmatmul.msk.bf16.gmra.mxu1 %vm757_vm2, %v1826_v26  ;;  %v3971_v37 = vadd.f32 %v1261_v45, %v1198_v19  ;;  %v2158_v45 = vshll.u32 %v3967_v32, 16  ;;  %v1944_v33 = vsel %vm875_vm4, %v1942_v50, %v1943_v58  ;;  %vm221_vm5 = vc.u32 %v213_v15, %v217_v16 }
 0x107   : > { %v931_v39 = vpop.f32.mrf.mxu2  ;;  %v3529_v26 = vmov 0  }
 0x108   : > { %v954_v4 = vadd.f32 %v931_v39, %v3871_v7  ;;  %v2632_v7 = vsel %vm776_vm1, %v3331_v31, 0  ;;  %v2160_v61 = vrot.slane %v2158_v45, 1  ;;  %v222_v19 = vsel %vm221_vm5, 1, %v3529_v26 }
 0x109   : > { %v1056_v47 = vpop.f32.mrf.mxu3  ;;  %2641 = vmatpush.bf16.msra.mxu1 %v2632_v7  ;;  %v224_v30 = vadd.s32 %v222_v19, %v216_v12 }
 0x10a   : > { %v1076_v43 = vadd.f32 %v1053_v21, %v954_v4  ;;  %v1179_v52 = vpop.f32.mrf.mxu0  ;;  %v2161_v23 = vsel %vm704_vm3, %v2157_v2, %v2160_v61  ;;  %v2164_v6 = vor.u32 %v2162_v13, %v2160_v61  ;;  %v2167_v2 = vrot.slane %v2165_v35, 1 }
 0x10b   : > { %v3977_v53 = vpop.f32.mrf.mxu1  ;;  %v2169_v13 = vshrl.u32 %v4000_v20, 16 }
 0x10c   : > { %3186 = vmatmul.msk.bf16.gmra.mxu2 %vm757_vm2, %v3899_v1  ;;  %v1199_v60 = vadd.f32 %v1176_v22, %v1076_v43  ;;  %v215_v1 = vmul.u32 43691, %v211_v41 }
 0x10d   : > { %3200 = vmatmul.msk.bf16.gmra.mxu0 %vm757_vm2, %v1552_v48  ;;  %v240_v48 = vshrl.u32 %v4007_v10, 16 }
 0x10e   : > { %v3993_v11 = vadd.f32 %v3933_v62, %v1199_v60  ;;  %v219_v21 = vshll.u32 %v215_v1, 16  ;;  %v220_v45 = vshrl.u32 %v215_v1, 16  ;;  %v1945_v60 = vrot.slane %v3827_v42, 1 }
 0x10f   : > { %v934_v63 = vpop.f32.mrf.mxu2 }
 0x110   : > { %v955_v46 = vadd.f32 %v934_v63, %v3814_v8  ;;  %v223_v8 = vadd.s32 %v217_v16, %v213_v15  ;;  %v4024_v15 = vadd.s32 16, %v3975_v49  ;;  %v1946_v19 = vsel %vm875_vm4, %v1943_v58, %v1945_v60 }
 0x111   : > { %v1058_v17 = vpop.f32.mrf.mxu3 }
 0x112   : > { %v1077_v38 = vadd.f32 %v1056_v47, %v955_v46  ;;  %v1181_v22 = vpop.f32.mrf.mxu0  ;;  %vm225_vm6 = vc.u32 %v223_v8, %v219_v21  ;;  %v239_v47 = vand.u32 65535, %v4007_v10  ;;  %v4030_v21 = vld [vmem:[%s3951_s5 + $0x18] sm:$0xff]  ;;  %v2168_v8 = vsel %vm704_vm3, %v2164_v6, %v2167_v2 }
 0x113   : > { %v4002_v62 = vpop.f32.mrf.mxu1  ;;  %v226_v4 = vsel %vm225_vm6, 1, %v3529_v26  ;;  %v4055_v6 = vadd.s32 24, %v3975_v49 }
 0x114   : > { %v1200_v39 = vadd.f32 %v1179_v52, %v1077_v38  ;;  %v228_v43 = vadd.s32 %v226_v4, %v224_v30  ;;  %v242_v31 = vmul.u32 43691, %v239_v47  ;;  %v243_v7 = vmul.u32 43690, %v239_v47 }
 0x115   : > { %v4019_v52 = vmul.u32 43691, %v240_v48  ;;  %v4904_v30 = vrot.slane %v3853_v5, 1 }
 0x116   : > { %3240 = vmatmul.msk.bf16.vlgmr.msrb.gmra.mxu3 %vm757_vm2, %v1944_v33  ;;  %3279 = vmatmul.msk.bf16.vlgmr.msrb.gmra.mxu1 %vm757_vm2, %v2161_v23  ;;  %v4017_v55 = vadd.f32 %v3955_v24, %v1200_v39  ;;  %v229_v41 = vadd.s32 %v228_v43, %v218_v40  ;;  %v246_v63 = vshll.u32 %v243_v7, 16  ;;  %v245_v33 = vmul.u32 43690, %v240_v48 }
 0x117   : > { %v936_v56 = vpop.f32.mrf.mxu2  ;;  %v248_v12 = vshll.u32 %v4019_v52, 16  ;;  %v268_v23 = vand.u32 65535, %v4024_v15  ;;  %v269_v39 = vshrl.u32 %v4024_v15, 16  ;;  %v247_v4 = vshrl.u32 %v243_v7, 16 }
 0x118   : > { %v956_v57 = vadd.f32 %v936_v56, %v3829_v44  ;;  %v230_v46 = vadd.s32 %v229_v41, %v220_v45  ;;  %vm250_vm7 = vc.u32 %v242_v31, %v246_v63  ;;  %v252_v44 = vadd.s32 %v246_v63, %v242_v31 }
 0x119   : > { %v1061_v50 = vpop.f32.mrf.mxu3  ;;  %v251_v38 = vsel %vm250_vm7, 1, %v3529_v26  ;;  %v249_v47 = vshrl.u32 %v4019_v52, 16  ;;  %v272_v31 = vmul.u32 43690, %v268_v23  ;;  %v4052_v41 = vmul.u32 43691, %v269_v39 }
 0x11a   : > { %v1078_v24 = vadd.f32 %v1058_v17, %v956_v57  ;;  %v1184_v16 = vpop.f32.mrf.mxu0  ;;  %v231_v61 = vshrl.u32 %v230_v46, 4  ;;  %v253_v35 = vadd.s32 %v251_v38, %v245_v33  ;;  %vm254_vm8 = vc.u32 %v252_v44, %v248_v12 }
 0x11b   : > { %v4026_v1 = vpop.f32.mrf.mxu1  ;;  %v255_v48 = vsel %vm254_vm8, 1, %v3529_v26  ;;  %v271_v57 = vmul.u32 43691, %v268_v23  ;;  %v4070_v46 = vsel %vm875_vm4, %v1945_v60, %v4904_v30  ;;  %v274_v12 = vmul.u32 43690, %v269_v39 }
 0x11c   : > { %4907 = vst [vmem:[#allocation5_spill] sm:$0xff] %v4026_v1  ;;  %3233 = vmatmul.msk.bf16.vlgmr.msrb.gmra.mxu2 %vm757_vm2, %v3785_v3  ;;  %v1201_v17 = vadd.f32 %v1181_v22, %v1078_v24  ;;  %v232_v3 = vmul.u32 24, %v231_v61  ;;  %v2172_v22 = vshll.u32 %v4030_v21, 16  ;;  %v257_v45 = vadd.s32 %v255_v48, %v253_v35 }
 0x11d   : > { %3272 = vmatmul.msk.bf16.vlgmr.msrb.gmra.mxu0 %vm757_vm2, %v3959_v28  ;;  %v277_v44 = vshll.u32 %v4052_v41, 16  ;;  %v297_v61 = vand.u32 65535, %v4055_v6  ;;  %v2171_v23 = vor.u32 %v2169_v13, %v2167_v2  ;;  %v298_v39 = vshrl.u32 %v4055_v6, 16 }
 0x11e   : > { %v4050_v56 = vsub.s32 %v3975_v49, %v232_v3  ;;  %v4058_v7 = vadd.f32 %v3977_v53, %v1201_v17  ;;  %v258_v53 = vadd.s32 %v257_v45, %v247_v4  ;;  %v2174_v60 = vrot.slane %v2172_v22, 1  ;;  %v4091_v45 = vld [vmem:[%s3951_s5 + $0x20] sm:$0xff] }
 0x11f   : > { %v939_v40 = vpop.f32.mrf.mxu2  ;;  %v301_v22 = vmul.u32 43690, %v297_v61 }
 0x120   : > { %v957_v58 = vadd.f32 %v939_v40, %v3840_v59  ;;  %vm555_vm9 = vcmp.ne.s32.totalorder %v4050_v56, 0  ;;  %vm567_vm10 = vcmp.lt.s32.totalorder %v4050_v56, 0  ;;  %v591_v59 = vadd.s32 24, %v4050_v56 }
 0x121   : > { %v1063_v43 = vpop.f32.mrf.mxu3  ;;  %vm4072_vm11 = vmand %vm567_vm10, %vm555_vm9  ;;  %v259_v17 = vadd.s32 %v258_v53, %v249_v47  ;;  %v304_v33 = vshll.u32 %v301_v22, 16  ;;  %v4102_v53 = vadd.s32 32, %v3975_v49 }
 0x122   : > { %v1079_v52 = vadd.f32 %v1061_v50, %v957_v58  ;;  %v4060_v63 = vpop.f32.mrf.mxu0  ;;  %v275_v50 = vshll.u32 %v272_v31, 16  ;;  %v603_v3 = vsel %vm4072_vm11, %v591_v59, %v4050_v56  ;;  %v278_v58 = vshrl.u32 %v4052_v41, 16 }
 0x123   : > { %v4062_v24 = vpop.f32.mrf.mxu1  ;;  %v260_v4 = vshrl.u32 %v259_v17, 4  ;;  %v2176_v41 = vshrl.u32 %v4030_v21, 16  ;;  %vm4120_vm5 = vcmp.lt.s32.totalorder %v603_v3, 16  ;;  %v327_v30 = vshrl.u32 %v4102_v53, 16 }
 0x124   : > { %4908 = vst [vmem:[#allocation6_spill] sm:$0xff] %v4062_v24  ;;  %v4078_v38 = vadd.f32 %v1184_v16, %v1079_v52  ;;  %vm279_vm12 = vc.u32 %v271_v57, %v275_v50  ;;  %v281_v35 = vadd.s32 %v275_v50, %v271_v57  ;;  %v276_v16 = vshrl.u32 %v272_v31, 16 }
 0x125   : > { %v280_v48 = vsel %vm279_vm12, 1, %v3529_v26  ;;  %v261_v47 = vmul.u32 24, %v260_v4  ;;  %v4093_v57 = vmul.u32 43691, %v298_v39 }
 0x126   : > { %3241 = vmatmul.msk.bf16.gmra.mxu3 %vm757_vm2, %v1946_v19  ;;  %3280 = vmatmul.msk.bf16.gmra.mxu1 %vm757_vm2, %v2168_v8  ;;  %v300_v19 = vmul.u32 43691, %v297_v61  ;;  %v282_v13 = vadd.s32 %v280_v48, %v274_v12  ;;  %vm283_vm13 = vc.u32 %v281_v35, %v277_v44  ;;  %v303_v12 = vmul.u32 43690, %v298_v39 }
 0x127   : > { %v941_v40 = vpop.f32.mrf.mxu2  ;;  %v284_v56 = vsel %vm283_vm13, 1, %v3529_v26  ;;  %v262_v50 = vsub.s32 %v4007_v10, %v261_v47  ;;  %v306_v44 = vshll.u32 %v4093_v57, 16  ;;  %v2179_v61 = vshll.u32 %v4091_v45, 16 }
 0x128   : > { %v958_v8 = vadd.f32 %v941_v40, %v3855_v9  ;;  %v286_v9 = vadd.s32 %v284_v56, %v282_v13  ;;  %vm308_vm14 = vc.u32 %v300_v19, %v304_v33  ;;  %v310_v17 = vadd.s32 %v304_v33, %v300_v19 }
 0x129   : > { %v1066_v2 = vpop.f32.mrf.mxu3  ;;  %v2175_v35 = vsel %vm704_vm3, %v2171_v23, %v2174_v60  ;;  %vm556_vm15 = vcmp.ne.s32.totalorder %v262_v50, 0  ;;  %vm568_vm0 = vcmp.lt.s32.totalorder %v262_v50, 0  ;;  %v592_v10 = vadd.s32 24, %v262_v50 }
 0x12a   : > { %v4095_v52 = vadd.f32 %v1063_v43, %v958_v8  ;;  %v4097_v31 = vpop.f32.mrf.mxu0  ;;  %v287_v43 = vadd.s32 %v286_v9, %v276_v16  ;;  %vm4114_vm1 = vmand %vm568_vm0, %vm556_vm15  ;;  %v309_v4 = vsel %vm308_vm14, 1, %v3529_v26  ;;  %v326_v16 = vand.u32 65535, %v4102_v53 }
 0x12b   : > { %v4099_v59 = vpop.f32.mrf.mxu1  ;;  %v2178_v23 = vor.u32 %v2176_v41, %v2174_v60  ;;  %v311_v8 = vadd.s32 %v309_v4, %v303_v12  ;;  %vm312_vm6 = vc.u32 %v310_v17, %v306_v44  ;;  %v4125_v9 = vrot.slane %v2179_v61, 1 }
 0x12c   : > { %3234 = vmatmul.msk.bf16.gmra.mxu2 %vm757_vm2, %v3797_v14  ;;  %v288_v14 = vadd.s32 %v287_v43, %v278_v58  ;;  %v305_v33 = vshrl.u32 %v301_v22, 16  ;;  %v604_v58 = vsel %vm4114_vm1, %v592_v10, %v262_v50  ;;  %v307_v43 = vshrl.u32 %v4093_v57, 16 }
 0x12d   : > { %3273 = vmatmul.msk.bf16.gmra.mxu0 %vm757_vm2, %v3967_v32  ;;  %v313_v3 = vsel %vm312_vm6, 1, %v3529_v26  ;;  %v330_v44 = vmul.u32 43690, %v326_v16  ;;  %v4916_v22 = vrot.slane %v3880_v34, 1  ;;  %v4917_v61 = vrot.slane %v3853_v5, 1 }
 0x12e   : > { %v289_v56 = vshrl.u32 %v288_v14, 4  ;;  %v315_v12 = vadd.s32 %v313_v3, %v311_v8  ;;  %v329_v57 = vmul.u32 43691, %v326_v16  ;;  %v331_v17 = vmul.u32 43691, %v327_v30 }
 0x12f   : > { %v944_v48 = vpop.f32.mrf.mxu2  ;;  %v4143_v50 = vsel %vm875_vm4, %v4917_v61, %v4916_v22  ;;  %v4146_v10 = vadd.s32 40, %v3975_v49  ;;  %v333_v14 = vshll.u32 %v330_v44, 16  ;;  %v4151_v4 = vadd.f32 %v4002_v62, %v4078_v38 }
 0x130   : > { %v959_v13 = vadd.f32 %v944_v48, %v3867_v25  ;;  %v290_v25 = vmul.u32 24, %v289_v56  ;;  %v316_v40 = vadd.s32 %v315_v12, %v305_v33  ;;  %v4905_v48 = vmov 0.0  }
 0x131   : > { %v1068_v47 = vpop.f32.mrf.mxu3  ;;  %4918 = vst [vmem:[#allocation8_spill] sm:$0xff] %v4151_v4  ;;  %v4158_v16 = vsel %vm4120_vm5, 1.0, %v4905_v48  ;;  %vm4161_vm7 = vcmp.lt.s32.totalorder %v604_v58, 16  ;;  %v4167_v62 = vsel %vm704_vm3, %v2178_v23, %v4125_v9  ;;  %vm337_vm10 = vc.u32 %v329_v57, %v333_v14 }
 0x132   : > { %v4132_v39 = vadd.f32 %v1066_v2, %v959_v13  ;;  %v4134_v60 = vpop.f32.mrf.mxu0  ;;  %v291_v2 = vsub.s32 %v4024_v15, %v290_v25  ;;  %v332_v15 = vmul.u32 43690, %v327_v30  ;;  %v335_v13 = vshll.u32 %v331_v17, 16 }
 0x133   : > { %v4136_v41 = vpop.f32.mrf.mxu1  ;;  %v339_v19 = vadd.s32 %v333_v14, %v329_v57  ;;  %v355_v33 = vand.u32 65535, %v4146_v10  ;;  %v338_v25 = vsel %vm337_vm10, 1, %v3529_v26  ;;  %v356_v23 = vshrl.u32 %v4146_v10, 16 }
 0x134   : > { %4915 = vst [vmem:[#allocation7_spill] sm:$0xff] %v4136_v41  ;;  %vm557_vm8 = vcmp.ne.s32.totalorder %v291_v2, 0  ;;  %vm569_vm9 = vcmp.lt.s32.totalorder %v291_v2, 0  ;;  %v593_v56 = vadd.s32 24, %v291_v2  ;;  %v334_v12 = vshrl.u32 %v330_v44, 16 }
 0x135   : > { %vm4171_vm11 = vmand %vm569_vm9, %vm557_vm8  ;;  %v340_v22 = vadd.s32 %v338_v25, %v332_v15  ;;  %vm341_vm12 = vc.u32 %v339_v19, %v335_v13  ;;  %v4191_v15 = vld [vmem:[%s3951_s5 + $0x28] sm:$0xff]  ;;  %v2183_v8 = vshrl.u32 %v4091_v45, 16  ;;  %v358_v19 = vmul.u32 43691, %v355_v33 }
 0x136   : > { %3242 = vmatmul.msk.bf16.gmra.mxu3 %vm757_vm2, %v4070_v46  ;;  %3281 = vmatmul.msk.bf16.gmra.mxu1 %vm757_vm2, %v2175_v35  ;;  %v317_v46 = vadd.s32 %v316_v40, %v307_v43  ;;  %v4185_v40 = vsel %vm4161_vm7, 1.0, %v4905_v48  ;;  %v336_v43 = vshrl.u32 %v331_v17, 16  ;;  %v4924_v3 = vrot.slane %v3902_v0, 1 }
 0x137   : > { %v946_v38 = vpop.f32.mrf.mxu2  ;;  %v4925_v17 = vrot.slane %v3880_v34, 1 }
 0x138   : > { %v960_v35 = vadd.f32 %v946_v38, %v3882_v36  ;;  %v318_v30 = vshrl.u32 %v317_v46, 4  ;;  %v342_v46 = vsel %vm341_vm12, 1, %v3529_v26  ;;  %v605_v38 = vsel %vm4171_vm11, %v593_v56, %v291_v2 }
 0x139   : > { %v1496_v58 = vpop.f32.mrf.mxu3  ;;  %v344_v44 = vadd.s32 %v342_v46, %v340_v22  ;;  %v4204_v2 = vsel %vm875_vm4, %v4925_v17, %v4924_v3  ;;  %vm4209_vm15 = vcmp.lt.s32.totalorder %v605_v38, 16  ;;  %v2185_v17 = vor.u32 %v2183_v8, %v4125_v9 }
 0x13a   : > { %v4178_v61 = vadd.f32 %v1068_v47, %v960_v35  ;;  %v1583_v57 = vpop.f32.mrf.mxu0  ;;  %v319_v14 = vmul.u32 24, %v318_v30  ;;  %v359_v47 = vmul.u32 43690, %v355_v33  ;;  %v360_v35 = vmul.u32 43691, %v356_v23 }
 0x13b   : > { %v4180_v36 = vpop.f32.mrf.mxu1  ;;  %v345_v56 = vadd.s32 %v344_v44, %v334_v12  ;;  %v361_v33 = vmul.u32 43690, %v356_v23  ;;  %v2186_v12 = vshll.u32 %v4191_v15, 16 }
 0x13c   : > { %4923 = vst [vmem:[#allocation9_spill] sm:$0xff] %v4180_v36  ;;  %3235 = vmatmul.msk.bf16.gmra.mxu2 %vm757_vm2, %v3827_v42  ;;  %v320_v13 = vsub.s32 %v4055_v6, %v319_v14  ;;  %v362_v30 = vshll.u32 %v359_v47, 16  ;;  %v4207_v42 = vadd.s32 48, %v3975_v49  ;;  %v364_v46 = vshll.u32 %v360_v35, 16 }
 0x13d   : > { %3274 = vmatmul.msk.bf16.gmra.mxu0 %vm757_vm2, %v4000_v20  ;;  %v346_v34 = vadd.s32 %v345_v56, %v336_v43  ;;  %v363_v38 = vshrl.u32 %v359_v47, 16  ;;  %v4226_v9 = vrot.slane %v2186_v12, 1 }
 0x13e   : > { %vm558_vm13 = vcmp.ne.s32.totalorder %v320_v13, 0  ;;  %vm570_vm14 = vcmp.lt.s32.totalorder %v320_v13, 0  ;;  %v594_v6 = vadd.s32 24, %v320_v13  ;;  %vm366_vm1 = vc.u32 %v358_v19, %v362_v30 }
 0x13f   : > { %v1373_v25 = vpop.f32.mrf.mxu2  ;;  %vm4213_vm0 = vmand %vm570_vm14, %vm558_vm13  ;;  %v368_v23 = vadd.s32 %v362_v30, %v358_v19  ;;  %v347_v48 = vshrl.u32 %v346_v34, 4  ;;  %v367_v36 = vsel %vm366_vm1, 1, %v3529_v26  ;;  %v384_v41 = vand.u32 65535, %v4207_v42 }
 0x140   : > { %v1403_v44 = vadd.f32 %v1373_v25, %v3904_v27  ;;  %v606_v43 = vsel %vm4213_vm0, %v594_v6, %v320_v13  ;;  %v369_v56 = vadd.s32 %v367_v36, %v361_v33  ;;  %v385_v47 = vshrl.u32 %v4207_v42, 16 }
 0x141   : > { %v1498_v3 = vpop.f32.mrf.mxu3  ;;  %vm370_vm5 = vc.u32 %v368_v23, %v364_v46  ;;  %v348_v27 = vmul.u32 24, %v347_v48  ;;  %v365_v30 = vshrl.u32 %v360_v35, 16  ;;  %vm4236_vm6 = vcmp.lt.s32.totalorder %v606_v43, 16 }
 0x142   : > { %v1526_v24 = vadd.f32 %v1496_v58, %v1403_v44  ;;  %v1585_v1 = vpop.f32.mrf.mxu0  ;;  %v371_v8 = vsel %vm370_vm5, 1, %v3529_v26  ;;  %v4230_v58 = vmul.u32 43690, %v384_v41  ;;  %v387_v13 = vmul.u32 43691, %v384_v41  ;;  %v2044_v44 = vld [vmem:[%s3951_s5 + $0x30] sm:$0xf] }
 0x143   : > { %v4222_v4 = vpop.f32.mrf.mxu1  ;;  %v373_v25 = vadd.s32 %v371_v8, %v369_v56  ;;  %v4241_v48 = vsub.s32 %v4102_v53, %v348_v27  ;;  %v4243_v6 = vmul.u32 43691, %v385_v47  ;;  %v4261_v41 = vsel %vm704_vm3, %v2185_v17, %v4226_v9 }
 0x144   : > { %v1613_v19 = vadd.f32 %v1583_v57, %v1526_v24  ;;  %v391_v53 = vshll.u32 %v4230_v58, 16  ;;  %v390_v46 = vmul.u32 43690, %v385_v47 }
 0x145   : > { %v374_v57 = vadd.s32 %v373_v25, %v363_v38  ;;  %vm559_vm7 = vcmp.ne.s32.totalorder %v4241_v48, 0  ;;  %vm571_vm8 = vcmp.lt.s32.totalorder %v4241_v48, 0  ;;  %v393_v33 = vshll.u32 %v4243_v6, 16 }
 0x146   : > { %3243 = vmatmul.msk.bf16.gmra.mxu3 %vm757_vm2, %v4143_v50  ;;  %3282 = vmatmul.msk.bf16.gmra.mxu1 %vm757_vm2, %v4167_v62  ;;  %v1625_v24 = vmul.f32 %v4158_v16, %v1613_v19  ;;  %1710 = vst.msk [vmem:[%s4247_s9] sm:$0xff] %vm757_vm2, %v1613_v19  ;;  %v4932_v50 = vmov 0.0   ;;  %v595_v23 = vadd.s32 24, %v4241_v48  ;;  %v1953_v38 = vrot.slane %v3925_v51, 1  ;;  %vm4280_vm10 = vmand %vm571_vm8, %vm559_vm7 }
 0x147   : > { %v4254_v62 = vsel %vm4209_vm15, 1.0, %v4932_v50  ;;  %v1375_v35 = vpop.f32.mrf.mxu2  ;;  %v4268_v22 = vsel %vm4236_vm6, 1.0, %v4932_v50  ;;  %v375_v12 = vadd.s32 %v374_v57, %v365_v30  ;;  %vm395_vm9 = vc.u32 %v387_v13, %v391_v53 }
 0x148   : > { %v1404_v14 = vadd.f32 %v1375_v35, %v3916_v29  ;;  %v397_v17 = vadd.s32 %v391_v53, %v387_v13  ;;  %v1637_v43 = vsel %vm757_vm2, %v1625_v24, 0.0  ;;  %v392_v30 = vshrl.u32 %v4230_v58, 16 }
 0x149   : > { %v1501_v34 = vpop.f32.mrf.mxu3  ;;  %v376_v47 = vshrl.u32 %v375_v12, 4  ;;  %v1667_v25 = vmul.f32 %v1625_v24, %v1613_v19  ;;  %v396_v36 = vsel %vm395_vm9, 1, %v3529_v26  ;;  %v607_v19 = vsel %vm4280_vm10, %v595_v23, %v4241_v48 }
 0x14a   : > { %v1527_v56 = vadd.f32 %v1498_v3, %v1404_v14  ;;  %v1588_v29 = vpop.f32.mrf.mxu0  ;;  %vm399_vm11 = vc.u32 %v397_v17, %v393_v33  ;;  %v2150_v3 = vunpack.c.l.b16 %v2044_v44  ;;  %v398_v53 = vadd.s32 %v396_v36, %v390_v46 }
 0x14b   : > { %v4274_v27 = vpop.f32.mrf.mxu1  ;;  %v377_v57 = vmul.u32 24, %v376_v47  ;;  %v400_v35 = vsel %vm399_vm11, 1, %v3529_v26  ;;  %v394_v58 = vshrl.u32 %v4243_v6, 16  ;;  %v4309_v48 = vadd.f32 %v4060_v63, %v4095_v52 }
 0x14c   : > { %v1614_v13 = vadd.f32 %v1585_v1, %v1527_v56  ;;  %3236 = vmatmul.msk.bf16.gmra.mxu2 %vm757_vm2, %v3853_v5  ;;  %v4296_v24 = vpack.c.b16 %v2150_v3, %v2150_v3  ;;  %v4301_v1 = vadd.s32 56, %v3975_v49  ;;  %v402_v33 = vadd.s32 %v400_v35, %v398_v53 }
 0x14d   : > { %3275 = vmatmul.msk.bf16.gmra.mxu0 %vm757_vm2, %v4030_v21  ;;  %v378_v21 = vsub.s32 %v4146_v10, %v377_v57  ;;  %v1679_v6 = vsel %vm757_vm2, %v1667_v25, 0.0  ;;  %v2190_v12 = vshrl.u32 %v4191_v15, 16  ;;  %vm4331_vm15 = vcmp.lt.s32.totalorder %v607_v19, 16 }
 0x14e   : > { %v1626_v5 = vmul.f32 %v4185_v40, %v1614_v13  ;;  %1711 = vst.msk [vmem:[%s4247_s9 + $0x8] sm:$0xff] %vm757_vm2, %v1614_v13  ;;  %v413_v46 = vand.u32 65535, %v4301_v1  ;;  %v414_v44 = vshrl.u32 %v4301_v1, 16  ;;  %v403_v8 = vadd.s32 %v402_v33, %v392_v30 }
 0x14f   : > { %v1378_v14 = vpop.f32.mrf.mxu2  ;;  %vm560_vm12 = vcmp.ne.s32.totalorder %v378_v21, 0  ;;  %vm572_vm13 = vcmp.lt.s32.totalorder %v378_v21, 0  ;;  %v596_v52 = vadd.s32 24, %v378_v21 }
 0x150   : > { %v1638_v23 = vsel %vm757_vm2, %v1626_v5, 0.0  ;;  %v1668_v17 = vmul.f32 %v1626_v5, %v1614_v13  ;;  %v1405_v56 = vadd.f32 %v1378_v14, %v3928_v54  ;;  %vm4321_vm14 = vmand %vm572_vm13, %vm560_vm12  ;;  %v2194_v54 = vshll.u32 %v4296_v24, 16 }
 0x151   : > { %v1503_v10 = vpop.f32.mrf.mxu3  ;;  %v1639_v63 = vadd.f32 %v1638_v23, %v1637_v43  ;;  %v416_v13 = vmul.u32 43691, %v413_v46  ;;  %v608_v43 = vsel %vm4321_vm14, %v596_v52, %v378_v21  ;;  %v404_v35 = vadd.s32 %v403_v8, %v394_v58 }
 0x152   : > { %v1680_v47 = vsel %vm757_vm2, %v1668_v17, 0.0  ;;  %v1528_v25 = vadd.f32 %v1501_v34, %v1405_v56  ;;  %v1590_v36 = vpop.f32.mrf.mxu0  ;;  %v417_v34 = vmul.u32 43690, %v413_v46  ;;  %v4335_v33 = vmul.u32 43691, %v414_v44  ;;  %v4353_v17 = vld [vmem:[%s4329_s23] sm:$0xff] }
 0x153   : > { %v4319_v3 = vpop.f32.mrf.mxu1  ;;  %v1681_v53 = vadd.f32 %v1680_v47, %v1679_v6  ;;  %v4338_v14 = vadd.s32 64, %v3975_v49  ;;  %v405_v58 = vshrl.u32 %v404_v35, 4  ;;  %v2192_v21 = vor.u32 %v2190_v12, %v4226_v9 }
 0x154   : > { %v1615_v30 = vadd.f32 %v1588_v29, %v1528_v25  ;;  %v419_v6 = vmul.u32 43690, %v414_v44  ;;  %v420_v29 = vshll.u32 %v417_v34, 16  ;;  %vm4348_vm0 = vcmp.lt.s32.totalorder %v608_v43, 16 }
 0x155   : > { %v2196_v23 = vrot.slane %v2194_v54, 1  ;;  %v421_v52 = vshrl.u32 %v417_v34, 16  ;;  %v2271_v5 = vrot.slane %v3959_v28, 1 }
 0x156   : > { %3244 = vmatmul.msk.bf16.gmra.mxu3 %vm757_vm2, %v4204_v2  ;;  %3283 = vmatmul.msk.bf16.gmra.mxu1 %vm757_vm2, %v4261_v41  ;;  %v1627_v19 = vmul.f32 %v4254_v62, %v1615_v30  ;;  %1712 = vst.msk [vmem:[%s4247_s9 + $0x10] sm:$0xff] %vm757_vm2, %v1615_v30  ;;  %v422_v2 = vshll.u32 %v4335_v33, 16  ;;  %v406_v41 = vmul.u32 24, %v405_v58  ;;  %vm424_vm1 = vc.u32 %v416_v13, %v420_v29 }
 0x157   : > { %v1380_v56 = vpop.f32.mrf.mxu2  ;;  %v426_v9 = vadd.s32 %v420_v29, %v416_v13  ;;  %v425_v25 = vsel %vm424_vm1, 1, %v3529_v26  ;;  %v2197_v51 = vsel %vm704_vm3, %v2192_v21, %v2196_v23  ;;  %v443_v21 = vshrl.u32 %v4338_v14, 16 }
 0x158   : > { %v1640_v12 = vsel %vm757_vm2, %v1627_v19, 0.0  ;;  %v1669_v44 = vmul.f32 %v1627_v19, %v1615_v30  ;;  %v1406_v8 = vadd.f32 %v1380_v56, %v3948_v18  ;;  %v407_v54 = vsub.s32 %v4207_v42, %v406_v41  ;;  %v4366_v19 = vld [vmem:[%s4329_s23 + $0x8] sm:$0xff] }
 0x159   : > { %v1506_v47 = vpop.f32.mrf.mxu3  ;;  %v1641_v57 = vadd.f32 %v1640_v12, %v1639_v63  ;;  %v427_v43 = vadd.s32 %v425_v25, %v419_v6  ;;  %vm428_vm5 = vc.u32 %v426_v9, %v422_v2  ;;  %v2483_v18 = vshll.u32 %v4353_v17, 16  ;;  %v3465_v6 = vld [vmem:[%s3780_s11 + $0x20] sm:$0xff] }
 0x15a   : > { %v1682_v35 = vsel %vm757_vm2, %v1669_v44, 0.0  ;;  %v1529_v34 = vadd.f32 %v1503_v10, %v1406_v8  ;;  %v1593_v58 = vpop.f32.mrf.mxu0  ;;  %v429_v30 = vsel %vm428_vm5, 1, %v3529_v26  ;;  %vm561_vm6 = vcmp.ne.s32.totalorder %v407_v54, 0 }
 0x15b   : > { %v4361_v13 = vpop.f32.mrf.mxu1  ;;  %v1683_v29 = vadd.f32 %v1682_v35, %v1681_v53  ;;  %vm573_vm7 = vcmp.lt.s32.totalorder %v407_v54, 0  ;;  %v597_v63 = vadd.s32 24, %v407_v54  ;;  %v4941_v10 = vrot.slane %v3902_v0, 1 }
 0x15c   : > { %v1616_v42 = vadd.f32 %v1590_v36, %v1529_v34  ;;  %3237 = vmatmul.msk.bf16.gmra.mxu2 %vm757_vm2, %v3465_v6  ;;  %vm4375_vm8 = vmand %vm573_vm7, %vm561_vm6  ;;  %v423_v53 = vshrl.u32 %v4335_v33, 16  ;;  %v431_v41 = vadd.s32 %v429_v30, %v427_v43  ;;  %v4385_v36 = vsel %vm4331_vm15, 1.0, %v4932_v50 }
 0x15d   : > { %v1954_v2 = vsel %vm875_vm4, %v4941_v10, %v1953_v38  ;;  %3276 = vmatmul.msk.bf16.gmra.mxu0 %vm757_vm2, %v4091_v45  ;;  %v4390_v0 = vsel %vm4348_vm0, 1.0, %v4932_v50  ;;  %v442_v38 = vand.u32 65535, %v4338_v14  ;;  %v609_v45 = vsel %vm4375_vm8, %v597_v63, %v407_v54 }
 0x15e   : > { %v1628_v33 = vmul.f32 %v4268_v22, %v1616_v42  ;;  %1713 = vst.msk [vmem:[%s4247_s9 + $0x18] sm:$0xff] %vm757_vm2, %v1616_v42  ;;  %v432_v9 = vadd.s32 %v431_v41, %v421_v52  ;;  %v2481_v44 = vshrl.u32 %v4353_v17, 16  ;;  %v2485_v46 = vrot.slane %v2483_v18, 1 }
 0x15f   : > { %v1383_v12 = vpop.f32.mrf.mxu2  ;;  %v2487_v8 = vshll.u32 %v4366_v19, 16  ;;  %v2272_v52 = vrot.slane %v3967_v32, 1  ;;  %v445_v54 = vmul.u32 43691, %v442_v38  ;;  %v446_v63 = vmul.u32 43690, %v442_v38 }
 0x160   : > { %v1642_v23 = vsel %vm757_vm2, %v1628_v33, 0.0  ;;  %v1670_v25 = vmul.f32 %v1628_v33, %v1616_v42  ;;  %v1407_v43 = vadd.f32 %v1383_v12, %v3971_v37  ;;  %v433_v34 = vadd.s32 %v432_v9, %v423_v53 }
 0x161   : > { %v1508_v35 = vpop.f32.mrf.mxu3  ;;  %v1643_v30 = vadd.f32 %v1642_v23, %v1641_v57  ;;  %vm4409_vm9 = vcmp.lt.s32.totalorder %v609_v45, 16  ;;  %v447_v33 = vmul.u32 43691, %v443_v21  ;;  %v2486_v53 = vor.u32 %v2485_v46, %v2481_v44 }
 0x162   : > { %v1684_v6 = vsel %vm757_vm2, %v1670_v25, 0.0  ;;  %v1530_v10 = vadd.f32 %v1506_v47, %v1407_v43  ;;  %v1595_v18 = vpop.f32.mrf.mxu0  ;;  %v434_v42 = vshrl.u32 %v433_v34, 4  ;;  %v448_v57 = vmul.u32 43690, %v443_v21 }
 0x163   : > { %v4407_v56 = vpop.f32.mrf.mxu1  ;;  %v1685_v37 = vadd.f32 %v1684_v6, %v1683_v29  ;;  %v449_v9 = vshll.u32 %v446_v63, 16  ;;  %v4413_v38 = vrot.slane %v2487_v8, 1  ;;  %v451_v25 = vshll.u32 %v447_v33, 16 }
 0x164   : > { %v1617_v12 = vadd.f32 %v1593_v58, %v1530_v10  ;;  %v435_v23 = vmul.u32 24, %v434_v42  ;;  %v450_v47 = vshrl.u32 %v446_v63, 16  ;;  %v4418_v43 = vadd.s32 72, %v3975_v49 }
 0x165   : > { %vm453_vm10 = vc.u32 %v445_v54, %v449_v9  ;;  %v455_v45 = vadd.s32 %v449_v9, %v445_v54  ;;  %v4427_v46 = vadd.f32 %v4097_v31, %v4132_v39 }
 0x166   : > { %3245 = vmatmul.msk.bf16.gmra.mxu3 %vm757_vm2, %v1954_v2  ;;  %3284 = vmatmul.msk.bf16.gmra.mxu1 %vm757_vm2, %v2197_v51  ;;  %v1629_v29 = vmul.f32 %v4385_v36, %v1617_v12  ;;  %1714 = vst.msk [vmem:[%s4247_s9 + $0x20] sm:$0xff] %vm757_vm2, %v1617_v12  ;;  %v436_v58 = vsub.s32 %v4301_v1, %v435_v23  ;;  %v454_v44 = vsel %vm453_vm10, 1, %v3529_v26  ;;  %v471_v8 = vand.u32 65535, %v4418_v43 }
 0x167   : > { %v1385_v2 = vpop.f32.mrf.mxu2  ;;  %v456_v51 = vadd.s32 %v454_v44, %v448_v57  ;;  %vm457_vm11 = vc.u32 %v455_v45, %v451_v25  ;;  %v472_v21 = vshrl.u32 %v4418_v43, 16  ;;  %v2600_v45 = vrot.slane %v4353_v17, 1 }
 0x168   : > { %v1644_v34 = vsel %vm757_vm2, %v1629_v29, 0.0  ;;  %v1671_v54 = vmul.f32 %v1629_v29, %v1617_v12  ;;  %v1408_v63 = vadd.f32 %v1385_v2, %v3993_v11  ;;  %vm562_vm12 = vcmp.ne.s32.totalorder %v436_v58, 0 }
 0x169   : > { %v1511_v6 = vpop.f32.mrf.mxu3  ;;  %v1645_v1 = vadd.f32 %v1644_v34, %v1643_v30  ;;  %vm574_vm13 = vcmp.lt.s32.totalorder %v436_v58, 0  ;;  %v598_v10 = vadd.s32 24, %v436_v58  ;;  %v458_v31 = vsel %vm457_vm11, 1, %v3529_v26 }
 0x16a   : > { %v1686_v39 = vsel %vm757_vm2, %v1671_v54, 0.0  ;;  %v1531_v42 = vadd.f32 %v1508_v35, %v1408_v63  ;;  %v1598_v57 = vpop.f32.mrf.mxu0  ;;  %vm4437_vm14 = vmand %vm574_vm13, %vm562_vm12  ;;  %v452_v12 = vshrl.u32 %v447_v33, 16  ;;  %v460_v11 = vadd.s32 %v458_v31, %v456_v51  ;;  %v3466_v35 = vld [vmem:[%s3780_s11 + $0x28] sm:$0xff] }
 0x16b   : > { %v4435_v9 = vpop.f32.mrf.mxu1  ;;  %v1687_v25 = vadd.f32 %v1686_v39, %v1685_v37  ;;  %v610_v30 = vsel %vm4437_vm14, %v598_v10, %v436_v58  ;;  %v2601_v29 = vrot.slane %v4366_v19, 1  ;;  %v4452_v33 = vsel %vm875_vm4, %v2271_v5, %v2272_v52 }
 0x16c   : > { %v1618_v44 = vadd.f32 %v1595_v18, %v1531_v42  ;;  %3238 = vmatmul.msk.bf16.gmra.mxu2 %vm757_vm2, %v3466_v35  ;;  %v461_v37 = vadd.s32 %v460_v11, %v450_v47  ;;  %v475_v2 = vmul.u32 43690, %v471_v8  ;;  %v4459_v58 = vsel %vm4409_vm9, 1.0, %v4932_v50 }
 0x16d   : > { %3277 = vmatmul.msk.bf16.gmra.mxu0 %vm757_vm2, %v4191_v15  ;;  %v4463_v18 = vsel %vm704_vm3, %v2486_v53, %v4413_v38  ;;  %v474_v51 = vmul.u32 43691, %v471_v8  ;;  %v476_v34 = vmul.u32 43691, %v472_v21  ;;  %vm4468_vm15 = vcmp.lt.s32.totalorder %v610_v30, 16 }
 0x16e   : > { %v1630_v28 = vmul.f32 %v4390_v0, %v1618_v44  ;;  %1715 = vst.msk [vmem:[%s4247_s9 + $0x28] sm:$0xff] %vm757_vm2, %v1618_v44  ;;  %v462_v15 = vadd.s32 %v461_v37, %v452_v12  ;;  %v478_v47 = vshll.u32 %v475_v2, 16  ;;  %v2602_v41 = vsel %vm875_vm4, %v2600_v45, %v2601_v29 }
 0x16f   : > { %v1388_v54 = vpop.f32.mrf.mxu2  ;;  %v477_v63 = vmul.u32 43690, %v472_v21  ;;  %v480_v53 = vshll.u32 %v476_v34, 16  ;;  %v1205_v8 = vadd.f32 %v4134_v60, %v4178_v61 }
 0x170   : > { %v1646_v10 = vsel %vm757_vm2, %v1630_v28, 0.0  ;;  %v1672_v31 = vmul.f32 %v1630_v28, %v1618_v44  ;;  %v1409_v39 = vadd.f32 %v1388_v54, %v4017_v55  ;;  %v463_v23 = vshrl.u32 %v462_v15, 4 }
 0x171   : > { %v1513_v42 = vpop.f32.mrf.mxu3  ;;  %v1647_v12 = vadd.f32 %v1646_v10, %v1645_v1  ;;  %vm482_vm0 = vc.u32 %v474_v51, %v478_v47  ;;  %v484_v11 = vadd.s32 %v478_v47, %v474_v51  ;;  %v4480_v30 = vadd.f32 %v4099_v59, %v1205_v8  ;;  %v4487_v1 = vld [vmem:[%s4329_s23 + $0x10] sm:$0xff] }
 0x172   : > { %v1688_v21 = vsel %vm757_vm2, %v1672_v31, 0.0  ;;  %v1532_v45 = vadd.f32 %v1511_v6, %v1409_v39  ;;  %v1600_v35 = vpop.f32.mrf.mxu0  ;;  %v464_v60 = vmul.u32 24, %v463_v23  ;;  %v483_v61 = vsel %vm482_vm0, 1, %v3529_v26 }
 0x173   : > { %v4483_v37 = vpop.f32.mrf.mxu1  ;;  %v1689_v44 = vadd.f32 %v1688_v21, %v1687_v25  ;;  %v479_v55 = vshrl.u32 %v475_v2, 16  ;;  %v485_v28 = vadd.s32 %v483_v61, %v477_v63  ;;  %vm486_vm1 = vc.u32 %v484_v11, %v480_v53 }
 0x174   : > { %v1619_v51 = vadd.f32 %v1598_v57, %v1532_v45  ;;  %v465_v59 = vsub.s32 %v4338_v14, %v464_v60  ;;  %v481_v15 = vshrl.u32 %v476_v34, 16  ;;  %v487_v47 = vsel %vm486_vm1, 1, %v3529_v26 }
 0x175   : > { %v489_v6 = vadd.s32 %v487_v47, %v485_v28  ;;  %v2491_v25 = vshrl.u32 %v4366_v19, 16  ;;  %v2494_v2 = vshll.u32 %v4487_v1, 16  ;;  %v4497_v54 = vadd.s32 80, %v3975_v49 }
 0x176   : > { %3318 = vmatmul.msk.bf16.vlgmr.msra.gmra.mxu3 %vm757_vm2, %v4353_v17  ;;  %3332 = vmatmul.msk.bf16.vlgmr.msra.gmra.mxu1 %vm757_vm2, %v2602_v41  ;;  %v1631_v57 = vmul.f32 %v4459_v58, %v1619_v51  ;;  %1716 = vst.msk [vmem:[%s4247_s9 + $0x30] sm:$0xff] %vm757_vm2, %v1619_v51  ;;  %vm563_vm5 = vcmp.ne.s32.totalorder %v465_v59, 0  ;;  %vm575_vm6 = vcmp.lt.s32.totalorder %v465_v59, 0  ;;  %v599_v14 = vadd.s32 24, %v465_v59 }
 0x177   : > { %v4505_v17 = vsel %vm4468_vm15, 1.0, %v4932_v50  ;;  %v1390_v34 = vpop.f32.mrf.mxu2  ;;  %vm587_vm7 = vmand %vm575_vm6, %vm563_vm5  ;;  %v490_v41 = vadd.s32 %v489_v6, %v479_v55  ;;  %v2274_v63 = vrot.slane %v4000_v20, 1  ;;  %v500_v53 = vand.u32 65535, %v4497_v54 }
 0x178   : > { %v1648_v8 = vsel %vm757_vm2, %v1631_v57, 0.0  ;;  %v1673_v10 = vmul.f32 %v1631_v57, %v1619_v51  ;;  %v1410_v31 = vadd.f32 %v1390_v34, %v4058_v7  ;;  %v611_v23 = vsel %vm587_vm7, %v599_v14, %v465_v59 }
 0x179   : > { %v1516_v39 = vpop.f32.mrf.mxu3  ;;  %v1649_v11 = vadd.f32 %v1648_v8, %v1647_v12  ;;  %vm623_vm8 = vcmp.lt.s32.totalorder %v611_v23, 16  ;;  %v491_v21 = vadd.s32 %v490_v41, %v481_v15  ;;  %v4512_v5 = vor.u32 %v2491_v25, %v4413_v38 }
 0x17a   : > { %v1690_v45 = vsel %vm757_vm2, %v1673_v10, 0.0  ;;  %v1533_v60 = vadd.f32 %v1513_v42, %v1410_v31  ;;  %v1603_v61 = vpop.f32.mrf.mxu0  ;;  %v4517_v28 = vrot.slane %v2494_v2, 1  ;;  %v501_v51 = vshrl.u32 %v4497_v54, 16  ;;  %v4950_v31 = vld [vmem:[#allocation8_spill] sm:$0xff] }
 0x17b   : > { %v4515_v55 = vpop.f32.mrf.mxu1  ;;  %v1691_v7 = vadd.f32 %v1690_v45, %v1689_v44  ;;  %v492_v47 = vshrl.u32 %v491_v21, 4  ;;  %v503_v59 = vmul.u32 43691, %v500_v53  ;;  %v504_v12 = vmul.u32 43690, %v500_v53 }
 0x17c   : > { %v1620_v6 = vadd.f32 %v1600_v35, %v1533_v60  ;;  %3286 = vmatmul.msk.bf16.vlgmr.msra.gmra.mxu2 %vm757_vm2, %v4452_v33  ;;  %v4523_v38 = vsel %vm623_vm8, 1.0, %v4932_v50  ;;  %v505_v42 = vmul.u32 43691, %v501_v51  ;;  %v2603_v15 = vrot.slane %v4487_v1, 1 }
 0x17d   : > { %3325 = vmatmul.msk.bf16.vlgmr.msra.gmra.mxu0 %vm757_vm2, %v4463_v18  ;;  %v493_v25 = vmul.u32 24, %v492_v47  ;;  %v506_v2 = vmul.u32 43690, %v501_v51  ;;  %v507_v57 = vshll.u32 %v504_v12, 16  ;;  %v4529_v44 = vadd.s32 88, %v3975_v49 }
 0x17e   : > { %v1632_v35 = vmul.f32 %v4505_v17, %v1620_v6  ;;  %1717 = vst.msk [vmem:[%s4247_s9 + $0x38] sm:$0xff] %vm757_vm2, %v1620_v6  ;;  %v508_v33 = vshrl.u32 %v504_v12, 16  ;;  %v509_v14 = vshll.u32 %v505_v42, 16  ;;  %v2604_v34 = vsel %vm875_vm4, %v2601_v29, %v2603_v15 }
 0x17f   : > { %v1393_v41 = vpop.f32.mrf.mxu2  ;;  %v494_v18 = vsub.s32 %v4418_v43, %v493_v25  ;;  %vm511_vm9 = vc.u32 %v503_v59, %v507_v57  ;;  %v513_v53 = vadd.s32 %v507_v57, %v503_v59  ;;  %v529_v49 = vand.u32 65535, %v4529_v44 }
 0x180   : > { %v1650_v8 = vsel %vm757_vm2, %v1632_v35, 0.0  ;;  %v1674_v10 = vmul.f32 %v1632_v35, %v1620_v6  ;;  %v1411_v23 = vadd.f32 %v1393_v41, %v4950_v31  ;;  %v512_v45 = vsel %vm511_vm9, 1, %v3529_v26 }
 0x181   : > { %v1518_v21 = vpop.f32.mrf.mxu3  ;;  %v1651_v60 = vadd.f32 %v1650_v8, %v1649_v11  ;;  %vm564_vm10 = vcmp.ne.s32.totalorder %v494_v18, 0  ;;  %vm576_vm11 = vcmp.lt.s32.totalorder %v494_v18, 0  ;;  %v600_v51 = vadd.s32 24, %v494_v18 }
 0x182   : > { %v1692_v29 = vsel %vm757_vm2, %v1674_v10, 0.0  ;;  %v1534_v47 = vadd.f32 %v1516_v39, %v1411_v23  ;;  %v1605_v43 = vpop.f32.mrf.mxu0  ;;  %vm4545_vm12 = vmand %vm576_vm11, %vm564_vm10  ;;  %v514_v6 = vadd.s32 %v512_v45, %v506_v2  ;;  %vm515_vm13 = vc.u32 %v513_v53, %v509_v14  ;;  %v4953_v10 = vld [vmem:[#allocation5_spill] sm:$0xff] }
 0x183   : > { %v4549_v12 = vpop.f32.mrf.mxu1  ;;  %v1693_v25 = vadd.f32 %v1692_v29, %v1691_v7  ;;  %v612_v11 = vsel %vm4545_vm12, %v600_v51, %v494_v18  ;;  %v516_v57 = vsel %vm515_vm13, 1, %v3529_v26  ;;  %v530_v35 = vshrl.u32 %v4529_v44, 16 }
 0x184   : > { %v1621_v41 = vadd.f32 %v1603_v61, %v1534_v47  ;;  %v510_v39 = vshrl.u32 %v505_v42, 16  ;;  %v518_v8 = vadd.s32 %v516_v57, %v514_v6  ;;  %v1290_v31 = vadd.f32 %v4953_v10, %v4309_v48 }
 0x185   : > { %v532_v2 = vmul.u32 43691, %v529_v49  ;;  %v533_v7 = vmul.u32 43690, %v529_v49  ;;  %v534_v14 = vmul.u32 43691, %v530_v35  ;;  %vm624_vm14 = vcmp.lt.s32.totalorder %v612_v11, 16 }
 0x186   : > { %3319 = vmatmul.msk.bf16.gmra.mxu3 %vm757_vm2, %v4366_v19  ;;  %3333 = vmatmul.msk.bf16.gmra.mxu1 %vm757_vm2, %v2604_v34  ;;  %v1633_v18 = vmul.f32 %v4523_v38, %v1621_v41  ;;  %1718 = vst.msk [vmem:[%s4247_s9 + $0x40] sm:$0xff] %vm757_vm2, %v1621_v41  ;;  %v2275_v61 = vsel %vm875_vm4, %v2272_v52, %v2274_v63  ;;  %v535_v34 = vmul.u32 43690, %v530_v35  ;;  %v4573_v32 = vsel %vm624_vm14, 1.0, %v4932_v50 }
 0x187   : > { %v519_v19 = vadd.s32 %v518_v8, %v508_v33  ;;  %v1395_v42 = vpop.f32.mrf.mxu2  ;;  %v2497_v48 = vsel %vm704_vm3, %v4512_v5, %v4517_v28  ;;  %v536_v53 = vshll.u32 %v533_v7, 16  ;;  %v538_v49 = vshll.u32 %v534_v14, 16 }
 0x188   : > { %v1652_v23 = vsel %vm757_vm2, %v1633_v18, 0.0  ;;  %v1675_v45 = vmul.f32 %v1633_v18, %v1621_v41  ;;  %v1412_v51 = vadd.f32 %v1395_v42, %v1290_v31  ;;  %v537_v8 = vshrl.u32 %v533_v7, 16  ;;  %v4954_v7 = vld [vmem:[#allocation6_spill] sm:$0xff] }
 0x189   : > { %v1521_v29 = vpop.f32.mrf.mxu3  ;;  %v520_v47 = vadd.s32 %v519_v19, %v510_v39  ;;  %v1653_v59 = vadd.f32 %v1652_v23, %v1651_v60  ;;  %vm540_vm15 = vc.u32 %v532_v2, %v536_v53  ;;  %v542_v52 = vadd.s32 %v536_v53, %v532_v2 }
 0x18a   : > { %v1694_v33 = vsel %vm757_vm2, %v1675_v45, 0.0  ;;  %v1535_v6 = vadd.f32 %v1518_v21, %v1412_v51  ;;  %v1608_v11 = vpop.f32.mrf.mxu0  ;;  %v541_v35 = vsel %vm540_vm15, 1, %v3529_v26  ;;  %v539_v21 = vshrl.u32 %v534_v14, 16 }
 0x18b   : > { %v521_v5 = vshrl.u32 %v520_v47, 4  ;;  %v4576_v57 = vpop.f32.mrf.mxu1  ;;  %v1695_v41 = vadd.f32 %v1694_v33, %v1693_v25  ;;  %v543_v10 = vadd.s32 %v541_v35, %v535_v34  ;;  %vm544_vm0 = vc.u32 %v542_v52, %v538_v49 }
 0x18c   : > { %v1622_v60 = vadd.f32 %v1605_v43, %v1535_v6  ;;  %3287 = vmatmul.msk.bf16.gmra.mxu2 %vm757_vm2, %v2275_v61  ;;  %v545_v31 = vsel %vm544_vm0, 1, %v3529_v26  ;;  %v1291_v19 = vadd.f32 %v4954_v7, %v4427_v46  ;;  %v2498_v51 = vshrl.u32 %v4487_v1, 16 }
 0x18d   : > { %v522_v39 = vmul.u32 24, %v521_v5  ;;  %3326 = vmatmul.msk.bf16.gmra.mxu0 %vm757_vm2, %v2497_v48  ;;  %v547_v2 = vadd.s32 %v545_v31, %v543_v10  ;;  %v4590_v48 = vld [vmem:[%s4329_s23 + $0x18] sm:$0xff] }
 0x18e   : > { %v1634_v18 = vmul.f32 %v4573_v32, %v1622_v60  ;;  %1719 = vst.msk [vmem:[%s4247_s9 + $0x48] sm:$0xff] %vm757_vm2, %v1622_v60  ;;  %v2501_v47 = vshll.u32 %v4590_v48, 16 }
 0x18f   : > { %v523_v25 = vsub.s32 %v4497_v54, %v522_v39  ;;  %v1398_v43 = vpop.f32.mrf.mxu2  ;;  %v548_v42 = vadd.s32 %v547_v2, %v537_v8  ;;  %v2605_v39 = vrot.slane %v4590_v48, 1 }
 0x190   : > { %v1654_v61 = vsel %vm757_vm2, %v1634_v18, 0.0  ;;  %v1676_v34 = vmul.f32 %v1634_v18, %v1622_v60  ;;  %v1413_v49 = vadd.f32 %v1398_v43, %v1291_v19  ;;  %v2503_v31 = vrot.slane %v2501_v47, 1 }
 0x191   : > { %vm565_vm1 = vcmp.ne.s32.totalorder %v523_v25, 0  ;;  %vm577_vm5 = vcmp.lt.s32.totalorder %v523_v25, 0  ;;  %v1523_v26 = vpop.f32.mrf.mxu3  ;;  %v1655_v14 = vadd.f32 %v1654_v61, %v1653_v59  ;;  %v601_v53 = vadd.s32 24, %v523_v25  ;;  %v4598_v59 = vld [vmem:[%s3951_s5 + $0x18] sm:$0xff] }
 0x192   : > { %vm589_vm6 = vmand %vm577_vm5, %vm565_vm1  ;;  %v549_v23 = vadd.s32 %v548_v42, %v539_v21  ;;  %v1696_v54 = vsel %vm757_vm2, %v1676_v34, 0.0  ;;  %v1610_v45 = vpop.f32.mrf.mxu0  ;;  %v1536_v6 = vadd.f32 %v1521_v29, %v1413_v49  ;;  %v2276_v35 = vrot.slane %v4598_v59, 1 }
 0x193   : > { %v4593_v46 = vpop.f32.mrf.mxu1  ;;  %v1697_v52 = vadd.f32 %v1696_v54, %v1695_v41  ;;  %v613_v33 = vsel %vm589_vm6, %v601_v53, %v523_v25  ;;  %v2500_v41 = vor.u32 %v2498_v51, %v4517_v28 }
 0x194   : > { %v550_v5 = vshrl.u32 %v549_v23, 4  ;;  %vm625_vm7 = vcmp.lt.s32.totalorder %v613_v33, 16  ;;  %v1623_v10 = vadd.f32 %v1608_v11, %v1536_v6  ;;  %v2606_v11 = vsel %vm875_vm4, %v2603_v15, %v2605_v39  ;;  %v4955_v23 = vld [vmem:[#allocation7_spill] sm:$0xff] }
 0x195   : > { %v4602_v8 = vsel %vm625_vm7, 1.0, %v4932_v50  ;;  %v2277_v28 = vsel %vm875_vm4, %v2274_v63, %v2276_v35  ;;  %v2504_v43 = vsel %vm704_vm3, %v2500_v41, %v2503_v31 }
 0x196   : > { %3320 = vmatmul.msk.bf16.gmra.mxu3 %vm757_vm2, %v4487_v1  ;;  %v551_v60 = vmul.u32 24, %v550_v5  ;;  %v1635_v29 = vmul.f32 %v4602_v8, %v1623_v10  ;;  %1720 = vst.msk [vmem:[%s4247_s9 + $0x50] sm:$0xff] %vm757_vm2, %v1623_v10  ;;  %3334 = vmatmul.msk.bf16.gmra.mxu1 %vm757_vm2, %v2606_v11 }
 0x197   : > { %v1400_v2 = vpop.f32.mrf.mxu2 }
 0x198   : > { %v552_v21 = vsub.s32 %v4529_v44, %v551_v60  ;;  %v1414_v18 = vadd.f32 %v1400_v2, %v4480_v30  ;;  %v1656_v7 = vsel %vm757_vm2, %v1635_v29, 0.0  ;;  %v1677_v19 = vmul.f32 %v1635_v29, %v1623_v10 }
 0x199   : > { %v1985_v25 = vpop.f32.mrf.mxu3  ;;  %v1657_v1 = vadd.f32 %v1656_v7, %v1655_v14  ;;  %v2505_v10 = vshrl.u32 %v4590_v48, 16  ;;  %v4956_v7 = vld [vmem:[#allocation9_spill] sm:$0xff] }
 0x19a   : > { %vm566_vm8 = vcmp.ne.s32.totalorder %v552_v21, 0  ;;  %vm578_vm9 = vcmp.lt.s32.totalorder %v552_v21, 0  ;;  %v602_v15 = vadd.s32 24, %v552_v21  ;;  %v1537_v30 = vadd.f32 %v1523_v26, %v1414_v18  ;;  %v4623_v44 = vpop.f32.mrf.mxu0  ;;  %v3401_v26 = vld [vmem:[%s4329_s23 + $0x20] sm:$0xff] }
 0x19b   : > { %vm590_vm10 = vmand %vm578_vm9, %vm566_vm8  ;;  %v4626_v20 = vpop.f32.mrf.mxu1  ;;  %v1698_v63 = vsel %vm757_vm2, %v1677_v19, 0.0  ;;  %v2508_v60 = vshll.u32 %v3401_v26, 16  ;;  %v2507_v18 = vor.u32 %v2505_v10, %v2503_v31 }
 0x19c   : > { %v1699_v42 = vadd.f32 %v1698_v63, %v1697_v52  ;;  %v614_v61 = vsel %vm590_vm10, %v602_v15, %v552_v21  ;;  %v1624_v34 = vadd.f32 %v1610_v45, %v1537_v30  ;;  %3288 = vmatmul.msk.bf16.gmra.mxu2 %vm757_vm2, %v2277_v28  ;;  %v2607_v52 = vrot.slane %v3401_v26, 1  ;;  %v3468_v21 = vld [vmem:[%s3951_s5 + $0x20] sm:$0xff] }
 0x19d   : > { %vm626_vm11 = vcmp.lt.s32.totalorder %v614_v61, 16  ;;  %3327 = vmatmul.msk.bf16.gmra.mxu0 %vm757_vm2, %v2504_v43  ;;  %v2278_v2 = vrot.slane %v3468_v21, 1 }
 0x19e   : > { %v4632_v14 = vsel %vm626_vm11, 1.0, %v4932_v50  ;;  %1721 = vst.msk [vmem:[%s4247_s9 + $0x58] sm:$0xff] %vm757_vm2, %v1624_v34  ;;  %v2608_v11 = vsel %vm875_vm4, %v2605_v39, %v2607_v52  ;;  %v3402_v39 = vld [vmem:[%s4329_s23 + $0x28] sm:$0xff] }
 0x19f   : > { %v1636_v53 = vmul.f32 %v4632_v14, %v1624_v34  ;;  %v1911_v49 = vpop.f32.mrf.mxu2  ;;  %v2279_v15 = vsel %vm875_vm4, %v2276_v35, %v2278_v2  ;;  %v2609_v61 = vrot.slane %v3402_v39, 1 }
 0x1a0   : > { %v1912_v54 = vadd.f32 %v1911_v49, %v4955_v23  ;;  %v2512_v49 = vshrl.u32 %v3401_v26, 16  ;;  %v2515_v23 = vshll.u32 %v3402_v39, 16 }
 0x1a1   : > { %v1987_v51 = vpop.f32.mrf.mxu3  ;;  %v1658_v45 = vsel %vm757_vm2, %v1636_v53, 0.0  ;;  %v1678_v47 = vmul.f32 %v1636_v53, %v1624_v34 }
 0x1a2   : > { %v4640_v33 = vadd.f32 %v1658_v45, %v1657_v1  ;;  %v2015_v6 = vadd.f32 %v1985_v25, %v1912_v54  ;;  %v4642_v5 = vpop.f32.mrf.mxu0  ;;  %v2510_v25 = vrot.slane %v2508_v60, 1  ;;  %v3469_v54 = vld [vmem:[%s3951_s5 + $0x28] sm:$0xff]  ;;  %v2610_v45 = vsel %vm875_vm4, %v2607_v52, %v2609_v61 }
 0x1a3   : > { %v4644_v50 = vpop.f32.mrf.mxu1  ;;  %v1700_v41 = vsel %vm757_vm2, %v1678_v47, 0.0  ;;  %v2517_v10 = vrot.slane %v2515_v23, 1 }
 0x1a4   : > { %v4648_v29 = vadd.f32 %v1700_v41, %v1699_v42  ;;  %v2514_v47 = vor.u32 %v2512_v49, %v2510_v25  ;;  %v2373_v41 = vld [vmem:[%s4329_s23 + $0x30] sm:$0xf]  ;;  %v2136_v52 = vadd.f32 %v4623_v44, %v2015_v6  ;;  %v2519_v49 = vshrl.u32 %v3402_v39, 16 }
 0x1a6   : > { %3321 = vmatmul.msk.bf16.gmra.mxu3 %vm757_vm2, %v4590_v48  ;;  %3335 = vmatmul.msk.bf16.gmra.mxu1 %vm757_vm2, %v2608_v11  ;;  %v2511_v48 = vsel %vm704_vm3, %v2507_v18, %v2510_v25 }
 0x1a7   : > { %v1913_v28 = vpop.f32.mrf.mxu2 }
 0x1a8   : > { %v1914_v19 = vadd.f32 %v1913_v28, %v4956_v7  ;;  %v2518_v7 = vsel %vm704_vm3, %v2514_v47, %v2517_v10 }
 0x1a9   : > { %v1990_v1 = vpop.f32.mrf.mxu3 }
 0x1aa   : > { %v2016_v30 = vadd.f32 %v1987_v51, %v1914_v19  ;;  %v4659_v43 = vpop.f32.mrf.mxu0  ;;  %v2280_v51 = vrot.slane %v3469_v54, 1  ;;  %v2479_v19 = vunpack.c.l.b16 %v2373_v41  ;;  %v2282_v54 = vrot.slane %v4296_v24, 1 }
 0x1ab   : > { %v4662_v63 = vpop.f32.mrf.mxu1 }
 0x1ac   : > { %3289 = vmatmul.msk.bf16.gmra.mxu2 %vm757_vm2, %v2279_v15  ;;  %v2281_v11 = vsel %vm875_vm4, %v2278_v2, %v2280_v51  ;;  %v2480_v25 = vpack.c.b16 %v2479_v19, %v2479_v19  ;;  %v2137_v6 = vadd.f32 %v4642_v5, %v2016_v30 }
 0x1ad   : > { %3328 = vmatmul.msk.bf16.gmra.mxu0 %vm757_vm2, %v2511_v48 }
 0x1ae   : > { %v2611_v48 = vrot.slane %v2480_v25, 1  ;;  %v2523_v23 = vshll.u32 %v2480_v25, 16 }
 0x1af   : > { %v1916_v31 = vpop.f32.mrf.mxu2 }
 0x1b0   : > { %v1917_v42 = vadd.f32 %v1916_v31, %v4222_v4  ;;  %v2612_v44 = vsel %vm875_vm4, %v2609_v61, %v2611_v48 }
 0x1b1   : > { %v1992_v59 = vpop.f32.mrf.mxu3 }
 0x1b2   : > { %v2017_v35 = vadd.f32 %v1990_v1, %v1917_v42  ;;  %v2113_v34 = vpop.f32.mrf.mxu0 }
 0x1b3   : > { %v4668_v53 = vpop.f32.mrf.mxu1 }
 0x1b4   : > { %v2138_v5 = vadd.f32 %v4659_v43, %v2017_v35 }
 0x1b6   : > { %3322 = vmatmul.msk.bf16.gmra.mxu3 %vm757_vm2, %v3401_v26  ;;  %3336 = vmatmul.msk.bf16.gmra.mxu1 %vm757_vm2, %v2610_v45  ;;  %v2521_v45 = vor.u32 %v2519_v49, %v2517_v10  ;;  %v4700_v30 = vadd.f32 %v4644_v50, %v2138_v5 }
 0x1b7   : > { %v1918_v60 = vpop.f32.mrf.mxu2 }
 0x1b8   : > { %v1919_v4 = vadd.f32 %v1918_v60, %v4274_v27  ;;  %v4682_v27 = vadd.f32 %v4593_v46, %v2136_v52  ;;  %v2525_v46 = vrot.slane %v2523_v23, 1 }
 0x1b9   : > { %v1995_v21 = vpop.f32.mrf.mxu3 }
 0x1ba   : > { %v2018_v18 = vadd.f32 %v1992_v59, %v1919_v4  ;;  %v2116_v28 = vpop.f32.mrf.mxu0  ;;  %v2283_v4 = vsel %vm875_vm4, %v2280_v51, %v2282_v54  ;;  %v2526_v24 = vsel %vm704_vm3, %v2521_v45, %v2525_v46 }
 0x1bb   : > { %v2240_v26 = vpop.f32.mrf.mxu1 }
 0x1bc   : > { %3290 = vmatmul.msk.bf16.gmra.mxu2 %vm757_vm2, %v2281_v11  ;;  %v2139_v19 = vadd.f32 %v2113_v34, %v2018_v18 }
 0x1bd   : > { %3329 = vmatmul.msk.bf16.gmra.mxu0 %vm757_vm2, %v2518_v7 }
 0x1be   : > { %v4704_v25 = vadd.f32 %v4662_v63, %v2139_v19 }
 0x1bf   : > { %v1921_v1 = vpop.f32.mrf.mxu2 }
 0x1c0   : > { %v1922_v15 = vadd.f32 %v1921_v1, %v4319_v3  ;;  %v4690_v3 = vadd.f32 %v4626_v20, %v2137_v6 }
 0x1c1   : > { %v1997_v2 = vpop.f32.mrf.mxu3 }
 0x1c2   : > { %v2019_v31 = vadd.f32 %v1995_v21, %v1922_v15  ;;  %v2118_v42 = vpop.f32.mrf.mxu0 }
 0x1c3   : > { %v2243_v59 = vpop.f32.mrf.mxu1 }
 0x1c4   : > { %v2140_v48 = vadd.f32 %v2116_v28, %v2019_v31 }
 0x1c6   : > { %3323 = vmatmul.msk.bf16.gmra.mxu3 %vm757_vm2, %v3402_v39  ;;  %3337 = vmatmul.msk.bf16.gmra.mxu1 %vm757_vm2, %v2612_v44  ;;  %v4708_v49 = vadd.f32 %v4668_v53, %v2140_v48 }
 0x1c7   : > { %v1923_v47 = vpop.f32.mrf.mxu2 }
 0x1c8   : > { %v1924_v60 = vadd.f32 %v1923_v47, %v4361_v13 }
 0x1c9   : > { %v2000_v41 = vpop.f32.mrf.mxu3 }
 0x1ca   : > { %v2020_v39 = vadd.f32 %v1997_v2, %v1924_v60  ;;  %v2121_v21 = vpop.f32.mrf.mxu0 }
 0x1cb   : > { %v2245_v61 = vpop.f32.mrf.mxu1 }
 0x1cc   : > { %3291 = vmatmul.msk.bf16.gmra.mxu2 %vm757_vm2, %v2283_v4  ;;  %v2141_v44 = vadd.f32 %v2118_v42, %v2020_v39 }
 0x1cd   : > { %3330 = vmatmul.msk.bf16.gmra.mxu0 %vm757_vm2, %v2526_v24 }
 0x1ce   : > { %v4711_v6 = vadd.f32 %v2240_v26, %v2141_v44 }
 0x1cf   : > { %v1926_v20 = vpop.f32.mrf.mxu2 }
 0x1d0   : > { %v1927_v13 = vadd.f32 %v1926_v20, %v4407_v56 }
 0x1d1   : > { %v2002_v10 = vpop.f32.mrf.mxu3 }
 0x1d2   : > { %v2021_v11 = vadd.f32 %v2000_v41, %v1927_v13  ;;  %v2123_v51 = vpop.f32.mrf.mxu0 }
 0x1d3   : > { %v2248_v7 = vpop.f32.mrf.mxu1 }
 0x1d4   : > { %v2142_v31 = vadd.f32 %v2121_v21, %v2021_v11 }
 0x1d6   : > { %v4714_v53 = vadd.f32 %v2243_v59, %v2142_v31 }
 0x1d7   : > { %v1928_v52 = vpop.f32.mrf.mxu2 }
 0x1d8   : > { %v1929_v1 = vadd.f32 %v1928_v52, %v4435_v9 }
 0x1d9   : > { %v2005_v15 = vpop.f32.mrf.mxu3 }
 0x1da   : > { %v2022_v2 = vadd.f32 %v2002_v10, %v1929_v1  ;;  %v2126_v43 = vpop.f32.mrf.mxu0 }
 0x1db   : > { %v2250_v35 = vpop.f32.mrf.mxu1 }
 0x1dc   : > { %v2143_v42 = vadd.f32 %v2123_v51, %v2022_v2 }
 0x1de   : > { %v4717_v26 = vadd.f32 %v2245_v61, %v2143_v42 }
 0x1df   : > { %v1931_v50 = vpop.f32.mrf.mxu2 }
 0x1e0   : > { %v1932_v56 = vadd.f32 %v1931_v50, %v4483_v37 }
 0x1e1   : > { %v2007_v23 = vpop.f32.mrf.mxu3 }
 0x1e2   : > { %v2023_v54 = vadd.f32 %v2005_v15, %v1932_v56  ;;  %v2128_v34 = vpop.f32.mrf.mxu0 }
 0x1e3   : > { %v2253_v18 = vpop.f32.mrf.mxu1 }
 0x1e4   : > { %v2144_v11 = vadd.f32 %v2126_v43, %v2023_v54 }
 0x1e6   : > { %v4720_v19 = vadd.f32 %v2248_v7, %v2144_v11 }
 0x1e7   : > { %v1933_v63 = vpop.f32.mrf.mxu2 }
 0x1e8   : > { %v1934_v9 = vadd.f32 %v1933_v63, %v4515_v55 }
 0x1e9   : > { %v2010_v45 = vpop.f32.mrf.mxu3 }
 0x1ea   : > { %v2024_v46 = vadd.f32 %v2007_v23, %v1934_v9  ;;  %v2131_v47 = vpop.f32.mrf.mxu0 }
 0x1eb   : > { %v2255_v28 = vpop.f32.mrf.mxu1 }
 0x1ec   : > { %v2145_v61 = vadd.f32 %v2128_v34, %v2024_v46 }
 0x1ef   : > { %v1936_v60 = vpop.f32.mrf.mxu2 }
 0x1f0   : > { %v1937_v37 = vadd.f32 %v1936_v60, %v4549_v12 }
 0x1f1   : > { %v2012_v41 = vpop.f32.mrf.mxu3 }
 0x1f2   : > { %v2025_v4 = vadd.f32 %v2010_v45, %v1937_v37  ;;  %v2133_v24 = vpop.f32.mrf.mxu0 }
 0x1f3   : > { %v2643_v5 = vpop.f32.mrf.mxu1 }
 0x1f4   : > { %v2146_v63 = vadd.f32 %v2131_v47, %v2025_v4 }
 0x1f6   : > { %v4729_v34 = vadd.f32 %v2253_v18, %v2146_v63 }
 0x1f7   : > { %v1938_v39 = vpop.f32.mrf.mxu2 }
 0x1f8   : > { %v1939_v55 = vadd.f32 %v1938_v39, %v4576_v57  ;;  %v4723_v57 = vadd.f32 %v2250_v35, %v2145_v61 }
 0x1f9   : > { %v2435_v20 = vpop.f32.mrf.mxu3 }
 0x1fa   : > { %v2026_v13 = vadd.f32 %v2012_v41, %v1939_v55  ;;  %v2557_v10 = vpop.f32.mrf.mxu0 }
 0x1fb   : > { %v2645_v21 = vpop.f32.mrf.mxu1 }
 0x1fc   : > { %v2147_v39 = vadd.f32 %v2133_v24, %v2026_v13 }
 0x1ff   : > { %v2314_v59 = vpop.f32.mrf.mxu2 }
 0x200   : > { %v2344_v12 = vadd.f32 %v2314_v59, %v4682_v27 }
 0x201   : > { %v2437_v52 = vpop.f32.mrf.mxu3 }
 0x202   : > { %v2465_v1 = vadd.f32 %v2435_v20, %v2344_v12  ;;  %v2559_v15 = vpop.f32.mrf.mxu0 }
 0x203   : > { %v2648_v51 = vpop.f32.mrf.mxu1 }
 0x204   : > { %v2587_v2 = vadd.f32 %v2557_v10, %v2465_v1  ;;  %v4739_v10 = vadd.f32 %v2255_v28, %v2147_v39 }
 0x206   : > { %v2673_v48 = vadd.f32 %v2643_v5, %v2587_v2 }
 0x207   : > { %v2316_v50 = vpop.f32.mrf.mxu2 }
 0x208   : > { %3338 = vst.msk [vmem:[%s4247_s9 + $0x60] sm:$0xff] %vm757_vm2, %v2673_v48  ;;  %v2345_v43 = vadd.f32 %v2316_v50, %v4690_v3  ;;  %v2685_v27 = vmul.f32 %v4158_v16, %v2673_v48 }
 0x209   : > { %v2440_v56 = vpop.f32.mrf.mxu3 }
 0x20a   : > { %v2466_v7 = vadd.f32 %v2437_v52, %v2345_v43  ;;  %v2562_v23 = vpop.f32.mrf.mxu0  ;;  %v2727_v46 = vmul.f32 %v2685_v27, %v2673_v48  ;;  %v2697_v60 = vsel %vm757_vm2, %v2685_v27, 0.0 }
 0x20b   : > { %v2650_v44 = vpop.f32.mrf.mxu1 }
 0x20c   : > { %v2588_v54 = vadd.f32 %v2559_v15, %v2466_v7  ;;  %v2739_v18 = vsel %vm757_vm2, %v2727_v46, 0.0 }
 0x20e   : > { %v2674_v9 = vadd.f32 %v2645_v21, %v2588_v54 }
 0x20f   : > { %v2319_v45 = vpop.f32.mrf.mxu2 }
 0x210   : > { %v2686_v35 = vmul.f32 %v4185_v40, %v2674_v9  ;;  %3339 = vst.msk [vmem:[%s4247_s9 + $0x68] sm:$0xff] %vm757_vm2, %v2674_v9  ;;  %v2346_v31 = vadd.f32 %v2319_v45, %v4700_v30 }
 0x211   : > { %v2442_v3 = vpop.f32.mrf.mxu3 }
 0x212   : > { %v2698_v16 = vsel %vm757_vm2, %v2686_v35, 0.0  ;;  %v2728_v37 = vmul.f32 %v2686_v35, %v2674_v9  ;;  %v2467_v41 = vadd.f32 %v2440_v56, %v2346_v31  ;;  %v2564_v47 = vpop.f32.mrf.mxu0 }
 0x213   : > { %v2699_v4 = vadd.f32 %v2698_v16, %v2697_v60  ;;  %v2653_v30 = vpop.f32.mrf.mxu1 }
 0x214   : > { %v2740_v5 = vsel %vm757_vm2, %v2728_v37, 0.0  ;;  %v2589_v42 = vadd.f32 %v2562_v23, %v2467_v41 }
 0x215   : > { %v2741_v40 = vadd.f32 %v2740_v5, %v2739_v18 }
 0x216   : > { %v2675_v55 = vadd.f32 %v2648_v51, %v2589_v42 }
 0x217   : > { %v2321_v20 = vpop.f32.mrf.mxu2 }
 0x218   : > { %v2687_v21 = vmul.f32 %v4254_v62, %v2675_v55  ;;  %3340 = vst.msk [vmem:[%s4247_s9 + $0x70] sm:$0xff] %vm757_vm2, %v2675_v55  ;;  %v2347_v11 = vadd.f32 %v2321_v20, %v4704_v25 }
 0x219   : > { %v2445_v59 = vpop.f32.mrf.mxu3 }
 0x21a   : > { %v2700_v12 = vsel %vm757_vm2, %v2687_v21, 0.0  ;;  %v2729_v52 = vmul.f32 %v2687_v21, %v2675_v55  ;;  %v2468_v1 = vadd.f32 %v2442_v3, %v2347_v11  ;;  %v2567_v15 = vpop.f32.mrf.mxu0 }
 0x21b   : > { %v2701_v2 = vadd.f32 %v2700_v12, %v2699_v4  ;;  %v2655_v50 = vpop.f32.mrf.mxu1 }
 0x21c   : > { %v2742_v24 = vsel %vm757_vm2, %v2729_v52, 0.0  ;;  %v2590_v13 = vadd.f32 %v2564_v47, %v2468_v1 }
 0x21d   : > { %v2743_v51 = vadd.f32 %v2742_v24, %v2741_v40 }
 0x21e   : > { %v2676_v28 = vadd.f32 %v2650_v44, %v2590_v13 }
 0x21f   : > { %v2324_v61 = vpop.f32.mrf.mxu2 }
 0x220   : > { %v2688_v48 = vmul.f32 %v4268_v22, %v2676_v28  ;;  %3341 = vst.msk [vmem:[%s4247_s9 + $0x78] sm:$0xff] %vm757_vm2, %v2676_v28  ;;  %v2348_v62 = vadd.f32 %v2324_v61, %v4708_v49 }
 0x221   : > { %v2447_v25 = vpop.f32.mrf.mxu3 }
 0x222   : > { %v2702_v43 = vsel %vm757_vm2, %v2688_v48, 0.0  ;;  %v2730_v56 = vmul.f32 %v2688_v48, %v2676_v28  ;;  %v2469_v7 = vadd.f32 %v2445_v59, %v2348_v62  ;;  %v2569_v23 = vpop.f32.mrf.mxu0 }
 0x223   : > { %v2703_v27 = vadd.f32 %v2702_v43, %v2701_v2  ;;  %v2658_v37 = vpop.f32.mrf.mxu1 }
 0x224   : > { %v2744_v54 = vsel %vm757_vm2, %v2730_v56, 0.0  ;;  %v2591_v63 = vadd.f32 %v2567_v15, %v2469_v7 }
 0x225   : > { %v2745_v44 = vadd.f32 %v2744_v54, %v2743_v51 }
 0x226   : > { %v2677_v9 = vadd.f32 %v2653_v30, %v2591_v63 }
 0x227   : > { %v2326_v45 = vpop.f32.mrf.mxu2 }
 0x228   : > { %v2689_v22 = vmul.f32 %v4385_v36, %v2677_v9  ;;  %3342 = vst.msk [vmem:[%s4247_s9 + $0x80] sm:$0xff] %vm757_vm2, %v2677_v9  ;;  %v2349_v49 = vadd.f32 %v2326_v45, %v4711_v6 }
 0x229   : > { %v2450_v46 = vpop.f32.mrf.mxu3 }
 0x22a   : > { %v2704_v35 = vsel %vm757_vm2, %v2689_v22, 0.0  ;;  %v2731_v31 = vmul.f32 %v2689_v22, %v2677_v9  ;;  %v2470_v3 = vadd.f32 %v2447_v25, %v2349_v49  ;;  %v2572_v60 = vpop.f32.mrf.mxu0 }
 0x22b   : > { %v2705_v16 = vadd.f32 %v2704_v35, %v2703_v27  ;;  %v2660_v12 = vpop.f32.mrf.mxu1 }
 0x22c   : > { %v2746_v41 = vsel %vm757_vm2, %v2731_v31, 0.0  ;;  %v2592_v47 = vadd.f32 %v2569_v23, %v2470_v3 }
 0x22d   : > { %v2747_v4 = vadd.f32 %v2746_v41, %v2745_v44 }
 0x22e   : > { %v2678_v18 = vadd.f32 %v2655_v50, %v2592_v47 }
 0x22f   : > { %v2329_v5 = vpop.f32.mrf.mxu2 }
 0x230   : > { %v2690_v36 = vmul.f32 %v4390_v0, %v2678_v18  ;;  %3343 = vst.msk [vmem:[%s4247_s9 + $0x88] sm:$0xff] %vm757_vm2, %v2678_v18  ;;  %v2350_v6 = vadd.f32 %v2329_v5, %v4714_v53 }
 0x231   : > { %v2452_v42 = vpop.f32.mrf.mxu3 }
 0x232   : > { %v2706_v40 = vsel %vm757_vm2, %v2690_v36, 0.0  ;;  %v2732_v39 = vmul.f32 %v2690_v36, %v2678_v18  ;;  %v2471_v55 = vadd.f32 %v2450_v46, %v2350_v6  ;;  %v2574_v30 = vpop.f32.mrf.mxu0 }
 0x233   : > { %v2707_v20 = vadd.f32 %v2706_v40, %v2705_v16  ;;  %v2663_v50 = vpop.f32.mrf.mxu1 }
 0x234   : > { %v2748_v21 = vsel %vm757_vm2, %v2732_v39, 0.0  ;;  %v2593_v11 = vadd.f32 %v2572_v60, %v2471_v55 }
 0x235   : > { %v2749_v59 = vadd.f32 %v2748_v21, %v2747_v4 }
 0x236   : > { %v2679_v52 = vadd.f32 %v2658_v37, %v2593_v11 }
 0x237   : > { %v2331_v1 = vpop.f32.mrf.mxu2 }
 0x238   : > { %v2691_v0 = vmul.f32 %v4459_v58, %v2679_v52  ;;  %3344 = vst.msk [vmem:[%s4247_s9 + $0x90] sm:$0xff] %vm757_vm2, %v2679_v52  ;;  %v2351_v53 = vadd.f32 %v2331_v1, %v4717_v26 }
 0x239   : > { %v2455_v51 = vpop.f32.mrf.mxu3 }
 0x23a   : > { %v2708_v15 = vsel %vm757_vm2, %v2691_v0, 0.0  ;;  %v2733_v2 = vmul.f32 %v2691_v0, %v2679_v52  ;;  %v2472_v24 = vadd.f32 %v2452_v42, %v2351_v53  ;;  %v2577_v62 = vpop.f32.mrf.mxu0  ;;  %v1660_v0 = vrot.slane %v4640_v33, 4 }
 0x23b   : > { %v2709_v13 = vadd.f32 %v2708_v15, %v2707_v20  ;;  %v2665_v46 = vpop.f32.mrf.mxu1 }
 0x23c   : > { %v2750_v28 = vsel %vm757_vm2, %v2733_v2, 0.0  ;;  %v2594_v61 = vadd.f32 %v2574_v30, %v2472_v24 }
 0x23d   : > { %v2751_v48 = vadd.f32 %v2750_v28, %v2749_v59 }
 0x23e   : > { %v2680_v25 = vadd.f32 %v2660_v12, %v2594_v61 }
 0x23f   : > { %v2334_v43 = vpop.f32.mrf.mxu2 }
 0x240   : > { %v2692_v58 = vmul.f32 %v4505_v17, %v2680_v25  ;;  %3345 = vst.msk [vmem:[%s4247_s9 + $0x98] sm:$0xff] %vm757_vm2, %v2680_v25  ;;  %v2352_v26 = vadd.f32 %v2334_v43, %v4720_v19 }
 0x241   : > { %v2457_v9 = vpop.f32.mrf.mxu3 }
 0x242   : > { %v2710_v56 = vsel %vm757_vm2, %v2692_v58, 0.0  ;;  %v2734_v7 = vmul.f32 %v2692_v58, %v2680_v25  ;;  %v2473_v23 = vadd.f32 %v2455_v51, %v2352_v26  ;;  %v2579_v22 = vpop.f32.mrf.mxu0 }
 0x243   : > { %v2711_v27 = vadd.f32 %v2710_v56, %v2709_v13  ;;  %v2668_v39 = vpop.f32.mrf.mxu1  ;;  %v1702_v13 = vrot.slane %v4648_v29, 4 }
 0x244   : > { %v2752_v54 = vsel %vm757_vm2, %v2734_v7, 0.0  ;;  %v2595_v63 = vadd.f32 %v2577_v62, %v2473_v23 }
 0x245   : > { %v2753_v44 = vadd.f32 %v2752_v54, %v2751_v48  ;;  %v1703_v48 = vadd.f32 %v1702_v13, %v4648_v29 }
 0x246   : > { %v2681_v45 = vadd.f32 %v2663_v50, %v2595_v63 }
 0x247   : > { %v2336_v49 = vpop.f32.mrf.mxu2  ;;  %v1704_v26 = vrot.slane %v1703_v48, 2 }
 0x248   : > { %v2693_v17 = vmul.f32 %v4523_v38, %v2681_v45  ;;  %3346 = vst.msk [vmem:[%s4247_s9 + $0xa0] sm:$0xff] %vm757_vm2, %v2681_v45  ;;  %v2353_v19 = vadd.f32 %v2336_v49, %v4723_v57 }
 0x249   : > { %v2460_v4 = vpop.f32.mrf.mxu3 }
 0x24a   : > { %v2712_v35 = vsel %vm757_vm2, %v2693_v17, 0.0  ;;  %v2735_v31 = vmul.f32 %v2693_v17, %v2681_v45  ;;  %v2474_v3 = vadd.f32 %v2457_v9, %v2353_v19  ;;  %v2582_v5 = vpop.f32.mrf.mxu0 }
 0x24b   : > { %v2713_v60 = vadd.f32 %v2712_v35, %v2711_v27  ;;  %v2670_v51 = vpop.f32.mrf.mxu1  ;;  %v2782_v35 = vld [vmem:[#allocation3] sm:$0x1] }
 0x24c   : > { %v2754_v16 = vsel %vm757_vm2, %v2735_v31, 0.0  ;;  %v2596_v37 = vadd.f32 %v2579_v22, %v2474_v3 }
 0x24d   : > { %v2755_v41 = vadd.f32 %v2754_v16, %v2753_v44  ;;  %v2786_v16 = vld [vmem:[#allocation4] sm:$0x1] }
 0x24e   : > { %v2682_v47 = vadd.f32 %v2665_v46, %v2596_v37 }
 0x24f   : > { %v2339_v18 = vpop.f32.mrf.mxu2 }
 0x250   : > { %v2694_v38 = vmul.f32 %v4573_v32, %v2682_v47  ;;  %3347 = vst.msk [vmem:[%s4247_s9 + $0xa8] sm:$0xff] %vm757_vm2, %v2682_v47  ;;  %v2354_v57 = vadd.f32 %v2339_v18, %v4729_v34 }
 0x251   : > { %v2462_v34 = vpop.f32.mrf.mxu3 }
 0x252   : > { %v2714_v36 = vsel %vm757_vm2, %v2694_v38, 0.0  ;;  %v2736_v6 = vmul.f32 %v2694_v38, %v2682_v47  ;;  %v2475_v42 = vadd.f32 %v2460_v4, %v2354_v57  ;;  %v2584_v15 = vpop.f32.mrf.mxu0 }
 0x253   : > { %v2715_v40 = vadd.f32 %v2714_v36, %v2713_v60 }
 0x254   : > { %v2756_v55 = vsel %vm757_vm2, %v2736_v6, 0.0  ;;  %v2597_v20 = vadd.f32 %v2582_v5, %v2475_v42 }
 0x255   : > { %v2757_v30 = vadd.f32 %v2756_v55, %v2755_v41 }
 0x256   : > { %v2683_v21 = vadd.f32 %v2668_v39, %v2597_v20 }
 0x257   : > { %v2341_v11 = vpop.f32.mrf.mxu2 }
 0x258   : > { %v2695_v59 = vmul.f32 %v4602_v8, %v2683_v21  ;;  %3348 = vst.msk [vmem:[%s4247_s9 + $0xb0] sm:$0xff] %vm757_vm2, %v2683_v21  ;;  %v2355_v32 = vadd.f32 %v2341_v11, %v4739_v10  ;;  %v1661_v10 = vadd.f32 %v1660_v0, %v4640_v33  ;;  %v1705_v33 = vadd.f32 %v1704_v26, %v1703_v48 }
 0x25a   : > { %v2716_v12 = vsel %vm757_vm2, %v2695_v59, 0.0  ;;  %v2737_v52 = vmul.f32 %v2695_v59, %v2683_v21  ;;  %v2476_v1 = vadd.f32 %v2462_v34, %v2355_v32  ;;  %v1662_v50 = vrot.slane %v1661_v10, 2 }
 0x25b   : > { %v2717_v53 = vadd.f32 %v2716_v12, %v2715_v40  ;;  %v1706_v29 = vrot.slane %v1705_v33, 1 }
 0x25c   : > { %v2758_v2 = vsel %vm757_vm2, %v2737_v52, 0.0  ;;  %v2598_v24 = vadd.f32 %v2584_v15, %v2476_v1  ;;  %v1663_v23 = vadd.f32 %v1662_v50, %v1661_v10 }
 0x25d   : > { %v2759_v8 = vadd.f32 %v2758_v2, %v2757_v30  ;;  %v1707_v31 = vadd.f32 %v1706_v29, %v1705_v33 }
 0x25e   : > { %v2684_v28 = vadd.f32 %v2670_v51, %v2598_v24  ;;  %v1664_v44 = vrot.slane %v1663_v23, 1 }
 0x260   : > { %v2696_v61 = vmul.f32 %v4632_v14, %v2684_v28  ;;  %3349 = vst.msk [vmem:[%s4247_s9 + $0xb8] sm:$0xff] %vm757_vm2, %v2684_v28  ;;  %v1665_v17 = vadd.f32 %v1664_v44, %v1663_v23 }
 0x262   : > { %v2718_v62 = vsel %vm757_vm2, %v2696_v61, 0.0  ;;  %v2738_v25 = vmul.f32 %v2696_v61, %v2684_v28 }
 0x263   : > { %v2719_v43 = vadd.f32 %v2718_v62, %v2717_v53 }
 0x264   : > { %v2760_v58 = vsel %vm757_vm2, %v2738_v25, 0.0  ;;  %vm2784_vm2 = vcmask 24576  }
 0x265   : > { %v2720_v56 = vrot.slane %v2719_v43, 4  ;;  %v2761_v7 = vadd.f32 %v2760_v58, %v2759_v8 }
 0x267   : > { %v2721_v27 = vadd.f32 %v2720_v56, %v2719_v43  ;;  %v2762_v54 = vrot.slane %v2761_v7, 4 }
 0x269   : > { %v2722_v63 = vrot.slane %v2721_v27, 2  ;;  %v2763_v14 = vadd.f32 %v2762_v54, %v2761_v7 }
 0x26b   : > { %v2723_v9 = vadd.f32 %v2722_v63, %v2721_v27  ;;  %v2764_v45 = vrot.slane %v2763_v14, 2 }
 0x26d   : > { %v2724_v22 = vrot.slane %v2723_v9, 1  ;;  %v2765_v49 = vadd.f32 %v2764_v45, %v2763_v14 }
 0x26f   : > { %v2725_v19 = vadd.f32 %v2724_v22, %v2723_v9  ;;  %v2766_v46 = vrot.slane %v2765_v49, 1 }
 0x271   : > { %v2726_v3 = vadd.f32 %v2725_v19, %v1665_v17  ;;  %v2767_v60 = vadd.f32 %v2766_v46, %v2765_v49 }
 0x273   : > { %v2768_v37 = vadd.f32 %v2767_v60, %v1707_v31  ;;  %v2783_v41 = vadd.f32 %v2782_v35, %v2726_v3 }
 0x275   : > { %2785 = vst.msk [vmem:[#allocation3] sm:$0x1] %vm2784_vm2, %v2783_v41  ;;  %v2787_v47 = vadd.f32 %v2786_v16, %v2768_v37 }
 0x277   : > { %2788 = vst.msk [vmem:[#allocation4] sm:$0x1] %vm2784_vm2, %v2787_v47 }
 0x278 PF: > { %p3350_p10 = scmp.ne.s32.totalorder %s3506_s10, 1 }
 0x279   : > { %s4808_s10 = scalar_lea.vmem (!%p3350_p10), [#allocation2], %s3595_s20 }
 0x27a   : > { %2792 = sbr.rel (%p3350_p10) target bundleno = 692 (0x2b4), region = 40 }
 0x27f   : > { %v2793_v4 = vld [vmem:[#allocation3] sm:$0x1]  ;;  %v2795_v18 = vld [vmem:[#allocation4] sm:$0x1]  ;;  %v2813_v11 = vld [vmem:[%s4808_s10 + $0x8] sm:$0xff]  ;;  %vm2870_vm13 = vcmask 27648  }
 0x280   : > { %v2794_v38 = vmul.f32 0.00390625, %v2793_v4  ;;  %v2796_v57 = vmul.f32 0.00390625, %v2795_v18  ;;  %v2812_v21 = vld [vmem:[%s4808_s10] sm:$0xff]  ;;  %v2814_v59 = vld [vmem:[%s4808_s10 + $0x18] sm:$0xff]  ;;  %v2816_v12 = vld [vmem:[%s4808_s10 + $0x30] sm:$0xff] }
 0x281   : > { %v2815_v34 = vld [vmem:[%s4808_s10 + $0x20] sm:$0xff]  ;;  %v2817_v52 = vld [vmem:[%s4808_s10 + $0x38] sm:$0xff]  ;;  %v2818_v0 = vld [vmem:[%s4808_s10 + $0x48] sm:$0xff] }
 0x282   : > { %v2797_v5 = vmul.f32 %v2794_v38, %v2794_v38  ;;  %v4805_v30 = vperm.slane %v2794_v38, 0  ;;  %v2819_v53 = vld [vmem:[%s4808_s10 + $0x50] sm:$0xff]  ;;  %v2820_v24 = vld [vmem:[%s4808_s10 + $0x60] sm:$0xff]  ;;  %v2821_v13 = vld [vmem:[%s4808_s10 + $0x68] sm:$0xff] }
 0x283   : > { %v2822_v61 = vld [vmem:[%s4808_s10 + $0x78] sm:$0xff]  ;;  %v2823_v48 = vld [vmem:[%s4808_s10 + $0x80] sm:$0xff]  ;;  %v2824_v62 = vld [vmem:[%s4808_s10 + $0x90] sm:$0xff] }
 0x284   : > { %v2798_v36 = vsub.f32 %v2796_v57, %v2797_v5  ;;  %v2831_v2 = vsub.f32 %v2812_v21, %v4805_v30  ;;  %v2832_v8 = vsub.f32 %v2813_v11, %v4805_v30  ;;  %v2833_v51 = vsub.f32 %v2814_v59, %v4805_v30  ;;  %v2825_v9 = vld [vmem:[%s4808_s10 + $0x98] sm:$0xff]  ;;  %v2826_v17 = vld [vmem:[%s4808_s10 + $0xa8] sm:$0xff]  ;;  %v2827_v3 = vld [vmem:[%s4808_s10 + $0xb0] sm:$0xff] }
 0x285   : > { %v2834_v28 = vsub.f32 %v2815_v34, %v4805_v30  ;;  %v2835_v10 = vsub.f32 %v2816_v12, %v4805_v30  ;;  %v2836_v50 = vsub.f32 %v2817_v52, %v4805_v30  ;;  %v2837_v43 = vsub.f32 %v2818_v0, %v4805_v30 }
 0x286   : > { %v2799_v6 = vmax.f32 %v2798_v36, 0.0  ;;  %v2838_v58 = vsub.f32 %v2819_v53, %v4805_v30  ;;  %v2839_v56 = vsub.f32 %v2820_v24, %v4805_v30  ;;  %v2840_v7 = vsub.f32 %v2821_v13, %v4805_v30 }
 0x287   : > { %v2841_v23 = vsub.f32 %v2822_v61, %v4805_v30  ;;  %v2842_v27 = vsub.f32 %v2823_v48, %v4805_v30  ;;  %v2843_v54 = vsub.f32 %v2824_v62, %v4805_v30  ;;  %v2844_v41 = vsub.f32 %v2825_v9, %v4805_v30 }
 0x288   : > { %v2800_v42 = vadd.f32 1e-05, %v2799_v6  ;;  %v2845_v38 = vsub.f32 %v2826_v17, %v4805_v30  ;;  %v2846_v6 = vsub.f32 %v2827_v3, %v4805_v30 }
 0x28a   : > { %3470 = vrsqrt.f32 %v2800_v42  ;;  %vm2807_vm3 = vweird.f32 %v2800_v42 }
 0x290   : > { %v3471_v40 = vpop.eup %3470 }
 0x291   : > { %v2802_v39 = vmul.f32 %v3471_v40, %v2800_v42  ;;  %vm2808_vm4 = vweird.f32 %v3471_v40 }
 0x292   : > { %vm4816_vm12 = vmor %vm2807_vm3, %vm2808_vm4 }
 0x293   : > { %v2803_v55 = vmul.f32 %v3471_v40, %v2802_v39 }
 0x295   : > { %v2804_v20 = vmul.f32 0.5, %v2803_v55 }
 0x297   : > { %v2805_v32 = vsub.f32 1.5, %v2804_v20 }
 0x299   : > { %v2806_v15 = vmul.f32 %v3471_v40, %v2805_v32 }
 0x29b   : > { %v2810_v25 = vsel %vm4816_vm12, %v3471_v40, %v2806_v15 }
 0x29c   : > { %v2848_v26 = vperm.slane %v2810_v25, 0 }
 0x29e   : > { %v2850_v33 = vmul.f32 %v2848_v26, %v2831_v2  ;;  %v2851_v63 = vmul.f32 %v2848_v26, %v2832_v8  ;;  %v2852_v14 = vmul.f32 %v2848_v26, %v2833_v51  ;;  %v2853_v44 = vmul.f32 %v2848_v26, %v2834_v28 }
 0x29f   : > { %v2854_v45 = vmul.f32 %v2848_v26, %v2835_v10  ;;  %v2855_v29 = vmul.f32 %v2848_v26, %v2836_v50  ;;  %v2856_v22 = vmul.f32 %v2848_v26, %v2837_v43  ;;  %v2857_v49 = vmul.f32 %v2848_v26, %v2838_v58 }
 0x2a0   : > { %v2866_v19 = vmax.f32 %v2850_v33, 0.0  ;;  %v2867_v46 = vmax.f32 %v2851_v63, 0.0  ;;  %v2873_v35 = vmax.f32 %v2852_v14, 0.0  ;;  %v2874_v31 = vmax.f32 %v2853_v44, 0.0 }
 0x2a1   : > { %v2880_v60 = vmax.f32 %v2854_v45, 0.0  ;;  %v2881_v16 = vmax.f32 %v2855_v29, 0.0  ;;  %v2887_v37 = vmax.f32 %v2856_v22, 0.0  ;;  %v2888_v36 = vmax.f32 %v2857_v49, 0.0 }
 0x2a2   : > { %v2868_v47 = vpack.c.bf16 %v2866_v19, %v2866_v19  ;;  %v2869_v4 = vpack.c.bf16 %v2867_v46, %v2867_v46  ;;  %v2875_v18 = vpack.c.bf16 %v2873_v35, %v2873_v35  ;;  %v2876_v57 = vpack.c.bf16 %v2874_v31, %v2874_v31 }
 0x2a3   : > { %v2882_v5 = vpack.c.bf16 %v2880_v60, %v2880_v60  ;;  %v2858_v42 = vmul.f32 %v2848_v26, %v2839_v56  ;;  %v2859_v40 = vmul.f32 %v2848_v26, %v2840_v7  ;;  %v2860_v39 = vmul.f32 %v2848_v26, %v2841_v23 }
 0x2a4   : > { %2871 = vst.msk [vmem:[%s3605_s4] sm:$0xf] %vm2870_vm13, %v2868_v47  ;;  %v2861_v55 = vmul.f32 %v2848_v26, %v2842_v27  ;;  %v2883_v20 = vpack.c.bf16 %v2881_v16, %v2881_v16  ;;  %v2889_v21 = vpack.c.bf16 %v2887_v37, %v2887_v37  ;;  %v2862_v11 = vmul.f32 %v2848_v26, %v2843_v54 }
 0x2a5   : > { %2872 = vst.msk [vmem:[%s3605_s4 + $0x4] sm:$0xf] %vm2870_vm13, %v2869_v4  ;;  %v2863_v59 = vmul.f32 %v2848_v26, %v2844_v41  ;;  %v2894_v32 = vmax.f32 %v2858_v42, 0.0  ;;  %v2895_v30 = vmax.f32 %v2859_v40, 0.0  ;;  %v2901_v34 = vmax.f32 %v2860_v39, 0.0 }
 0x2a6   : > { %3351 = vst.msk [vmem:[%s3605_s4 + $0x8] sm:$0xf] %vm2870_vm13, %v2875_v18  ;;  %v2864_v12 = vmul.f32 %v2848_v26, %v2845_v38  ;;  %v2890_v52 = vpack.c.bf16 %v2888_v36, %v2888_v36  ;;  %v2902_v1 = vmax.f32 %v2861_v55, 0.0  ;;  %v2865_v0 = vmul.f32 %v2848_v26, %v2846_v6 }
 0x2a7   : > { %3352 = vst.msk [vmem:[%s3605_s4 + $0xc] sm:$0xf] %vm2870_vm13, %v2876_v57  ;;  %v2896_v53 = vpack.c.bf16 %v2894_v32, %v2894_v32  ;;  %v2908_v15 = vmax.f32 %v2862_v11, 0.0  ;;  %v2897_v2 = vpack.c.bf16 %v2895_v30, %v2895_v30  ;;  %v2909_v24 = vmax.f32 %v2863_v59, 0.0 }
 0x2a8   : > { %3353 = vst.msk [vmem:[%s3605_s4 + $0x10] sm:$0xf] %vm2870_vm13, %v2882_v5  ;;  %v2903_v13 = vpack.c.bf16 %v2901_v34, %v2901_v34  ;;  %v2915_v8 = vmax.f32 %v2864_v12, 0.0  ;;  %v2904_v51 = vpack.c.bf16 %v2902_v1, %v2902_v1  ;;  %v2916_v28 = vmax.f32 %v2865_v0, 0.0 }
 0x2a9   : > { %3354 = vst.msk [vmem:[%s3605_s4 + $0x14] sm:$0xf] %vm2870_vm13, %v2883_v20  ;;  %v2910_v10 = vpack.c.bf16 %v2908_v15, %v2908_v15  ;;  %v2911_v61 = vpack.c.bf16 %v2909_v24, %v2909_v24 }
 0x2aa   : > { %3355 = vst.msk [vmem:[%s3605_s4 + $0x18] sm:$0xf] %vm2870_vm13, %v2889_v21  ;;  %v2917_v48 = vpack.c.bf16 %v2915_v8, %v2915_v8  ;;  %v2918_v62 = vpack.c.bf16 %v2916_v28, %v2916_v28 }
 0x2ab   : > { %3356 = vst.msk [vmem:[%s3605_s4 + $0x1c] sm:$0xf] %vm2870_vm13, %v2890_v52 }
 0x2ac   : > { %3357 = vst.msk [vmem:[%s3605_s4 + $0x20] sm:$0xf] %vm2870_vm13, %v2896_v53 }
 0x2ad   : > { %3358 = vst.msk [vmem:[%s3605_s4 + $0x24] sm:$0xf] %vm2870_vm13, %v2897_v2 }
 0x2ae   : > { %3359 = vst.msk [vmem:[%s3605_s4 + $0x28] sm:$0xf] %vm2870_vm13, %v2903_v13 }
 0x2af   : > { %3360 = vst.msk [vmem:[%s3605_s4 + $0x2c] sm:$0xf] %vm2870_vm13, %v2904_v51 }
 0x2b0   : > { %3361 = vst.msk [vmem:[%s3605_s4 + $0x30] sm:$0xf] %vm2870_vm13, %v2910_v10 }
 0x2b1   : > { %3362 = vst.msk [vmem:[%s3605_s4 + $0x34] sm:$0xf] %vm2870_vm13, %v2911_v61 }
 0x2b2   : > { %3363 = vst.msk [vmem:[%s3605_s4 + $0x38] sm:$0xf] %vm2870_vm13, %v2917_v48 }
 0x2b3   : > { %3364 = vst.msk [vmem:[%s3605_s4 + $0x3c] sm:$0xf] %vm2870_vm13, %v2918_v62 }
 0x2b4 PF: > { %s12_s15 = sadd.s32 1, %s3526_s15   ;;  %s4959_s9 = smov %s3514_s12 }
 0x2b5   : > { %p9_p11 = scmp.ge.s32.totalorder %s12_s15, 10   ;;  %s4960_s10 = smov %s3518_s13 }
 0x2b6   : > { %s4961_s11 = smov %s3522_s14  ;;  %s4962_s12 = smov %s4966_s16 }
 0x2b7   : > { %s4963_s13 = smov %s4970_s17  ;;  %s4964_s14 = smov %s4974_s18 }
 0x2b8   :  { %11 = sbr.rel (!%p9_p11) target bundleno = 4 (0x4), region = 94 }

// kernel: basic_block_orj_forward.3
= control target key start
LH: loop header
LB: loop body
LE: loop exit
PB: predicated region body
PF: predicated region fallthrough
CT: control target
= control target key end

     0   :  { %s3686_s12 = smov 0   ;;  %s3688_s13 = smov 0   ;;  %s5080_s0 = inlined_call_operand.vmem [shape: bf16[2,456,4], index: 0, kind: input, shape index: {}]   ;;  %s5081_s1 = inlined_call_operand.vmem [shape: bf16[9,4,4], index: 1, kind: input, shape index: {}]   ;;  %s5082_s2 = inlined_call_operand.vmem [shape: f32[2,16,16,4], index: 2, kind: input, shape index: {}]   ;;  %s5083_s3 = inlined_call_operand.vmem [shape: f32[2,16,16,4], index: 3, kind: output, shape index: {}]  }
   0x1   :  { %s3690_s14 = smov 0   ;;  %s3692_s15 = smov 0  }
   0x2   :  { %s3694_s16 = smov 0   ;;  %s3696_s17 = smov 0  }
   0x3   :  { %s3698_s18 = smov 0  }
   0x4 LB: > { %s25_s19 = sadd.s32 1, %s3649_s15  ;;  %s28_s20 = sadd.s32 1, %s3653_s16  ;;  %s3661_s18 = sphi %s3698_s18, %s13_s18   ;;  %s3657_s17 = sphi %s3696_s17, %s5144_s17   ;;  %s3653_s16 = sphi %s3694_s16, %s5143_s16   ;;  %s3649_s15 = sphi %s3692_s15, %s5142_s15   ;;  %s3645_s14 = sphi %s3690_s14, %s5141_s14   ;;  %s3641_s13 = sphi %s3688_s13, %s5140_s13   ;;  %s3637_s12 = sphi %s3686_s12, %s5139_s12  }
   0x5   : > { %p26_p0 = scmp.ge.s32.totalorder %s25_s19, 2  ;;  %p3161_p1 = scmp.ge.s32.totalorder %s3661_s18, 1 }
   0x6   : > { %p182_p2 = scmp.lt.s32.totalorder %s3661_s18, 9  ;;  %s32_s21 = sadd.s32 1, %s3657_s17 }
   0x7   : > { %s5146_s19 = smov (%p26_p0, %s25_s19), 0  ;;  %s5148_s20 = smov (!%p26_p0, %s28_s20), %s3653_s16 }
   0x8   : > { %p183_p3 = pnand %p3161_p1, %p182_p2  ;;  %p30_p4 = scmp.ge.s32.totalorder %s5148_s20, 2 }
   0x9   : > { %p223_p6 = scmp.lt.s32.totalorder (!%p183_p3), %s3645_s14, 1  ;;  %s228_s22 = smul.u32 (!%p183_p3), %s3637_s12, %s3641_s13 }
   0xa   : > { %s5150_s20 = smov (%p30_p4, %s5148_s20), 0  ;;  %s5152_s21 = smov (!%p30_p4, %s32_s21), %s3657_s17 }
   0xb   : > { %p34_p5 = scmp.ge.s32.totalorder %s5152_s21, 2  ;;  %186 = sbr.rel (%p183_p3) target bundleno = 692 (0x2b4), region = 32 }
   0xc   : > { %s3735_s23 = smul.u32 (!%p183_p3), 192, %s3637_s12  ;;  %s3163_s24 = sshll.u32 (!%p183_p3), %s228_s22, 3 }
   0xd   : > { %s5154_s21 = smov (%p34_p5, %s5152_s21), 0  ;;  %p232_p7 = scmp.lt.s32.totalorder (!%p183_p3), %s3163_s24, 15 }
   0xe   : > { %p3171_p8 = scmp.ne.s32.totalorder (!%p183_p3), %s3641_s13, 0 }
  0x10   : > { %s5156_s14 = smov (!%p223_p6, %s3645_s14), 1  ;;  %s5158_s24 = smov (!%p232_p7, %s3163_s24), 15 }
  0x11   : > { %s3540_s25 = smul.u32 228, %s5156_s14  ;;  %s3165_s29 = sshll.u32 %s5156_s14, 5 }
  0x12   : > { %s3164_s30 = sshll.u32 %s5158_s24, 1  ;;  %259 = sbr.rel (%p3171_p8) target bundleno = 632 (0x278), region = 36 }
  0x13   : > { %s3740_s28 = scalar_lea.vmem %s5080_s0, %s3540_s25  ;;  %s236_s4 = sadd.s32 %s3165_s29, %s3164_s30 }
  0x14   : > { %s3166_s5 = sshll.u32 %s236_s4, 3 }
  0x15   : > { %s3745_s8 = scalar_lea.vmem %s5082_s2, %s3166_s5  ;;  %s3750_s11 = scalar_lea.vmem %s5083_s3, %s3166_s5 }
  0x17   : > { %p3172_p9 = scmp.ne.s32.totalorder %s3637_s12, 0 }
  0x19   : > { %263 = sbr.rel (%p3172_p9) target bundleno = 33 (0x21), region = 40 }
  0x1e   : > { %vm264_vm0 = vcmask 24576   ;;  %v3663_v0 = vmov 0.0  }
  0x1f   : > { %265 = vst.msk [vmem:[#allocation3] sm:$0x1] %vm264_vm0, %v3663_v0 }
  0x20   : > { %266 = vst.msk [vmem:[#allocation4] sm:$0x1] %vm264_vm0, %v3663_v0 }
  0x21 PF: > { %v741_v1 = vld [vmem:[%s5081_s1] sm:$0x3]  ;;  %vm849_vm1 = vcmask 1041408   ;;  %s724_s24 = sshra.s32 %s3735_s23, 3  ;;  %v3186_v3 = vld [vmem:[%s5081_s1 + $0x2] sm:$0x3] }
  0x22   : > { %v905_v2 = vsel %vm849_vm1, %v741_v1, 0  ;;  %s3185_s25 = sshll.u32 %s724_s24, 2  ;;  %vm830_vm2 = vcmask 31744   ;;  %v851_v4 = vsel %vm849_vm1, %v3186_v3, 0  ;;  %v3223_v5 = vld [vmem:[%s5081_s1 + $0x4] sm:$0x3] }
  0x23   : > { %3539 = vmatpush.bf16.msra.mxu3 %v905_v2  ;;  %s3763_s12 = scalar_lea.vmem %s3740_s28, %s3185_s25  ;;  %914 = vmatpush.bf16.msra.mxu1 %v905_v2  ;;  %v3231_v6 = vld [vmem:[%s5081_s1 + $0x6] sm:$0x3]  ;;  %v981_v9 = vsel %vm849_vm1, %v3223_v5, 0  ;;  %v3262_v13 = vld [vmem:[%s5081_s1 + $0x8] sm:$0x3]  ;;  %s1034_s26 = sadd.s32 24, %s3735_s23 }
  0x24   : > { %v3773_v7 = vld [vmem:[%s3763_s12 + $0x18] sm:$0xff]  ;;  %3538 = vmatpush.bf16.msra.mxu2 %v851_v4  ;;  %860 = vmatpush.bf16.msra.mxu0 %v851_v4  ;;  %v3776_v8 = vld [vmem:[%s3763_s12 + $0x20] sm:$0xff]  ;;  %v1103_v11 = vsel %vm849_vm1, %v3231_v6, 0  ;;  %v3784_v12 = vld [vmem:[%s3763_s12 + $0x8] sm:$0xff]  ;;  %v1226_v21 = vsel %vm849_vm1, %v3262_v13, 0  ;;  %s1035_s27 = sshra.s32 %s1034_s26, 3 }
  0x25   : > { %v3780_v10 = vld [vmem:[%s3763_s12] sm:$0xff]  ;;  %v3269_v14 = vld [vmem:[%s5081_s1 + $0xa] sm:$0x3]  ;;  %v802_v15 = vshll.u32 %v3773_v7, 16  ;;  %v806_v16 = vshrl.u32 %v3773_v7, 16  ;;  %v810_v17 = vshll.u32 %v3776_v8, 16 }
  0x26   : > { %3220 = vmatmul.msk.bf16.vlgmr.msra.gmra.mxu3 %vm830_vm2, %v3773_v7  ;;  %v779_v18 = vshrl.u32 %v3780_v10, 16  ;;  %3217 = vmatmul.msk.bf16.vlgmr.msra.gmra.mxu1 %vm830_vm2, %v3780_v10  ;;  %v781_v19 = vshll.u32 %v3780_v10, 16  ;;  %v786_v20 = vshll.u32 %v3784_v12, 16  ;;  %v1313_v22 = vsel %vm849_vm1, %v3269_v14, 0  ;;  %v3809_v31 = vld [vmem:[%s3763_s12 + $0x28] sm:$0xff]  ;;  %v3812_v32 = vld [vmem:[%s3763_s12 + $0x10] sm:$0xff] }
  0x27   : > { %1112 = vmatpush.bf16.msrb.mxu3 %v1103_v11  ;;  %v804_v23 = vrot.slane %v802_v15, 1  ;;  %v812_v24 = vrot.slane %v810_v17, 1  ;;  %1322 = vmatpush.bf16.msrb.mxu1 %v1313_v22  ;;  %vm777_vm3 = vsmask.f32 7424  ;;  %v814_v33 = vshrl.u32 %v3776_v8, 16  ;;  %s1366_s7 = sadd.s32 48, %s3735_s23 }
  0x28   : > { %990 = vmatpush.bf16.msrb.mxu2 %v981_v9  ;;  %1235 = vmatpush.bf16.msrb.mxu0 %v1226_v21  ;;  %v783_v25 = vrot.slane %v781_v19, 1  ;;  %v788_v26 = vrot.slane %v786_v20, 1  ;;  %v818_v34 = vshll.u32 %v3809_v31, 16  ;;  %v790_v35 = vshrl.u32 %v3784_v12, 16  ;;  %v740_v41 = vld [vmem:[%s3763_s12 + $0x30] sm:$0xf] }
  0x29   : > { %v808_v27 = vor.u32 %v806_v16, %v804_v23  ;;  %v794_v36 = vshll.u32 %v3812_v32, 16  ;;  %v816_v37 = vor.u32 %v814_v33, %v812_v24  ;;  %v769_v43 = vunpack.c.l.b16 %v740_v41  ;;  %v3277_v45 = vld [vmem:[%s5081_s1 + $0xc] sm:$0x3]  ;;  %v3308_v48 = vld [vmem:[%s5081_s1 + $0xe] sm:$0x3]  ;;  %s3230_s12 = sshll.u32 %s1035_s27, 2 }
  0x2a   : > { %v784_v28 = vor.u32 %v783_v25, %v779_v18  ;;  %v820_v38 = vrot.slane %v818_v34, 1  ;;  %v792_v39 = vor.u32 %v790_v35, %v788_v26  ;;  %v1435_v47 = vsel %vm849_vm1, %v3277_v45, 0  ;;  %v3315_v55 = vld [vmem:[%s5081_s1 + $0x10] sm:$0x3]  ;;  %v3323_v56 = vld [vmem:[%s5081_s1 + $0x2] sm:$0x3]  ;;  %s3854_s6 = scalar_lea.vmem %s3740_s28, %s3230_s12 }
  0x2b   : > { %v813_v29 = vsel %vm777_vm3, %v808_v27, %v812_v24  ;;  %v796_v40 = vrot.slane %v794_v36, 1  ;;  %v3830_v46 = vpack.c.b16 %v769_v43, %v769_v43  ;;  %v1558_v49 = vsel %vm849_vm1, %v3308_v48, 0  ;;  %v3508_v62 = vld [vmem:[%s3854_s6] sm:$0xff]  ;;  %v3509_v63 = vld [vmem:[%s3854_s6 + $0x8] sm:$0xff]  ;;  %v3510_v17 = vld [vmem:[%s3854_s6 + $0x10] sm:$0xff]  ;;  %s3906_s9 = sadd.s32 96, %s3735_s23 }
  0x2c   : > { %3214 = vmatmul.msk.bf16.vlgmr.msra.gmra.mxu2 %vm830_vm2, %v813_v29  ;;  %v789_v30 = vsel %vm777_vm3, %v784_v28, %v788_v26  ;;  %v821_v42 = vsel %vm777_vm3, %v816_v37, %v820_v38  ;;  %1567 = vmatpush.bf16.msra.mxu3 %v1558_v49  ;;  %v822_v50 = vshrl.u32 %v3809_v31, 16  ;;  %v798_v52 = vshrl.u32 %v3812_v32, 16  ;;  %v3511_v28 = vld [vmem:[%s3854_s6 + $0x18] sm:$0xff]  ;;  %v3512_v36 = vld [vmem:[%s3854_s6 + $0x20] sm:$0xff]  ;;  %s1367_s10 = sshra.s32 %s1366_s7, 3  ;;  %s1796_s14 = sshra.s32 %s3906_s9, 3 }
  0x2d   : > { %3211 = vmatmul.msk.bf16.vlgmr.msra.gmra.mxu0 %vm830_vm2, %v789_v30  ;;  %v797_v44 = vsel %vm777_vm3, %v792_v39, %v796_v40  ;;  %1444 = vmatpush.bf16.msra.mxu2 %v1435_v47  ;;  %v826_v51 = vshll.u32 %v3830_v46, 16  ;;  %v1645_v58 = vsel %vm849_vm1, %v3315_v55, 0  ;;  %v1919_v59 = vsel %vm849_vm1, %v3323_v56, 0  ;;  %s3276_s22 = sshll.u32 %s1367_s10, 2  ;;  %s3322_s26 = sshll.u32 %s1796_s14, 2 }
  0x2e   : > { %v824_v53 = vor.u32 %v822_v50, %v820_v38  ;;  %v800_v57 = vor.u32 %v798_v52, %v796_v40  ;;  %1654 = vmatpush.bf16.msra.mxu0 %v1645_v58  ;;  %1928 = vmatpush.bf16.msra.mxu1 %v1919_v59  ;;  %v1163_v0 = vshll.u32 %v3508_v62, 16  ;;  %v1281_v1 = vrot.slane %v3508_v62, 1  ;;  %v3360_v59 = vld [vmem:[%s5081_s1 + $0x4] sm:$0x3]  ;;  %s3921_s29 = scalar_lea.vmem %s3740_s28, %s3276_s22  ;;  %s3925_s30 = scalar_lea.vmem %s3740_s28, %s3322_s26 }
  0x2f   : > { %v828_v54 = vrot.slane %v826_v51, 1  ;;  %v1282_v2 = vrot.slane %v3509_v63, 1  ;;  %vm948_vm4 = vcmask 1046528   ;;  %v1161_v3 = vshrl.u32 %v3508_v62, 16  ;;  %v1051_v51 = vld [vmem:[%s3854_s6 + $0x30] sm:$0xf] }
  0x30   : > { %v805_v61 = vsel %vm777_vm3, %v800_v57, %v804_v23  ;;  %v1165_v4 = vrot.slane %v1163_v0, 1  ;;  %v1167_v5 = vshll.u32 %v3509_v63, 16  ;;  %v949_v9 = vrot.slane %v3780_v10, 1  ;;  %v1813_v57 = vld [vmem:[%s5081_s1] sm:$0x3]  ;;  %s2100_s10 = sadd.s32 24, %s3906_s9 }
  0x31   : > { %v829_v60 = vsel %vm777_vm3, %v824_v53, %v828_v54  ;;  %v1283_v6 = vsel %vm948_vm4, %v1281_v1, %v1282_v2  ;;  %v950_v11 = vrot.slane %v3784_v12, 1  ;;  %v1284_v18 = vrot.slane %v3510_v17, 1  ;;  %v3514_v0 = vld [vmem:[%s3921_s29] sm:$0xff]  ;;  %s2101_s14 = sshra.s32 %s2100_s10, 3  ;;  %s4392_s7 = scalar_lea.vmem [#allocation2], %s3735_s23 }
  0x32   : > { %v1166_v13 = vor.u32 %v1165_v4, %v1161_v3  ;;  %v1169_v14 = vrot.slane %v1167_v5, 1  ;;  %v1171_v19 = vshrl.u32 %v3509_v63, 16  ;;  %v1174_v20 = vshll.u32 %v3510_v17, 16  ;;  %v3930_v3 = vld [vmem:[%s3925_s30] sm:$0xff]  ;;  %s3367_s25 = sshll.u32 %s2101_s14, 2  ;;  %s2429_s10 = sadd.s32 48, %s3906_s9 }
  0x33   : > { %v951_v15 = vsel %vm948_vm4, %v949_v9, %v950_v11  ;;  %v1285_v10 = vsel %vm948_vm4, %v1282_v2, %v1284_v18  ;;  %v954_v21 = vrot.slane %v3773_v7, 1  ;;  %v956_v22 = vrot.slane %v3776_v8, 1  ;;  %s4096_s12 = scalar_lea.vmem %s3740_s28, %s3367_s25  ;;  %s4443_s9 = sshra.s32 %s2429_s10, 3 }
  0x34   : > { %v1170_v16 = vsel %vm777_vm3, %v1166_v13, %v1169_v14  ;;  %v1173_v23 = vor.u32 %v1171_v19, %v1169_v14  ;;  %v1176_v24 = vrot.slane %v1174_v20, 1  ;;  %v1286_v29 = vrot.slane %v3511_v28, 1  ;;  %v3939_v13 = vld [vmem:[%s3921_s29 + $0x8] sm:$0xff]  ;;  %s3413_s14 = sshll.u32 %s4443_s9, 2 }
  0x35   : > { %v957_v25 = vsel %vm948_vm4, %v954_v21, %v956_v22  ;;  %v1178_v30 = vshrl.u32 %v3510_v17, 16  ;;  %v1288_v37 = vrot.slane %v3512_v36, 1  ;;  %v1185_v38 = vshrl.u32 %v3511_v28, 16  ;;  %v3942_v14 = vld [vmem:[%s3925_s30 + $0x8] sm:$0xff]  ;;  %s4474_s22 = scalar_lea.vmem %s3740_s28, %s3413_s14 }
  0x36   : > { %3221 = vmatmul.msk.bf16.gmra.mxu3 %vm830_vm2, %v3776_v8  ;;  %3218 = vmatmul.msk.bf16.gmra.mxu1 %vm830_vm2, %v3784_v12  ;;  %v952_v12 = vrot.slane %v3812_v32, 1  ;;  %v1177_v27 = vsel %vm777_vm3, %v1173_v23, %v1176_v24  ;;  %v1287_v7 = vsel %vm948_vm4, %v1284_v18, %v1286_v29  ;;  %v1188_v39 = vshll.u32 %v3512_v36, 16  ;;  %v3399_v18 = vld [vmem:[%s5081_s1 + $0x8] sm:$0x3] }
  0x37   : > { %v1180_v8 = vor.u32 %v1178_v30, %v1176_v24  ;;  %v1289_v40 = vsel %vm948_vm4, %v1286_v29, %v1288_v37  ;;  %v1192_v47 = vshrl.u32 %v3512_v36, 16  ;;  %v958_v50 = vrot.slane %v3809_v31, 1 }
  0x38   : > { %v953_v26 = vsel %vm948_vm4, %v950_v11, %v952_v12  ;;  %v955_v34 = vsel %vm948_vm4, %v952_v12, %v954_v21  ;;  %v1159_v54 = vunpack.c.l.b16 %v1051_v51  ;;  %v1973_v58 = vsel %vm849_vm1, %v1813_v57, 0  ;;  %v3368_v11 = vld [vmem:[%s5081_s1 + $0x6] sm:$0x3] }
  0x39   : > { %v959_v55 = vsel %vm948_vm4, %v956_v22, %v958_v50  ;;  %v960_v4 = vrot.slane %v3830_v46, 1  ;;  %v1495_v9 = vshll.u32 %v3514_v0, 16  ;;  %v1493_v20 = vshrl.u32 %v3514_v0, 16 }
  0x3a   : > { %v2290_v12 = vsel %vm849_vm1, %v3399_v18, 0  ;;  %v1499_v23 = vshll.u32 %v3939_v13, 16  ;;  %v1849_v24 = vshrl.u32 %v3930_v3, 16 }
  0x3c   : > { %3215 = vmatmul.msk.bf16.gmra.mxu2 %vm830_vm2, %v821_v42  ;;  %v1190_v42 = vrot.slane %v1188_v39, 1  ;;  %v1501_v29 = vrot.slane %v1499_v23, 1  ;;  %v1613_v39 = vrot.slane %v3514_v0, 1 }
  0x3d   : > { %3212 = vmatmul.msk.bf16.gmra.mxu0 %vm830_vm2, %v797_v44  ;;  %v3513_v44 = vld [vmem:[%s3854_s6 + $0x28] sm:$0xff] }
  0x3e   : > { %v1290_v45 = vrot.slane %v3513_v44, 1  ;;  %v1195_v48 = vshll.u32 %v3513_v44, 16  ;;  %v1194_v52 = vor.u32 %v1192_v47, %v1190_v42 }
  0x40   : > { %v1291_v49 = vsel %vm948_vm4, %v1288_v37, %v1290_v45  ;;  %v1197_v53 = vrot.slane %v1195_v48, 1 }
  0x42   : > { %v1198_v56 = vsel %vm777_vm3, %v1194_v52, %v1197_v53  ;;  %v1860_v52 = vshrl.u32 %v3942_v14, 16 }
  0x46   : > { %3222 = vmatmul.msk.bf16.gmra.mxu3 %vm830_vm2, %v3809_v31  ;;  %3219 = vmatmul.msk.bf16.gmra.mxu1 %vm830_vm2, %v3812_v32  ;;  %v1181_v32 = vshll.u32 %v3511_v28, 16  ;;  %v1160_v31 = vpack.c.b16 %v1159_v54, %v1159_v54 }
  0x48   : > { %v1183_v33 = vrot.slane %v1181_v32, 1 }
  0x4a   : > { %v1184_v35 = vsel %vm777_vm3, %v1180_v8, %v1183_v33  ;;  %v1187_v41 = vor.u32 %v1185_v38, %v1183_v33 }
  0x4c   : > { %3216 = vmatmul.msk.bf16.gmra.mxu2 %vm830_vm2, %v829_v60  ;;  %v1191_v43 = vsel %vm777_vm3, %v1187_v41, %v1190_v42  ;;  %v1292_v60 = vrot.slane %v1160_v31, 1  ;;  %v3969_v41 = vld [vmem:[%s3921_s29 + $0x10] sm:$0xff] }
  0x4d   : > { %3213 = vmatmul.msk.bf16.gmra.mxu0 %vm830_vm2, %v805_v61  ;;  %v2047_v61 = vsel %vm849_vm1, %v3360_v59, 0  ;;  %v3972_v42 = vld [vmem:[%s3925_s30 + $0x10] sm:$0xff]  ;;  %v1506_v51 = vshll.u32 %v3969_v41, 16 }
  0x4e   : > { %v1293_v2 = vsel %vm948_vm4, %v1290_v45, %v1292_v60 }
  0x56   : > { %3256 = vmatmul.msk.bf16.vlgmr.msrb.gmra.mxu3 %vm830_vm2, %v3508_v62  ;;  %3270 = vmatmul.msk.bf16.vlgmr.msrb.gmra.mxu1 %vm830_vm2, %v1283_v6  ;;  %v1199_v62 = vshrl.u32 %v3513_v44, 16 }
  0x57   : > { %2056 = vmatpush.bf16.msrb.mxu3 %v2047_v61  ;;  %2299 = vmatpush.bf16.msrb.mxu1 %v2290_v12 }
  0x58   : > { %v1201_v5 = vor.u32 %v1199_v62, %v1197_v53  ;;  %v1864_v53 = vshll.u32 %v3972_v42, 16 }
  0x5a   : > { %v1866_v57 = vrot.slane %v1864_v53, 1 }
  0x5c   : > { %3224 = vmatmul.msk.bf16.vlgmr.msrb.gmra.mxu2 %vm830_vm2, %v951_v15  ;;  %v1851_v15 = vshll.u32 %v3930_v3, 16 }
  0x5d   : > { %3263 = vmatmul.msk.bf16.vlgmr.msrb.gmra.mxu0 %vm830_vm2, %v1170_v16  ;;  %1982 = vmatpush.bf16.msrb.mxu2 %v1973_v58  ;;  %v2168_v16 = vsel %vm849_vm1, %v3368_v11, 0 }
  0x5e   : > { %2177 = vmatpush.bf16.msrb.mxu0 %v2168_v16 }
  0x66   : > { %3257 = vmatmul.msk.bf16.gmra.mxu3 %vm830_vm2, %v3509_v63  ;;  %3271 = vmatmul.msk.bf16.gmra.mxu1 %vm830_vm2, %v1285_v10  ;;  %v1203_v63 = vshll.u32 %v1160_v31, 16  ;;  %v1497_v10 = vrot.slane %v1495_v9, 1 }
  0x68   : > { %v1205_v6 = vrot.slane %v1203_v63, 1 }
  0x6a   : > { %v1206_v19 = vsel %vm777_vm3, %v1201_v5, %v1205_v6  ;;  %v3998_v5 = vld [vmem:[%s3925_s30 + $0x18] sm:$0xff] }
  0x6c   : > { %3225 = vmatmul.msk.bf16.gmra.mxu2 %vm830_vm2, %v953_v26  ;;  %v1856_v26 = vshll.u32 %v3942_v14, 16 }
  0x6d   : > { %3264 = vmatmul.msk.bf16.gmra.mxu0 %vm830_vm2, %v1177_v27 }
  0x6e   : > { %v1858_v32 = vrot.slane %v1856_v26, 1 }
  0x70   : > { %v1862_v31 = vor.u32 %v1860_v52, %v1858_v32 }
  0x76   : > { %3258 = vmatmul.msk.bf16.gmra.mxu3 %vm830_vm2, %v3510_v17  ;;  %3272 = vmatmul.msk.bf16.gmra.mxu1 %vm830_vm2, %v1287_v7  ;;  %v961_v17 = vsel %vm948_vm4, %v958_v50, %v960_v4  ;;  %v1503_v50 = vshrl.u32 %v3939_v13, 16  ;;  %v3995_v4 = vld [vmem:[%s3921_s29 + $0x18] sm:$0xff] }
  0x77   : > { %v1513_v18 = vshll.u32 %v3995_v4, 16 }
  0x7c   : > { %3226 = vmatmul.msk.bf16.gmra.mxu2 %vm830_vm2, %v955_v34 }
  0x7d   : > { %3265 = vmatmul.msk.bf16.gmra.mxu0 %vm830_vm2, %v1184_v35 }
  0x86   : > { %3259 = vmatmul.msk.bf16.gmra.mxu3 %vm830_vm2, %v3511_v28  ;;  %3273 = vmatmul.msk.bf16.gmra.mxu1 %vm830_vm2, %v1289_v40  ;;  %v1498_v28 = vor.u32 %v1497_v10, %v1493_v20  ;;  %v1614_v40 = vrot.slane %v3939_v13, 1  ;;  %v1872_v20 = vshll.u32 %v3998_v5, 16 }
  0x88   : > { %v1502_v35 = vsel %vm777_vm3, %v1498_v28, %v1501_v29  ;;  %v1615_v47 = vsel %vm948_vm4, %v1613_v39, %v1614_v40  ;;  %v1874_v23 = vrot.slane %v1872_v20, 1 }
  0x8c   : > { %3227 = vmatmul.msk.bf16.gmra.mxu2 %vm830_vm2, %v957_v25  ;;  %v1853_v25 = vrot.slane %v1851_v15, 1 }
  0x8d   : > { %3266 = vmatmul.msk.bf16.gmra.mxu0 %vm830_vm2, %v1191_v43 }
  0x8e   : > { %v1854_v30 = vor.u32 %v1853_v25, %v1849_v24 }
  0x90   : > { %v1859_v37 = vsel %vm777_vm3, %v1854_v30, %v1858_v32 }
  0x96   : > { %3260 = vmatmul.msk.bf16.gmra.mxu3 %vm830_vm2, %v3512_v36  ;;  %3274 = vmatmul.msk.bf16.gmra.mxu1 %vm830_vm2, %v1291_v49 }
  0x9c   : > { %3228 = vmatmul.msk.bf16.gmra.mxu2 %vm830_vm2, %v959_v55  ;;  %v1505_v55 = vor.u32 %v1503_v50, %v1501_v29 }
  0x9d   : > { %3267 = vmatmul.msk.bf16.gmra.mxu0 %vm830_vm2, %v1198_v56  ;;  %v1508_v56 = vrot.slane %v1506_v51, 1 }
  0x9f   : > { %v1509_v62 = vsel %vm777_vm3, %v1505_v55, %v1508_v56 }
  0xa3   : > { %v916_v1 = vpop.f32.mrf.mxu1 }
  0xa6   : > { %3261 = vmatmul.msk.bf16.gmra.mxu3 %vm830_vm2, %v3513_v44  ;;  %3275 = vmatmul.msk.bf16.gmra.mxu1 %vm830_vm2, %v1293_v2 }
  0xa9   : > { %v931_v46 = vpop.f32.mrf.mxu3 }
  0xaa   : > { %v862_v21 = vpop.f32.mrf.mxu0 }
  0xab   : > { %v918_v22 = vpop.f32.mrf.mxu1  ;;  %v3955_v27 = vadd.f32 %v916_v1, %v862_v21  ;;  %v1867_v1 = vsel %vm777_vm3, %v1862_v31, %v1866_v57  ;;  %v1515_v21 = vrot.slane %v1513_v18, 1 }
  0xac   : > { %3229 = vmatmul.msk.bf16.gmra.mxu2 %vm830_vm2, %v961_v17  ;;  %v1510_v17 = vshrl.u32 %v3969_v41, 16 }
  0xad   : > { %3268 = vmatmul.msk.bf16.gmra.mxu0 %vm830_vm2, %v1206_v19  ;;  %v1868_v19 = vshrl.u32 %v3972_v42, 16 }
  0xae   : > { %v1512_v12 = vor.u32 %v1510_v17, %v1508_v56 }
  0xaf   : > { %v877_v7 = vpop.f32.mrf.mxu2 }
  0xb0   : > { %v3959_v8 = vadd.f32 %v931_v46, %v877_v7  ;;  %v1516_v29 = vsel %vm777_vm3, %v1512_v12, %v1515_v21 }
  0xb1   : > { %v933_v33 = vpop.f32.mrf.mxu3 }
  0xb2   : > { %v864_v34 = vpop.f32.mrf.mxu0 }
  0xb3   : > { %v921_v36 = vpop.f32.mrf.mxu1  ;;  %v3963_v38 = vadd.f32 %v918_v22, %v864_v34  ;;  %v1870_v22 = vor.u32 %v1868_v19, %v1866_v57  ;;  %v4025_v34 = vld [vmem:[%s3925_s30 + $0x20] sm:$0xff] }
  0xb4   : > { %v1884_v12 = vshrl.u32 %v4025_v34, 16 }
  0xb5   : > { %v1875_v32 = vsel %vm777_vm3, %v1870_v22, %v1874_v23 }
  0xb6   : > { %3309 = vmatmul.msk.bf16.vlgmr.msra.gmra.mxu3 %vm830_vm2, %v1502_v35  ;;  %3348 = vmatmul.msk.bf16.vlgmr.msra.gmra.mxu1 %vm830_vm2, %v1859_v37 }
  0xb7   : > { %v879_v43 = vpop.f32.mrf.mxu2 }
  0xb8   : > { %v3974_v44 = vadd.f32 %v933_v33, %v879_v43  ;;  %v4022_v33 = vld [vmem:[%s3921_s29 + $0x20] sm:$0xff] }
  0xb9   : > { %v936_v45 = vpop.f32.mrf.mxu3 }
  0xba   : > { %v867_v48 = vpop.f32.mrf.mxu0 }
  0xbb   : > { %v923_v49 = vpop.f32.mrf.mxu1  ;;  %v3981_v54 = vadd.f32 %v921_v36, %v867_v48  ;;  %v1876_v48 = vshrl.u32 %v3998_v5, 16 }
  0xbc   : > { %3302 = vmatmul.msk.bf16.vlgmr.msra.gmra.mxu2 %vm830_vm2, %v3514_v0  ;;  %v1616_v0 = vrot.slane %v3969_v41, 1 }
  0xbd   : > { %3316 = vmatmul.msk.bf16.vlgmr.msra.gmra.mxu0 %vm830_vm2, %v1615_v47  ;;  %v1520_v47 = vshll.u32 %v4022_v33, 16  ;;  %v1878_v52 = vor.u32 %v1876_v48, %v1874_v23 }
  0xbe   : > { %v1617_v15 = vsel %vm948_vm4, %v1614_v40, %v1616_v0 }
  0xbf   : > { %v882_v58 = vpop.f32.mrf.mxu2  ;;  %v1522_v51 = vrot.slane %v1520_v47, 1 }
  0xc0   : > { %v3985_v59 = vadd.f32 %v936_v45, %v882_v58  ;;  %v1517_v45 = vshrl.u32 %v3995_v4, 16 }
  0xc1   : > { %v938_v60 = vpop.f32.mrf.mxu3 }
  0xc2   : > { %v869_v61 = vpop.f32.mrf.mxu0  ;;  %v1519_v50 = vor.u32 %v1517_v45, %v1515_v21 }
  0xc3   : > { %v926_v63 = vpop.f32.mrf.mxu1  ;;  %v3989_v2 = vadd.f32 %v923_v49, %v869_v61  ;;  %v1880_v49 = vshll.u32 %v4025_v34, 16 }
  0xc5   : > { %v1882_v53 = vrot.slane %v1880_v49, 1 }
  0xc6   : > { %3310 = vmatmul.msk.bf16.gmra.mxu3 %vm830_vm2, %v1509_v62  ;;  %3349 = vmatmul.msk.bf16.gmra.mxu1 %vm830_vm2, %v1867_v1  ;;  %v4044_v1 = vld [vmem:[%s3921_s29 + $0x28] sm:$0xff] }
  0xc7   : > { %v884_v6 = vpop.f32.mrf.mxu2  ;;  %v1883_v62 = vsel %vm777_vm3, %v1878_v52, %v1882_v53  ;;  %v1527_v20 = vshll.u32 %v4044_v1, 16 }
  0xc8   : > { %v4000_v9 = vadd.f32 %v938_v60, %v884_v6  ;;  %v1523_v60 = vsel %vm777_vm3, %v1519_v50, %v1522_v51  ;;  %v1622_v50 = vrot.slane %v4044_v1, 1 }
  0xc9   : > { %v941_v11 = vpop.f32.mrf.mxu3  ;;  %v1529_v23 = vrot.slane %v1527_v20, 1 }
  0xca   : > { %v872_v16 = vpop.f32.mrf.mxu0 }
  0xcb   : > { %v928_v46 = vpop.f32.mrf.mxu1  ;;  %v4007_v10 = vadd.f32 %v926_v63, %v872_v16  ;;  %v1620_v63 = vrot.slane %v4022_v33, 1 }
  0xcc   : > { %3303 = vmatmul.msk.bf16.gmra.mxu2 %vm830_vm2, %v3939_v13  ;;  %v1618_v13 = vrot.slane %v3995_v4, 1 }
  0xcd   : > { %3317 = vmatmul.msk.bf16.gmra.mxu0 %vm830_vm2, %v1617_v15 }
  0xce   : > { %v1619_v39 = vsel %vm948_vm4, %v1616_v0, %v1618_v13  ;;  %v4047_v0 = vld [vmem:[%s3925_s30 + $0x28] sm:$0xff]  ;;  %v1621_v16 = vsel %vm948_vm4, %v1618_v13, %v1620_v63 }
  0xcf   : > { %v887_v24 = vpop.f32.mrf.mxu2  ;;  %v1888_v21 = vshll.u32 %v4047_v0, 16 }
  0xd0   : > { %v4012_v25 = vadd.f32 %v941_v11, %v887_v24  ;;  %v1886_v24 = vor.u32 %v1884_v12, %v1882_v53 }
  0xd1   : > { %v943_v26 = vpop.f32.mrf.mxu3 }
  0xd2   : > { %v874_v28 = vpop.f32.mrf.mxu0 }
  0xd3   : > { %v1324_v30 = vpop.f32.mrf.mxu1  ;;  %v4016_v7 = vadd.f32 %v928_v46, %v874_v28  ;;  %v1524_v46 = vshrl.u32 %v4022_v33, 16  ;;  %v1383_v28 = vld [vmem:[%s3921_s29 + $0x30] sm:$0xf] }
  0xd5   : > { %v1526_v22 = vor.u32 %v1524_v46, %v1522_v51 }
  0xd6   : > { %3311 = vmatmul.msk.bf16.gmra.mxu3 %vm830_vm2, %v1516_v29  ;;  %3350 = vmatmul.msk.bf16.gmra.mxu1 %vm830_vm2, %v1875_v32  ;;  %v1812_v32 = vld [vmem:[%s3925_s30 + $0x30] sm:$0xf] }
  0xd7   : > { %v889_v35 = vpop.f32.mrf.mxu2  ;;  %v1840_v48 = vunpack.c.l.b16 %v1812_v32  ;;  %v4112_v32 = vld [vmem:[%s4096_s12 + $0x8] sm:$0xff] }
  0xd8   : > { %v4027_v36 = vadd.f32 %v943_v26, %v889_v35  ;;  %v1890_v26 = vrot.slane %v1888_v21, 1 }
  0xd9   : > { %v1114_v37 = vpop.f32.mrf.mxu3  ;;  %v4070_v51 = vpack.c.b16 %v1840_v48, %v1840_v48 }
  0xda   : > { %v1237_v40 = vpop.f32.mrf.mxu0  ;;  %v1891_v47 = vsel %vm777_vm3, %v1886_v24, %v1890_v26 }
  0xdb   : > { %v1326_v43 = vpop.f32.mrf.mxu1 }
  0xdc   : > { %3304 = vmatmul.msk.bf16.gmra.mxu2 %vm830_vm2, %v3969_v41 }
  0xdd   : > { %3318 = vmatmul.msk.bf16.gmra.mxu0 %vm830_vm2, %v1619_v39 }
  0xdf   : > { %v992_v55 = vpop.f32.mrf.mxu2 }
  0xe0   : > { %v1022_v56 = vadd.f32 %v992_v55, %v3955_v27 }
  0xe1   : > { %v1116_v31 = vpop.f32.mrf.mxu3 }
  0xe2   : > { %v1144_v57 = vadd.f32 %v1114_v37, %v1022_v56  ;;  %v1239_v58 = vpop.f32.mrf.mxu0  ;;  %v1491_v37 = vunpack.c.l.b16 %v1383_v28  ;;  %v1531_v56 = vshrl.u32 %v4044_v1, 16  ;;  %v4104_v28 = vld [vmem:[%s4096_s12] sm:$0xff] }
  0xe3   : > { %v1329_v61 = vpop.f32.mrf.mxu1 }
  0xe4   : > { %v1267_v41 = vadd.f32 %v1237_v40, %v1144_v57 }
  0xe6   : > { %3312 = vmatmul.msk.bf16.gmra.mxu3 %vm830_vm2, %v1523_v60  ;;  %3351 = vmatmul.msk.bf16.gmra.mxu1 %vm830_vm2, %v1883_v62  ;;  %v4049_v27 = vadd.f32 %v1324_v30, %v1267_v41  ;;  %v1623_v60 = vsel %vm948_vm4, %v1620_v63, %v1622_v50  ;;  %v1892_v41 = vshrl.u32 %v4047_v0, 16 }
  0xe7   : > { %v994_v6 = vpop.f32.mrf.mxu2 }
  0xe8   : > { %v1023_v11 = vadd.f32 %v994_v6, %v3963_v38  ;;  %v1896_v6 = vshll.u32 %v4070_v51, 16  ;;  %v1894_v46 = vor.u32 %v1892_v41, %v1890_v26 }
  0xe9   : > { %v1119_v15 = vpop.f32.mrf.mxu3 }
  0xea   : > { %v1145_v17 = vadd.f32 %v1116_v31, %v1023_v11  ;;  %v1242_v18 = vpop.f32.mrf.mxu0  ;;  %v1533_v11 = vor.u32 %v1531_v56, %v1529_v23 }
  0xeb   : > { %v1331_v19 = vpop.f32.mrf.mxu1 }
  0xec   : > { %3305 = vmatmul.msk.bf16.gmra.mxu2 %vm830_vm2, %v3995_v4  ;;  %v1268_v38 = vadd.f32 %v1239_v58, %v1145_v17  ;;  %v1530_v4 = vsel %vm777_vm3, %v1526_v22, %v1529_v23  ;;  %v1898_v17 = vrot.slane %v1896_v6, 1 }
  0xed   : > { %3319 = vmatmul.msk.bf16.gmra.mxu0 %vm830_vm2, %v1621_v16  ;;  %v3414_v16 = vld [vmem:[%s5081_s1 + $0xc] sm:$0x3] }
  0xee   : > { %v4061_v29 = vadd.f32 %v1326_v43, %v1268_v38  ;;  %v1492_v43 = vpack.c.b16 %v1491_v37, %v1491_v37  ;;  %v1899_v26 = vsel %vm777_vm3, %v1894_v46, %v1898_v17 }
  0xef   : > { %v997_v30 = vpop.f32.mrf.mxu2 }
  0xf0   : > { %v1024_v13 = vadd.f32 %v997_v30, %v3981_v54  ;;  %v1535_v31 = vshll.u32 %v1492_v43, 16  ;;  %v1624_v30 = vrot.slane %v1492_v43, 1 }
  0xf1   : > { %v1121_v35 = vpop.f32.mrf.mxu3 }
  0xf2   : > { %v1146_v39 = vadd.f32 %v1119_v15, %v1024_v13  ;;  %v1244_v40 = vpop.f32.mrf.mxu0  ;;  %v1537_v63 = vrot.slane %v1535_v31, 1  ;;  %v2227_v13 = vshll.u32 %v4104_v28, 16  ;;  %v1625_v48 = vsel %vm948_vm4, %v1622_v50, %v1624_v30  ;;  %v3452_v31 = vld [vmem:[%s5081_s1 + $0x10] sm:$0x3] }
  0xf3   : > { %v1334_v45 = vpop.f32.mrf.mxu1  ;;  %v2015_v50 = vrot.slane %v3930_v3, 1 }
  0xf4   : > { %v1269_v49 = vadd.f32 %v1242_v18, %v1146_v39  ;;  %v1538_v23 = vsel %vm777_vm3, %v1533_v11, %v1537_v63  ;;  %v2229_v56 = vrot.slane %v2227_v13, 1  ;;  %v2235_v13 = vshrl.u32 %v4112_v32, 16 }
  0xf6   : > { %3313 = vmatmul.msk.bf16.gmra.mxu3 %vm830_vm2, %v1530_v4  ;;  %3352 = vmatmul.msk.bf16.gmra.mxu1 %vm830_vm2, %v1891_v47  ;;  %v4073_v54 = vadd.f32 %v1329_v61, %v1269_v49 }
  0xf7   : > { %v999_v52 = vpop.f32.mrf.mxu2 }
  0xf8   : > { %v1025_v53 = vadd.f32 %v999_v52, %v3989_v2  ;;  %v3406_v2 = vld [vmem:[%s5081_s1 + $0xa] sm:$0x3] }
  0xf9   : > { %v1124_v55 = vpop.f32.mrf.mxu3  ;;  %v2376_v15 = vsel %vm849_vm1, %v3406_v2, 0 }
  0xfa   : > { %v1147_v57 = vadd.f32 %v1121_v35, %v1025_v53  ;;  %v1247_v58 = vpop.f32.mrf.mxu0  ;;  %2385 = vmatpush.bf16.msra.mxu2 %v2376_v15 }
  0xfb   : > { %v4078_v62 = vpop.f32.mrf.mxu1 }
  0xfc   : > { %3306 = vmatmul.msk.bf16.gmra.mxu2 %vm830_vm2, %v4022_v33  ;;  %v1270_v61 = vadd.f32 %v1244_v40, %v1147_v57  ;;  %v2497_v33 = vsel %vm849_vm1, %v3414_v16, 0  ;;  %v267_v40 = vlaneseq }
  0xfd   : > { %3320 = vmatmul.msk.bf16.gmra.mxu0 %vm830_vm2, %v1623_v60  ;;  %2506 = vmatpush.bf16.msra.mxu3 %v2497_v33 }
  0xfe   : > { %v4093_v18 = vadd.f32 %v1331_v19, %v1270_v61  ;;  %v4120_v49 = vshrl.u32 %v267_v40, 7 }
  0xff   : > { %v1002_v20 = vpop.f32.mrf.mxu2 }
 0x100   : > { %v1026_v12 = vadd.f32 %v1002_v20, %v4007_v10  ;;  %v3445_v10 = vld [vmem:[%s5081_s1 + $0xe] sm:$0x3]  ;;  %v283_v57 = vand.u32 65535, %v4120_v49  ;;  %v284_v41 = vshrl.u32 %v4120_v49, 16  ;;  %v4145_v20 = vld [vmem:[%s4096_s12 + $0x10] sm:$0xff] }
 0x101   : > { %v1126_v21 = vpop.f32.mrf.mxu3  ;;  %v2619_v35 = vsel %vm849_vm1, %v3445_v10, 0  ;;  %v4152_v10 = vadd.s32 8, %v4120_v49 }
 0x102   : > { %v1148_v38 = vadd.f32 %v1124_v55, %v1026_v12  ;;  %v1249_v22 = vpop.f32.mrf.mxu0  ;;  %2628 = vmatpush.bf16.msra.mxu0 %v2619_v35  ;;  %v2225_v55 = vshrl.u32 %v4104_v28, 16  ;;  %v287_v6 = vmul.u32 43690, %v283_v57  ;;  %v286_v15 = vmul.u32 43691, %v283_v57 }
 0x103   : > { %v4100_v24 = vpop.f32.mrf.mxu1  ;;  %v289_v12 = vmul.u32 43690, %v284_v41  ;;  %v2238_v35 = vshll.u32 %v4145_v20, 16 }
 0x104   : > { %v1271_v19 = vadd.f32 %v1247_v58, %v1148_v38  ;;  %v2016_v58 = vrot.slane %v3942_v14, 1  ;;  %v2230_v2 = vor.u32 %v2229_v56, %v2225_v55  ;;  %v290_v16 = vshll.u32 %v287_v6, 16 }
 0x105   : > { %v291_v40 = vshrl.u32 %v287_v6, 16 }
 0x106   : > { %3314 = vmatmul.msk.bf16.gmra.mxu3 %vm830_vm2, %v1538_v23  ;;  %3353 = vmatmul.msk.bf16.gmra.mxu1 %vm830_vm2, %v1899_v26  ;;  %v4116_v37 = vadd.f32 %v1334_v45, %v1271_v19  ;;  %v2231_v45 = vshll.u32 %v4112_v32, 16  ;;  %v2017_v33 = vsel %vm948_vm4, %v2015_v50, %v2016_v58  ;;  %vm294_vm5 = vc.u32 %v286_v15, %v290_v16 }
 0x107   : > { %v1004_v39 = vpop.f32.mrf.mxu2  ;;  %v3664_v26 = vmov 0  }
 0x108   : > { %v1027_v4 = vadd.f32 %v1004_v39, %v4016_v7  ;;  %v2705_v7 = vsel %vm849_vm1, %v3452_v31, 0  ;;  %v2233_v61 = vrot.slane %v2231_v45, 1  ;;  %v295_v19 = vsel %vm294_vm5, 1, %v3664_v26 }
 0x109   : > { %v1129_v47 = vpop.f32.mrf.mxu3  ;;  %2714 = vmatpush.bf16.msra.mxu1 %v2705_v7  ;;  %v297_v30 = vadd.s32 %v295_v19, %v289_v12 }
 0x10a   : > { %v1149_v43 = vadd.f32 %v1126_v21, %v1027_v4  ;;  %v1252_v52 = vpop.f32.mrf.mxu0  ;;  %v2234_v23 = vsel %vm777_vm3, %v2230_v2, %v2233_v61  ;;  %v2237_v6 = vor.u32 %v2235_v13, %v2233_v61  ;;  %v2240_v2 = vrot.slane %v2238_v35, 1 }
 0x10b   : > { %v4122_v53 = vpop.f32.mrf.mxu1  ;;  %v2242_v13 = vshrl.u32 %v4145_v20, 16 }
 0x10c   : > { %3307 = vmatmul.msk.bf16.gmra.mxu2 %vm830_vm2, %v4044_v1  ;;  %v1272_v60 = vadd.f32 %v1249_v22, %v1149_v43  ;;  %v288_v1 = vmul.u32 43691, %v284_v41 }
 0x10d   : > { %3321 = vmatmul.msk.bf16.gmra.mxu0 %vm830_vm2, %v1625_v48  ;;  %v313_v48 = vshrl.u32 %v4152_v10, 16 }
 0x10e   : > { %v4138_v11 = vadd.f32 %v4078_v62, %v1272_v60  ;;  %v292_v21 = vshll.u32 %v288_v1, 16  ;;  %v293_v45 = vshrl.u32 %v288_v1, 16  ;;  %v2018_v60 = vrot.slane %v3972_v42, 1 }
 0x10f   : > { %v1007_v63 = vpop.f32.mrf.mxu2 }
 0x110   : > { %v1028_v46 = vadd.f32 %v1007_v63, %v3959_v8  ;;  %v296_v8 = vadd.s32 %v290_v16, %v286_v15  ;;  %v4169_v15 = vadd.s32 16, %v4120_v49  ;;  %v2019_v19 = vsel %vm948_vm4, %v2016_v58, %v2018_v60 }
 0x111   : > { %v1131_v17 = vpop.f32.mrf.mxu3 }
 0x112   : > { %v1150_v38 = vadd.f32 %v1129_v47, %v1028_v46  ;;  %v1254_v22 = vpop.f32.mrf.mxu0  ;;  %vm298_vm6 = vc.u32 %v296_v8, %v292_v21  ;;  %v312_v47 = vand.u32 65535, %v4152_v10  ;;  %v4175_v21 = vld [vmem:[%s4096_s12 + $0x18] sm:$0xff]  ;;  %v2241_v8 = vsel %vm777_vm3, %v2237_v6, %v2240_v2 }
 0x113   : > { %v4147_v62 = vpop.f32.mrf.mxu1  ;;  %v299_v4 = vsel %vm298_vm6, 1, %v3664_v26  ;;  %v4200_v6 = vadd.s32 24, %v4120_v49 }
 0x114   : > { %v1273_v39 = vadd.f32 %v1252_v52, %v1150_v38  ;;  %v301_v43 = vadd.s32 %v299_v4, %v297_v30  ;;  %v315_v31 = vmul.u32 43691, %v312_v47  ;;  %v316_v7 = vmul.u32 43690, %v312_v47 }
 0x115   : > { %v4164_v52 = vmul.u32 43691, %v313_v48  ;;  %v5084_v30 = vrot.slane %v3998_v5, 1 }
 0x116   : > { %3361 = vmatmul.msk.bf16.vlgmr.msrb.gmra.mxu3 %vm830_vm2, %v2017_v33  ;;  %3400 = vmatmul.msk.bf16.vlgmr.msrb.gmra.mxu1 %vm830_vm2, %v2234_v23  ;;  %v4162_v55 = vadd.f32 %v4100_v24, %v1273_v39  ;;  %v302_v41 = vadd.s32 %v301_v43, %v291_v40  ;;  %v319_v63 = vshll.u32 %v316_v7, 16  ;;  %v318_v33 = vmul.u32 43690, %v313_v48 }
 0x117   : > { %v1009_v56 = vpop.f32.mrf.mxu2  ;;  %v321_v12 = vshll.u32 %v4164_v52, 16  ;;  %v341_v23 = vand.u32 65535, %v4169_v15  ;;  %v342_v39 = vshrl.u32 %v4169_v15, 16  ;;  %v320_v4 = vshrl.u32 %v316_v7, 16 }
 0x118   : > { %v1029_v57 = vadd.f32 %v1009_v56, %v3974_v44  ;;  %v303_v46 = vadd.s32 %v302_v41, %v293_v45  ;;  %vm323_vm7 = vc.u32 %v315_v31, %v319_v63  ;;  %v325_v44 = vadd.s32 %v319_v63, %v315_v31 }
 0x119   : > { %v1134_v50 = vpop.f32.mrf.mxu3  ;;  %v324_v38 = vsel %vm323_vm7, 1, %v3664_v26  ;;  %v322_v47 = vshrl.u32 %v4164_v52, 16  ;;  %v345_v31 = vmul.u32 43690, %v341_v23  ;;  %v4197_v41 = vmul.u32 43691, %v342_v39 }
 0x11a   : > { %v1151_v24 = vadd.f32 %v1131_v17, %v1029_v57  ;;  %v1257_v16 = vpop.f32.mrf.mxu0  ;;  %v304_v61 = vshrl.u32 %v303_v46, 4  ;;  %v326_v35 = vadd.s32 %v324_v38, %v318_v33  ;;  %vm327_vm8 = vc.u32 %v325_v44, %v321_v12 }
 0x11b   : > { %v4171_v1 = vpop.f32.mrf.mxu1  ;;  %v328_v48 = vsel %vm327_vm8, 1, %v3664_v26  ;;  %v344_v57 = vmul.u32 43691, %v341_v23  ;;  %v4215_v46 = vsel %vm948_vm4, %v2018_v60, %v5084_v30  ;;  %v347_v12 = vmul.u32 43690, %v342_v39 }
 0x11c   : > { %5087 = vst [vmem:[#allocation5_spill] sm:$0xff] %v4171_v1  ;;  %3354 = vmatmul.msk.bf16.vlgmr.msrb.gmra.mxu2 %vm830_vm2, %v3930_v3  ;;  %v1274_v17 = vadd.f32 %v1254_v22, %v1151_v24  ;;  %v305_v3 = vmul.u32 24, %v304_v61  ;;  %v2245_v22 = vshll.u32 %v4175_v21, 16  ;;  %v330_v45 = vadd.s32 %v328_v48, %v326_v35 }
 0x11d   : > { %3393 = vmatmul.msk.bf16.vlgmr.msrb.gmra.mxu0 %vm830_vm2, %v4104_v28  ;;  %v350_v44 = vshll.u32 %v4197_v41, 16  ;;  %v370_v61 = vand.u32 65535, %v4200_v6  ;;  %v2244_v23 = vor.u32 %v2242_v13, %v2240_v2  ;;  %v371_v39 = vshrl.u32 %v4200_v6, 16 }
 0x11e   : > { %v4195_v56 = vsub.s32 %v4120_v49, %v305_v3  ;;  %v4203_v7 = vadd.f32 %v4122_v53, %v1274_v17  ;;  %v331_v53 = vadd.s32 %v330_v45, %v320_v4  ;;  %v2247_v60 = vrot.slane %v2245_v22, 1  ;;  %v4236_v45 = vld [vmem:[%s4096_s12 + $0x20] sm:$0xff] }
 0x11f   : > { %v1012_v40 = vpop.f32.mrf.mxu2  ;;  %v374_v22 = vmul.u32 43690, %v370_v61 }
 0x120   : > { %v1030_v58 = vadd.f32 %v1012_v40, %v3985_v59  ;;  %vm628_vm9 = vcmp.ne.s32.totalorder %v4195_v56, 0  ;;  %vm640_vm10 = vcmp.lt.s32.totalorder %v4195_v56, 0  ;;  %v664_v59 = vadd.s32 24, %v4195_v56 }
 0x121   : > { %v1136_v43 = vpop.f32.mrf.mxu3  ;;  %vm4217_vm11 = vmand %vm640_vm10, %vm628_vm9  ;;  %v332_v17 = vadd.s32 %v331_v53, %v322_v47  ;;  %v377_v33 = vshll.u32 %v374_v22, 16  ;;  %v4247_v53 = vadd.s32 32, %v4120_v49 }
 0x122   : > { %v1152_v52 = vadd.f32 %v1134_v50, %v1030_v58  ;;  %v4205_v63 = vpop.f32.mrf.mxu0  ;;  %v348_v50 = vshll.u32 %v345_v31, 16  ;;  %v676_v3 = vsel %vm4217_vm11, %v664_v59, %v4195_v56  ;;  %v351_v58 = vshrl.u32 %v4197_v41, 16 }
 0x123   : > { %v4207_v24 = vpop.f32.mrf.mxu1  ;;  %v333_v4 = vshrl.u32 %v332_v17, 4  ;;  %v2249_v41 = vshrl.u32 %v4175_v21, 16  ;;  %vm4265_vm5 = vcmp.lt.s32.totalorder %v676_v3, 16  ;;  %v400_v30 = vshrl.u32 %v4247_v53, 16 }
 0x124   : > { %5088 = vst [vmem:[#allocation6_spill] sm:$0xff] %v4207_v24  ;;  %v4223_v38 = vadd.f32 %v1257_v16, %v1152_v52  ;;  %vm352_vm12 = vc.u32 %v344_v57, %v348_v50  ;;  %v354_v35 = vadd.s32 %v348_v50, %v344_v57  ;;  %v349_v16 = vshrl.u32 %v345_v31, 16 }
 0x125   : > { %v353_v48 = vsel %vm352_vm12, 1, %v3664_v26  ;;  %v334_v47 = vmul.u32 24, %v333_v4  ;;  %v4238_v57 = vmul.u32 43691, %v371_v39 }
 0x126   : > { %3362 = vmatmul.msk.bf16.gmra.mxu3 %vm830_vm2, %v2019_v19  ;;  %3401 = vmatmul.msk.bf16.gmra.mxu1 %vm830_vm2, %v2241_v8  ;;  %v373_v19 = vmul.u32 43691, %v370_v61  ;;  %v355_v13 = vadd.s32 %v353_v48, %v347_v12  ;;  %vm356_vm13 = vc.u32 %v354_v35, %v350_v44  ;;  %v376_v12 = vmul.u32 43690, %v371_v39 }
 0x127   : > { %v1014_v40 = vpop.f32.mrf.mxu2  ;;  %v357_v56 = vsel %vm356_vm13, 1, %v3664_v26  ;;  %v335_v50 = vsub.s32 %v4152_v10, %v334_v47  ;;  %v379_v44 = vshll.u32 %v4238_v57, 16  ;;  %v2252_v61 = vshll.u32 %v4236_v45, 16 }
 0x128   : > { %v1031_v8 = vadd.f32 %v1014_v40, %v4000_v9  ;;  %v359_v9 = vadd.s32 %v357_v56, %v355_v13  ;;  %vm381_vm14 = vc.u32 %v373_v19, %v377_v33  ;;  %v383_v17 = vadd.s32 %v377_v33, %v373_v19 }
 0x129   : > { %v1139_v2 = vpop.f32.mrf.mxu3  ;;  %v2248_v35 = vsel %vm777_vm3, %v2244_v23, %v2247_v60  ;;  %vm629_vm15 = vcmp.ne.s32.totalorder %v335_v50, 0  ;;  %vm641_vm0 = vcmp.lt.s32.totalorder %v335_v50, 0  ;;  %v665_v10 = vadd.s32 24, %v335_v50 }
 0x12a   : > { %v4240_v52 = vadd.f32 %v1136_v43, %v1031_v8  ;;  %v4242_v31 = vpop.f32.mrf.mxu0  ;;  %v360_v43 = vadd.s32 %v359_v9, %v349_v16  ;;  %vm4259_vm1 = vmand %vm641_vm0, %vm629_vm15  ;;  %v382_v4 = vsel %vm381_vm14, 1, %v3664_v26  ;;  %v399_v16 = vand.u32 65535, %v4247_v53 }
 0x12b   : > { %v4244_v59 = vpop.f32.mrf.mxu1  ;;  %v2251_v23 = vor.u32 %v2249_v41, %v2247_v60  ;;  %v384_v8 = vadd.s32 %v382_v4, %v376_v12  ;;  %vm385_vm6 = vc.u32 %v383_v17, %v379_v44  ;;  %v4270_v9 = vrot.slane %v2252_v61, 1 }
 0x12c   : > { %3355 = vmatmul.msk.bf16.gmra.mxu2 %vm830_vm2, %v3942_v14  ;;  %v361_v14 = vadd.s32 %v360_v43, %v351_v58  ;;  %v378_v33 = vshrl.u32 %v374_v22, 16  ;;  %v677_v58 = vsel %vm4259_vm1, %v665_v10, %v335_v50  ;;  %v380_v43 = vshrl.u32 %v4238_v57, 16 }
 0x12d   : > { %3394 = vmatmul.msk.bf16.gmra.mxu0 %vm830_vm2, %v4112_v32  ;;  %v386_v3 = vsel %vm385_vm6, 1, %v3664_v26  ;;  %v403_v44 = vmul.u32 43690, %v399_v16  ;;  %v5096_v22 = vrot.slane %v4025_v34, 1  ;;  %v5097_v61 = vrot.slane %v3998_v5, 1 }
 0x12e   : > { %v362_v56 = vshrl.u32 %v361_v14, 4  ;;  %v388_v12 = vadd.s32 %v386_v3, %v384_v8  ;;  %v402_v57 = vmul.u32 43691, %v399_v16  ;;  %v404_v17 = vmul.u32 43691, %v400_v30 }
 0x12f   : > { %v1017_v48 = vpop.f32.mrf.mxu2  ;;  %v4288_v50 = vsel %vm948_vm4, %v5097_v61, %v5096_v22  ;;  %v4291_v10 = vadd.s32 40, %v4120_v49  ;;  %v406_v14 = vshll.u32 %v403_v44, 16  ;;  %v4296_v4 = vadd.f32 %v4147_v62, %v4223_v38 }
 0x130   : > { %v1032_v13 = vadd.f32 %v1017_v48, %v4012_v25  ;;  %v363_v25 = vmul.u32 24, %v362_v56  ;;  %v389_v40 = vadd.s32 %v388_v12, %v378_v33  ;;  %v5085_v48 = vmov 0.0  }
 0x131   : > { %v1141_v47 = vpop.f32.mrf.mxu3  ;;  %5098 = vst [vmem:[#allocation8_spill] sm:$0xff] %v4296_v4  ;;  %v4303_v16 = vsel %vm4265_vm5, 1.0, %v5085_v48  ;;  %vm4306_vm7 = vcmp.lt.s32.totalorder %v677_v58, 16  ;;  %v4312_v62 = vsel %vm777_vm3, %v2251_v23, %v4270_v9  ;;  %vm410_vm10 = vc.u32 %v402_v57, %v406_v14 }
 0x132   : > { %v4277_v39 = vadd.f32 %v1139_v2, %v1032_v13  ;;  %v4279_v60 = vpop.f32.mrf.mxu0  ;;  %v364_v2 = vsub.s32 %v4169_v15, %v363_v25  ;;  %v405_v15 = vmul.u32 43690, %v400_v30  ;;  %v408_v13 = vshll.u32 %v404_v17, 16 }
 0x133   : > { %v4281_v41 = vpop.f32.mrf.mxu1  ;;  %v412_v19 = vadd.s32 %v406_v14, %v402_v57  ;;  %v428_v33 = vand.u32 65535, %v4291_v10  ;;  %v411_v25 = vsel %vm410_vm10, 1, %v3664_v26  ;;  %v429_v23 = vshrl.u32 %v4291_v10, 16 }
 0x134   : > { %5095 = vst [vmem:[#allocation7_spill] sm:$0xff] %v4281_v41  ;;  %vm630_vm8 = vcmp.ne.s32.totalorder %v364_v2, 0  ;;  %vm642_vm9 = vcmp.lt.s32.totalorder %v364_v2, 0  ;;  %v666_v56 = vadd.s32 24, %v364_v2  ;;  %v407_v12 = vshrl.u32 %v403_v44, 16 }
 0x135   : > { %vm4316_vm11 = vmand %vm642_vm9, %vm630_vm8  ;;  %v413_v22 = vadd.s32 %v411_v25, %v405_v15  ;;  %vm414_vm12 = vc.u32 %v412_v19, %v408_v13  ;;  %v4336_v15 = vld [vmem:[%s4096_s12 + $0x28] sm:$0xff]  ;;  %v2256_v8 = vshrl.u32 %v4236_v45, 16  ;;  %v431_v19 = vmul.u32 43691, %v428_v33 }
 0x136   : > { %3363 = vmatmul.msk.bf16.gmra.mxu3 %vm830_vm2, %v4215_v46  ;;  %3402 = vmatmul.msk.bf16.gmra.mxu1 %vm830_vm2, %v2248_v35  ;;  %v390_v46 = vadd.s32 %v389_v40, %v380_v43  ;;  %v4330_v40 = vsel %vm4306_vm7, 1.0, %v5085_v48  ;;  %v409_v43 = vshrl.u32 %v404_v17, 16  ;;  %v5104_v3 = vrot.slane %v4047_v0, 1 }
 0x137   : > { %v1019_v38 = vpop.f32.mrf.mxu2  ;;  %v5105_v17 = vrot.slane %v4025_v34, 1 }
 0x138   : > { %v1033_v35 = vadd.f32 %v1019_v38, %v4027_v36  ;;  %v391_v30 = vshrl.u32 %v390_v46, 4  ;;  %v415_v46 = vsel %vm414_vm12, 1, %v3664_v26  ;;  %v678_v38 = vsel %vm4316_vm11, %v666_v56, %v364_v2 }
 0x139   : > { %v1569_v58 = vpop.f32.mrf.mxu3  ;;  %v417_v44 = vadd.s32 %v415_v46, %v413_v22  ;;  %v4349_v2 = vsel %vm948_vm4, %v5105_v17, %v5104_v3  ;;  %vm4354_vm15 = vcmp.lt.s32.totalorder %v678_v38, 16  ;;  %v2258_v17 = vor.u32 %v2256_v8, %v4270_v9 }
 0x13a   : > { %v4323_v61 = vadd.f32 %v1141_v47, %v1033_v35  ;;  %v1656_v57 = vpop.f32.mrf.mxu0  ;;  %v392_v14 = vmul.u32 24, %v391_v30  ;;  %v432_v47 = vmul.u32 43690, %v428_v33  ;;  %v433_v35 = vmul.u32 43691, %v429_v23 }
 0x13b   : > { %v4325_v36 = vpop.f32.mrf.mxu1  ;;  %v418_v56 = vadd.s32 %v417_v44, %v407_v12  ;;  %v434_v33 = vmul.u32 43690, %v429_v23  ;;  %v2259_v12 = vshll.u32 %v4336_v15, 16 }
 0x13c   : > { %5103 = vst [vmem:[#allocation9_spill] sm:$0xff] %v4325_v36  ;;  %3356 = vmatmul.msk.bf16.gmra.mxu2 %vm830_vm2, %v3972_v42  ;;  %v393_v13 = vsub.s32 %v4200_v6, %v392_v14  ;;  %v435_v30 = vshll.u32 %v432_v47, 16  ;;  %v4352_v42 = vadd.s32 48, %v4120_v49  ;;  %v437_v46 = vshll.u32 %v433_v35, 16 }
 0x13d   : > { %3395 = vmatmul.msk.bf16.gmra.mxu0 %vm830_vm2, %v4145_v20  ;;  %v419_v34 = vadd.s32 %v418_v56, %v409_v43  ;;  %v436_v38 = vshrl.u32 %v432_v47, 16  ;;  %v4371_v9 = vrot.slane %v2259_v12, 1 }
 0x13e   : > { %vm631_vm13 = vcmp.ne.s32.totalorder %v393_v13, 0  ;;  %vm643_vm14 = vcmp.lt.s32.totalorder %v393_v13, 0  ;;  %v667_v6 = vadd.s32 24, %v393_v13  ;;  %vm439_vm1 = vc.u32 %v431_v19, %v435_v30 }
 0x13f   : > { %v1446_v25 = vpop.f32.mrf.mxu2  ;;  %vm4358_vm0 = vmand %vm643_vm14, %vm631_vm13  ;;  %v441_v23 = vadd.s32 %v435_v30, %v431_v19  ;;  %v420_v48 = vshrl.u32 %v419_v34, 4  ;;  %v440_v36 = vsel %vm439_vm1, 1, %v3664_v26  ;;  %v457_v41 = vand.u32 65535, %v4352_v42 }
 0x140   : > { %v1476_v44 = vadd.f32 %v1446_v25, %v4049_v27  ;;  %v679_v43 = vsel %vm4358_vm0, %v667_v6, %v393_v13  ;;  %v442_v56 = vadd.s32 %v440_v36, %v434_v33  ;;  %v458_v47 = vshrl.u32 %v4352_v42, 16 }
 0x141   : > { %v1571_v3 = vpop.f32.mrf.mxu3  ;;  %vm443_vm5 = vc.u32 %v441_v23, %v437_v46  ;;  %v421_v27 = vmul.u32 24, %v420_v48  ;;  %v438_v30 = vshrl.u32 %v433_v35, 16  ;;  %vm4381_vm6 = vcmp.lt.s32.totalorder %v679_v43, 16 }
 0x142   : > { %v1599_v24 = vadd.f32 %v1569_v58, %v1476_v44  ;;  %v1658_v1 = vpop.f32.mrf.mxu0  ;;  %v444_v8 = vsel %vm443_vm5, 1, %v3664_v26  ;;  %v4375_v58 = vmul.u32 43690, %v457_v41  ;;  %v460_v13 = vmul.u32 43691, %v457_v41  ;;  %v2117_v44 = vld [vmem:[%s4096_s12 + $0x30] sm:$0xf] }
 0x143   : > { %v4367_v4 = vpop.f32.mrf.mxu1  ;;  %v446_v25 = vadd.s32 %v444_v8, %v442_v56  ;;  %v4386_v48 = vsub.s32 %v4247_v53, %v421_v27  ;;  %v4388_v6 = vmul.u32 43691, %v458_v47  ;;  %v4406_v41 = vsel %vm777_vm3, %v2258_v17, %v4371_v9 }
 0x144   : > { %v1686_v19 = vadd.f32 %v1656_v57, %v1599_v24  ;;  %v464_v53 = vshll.u32 %v4375_v58, 16  ;;  %v463_v46 = vmul.u32 43690, %v458_v47 }
 0x145   : > { %v447_v57 = vadd.s32 %v446_v25, %v436_v38  ;;  %vm632_vm7 = vcmp.ne.s32.totalorder %v4386_v48, 0  ;;  %vm644_vm8 = vcmp.lt.s32.totalorder %v4386_v48, 0  ;;  %v466_v33 = vshll.u32 %v4388_v6, 16 }
 0x146   : > { %3364 = vmatmul.msk.bf16.gmra.mxu3 %vm830_vm2, %v4288_v50  ;;  %3403 = vmatmul.msk.bf16.gmra.mxu1 %vm830_vm2, %v4312_v62  ;;  %v1698_v24 = vmul.f32 %v4303_v16, %v1686_v19  ;;  %1783 = vst.msk [vmem:[%s4392_s7] sm:$0xff] %vm830_vm2, %v1686_v19  ;;  %v5112_v50 = vmov 0.0   ;;  %v668_v23 = vadd.s32 24, %v4386_v48  ;;  %v2026_v38 = vrot.slane %v4070_v51, 1  ;;  %vm4425_vm10 = vmand %vm644_vm8, %vm632_vm7 }
 0x147   : > { %v4399_v62 = vsel %vm4354_vm15, 1.0, %v5112_v50  ;;  %v1448_v35 = vpop.f32.mrf.mxu2  ;;  %v4413_v22 = vsel %vm4381_vm6, 1.0, %v5112_v50  ;;  %v448_v12 = vadd.s32 %v447_v57, %v438_v30  ;;  %vm468_vm9 = vc.u32 %v460_v13, %v464_v53 }
 0x148   : > { %v1477_v14 = vadd.f32 %v1448_v35, %v4061_v29  ;;  %v470_v17 = vadd.s32 %v464_v53, %v460_v13  ;;  %v1710_v43 = vsel %vm830_vm2, %v1698_v24, 0.0  ;;  %v465_v30 = vshrl.u32 %v4375_v58, 16 }
 0x149   : > { %v1574_v34 = vpop.f32.mrf.mxu3  ;;  %v449_v47 = vshrl.u32 %v448_v12, 4  ;;  %v1740_v25 = vmul.f32 %v1698_v24, %v1686_v19  ;;  %v469_v36 = vsel %vm468_vm9, 1, %v3664_v26  ;;  %v680_v19 = vsel %vm4425_vm10, %v668_v23, %v4386_v48 }
 0x14a   : > { %v1600_v56 = vadd.f32 %v1571_v3, %v1477_v14  ;;  %v1661_v29 = vpop.f32.mrf.mxu0  ;;  %vm472_vm11 = vc.u32 %v470_v17, %v466_v33  ;;  %v2223_v3 = vunpack.c.l.b16 %v2117_v44  ;;  %v471_v53 = vadd.s32 %v469_v36, %v463_v46 }
 0x14b   : > { %v4419_v27 = vpop.f32.mrf.mxu1  ;;  %v450_v57 = vmul.u32 24, %v449_v47  ;;  %v473_v35 = vsel %vm472_vm11, 1, %v3664_v26  ;;  %v467_v58 = vshrl.u32 %v4388_v6, 16  ;;  %v4454_v48 = vadd.f32 %v4205_v63, %v4240_v52 }
 0x14c   : > { %v1687_v13 = vadd.f32 %v1658_v1, %v1600_v56  ;;  %3357 = vmatmul.msk.bf16.gmra.mxu2 %vm830_vm2, %v3998_v5  ;;  %v4441_v24 = vpack.c.b16 %v2223_v3, %v2223_v3  ;;  %v4446_v1 = vadd.s32 56, %v4120_v49  ;;  %v475_v33 = vadd.s32 %v473_v35, %v471_v53 }
 0x14d   : > { %3396 = vmatmul.msk.bf16.gmra.mxu0 %vm830_vm2, %v4175_v21  ;;  %v451_v21 = vsub.s32 %v4291_v10, %v450_v57  ;;  %v1752_v6 = vsel %vm830_vm2, %v1740_v25, 0.0  ;;  %v2263_v12 = vshrl.u32 %v4336_v15, 16  ;;  %vm4476_vm15 = vcmp.lt.s32.totalorder %v680_v19, 16 }
 0x14e   : > { %v1699_v5 = vmul.f32 %v4330_v40, %v1687_v13  ;;  %1784 = vst.msk [vmem:[%s4392_s7 + $0x8] sm:$0xff] %vm830_vm2, %v1687_v13  ;;  %v486_v46 = vand.u32 65535, %v4446_v1  ;;  %v487_v44 = vshrl.u32 %v4446_v1, 16  ;;  %v476_v8 = vadd.s32 %v475_v33, %v465_v30 }
 0x14f   : > { %v1451_v14 = vpop.f32.mrf.mxu2  ;;  %vm633_vm12 = vcmp.ne.s32.totalorder %v451_v21, 0  ;;  %vm645_vm13 = vcmp.lt.s32.totalorder %v451_v21, 0  ;;  %v669_v52 = vadd.s32 24, %v451_v21 }
 0x150   : > { %v1711_v23 = vsel %vm830_vm2, %v1699_v5, 0.0  ;;  %v1741_v17 = vmul.f32 %v1699_v5, %v1687_v13  ;;  %v1478_v56 = vadd.f32 %v1451_v14, %v4073_v54  ;;  %vm4466_vm14 = vmand %vm645_vm13, %vm633_vm12  ;;  %v2267_v54 = vshll.u32 %v4441_v24, 16 }
 0x151   : > { %v1576_v10 = vpop.f32.mrf.mxu3  ;;  %v1712_v63 = vadd.f32 %v1711_v23, %v1710_v43  ;;  %v489_v13 = vmul.u32 43691, %v486_v46  ;;  %v681_v43 = vsel %vm4466_vm14, %v669_v52, %v451_v21  ;;  %v477_v35 = vadd.s32 %v476_v8, %v467_v58 }
 0x152   : > { %v1753_v47 = vsel %vm830_vm2, %v1741_v17, 0.0  ;;  %v1601_v25 = vadd.f32 %v1574_v34, %v1478_v56  ;;  %v1663_v36 = vpop.f32.mrf.mxu0  ;;  %v490_v34 = vmul.u32 43690, %v486_v46  ;;  %v4480_v33 = vmul.u32 43691, %v487_v44  ;;  %v4498_v17 = vld [vmem:[%s4474_s22] sm:$0xff] }
 0x153   : > { %v4464_v3 = vpop.f32.mrf.mxu1  ;;  %v1754_v53 = vadd.f32 %v1753_v47, %v1752_v6  ;;  %v4483_v14 = vadd.s32 64, %v4120_v49  ;;  %v478_v58 = vshrl.u32 %v477_v35, 4  ;;  %v2265_v21 = vor.u32 %v2263_v12, %v4371_v9 }
 0x154   : > { %v1688_v30 = vadd.f32 %v1661_v29, %v1601_v25  ;;  %v492_v6 = vmul.u32 43690, %v487_v44  ;;  %v493_v29 = vshll.u32 %v490_v34, 16  ;;  %vm4493_vm0 = vcmp.lt.s32.totalorder %v681_v43, 16 }
 0x155   : > { %v2269_v23 = vrot.slane %v2267_v54, 1  ;;  %v494_v52 = vshrl.u32 %v490_v34, 16  ;;  %v2344_v5 = vrot.slane %v4104_v28, 1 }
 0x156   : > { %3365 = vmatmul.msk.bf16.gmra.mxu3 %vm830_vm2, %v4349_v2  ;;  %3404 = vmatmul.msk.bf16.gmra.mxu1 %vm830_vm2, %v4406_v41  ;;  %v1700_v19 = vmul.f32 %v4399_v62, %v1688_v30  ;;  %1785 = vst.msk [vmem:[%s4392_s7 + $0x10] sm:$0xff] %vm830_vm2, %v1688_v30  ;;  %v495_v2 = vshll.u32 %v4480_v33, 16  ;;  %v479_v41 = vmul.u32 24, %v478_v58  ;;  %vm497_vm1 = vc.u32 %v489_v13, %v493_v29 }
 0x157   : > { %v1453_v56 = vpop.f32.mrf.mxu2  ;;  %v499_v9 = vadd.s32 %v493_v29, %v489_v13  ;;  %v498_v25 = vsel %vm497_vm1, 1, %v3664_v26  ;;  %v2270_v51 = vsel %vm777_vm3, %v2265_v21, %v2269_v23  ;;  %v516_v21 = vshrl.u32 %v4483_v14, 16 }
 0x158   : > { %v1713_v12 = vsel %vm830_vm2, %v1700_v19, 0.0  ;;  %v1742_v44 = vmul.f32 %v1700_v19, %v1688_v30  ;;  %v1479_v8 = vadd.f32 %v1453_v56, %v4093_v18  ;;  %v480_v54 = vsub.s32 %v4352_v42, %v479_v41  ;;  %v4511_v19 = vld [vmem:[%s4474_s22 + $0x8] sm:$0xff] }
 0x159   : > { %v1579_v47 = vpop.f32.mrf.mxu3  ;;  %v1714_v57 = vadd.f32 %v1713_v12, %v1712_v63  ;;  %v500_v43 = vadd.s32 %v498_v25, %v492_v6  ;;  %vm501_vm5 = vc.u32 %v499_v9, %v495_v2  ;;  %v2556_v18 = vshll.u32 %v4498_v17, 16  ;;  %v3600_v6 = vld [vmem:[%s3925_s30 + $0x20] sm:$0xff] }
 0x15a   : > { %v1755_v35 = vsel %vm830_vm2, %v1742_v44, 0.0  ;;  %v1602_v34 = vadd.f32 %v1576_v10, %v1479_v8  ;;  %v1666_v58 = vpop.f32.mrf.mxu0  ;;  %v502_v30 = vsel %vm501_vm5, 1, %v3664_v26  ;;  %vm634_vm6 = vcmp.ne.s32.totalorder %v480_v54, 0 }
 0x15b   : > { %v4506_v13 = vpop.f32.mrf.mxu1  ;;  %v1756_v29 = vadd.f32 %v1755_v35, %v1754_v53  ;;  %vm646_vm7 = vcmp.lt.s32.totalorder %v480_v54, 0  ;;  %v670_v63 = vadd.s32 24, %v480_v54  ;;  %v5121_v10 = vrot.slane %v4047_v0, 1 }
 0x15c   : > { %v1689_v42 = vadd.f32 %v1663_v36, %v1602_v34  ;;  %3358 = vmatmul.msk.bf16.gmra.mxu2 %vm830_vm2, %v3600_v6  ;;  %vm4520_vm8 = vmand %vm646_vm7, %vm634_vm6  ;;  %v496_v53 = vshrl.u32 %v4480_v33, 16  ;;  %v504_v41 = vadd.s32 %v502_v30, %v500_v43  ;;  %v4530_v36 = vsel %vm4476_vm15, 1.0, %v5112_v50 }
 0x15d   : > { %v2027_v2 = vsel %vm948_vm4, %v5121_v10, %v2026_v38  ;;  %3397 = vmatmul.msk.bf16.gmra.mxu0 %vm830_vm2, %v4236_v45  ;;  %v4535_v0 = vsel %vm4493_vm0, 1.0, %v5112_v50  ;;  %v515_v38 = vand.u32 65535, %v4483_v14  ;;  %v682_v45 = vsel %vm4520_vm8, %v670_v63, %v480_v54 }
 0x15e   : > { %v1701_v33 = vmul.f32 %v4413_v22, %v1689_v42  ;;  %1786 = vst.msk [vmem:[%s4392_s7 + $0x18] sm:$0xff] %vm830_vm2, %v1689_v42  ;;  %v505_v9 = vadd.s32 %v504_v41, %v494_v52  ;;  %v2554_v44 = vshrl.u32 %v4498_v17, 16  ;;  %v2558_v46 = vrot.slane %v2556_v18, 1 }
 0x15f   : > { %v1456_v12 = vpop.f32.mrf.mxu2  ;;  %v2560_v8 = vshll.u32 %v4511_v19, 16  ;;  %v2345_v52 = vrot.slane %v4112_v32, 1  ;;  %v518_v54 = vmul.u32 43691, %v515_v38  ;;  %v519_v63 = vmul.u32 43690, %v515_v38 }
 0x160   : > { %v1715_v23 = vsel %vm830_vm2, %v1701_v33, 0.0  ;;  %v1743_v25 = vmul.f32 %v1701_v33, %v1689_v42  ;;  %v1480_v43 = vadd.f32 %v1456_v12, %v4116_v37  ;;  %v506_v34 = vadd.s32 %v505_v9, %v496_v53 }
 0x161   : > { %v1581_v35 = vpop.f32.mrf.mxu3  ;;  %v1716_v30 = vadd.f32 %v1715_v23, %v1714_v57  ;;  %vm4554_vm9 = vcmp.lt.s32.totalorder %v682_v45, 16  ;;  %v520_v33 = vmul.u32 43691, %v516_v21  ;;  %v2559_v53 = vor.u32 %v2558_v46, %v2554_v44 }
 0x162   : > { %v1757_v6 = vsel %vm830_vm2, %v1743_v25, 0.0  ;;  %v1603_v10 = vadd.f32 %v1579_v47, %v1480_v43  ;;  %v1668_v18 = vpop.f32.mrf.mxu0  ;;  %v507_v42 = vshrl.u32 %v506_v34, 4  ;;  %v521_v57 = vmul.u32 43690, %v516_v21 }
 0x163   : > { %v4552_v56 = vpop.f32.mrf.mxu1  ;;  %v1758_v37 = vadd.f32 %v1757_v6, %v1756_v29  ;;  %v522_v9 = vshll.u32 %v519_v63, 16  ;;  %v4558_v38 = vrot.slane %v2560_v8, 1  ;;  %v524_v25 = vshll.u32 %v520_v33, 16 }
 0x164   : > { %v1690_v12 = vadd.f32 %v1666_v58, %v1603_v10  ;;  %v508_v23 = vmul.u32 24, %v507_v42  ;;  %v523_v47 = vshrl.u32 %v519_v63, 16  ;;  %v4563_v43 = vadd.s32 72, %v4120_v49 }
 0x165   : > { %vm526_vm10 = vc.u32 %v518_v54, %v522_v9  ;;  %v528_v45 = vadd.s32 %v522_v9, %v518_v54  ;;  %v4572_v46 = vadd.f32 %v4242_v31, %v4277_v39 }
 0x166   : > { %3366 = vmatmul.msk.bf16.gmra.mxu3 %vm830_vm2, %v2027_v2  ;;  %3405 = vmatmul.msk.bf16.gmra.mxu1 %vm830_vm2, %v2270_v51  ;;  %v1702_v29 = vmul.f32 %v4530_v36, %v1690_v12  ;;  %1787 = vst.msk [vmem:[%s4392_s7 + $0x20] sm:$0xff] %vm830_vm2, %v1690_v12  ;;  %v509_v58 = vsub.s32 %v4446_v1, %v508_v23  ;;  %v527_v44 = vsel %vm526_vm10, 1, %v3664_v26  ;;  %v544_v8 = vand.u32 65535, %v4563_v43 }
 0x167   : > { %v1458_v2 = vpop.f32.mrf.mxu2  ;;  %v529_v51 = vadd.s32 %v527_v44, %v521_v57  ;;  %vm530_vm11 = vc.u32 %v528_v45, %v524_v25  ;;  %v545_v21 = vshrl.u32 %v4563_v43, 16  ;;  %v2673_v45 = vrot.slane %v4498_v17, 1 }
 0x168   : > { %v1717_v34 = vsel %vm830_vm2, %v1702_v29, 0.0  ;;  %v1744_v54 = vmul.f32 %v1702_v29, %v1690_v12  ;;  %v1481_v63 = vadd.f32 %v1458_v2, %v4138_v11  ;;  %vm635_vm12 = vcmp.ne.s32.totalorder %v509_v58, 0 }
 0x169   : > { %v1584_v6 = vpop.f32.mrf.mxu3  ;;  %v1718_v1 = vadd.f32 %v1717_v34, %v1716_v30  ;;  %vm647_vm13 = vcmp.lt.s32.totalorder %v509_v58, 0  ;;  %v671_v10 = vadd.s32 24, %v509_v58  ;;  %v531_v31 = vsel %vm530_vm11, 1, %v3664_v26 }
 0x16a   : > { %v1759_v39 = vsel %vm830_vm2, %v1744_v54, 0.0  ;;  %v1604_v42 = vadd.f32 %v1581_v35, %v1481_v63  ;;  %v1671_v57 = vpop.f32.mrf.mxu0  ;;  %vm4582_vm14 = vmand %vm647_vm13, %vm635_vm12  ;;  %v525_v12 = vshrl.u32 %v520_v33, 16  ;;  %v533_v11 = vadd.s32 %v531_v31, %v529_v51  ;;  %v3601_v35 = vld [vmem:[%s3925_s30 + $0x28] sm:$0xff] }
 0x16b   : > { %v4580_v9 = vpop.f32.mrf.mxu1  ;;  %v1760_v25 = vadd.f32 %v1759_v39, %v1758_v37  ;;  %v683_v30 = vsel %vm4582_vm14, %v671_v10, %v509_v58  ;;  %v2674_v29 = vrot.slane %v4511_v19, 1  ;;  %v4597_v33 = vsel %vm948_vm4, %v2344_v5, %v2345_v52 }
 0x16c   : > { %v1691_v44 = vadd.f32 %v1668_v18, %v1604_v42  ;;  %3359 = vmatmul.msk.bf16.gmra.mxu2 %vm830_vm2, %v3601_v35  ;;  %v534_v37 = vadd.s32 %v533_v11, %v523_v47  ;;  %v548_v2 = vmul.u32 43690, %v544_v8  ;;  %v4604_v58 = vsel %vm4554_vm9, 1.0, %v5112_v50 }
 0x16d   : > { %3398 = vmatmul.msk.bf16.gmra.mxu0 %vm830_vm2, %v4336_v15  ;;  %v4608_v18 = vsel %vm777_vm3, %v2559_v53, %v4558_v38  ;;  %v547_v51 = vmul.u32 43691, %v544_v8  ;;  %v549_v34 = vmul.u32 43691, %v545_v21  ;;  %vm4613_vm15 = vcmp.lt.s32.totalorder %v683_v30, 16 }
 0x16e   : > { %v1703_v28 = vmul.f32 %v4535_v0, %v1691_v44  ;;  %1788 = vst.msk [vmem:[%s4392_s7 + $0x28] sm:$0xff] %vm830_vm2, %v1691_v44  ;;  %v535_v15 = vadd.s32 %v534_v37, %v525_v12  ;;  %v551_v47 = vshll.u32 %v548_v2, 16  ;;  %v2675_v41 = vsel %vm948_vm4, %v2673_v45, %v2674_v29 }
 0x16f   : > { %v1461_v54 = vpop.f32.mrf.mxu2  ;;  %v550_v63 = vmul.u32 43690, %v545_v21  ;;  %v553_v53 = vshll.u32 %v549_v34, 16  ;;  %v1278_v8 = vadd.f32 %v4279_v60, %v4323_v61 }
 0x170   : > { %v1719_v10 = vsel %vm830_vm2, %v1703_v28, 0.0  ;;  %v1745_v31 = vmul.f32 %v1703_v28, %v1691_v44  ;;  %v1482_v39 = vadd.f32 %v1461_v54, %v4162_v55  ;;  %v536_v23 = vshrl.u32 %v535_v15, 4 }
 0x171   : > { %v1586_v42 = vpop.f32.mrf.mxu3  ;;  %v1720_v12 = vadd.f32 %v1719_v10, %v1718_v1  ;;  %vm555_vm0 = vc.u32 %v547_v51, %v551_v47  ;;  %v557_v11 = vadd.s32 %v551_v47, %v547_v51  ;;  %v4625_v30 = vadd.f32 %v4244_v59, %v1278_v8  ;;  %v4632_v1 = vld [vmem:[%s4474_s22 + $0x10] sm:$0xff] }
 0x172   : > { %v1761_v21 = vsel %vm830_vm2, %v1745_v31, 0.0  ;;  %v1605_v45 = vadd.f32 %v1584_v6, %v1482_v39  ;;  %v1673_v35 = vpop.f32.mrf.mxu0  ;;  %v537_v60 = vmul.u32 24, %v536_v23  ;;  %v556_v61 = vsel %vm555_vm0, 1, %v3664_v26 }
 0x173   : > { %v4628_v37 = vpop.f32.mrf.mxu1  ;;  %v1762_v44 = vadd.f32 %v1761_v21, %v1760_v25  ;;  %v552_v55 = vshrl.u32 %v548_v2, 16  ;;  %v558_v28 = vadd.s32 %v556_v61, %v550_v63  ;;  %vm559_vm1 = vc.u32 %v557_v11, %v553_v53 }
 0x174   : > { %v1692_v51 = vadd.f32 %v1671_v57, %v1605_v45  ;;  %v538_v59 = vsub.s32 %v4483_v14, %v537_v60  ;;  %v554_v15 = vshrl.u32 %v549_v34, 16  ;;  %v560_v47 = vsel %vm559_vm1, 1, %v3664_v26 }
 0x175   : > { %v562_v6 = vadd.s32 %v560_v47, %v558_v28  ;;  %v2564_v25 = vshrl.u32 %v4511_v19, 16  ;;  %v2567_v2 = vshll.u32 %v4632_v1, 16  ;;  %v4642_v54 = vadd.s32 80, %v4120_v49 }
 0x176   : > { %3439 = vmatmul.msk.bf16.vlgmr.msra.gmra.mxu3 %vm830_vm2, %v4498_v17  ;;  %3453 = vmatmul.msk.bf16.vlgmr.msra.gmra.mxu1 %vm830_vm2, %v2675_v41  ;;  %v1704_v57 = vmul.f32 %v4604_v58, %v1692_v51  ;;  %1789 = vst.msk [vmem:[%s4392_s7 + $0x30] sm:$0xff] %vm830_vm2, %v1692_v51  ;;  %vm636_vm5 = vcmp.ne.s32.totalorder %v538_v59, 0  ;;  %vm648_vm6 = vcmp.lt.s32.totalorder %v538_v59, 0  ;;  %v672_v14 = vadd.s32 24, %v538_v59 }
 0x177   : > { %v4650_v17 = vsel %vm4613_vm15, 1.0, %v5112_v50  ;;  %v1463_v34 = vpop.f32.mrf.mxu2  ;;  %vm660_vm7 = vmand %vm648_vm6, %vm636_vm5  ;;  %v563_v41 = vadd.s32 %v562_v6, %v552_v55  ;;  %v2347_v63 = vrot.slane %v4145_v20, 1  ;;  %v573_v53 = vand.u32 65535, %v4642_v54 }
 0x178   : > { %v1721_v8 = vsel %vm830_vm2, %v1704_v57, 0.0  ;;  %v1746_v10 = vmul.f32 %v1704_v57, %v1692_v51  ;;  %v1483_v31 = vadd.f32 %v1463_v34, %v4203_v7  ;;  %v684_v23 = vsel %vm660_vm7, %v672_v14, %v538_v59 }
 0x179   : > { %v1589_v39 = vpop.f32.mrf.mxu3  ;;  %v1722_v11 = vadd.f32 %v1721_v8, %v1720_v12  ;;  %vm696_vm8 = vcmp.lt.s32.totalorder %v684_v23, 16  ;;  %v564_v21 = vadd.s32 %v563_v41, %v554_v15  ;;  %v4657_v5 = vor.u32 %v2564_v25, %v4558_v38 }
 0x17a   : > { %v1763_v45 = vsel %vm830_vm2, %v1746_v10, 0.0  ;;  %v1606_v60 = vadd.f32 %v1586_v42, %v1483_v31  ;;  %v1676_v61 = vpop.f32.mrf.mxu0  ;;  %v4662_v28 = vrot.slane %v2567_v2, 1  ;;  %v574_v51 = vshrl.u32 %v4642_v54, 16  ;;  %v5130_v31 = vld [vmem:[#allocation8_spill] sm:$0xff] }
 0x17b   : > { %v4660_v55 = vpop.f32.mrf.mxu1  ;;  %v1764_v7 = vadd.f32 %v1763_v45, %v1762_v44  ;;  %v565_v47 = vshrl.u32 %v564_v21, 4  ;;  %v576_v59 = vmul.u32 43691, %v573_v53  ;;  %v577_v12 = vmul.u32 43690, %v573_v53 }
 0x17c   : > { %v1693_v6 = vadd.f32 %v1673_v35, %v1606_v60  ;;  %3407 = vmatmul.msk.bf16.vlgmr.msra.gmra.mxu2 %vm830_vm2, %v4597_v33  ;;  %v4668_v38 = vsel %vm696_vm8, 1.0, %v5112_v50  ;;  %v578_v42 = vmul.u32 43691, %v574_v51  ;;  %v2676_v15 = vrot.slane %v4632_v1, 1 }
 0x17d   : > { %3446 = vmatmul.msk.bf16.vlgmr.msra.gmra.mxu0 %vm830_vm2, %v4608_v18  ;;  %v566_v25 = vmul.u32 24, %v565_v47  ;;  %v579_v2 = vmul.u32 43690, %v574_v51  ;;  %v580_v57 = vshll.u32 %v577_v12, 16  ;;  %v4674_v44 = vadd.s32 88, %v4120_v49 }
 0x17e   : > { %v1705_v35 = vmul.f32 %v4650_v17, %v1693_v6  ;;  %1790 = vst.msk [vmem:[%s4392_s7 + $0x38] sm:$0xff] %vm830_vm2, %v1693_v6  ;;  %v581_v33 = vshrl.u32 %v577_v12, 16  ;;  %v582_v14 = vshll.u32 %v578_v42, 16  ;;  %v2677_v34 = vsel %vm948_vm4, %v2674_v29, %v2676_v15 }
 0x17f   : > { %v1466_v41 = vpop.f32.mrf.mxu2  ;;  %v567_v18 = vsub.s32 %v4563_v43, %v566_v25  ;;  %vm584_vm9 = vc.u32 %v576_v59, %v580_v57  ;;  %v586_v53 = vadd.s32 %v580_v57, %v576_v59  ;;  %v602_v49 = vand.u32 65535, %v4674_v44 }
 0x180   : > { %v1723_v8 = vsel %vm830_vm2, %v1705_v35, 0.0  ;;  %v1747_v10 = vmul.f32 %v1705_v35, %v1693_v6  ;;  %v1484_v23 = vadd.f32 %v1466_v41, %v5130_v31  ;;  %v585_v45 = vsel %vm584_vm9, 1, %v3664_v26 }
 0x181   : > { %v1591_v21 = vpop.f32.mrf.mxu3  ;;  %v1724_v60 = vadd.f32 %v1723_v8, %v1722_v11  ;;  %vm637_vm10 = vcmp.ne.s32.totalorder %v567_v18, 0  ;;  %vm649_vm11 = vcmp.lt.s32.totalorder %v567_v18, 0  ;;  %v673_v51 = vadd.s32 24, %v567_v18 }
 0x182   : > { %v1765_v29 = vsel %vm830_vm2, %v1747_v10, 0.0  ;;  %v1607_v47 = vadd.f32 %v1589_v39, %v1484_v23  ;;  %v1678_v43 = vpop.f32.mrf.mxu0  ;;  %vm4690_vm12 = vmand %vm649_vm11, %vm637_vm10  ;;  %v587_v6 = vadd.s32 %v585_v45, %v579_v2  ;;  %vm588_vm13 = vc.u32 %v586_v53, %v582_v14  ;;  %v5133_v10 = vld [vmem:[#allocation5_spill] sm:$0xff] }
 0x183   : > { %v4694_v12 = vpop.f32.mrf.mxu1  ;;  %v1766_v25 = vadd.f32 %v1765_v29, %v1764_v7  ;;  %v685_v11 = vsel %vm4690_vm12, %v673_v51, %v567_v18  ;;  %v589_v57 = vsel %vm588_vm13, 1, %v3664_v26  ;;  %v603_v35 = vshrl.u32 %v4674_v44, 16 }
 0x184   : > { %v1694_v41 = vadd.f32 %v1676_v61, %v1607_v47  ;;  %v583_v39 = vshrl.u32 %v578_v42, 16  ;;  %v591_v8 = vadd.s32 %v589_v57, %v587_v6  ;;  %v1363_v31 = vadd.f32 %v5133_v10, %v4454_v48 }
 0x185   : > { %v605_v2 = vmul.u32 43691, %v602_v49  ;;  %v606_v7 = vmul.u32 43690, %v602_v49  ;;  %v607_v14 = vmul.u32 43691, %v603_v35  ;;  %vm697_vm14 = vcmp.lt.s32.totalorder %v685_v11, 16 }
 0x186   : > { %3440 = vmatmul.msk.bf16.gmra.mxu3 %vm830_vm2, %v4511_v19  ;;  %3454 = vmatmul.msk.bf16.gmra.mxu1 %vm830_vm2, %v2677_v34  ;;  %v1706_v18 = vmul.f32 %v4668_v38, %v1694_v41  ;;  %1791 = vst.msk [vmem:[%s4392_s7 + $0x40] sm:$0xff] %vm830_vm2, %v1694_v41  ;;  %v2348_v61 = vsel %vm948_vm4, %v2345_v52, %v2347_v63  ;;  %v608_v34 = vmul.u32 43690, %v603_v35  ;;  %v4718_v32 = vsel %vm697_vm14, 1.0, %v5112_v50 }
 0x187   : > { %v592_v19 = vadd.s32 %v591_v8, %v581_v33  ;;  %v1468_v42 = vpop.f32.mrf.mxu2  ;;  %v2570_v48 = vsel %vm777_vm3, %v4657_v5, %v4662_v28  ;;  %v609_v53 = vshll.u32 %v606_v7, 16  ;;  %v611_v49 = vshll.u32 %v607_v14, 16 }
 0x188   : > { %v1725_v23 = vsel %vm830_vm2, %v1706_v18, 0.0  ;;  %v1748_v45 = vmul.f32 %v1706_v18, %v1694_v41  ;;  %v1485_v51 = vadd.f32 %v1468_v42, %v1363_v31  ;;  %v610_v8 = vshrl.u32 %v606_v7, 16  ;;  %v5134_v7 = vld [vmem:[#allocation6_spill] sm:$0xff] }
 0x189   : > { %v1594_v29 = vpop.f32.mrf.mxu3  ;;  %v593_v47 = vadd.s32 %v592_v19, %v583_v39  ;;  %v1726_v59 = vadd.f32 %v1725_v23, %v1724_v60  ;;  %vm613_vm15 = vc.u32 %v605_v2, %v609_v53  ;;  %v615_v52 = vadd.s32 %v609_v53, %v605_v2 }
 0x18a   : > { %v1767_v33 = vsel %vm830_vm2, %v1748_v45, 0.0  ;;  %v1608_v6 = vadd.f32 %v1591_v21, %v1485_v51  ;;  %v1681_v11 = vpop.f32.mrf.mxu0  ;;  %v614_v35 = vsel %vm613_vm15, 1, %v3664_v26  ;;  %v612_v21 = vshrl.u32 %v607_v14, 16 }
 0x18b   : > { %v594_v5 = vshrl.u32 %v593_v47, 4  ;;  %v4721_v57 = vpop.f32.mrf.mxu1  ;;  %v1768_v41 = vadd.f32 %v1767_v33, %v1766_v25  ;;  %v616_v10 = vadd.s32 %v614_v35, %v608_v34  ;;  %vm617_vm0 = vc.u32 %v615_v52, %v611_v49 }
 0x18c   : > { %v1695_v60 = vadd.f32 %v1678_v43, %v1608_v6  ;;  %3408 = vmatmul.msk.bf16.gmra.mxu2 %vm830_vm2, %v2348_v61  ;;  %v618_v31 = vsel %vm617_vm0, 1, %v3664_v26  ;;  %v1364_v19 = vadd.f32 %v5134_v7, %v4572_v46  ;;  %v2571_v51 = vshrl.u32 %v4632_v1, 16 }
 0x18d   : > { %v595_v39 = vmul.u32 24, %v594_v5  ;;  %3447 = vmatmul.msk.bf16.gmra.mxu0 %vm830_vm2, %v2570_v48  ;;  %v620_v2 = vadd.s32 %v618_v31, %v616_v10  ;;  %v4735_v48 = vld [vmem:[%s4474_s22 + $0x18] sm:$0xff] }
 0x18e   : > { %v1707_v18 = vmul.f32 %v4718_v32, %v1695_v60  ;;  %1792 = vst.msk [vmem:[%s4392_s7 + $0x48] sm:$0xff] %vm830_vm2, %v1695_v60  ;;  %v2574_v47 = vshll.u32 %v4735_v48, 16 }
 0x18f   : > { %v596_v25 = vsub.s32 %v4642_v54, %v595_v39  ;;  %v1471_v43 = vpop.f32.mrf.mxu2  ;;  %v621_v42 = vadd.s32 %v620_v2, %v610_v8  ;;  %v2678_v39 = vrot.slane %v4735_v48, 1 }
 0x190   : > { %v1727_v61 = vsel %vm830_vm2, %v1707_v18, 0.0  ;;  %v1749_v34 = vmul.f32 %v1707_v18, %v1695_v60  ;;  %v1486_v49 = vadd.f32 %v1471_v43, %v1364_v19  ;;  %v2576_v31 = vrot.slane %v2574_v47, 1 }
 0x191   : > { %vm638_vm1 = vcmp.ne.s32.totalorder %v596_v25, 0  ;;  %vm650_vm5 = vcmp.lt.s32.totalorder %v596_v25, 0  ;;  %v1596_v26 = vpop.f32.mrf.mxu3  ;;  %v1728_v14 = vadd.f32 %v1727_v61, %v1726_v59  ;;  %v674_v53 = vadd.s32 24, %v596_v25  ;;  %v4743_v59 = vld [vmem:[%s4096_s12 + $0x18] sm:$0xff] }
 0x192   : > { %vm662_vm6 = vmand %vm650_vm5, %vm638_vm1  ;;  %v622_v23 = vadd.s32 %v621_v42, %v612_v21  ;;  %v1769_v54 = vsel %vm830_vm2, %v1749_v34, 0.0  ;;  %v1683_v45 = vpop.f32.mrf.mxu0  ;;  %v1609_v6 = vadd.f32 %v1594_v29, %v1486_v49  ;;  %v2349_v35 = vrot.slane %v4743_v59, 1 }
 0x193   : > { %v4738_v46 = vpop.f32.mrf.mxu1  ;;  %v1770_v52 = vadd.f32 %v1769_v54, %v1768_v41  ;;  %v686_v33 = vsel %vm662_vm6, %v674_v53, %v596_v25  ;;  %v2573_v41 = vor.u32 %v2571_v51, %v4662_v28 }
 0x194   : > { %v623_v5 = vshrl.u32 %v622_v23, 4  ;;  %vm698_vm7 = vcmp.lt.s32.totalorder %v686_v33, 16  ;;  %v1696_v10 = vadd.f32 %v1681_v11, %v1609_v6  ;;  %v2679_v11 = vsel %vm948_vm4, %v2676_v15, %v2678_v39  ;;  %v5135_v23 = vld [vmem:[#allocation7_spill] sm:$0xff] }
 0x195   : > { %v4747_v8 = vsel %vm698_vm7, 1.0, %v5112_v50  ;;  %v2350_v28 = vsel %vm948_vm4, %v2347_v63, %v2349_v35  ;;  %v2577_v43 = vsel %vm777_vm3, %v2573_v41, %v2576_v31 }
 0x196   : > { %3441 = vmatmul.msk.bf16.gmra.mxu3 %vm830_vm2, %v4632_v1  ;;  %v624_v60 = vmul.u32 24, %v623_v5  ;;  %v1708_v29 = vmul.f32 %v4747_v8, %v1696_v10  ;;  %1793 = vst.msk [vmem:[%s4392_s7 + $0x50] sm:$0xff] %vm830_vm2, %v1696_v10  ;;  %3455 = vmatmul.msk.bf16.gmra.mxu1 %vm830_vm2, %v2679_v11 }
 0x197   : > { %v1473_v2 = vpop.f32.mrf.mxu2 }
 0x198   : > { %v625_v21 = vsub.s32 %v4674_v44, %v624_v60  ;;  %v1487_v18 = vadd.f32 %v1473_v2, %v4625_v30  ;;  %v1729_v7 = vsel %vm830_vm2, %v1708_v29, 0.0  ;;  %v1750_v19 = vmul.f32 %v1708_v29, %v1696_v10 }
 0x199   : > { %v2058_v25 = vpop.f32.mrf.mxu3  ;;  %v1730_v1 = vadd.f32 %v1729_v7, %v1728_v14  ;;  %v2578_v10 = vshrl.u32 %v4735_v48, 16  ;;  %v5136_v7 = vld [vmem:[#allocation9_spill] sm:$0xff] }
 0x19a   : > { %vm639_vm8 = vcmp.ne.s32.totalorder %v625_v21, 0  ;;  %vm651_vm9 = vcmp.lt.s32.totalorder %v625_v21, 0  ;;  %v675_v15 = vadd.s32 24, %v625_v21  ;;  %v1610_v30 = vadd.f32 %v1596_v26, %v1487_v18  ;;  %v4768_v44 = vpop.f32.mrf.mxu0  ;;  %v3536_v26 = vld [vmem:[%s4474_s22 + $0x20] sm:$0xff] }
 0x19b   : > { %vm663_vm10 = vmand %vm651_vm9, %vm639_vm8  ;;  %v4771_v20 = vpop.f32.mrf.mxu1  ;;  %v1771_v63 = vsel %vm830_vm2, %v1750_v19, 0.0  ;;  %v2581_v60 = vshll.u32 %v3536_v26, 16  ;;  %v2580_v18 = vor.u32 %v2578_v10, %v2576_v31 }
 0x19c   : > { %v1772_v42 = vadd.f32 %v1771_v63, %v1770_v52  ;;  %v687_v61 = vsel %vm663_vm10, %v675_v15, %v625_v21  ;;  %v1697_v34 = vadd.f32 %v1683_v45, %v1610_v30  ;;  %3409 = vmatmul.msk.bf16.gmra.mxu2 %vm830_vm2, %v2350_v28  ;;  %v2680_v52 = vrot.slane %v3536_v26, 1  ;;  %v3603_v21 = vld [vmem:[%s4096_s12 + $0x20] sm:$0xff] }
 0x19d   : > { %vm699_vm11 = vcmp.lt.s32.totalorder %v687_v61, 16  ;;  %3448 = vmatmul.msk.bf16.gmra.mxu0 %vm830_vm2, %v2577_v43  ;;  %v2351_v2 = vrot.slane %v3603_v21, 1 }
 0x19e   : > { %v4777_v14 = vsel %vm699_vm11, 1.0, %v5112_v50  ;;  %1794 = vst.msk [vmem:[%s4392_s7 + $0x58] sm:$0xff] %vm830_vm2, %v1697_v34  ;;  %v2681_v11 = vsel %vm948_vm4, %v2678_v39, %v2680_v52  ;;  %v3537_v39 = vld [vmem:[%s4474_s22 + $0x28] sm:$0xff] }
 0x19f   : > { %v1709_v53 = vmul.f32 %v4777_v14, %v1697_v34  ;;  %v1984_v49 = vpop.f32.mrf.mxu2  ;;  %v2352_v15 = vsel %vm948_vm4, %v2349_v35, %v2351_v2  ;;  %v2682_v61 = vrot.slane %v3537_v39, 1 }
 0x1a0   : > { %v1985_v54 = vadd.f32 %v1984_v49, %v5135_v23  ;;  %v2585_v49 = vshrl.u32 %v3536_v26, 16  ;;  %v2588_v23 = vshll.u32 %v3537_v39, 16 }
 0x1a1   : > { %v2060_v51 = vpop.f32.mrf.mxu3  ;;  %v1731_v45 = vsel %vm830_vm2, %v1709_v53, 0.0  ;;  %v1751_v47 = vmul.f32 %v1709_v53, %v1697_v34 }
 0x1a2   : > { %v4785_v33 = vadd.f32 %v1731_v45, %v1730_v1  ;;  %v2088_v6 = vadd.f32 %v2058_v25, %v1985_v54  ;;  %v4787_v5 = vpop.f32.mrf.mxu0  ;;  %v2583_v25 = vrot.slane %v2581_v60, 1  ;;  %v3604_v54 = vld [vmem:[%s4096_s12 + $0x28] sm:$0xff]  ;;  %v2683_v45 = vsel %vm948_vm4, %v2680_v52, %v2682_v61 }
 0x1a3   : > { %v4789_v50 = vpop.f32.mrf.mxu1  ;;  %v1773_v41 = vsel %vm830_vm2, %v1751_v47, 0.0  ;;  %v2590_v10 = vrot.slane %v2588_v23, 1 }
 0x1a4   : > { %v4793_v29 = vadd.f32 %v1773_v41, %v1772_v42  ;;  %v2587_v47 = vor.u32 %v2585_v49, %v2583_v25  ;;  %v2446_v41 = vld [vmem:[%s4474_s22 + $0x30] sm:$0xf]  ;;  %v2209_v52 = vadd.f32 %v4768_v44, %v2088_v6  ;;  %v2592_v49 = vshrl.u32 %v3537_v39, 16 }
 0x1a6   : > { %3442 = vmatmul.msk.bf16.gmra.mxu3 %vm830_vm2, %v4735_v48  ;;  %3456 = vmatmul.msk.bf16.gmra.mxu1 %vm830_vm2, %v2681_v11  ;;  %v2584_v48 = vsel %vm777_vm3, %v2580_v18, %v2583_v25 }
 0x1a7   : > { %v1986_v28 = vpop.f32.mrf.mxu2 }
 0x1a8   : > { %v1987_v19 = vadd.f32 %v1986_v28, %v5136_v7  ;;  %v2591_v7 = vsel %vm777_vm3, %v2587_v47, %v2590_v10 }
 0x1a9   : > { %v2063_v1 = vpop.f32.mrf.mxu3 }
 0x1aa   : > { %v2089_v30 = vadd.f32 %v2060_v51, %v1987_v19  ;;  %v4804_v43 = vpop.f32.mrf.mxu0  ;;  %v2353_v51 = vrot.slane %v3604_v54, 1  ;;  %v2552_v19 = vunpack.c.l.b16 %v2446_v41  ;;  %v2355_v54 = vrot.slane %v4441_v24, 1 }
 0x1ab   : > { %v4807_v63 = vpop.f32.mrf.mxu1 }
 0x1ac   : > { %3410 = vmatmul.msk.bf16.gmra.mxu2 %vm830_vm2, %v2352_v15  ;;  %v2354_v11 = vsel %vm948_vm4, %v2351_v2, %v2353_v51  ;;  %v2553_v25 = vpack.c.b16 %v2552_v19, %v2552_v19  ;;  %v2210_v6 = vadd.f32 %v4787_v5, %v2089_v30 }
 0x1ad   : > { %3449 = vmatmul.msk.bf16.gmra.mxu0 %vm830_vm2, %v2584_v48 }
 0x1ae   : > { %v2684_v48 = vrot.slane %v2553_v25, 1  ;;  %v2596_v23 = vshll.u32 %v2553_v25, 16 }
 0x1af   : > { %v1989_v31 = vpop.f32.mrf.mxu2 }
 0x1b0   : > { %v1990_v42 = vadd.f32 %v1989_v31, %v4367_v4  ;;  %v2685_v44 = vsel %vm948_vm4, %v2682_v61, %v2684_v48 }
 0x1b1   : > { %v2065_v59 = vpop.f32.mrf.mxu3 }
 0x1b2   : > { %v2090_v35 = vadd.f32 %v2063_v1, %v1990_v42  ;;  %v2186_v34 = vpop.f32.mrf.mxu0 }
 0x1b3   : > { %v4813_v53 = vpop.f32.mrf.mxu1 }
 0x1b4   : > { %v2211_v5 = vadd.f32 %v4804_v43, %v2090_v35 }
 0x1b6   : > { %3443 = vmatmul.msk.bf16.gmra.mxu3 %vm830_vm2, %v3536_v26  ;;  %3457 = vmatmul.msk.bf16.gmra.mxu1 %vm830_vm2, %v2683_v45  ;;  %v2594_v45 = vor.u32 %v2592_v49, %v2590_v10  ;;  %v4845_v30 = vadd.f32 %v4789_v50, %v2211_v5 }
 0x1b7   : > { %v1991_v60 = vpop.f32.mrf.mxu2 }
 0x1b8   : > { %v1992_v4 = vadd.f32 %v1991_v60, %v4419_v27  ;;  %v4827_v27 = vadd.f32 %v4738_v46, %v2209_v52  ;;  %v2598_v46 = vrot.slane %v2596_v23, 1 }
 0x1b9   : > { %v2068_v21 = vpop.f32.mrf.mxu3 }
 0x1ba   : > { %v2091_v18 = vadd.f32 %v2065_v59, %v1992_v4  ;;  %v2189_v28 = vpop.f32.mrf.mxu0  ;;  %v2356_v4 = vsel %vm948_vm4, %v2353_v51, %v2355_v54  ;;  %v2599_v24 = vsel %vm777_vm3, %v2594_v45, %v2598_v46 }
 0x1bb   : > { %v2313_v26 = vpop.f32.mrf.mxu1 }
 0x1bc   : > { %3411 = vmatmul.msk.bf16.gmra.mxu2 %vm830_vm2, %v2354_v11  ;;  %v2212_v19 = vadd.f32 %v2186_v34, %v2091_v18 }
 0x1bd   : > { %3450 = vmatmul.msk.bf16.gmra.mxu0 %vm830_vm2, %v2591_v7 }
 0x1be   : > { %v4849_v25 = vadd.f32 %v4807_v63, %v2212_v19 }
 0x1bf   : > { %v1994_v1 = vpop.f32.mrf.mxu2 }
 0x1c0   : > { %v1995_v15 = vadd.f32 %v1994_v1, %v4464_v3  ;;  %v4835_v3 = vadd.f32 %v4771_v20, %v2210_v6 }
 0x1c1   : > { %v2070_v2 = vpop.f32.mrf.mxu3 }
 0x1c2   : > { %v2092_v31 = vadd.f32 %v2068_v21, %v1995_v15  ;;  %v2191_v42 = vpop.f32.mrf.mxu0 }
 0x1c3   : > { %v2316_v59 = vpop.f32.mrf.mxu1 }
 0x1c4   : > { %v2213_v48 = vadd.f32 %v2189_v28, %v2092_v31 }
 0x1c6   : > { %3444 = vmatmul.msk.bf16.gmra.mxu3 %vm830_vm2, %v3537_v39  ;;  %3458 = vmatmul.msk.bf16.gmra.mxu1 %vm830_vm2, %v2685_v44  ;;  %v4853_v49 = vadd.f32 %v4813_v53, %v2213_v48 }
 0x1c7   : > { %v1996_v47 = vpop.f32.mrf.mxu2 }
 0x1c8   : > { %v1997_v60 = vadd.f32 %v1996_v47, %v4506_v13 }
 0x1c9   : > { %v2073_v41 = vpop.f32.mrf.mxu3 }
 0x1ca   : > { %v2093_v39 = vadd.f32 %v2070_v2, %v1997_v60  ;;  %v2194_v21 = vpop.f32.mrf.mxu0 }
 0x1cb   : > { %v2318_v61 = vpop.f32.mrf.mxu1 }
 0x1cc   : > { %3412 = vmatmul.msk.bf16.gmra.mxu2 %vm830_vm2, %v2356_v4  ;;  %v2214_v44 = vadd.f32 %v2191_v42, %v2093_v39 }
 0x1cd   : > { %3451 = vmatmul.msk.bf16.gmra.mxu0 %vm830_vm2, %v2599_v24 }
 0x1ce   : > { %v4856_v6 = vadd.f32 %v2313_v26, %v2214_v44 }
 0x1cf   : > { %v1999_v20 = vpop.f32.mrf.mxu2 }
 0x1d0   : > { %v2000_v13 = vadd.f32 %v1999_v20, %v4552_v56 }
 0x1d1   : > { %v2075_v10 = vpop.f32.mrf.mxu3 }
 0x1d2   : > { %v2094_v11 = vadd.f32 %v2073_v41, %v2000_v13  ;;  %v2196_v51 = vpop.f32.mrf.mxu0 }
 0x1d3   : > { %v2321_v7 = vpop.f32.mrf.mxu1 }
 0x1d4   : > { %v2215_v31 = vadd.f32 %v2194_v21, %v2094_v11 }
 0x1d6   : > { %v4859_v53 = vadd.f32 %v2316_v59, %v2215_v31 }
 0x1d7   : > { %v2001_v52 = vpop.f32.mrf.mxu2 }
 0x1d8   : > { %v2002_v1 = vadd.f32 %v2001_v52, %v4580_v9 }
 0x1d9   : > { %v2078_v15 = vpop.f32.mrf.mxu3 }
 0x1da   : > { %v2095_v2 = vadd.f32 %v2075_v10, %v2002_v1  ;;  %v2199_v43 = vpop.f32.mrf.mxu0 }
 0x1db   : > { %v2323_v35 = vpop.f32.mrf.mxu1 }
 0x1dc   : > { %v2216_v42 = vadd.f32 %v2196_v51, %v2095_v2 }
 0x1de   : > { %v4862_v26 = vadd.f32 %v2318_v61, %v2216_v42 }
 0x1df   : > { %v2004_v50 = vpop.f32.mrf.mxu2 }
 0x1e0   : > { %v2005_v56 = vadd.f32 %v2004_v50, %v4628_v37 }
 0x1e1   : > { %v2080_v23 = vpop.f32.mrf.mxu3 }
 0x1e2   : > { %v2096_v54 = vadd.f32 %v2078_v15, %v2005_v56  ;;  %v2201_v34 = vpop.f32.mrf.mxu0 }
 0x1e3   : > { %v2326_v18 = vpop.f32.mrf.mxu1 }
 0x1e4   : > { %v2217_v11 = vadd.f32 %v2199_v43, %v2096_v54 }
 0x1e6   : > { %v4865_v19 = vadd.f32 %v2321_v7, %v2217_v11 }
 0x1e7   : > { %v2006_v63 = vpop.f32.mrf.mxu2 }
 0x1e8   : > { %v2007_v9 = vadd.f32 %v2006_v63, %v4660_v55 }
 0x1e9   : > { %v2083_v45 = vpop.f32.mrf.mxu3 }
 0x1ea   : > { %v2097_v46 = vadd.f32 %v2080_v23, %v2007_v9  ;;  %v2204_v47 = vpop.f32.mrf.mxu0 }
 0x1eb   : > { %v2328_v28 = vpop.f32.mrf.mxu1 }
 0x1ec   : > { %v2218_v61 = vadd.f32 %v2201_v34, %v2097_v46 }
 0x1ef   : > { %v2009_v60 = vpop.f32.mrf.mxu2 }
 0x1f0   : > { %v2010_v37 = vadd.f32 %v2009_v60, %v4694_v12 }
 0x1f1   : > { %v2085_v41 = vpop.f32.mrf.mxu3 }
 0x1f2   : > { %v2098_v4 = vadd.f32 %v2083_v45, %v2010_v37  ;;  %v2206_v24 = vpop.f32.mrf.mxu0 }
 0x1f3   : > { %v2716_v5 = vpop.f32.mrf.mxu1 }
 0x1f4   : > { %v2219_v63 = vadd.f32 %v2204_v47, %v2098_v4 }
 0x1f6   : > { %v4874_v34 = vadd.f32 %v2326_v18, %v2219_v63 }
 0x1f7   : > { %v2011_v39 = vpop.f32.mrf.mxu2 }
 0x1f8   : > { %v2012_v55 = vadd.f32 %v2011_v39, %v4721_v57  ;;  %v4868_v57 = vadd.f32 %v2323_v35, %v2218_v61 }
 0x1f9   : > { %v2508_v20 = vpop.f32.mrf.mxu3 }
 0x1fa   : > { %v2099_v13 = vadd.f32 %v2085_v41, %v2012_v55  ;;  %v2630_v10 = vpop.f32.mrf.mxu0 }
 0x1fb   : > { %v2718_v21 = vpop.f32.mrf.mxu1 }
 0x1fc   : > { %v2220_v39 = vadd.f32 %v2206_v24, %v2099_v13 }
 0x1ff   : > { %v2387_v59 = vpop.f32.mrf.mxu2 }
 0x200   : > { %v2417_v12 = vadd.f32 %v2387_v59, %v4827_v27 }
 0x201   : > { %v2510_v52 = vpop.f32.mrf.mxu3 }
 0x202   : > { %v2538_v1 = vadd.f32 %v2508_v20, %v2417_v12  ;;  %v2632_v15 = vpop.f32.mrf.mxu0 }
 0x203   : > { %v2721_v51 = vpop.f32.mrf.mxu1 }
 0x204   : > { %v2660_v2 = vadd.f32 %v2630_v10, %v2538_v1  ;;  %v4884_v10 = vadd.f32 %v2328_v28, %v2220_v39 }
 0x206   : > { %v2746_v48 = vadd.f32 %v2716_v5, %v2660_v2 }
 0x207   : > { %v2389_v50 = vpop.f32.mrf.mxu2 }
 0x208   : > { %3459 = vst.msk [vmem:[%s4392_s7 + $0x60] sm:$0xff] %vm830_vm2, %v2746_v48  ;;  %v2418_v43 = vadd.f32 %v2389_v50, %v4835_v3  ;;  %v2758_v27 = vmul.f32 %v4303_v16, %v2746_v48 }
 0x209   : > { %v2513_v56 = vpop.f32.mrf.mxu3 }
 0x20a   : > { %v2539_v7 = vadd.f32 %v2510_v52, %v2418_v43  ;;  %v2635_v23 = vpop.f32.mrf.mxu0  ;;  %v2800_v46 = vmul.f32 %v2758_v27, %v2746_v48  ;;  %v2770_v60 = vsel %vm830_vm2, %v2758_v27, 0.0 }
 0x20b   : > { %v2723_v44 = vpop.f32.mrf.mxu1 }
 0x20c   : > { %v2661_v54 = vadd.f32 %v2632_v15, %v2539_v7  ;;  %v2812_v18 = vsel %vm830_vm2, %v2800_v46, 0.0 }
 0x20e   : > { %v2747_v9 = vadd.f32 %v2718_v21, %v2661_v54 }
 0x20f   : > { %v2392_v45 = vpop.f32.mrf.mxu2 }
 0x210   : > { %v2759_v35 = vmul.f32 %v4330_v40, %v2747_v9  ;;  %3460 = vst.msk [vmem:[%s4392_s7 + $0x68] sm:$0xff] %vm830_vm2, %v2747_v9  ;;  %v2419_v31 = vadd.f32 %v2392_v45, %v4845_v30 }
 0x211   : > { %v2515_v3 = vpop.f32.mrf.mxu3 }
 0x212   : > { %v2771_v16 = vsel %vm830_vm2, %v2759_v35, 0.0  ;;  %v2801_v37 = vmul.f32 %v2759_v35, %v2747_v9  ;;  %v2540_v41 = vadd.f32 %v2513_v56, %v2419_v31  ;;  %v2637_v47 = vpop.f32.mrf.mxu0 }
 0x213   : > { %v2772_v4 = vadd.f32 %v2771_v16, %v2770_v60  ;;  %v2726_v30 = vpop.f32.mrf.mxu1 }
 0x214   : > { %v2813_v5 = vsel %vm830_vm2, %v2801_v37, 0.0  ;;  %v2662_v42 = vadd.f32 %v2635_v23, %v2540_v41 }
 0x215   : > { %v2814_v40 = vadd.f32 %v2813_v5, %v2812_v18 }
 0x216   : > { %v2748_v55 = vadd.f32 %v2721_v51, %v2662_v42 }
 0x217   : > { %v2394_v20 = vpop.f32.mrf.mxu2 }
 0x218   : > { %v2760_v21 = vmul.f32 %v4399_v62, %v2748_v55  ;;  %3461 = vst.msk [vmem:[%s4392_s7 + $0x70] sm:$0xff] %vm830_vm2, %v2748_v55  ;;  %v2420_v11 = vadd.f32 %v2394_v20, %v4849_v25 }
 0x219   : > { %v2518_v59 = vpop.f32.mrf.mxu3 }
 0x21a   : > { %v2773_v12 = vsel %vm830_vm2, %v2760_v21, 0.0  ;;  %v2802_v52 = vmul.f32 %v2760_v21, %v2748_v55  ;;  %v2541_v1 = vadd.f32 %v2515_v3, %v2420_v11  ;;  %v2640_v15 = vpop.f32.mrf.mxu0 }
 0x21b   : > { %v2774_v2 = vadd.f32 %v2773_v12, %v2772_v4  ;;  %v2728_v50 = vpop.f32.mrf.mxu1 }
 0x21c   : > { %v2815_v24 = vsel %vm830_vm2, %v2802_v52, 0.0  ;;  %v2663_v13 = vadd.f32 %v2637_v47, %v2541_v1 }
 0x21d   : > { %v2816_v51 = vadd.f32 %v2815_v24, %v2814_v40 }
 0x21e   : > { %v2749_v28 = vadd.f32 %v2723_v44, %v2663_v13 }
 0x21f   : > { %v2397_v61 = vpop.f32.mrf.mxu2 }
 0x220   : > { %v2761_v48 = vmul.f32 %v4413_v22, %v2749_v28  ;;  %3462 = vst.msk [vmem:[%s4392_s7 + $0x78] sm:$0xff] %vm830_vm2, %v2749_v28  ;;  %v2421_v62 = vadd.f32 %v2397_v61, %v4853_v49 }
 0x221   : > { %v2520_v25 = vpop.f32.mrf.mxu3 }
 0x222   : > { %v2775_v43 = vsel %vm830_vm2, %v2761_v48, 0.0  ;;  %v2803_v56 = vmul.f32 %v2761_v48, %v2749_v28  ;;  %v2542_v7 = vadd.f32 %v2518_v59, %v2421_v62  ;;  %v2642_v23 = vpop.f32.mrf.mxu0 }
 0x223   : > { %v2776_v27 = vadd.f32 %v2775_v43, %v2774_v2  ;;  %v2731_v37 = vpop.f32.mrf.mxu1 }
 0x224   : > { %v2817_v54 = vsel %vm830_vm2, %v2803_v56, 0.0  ;;  %v2664_v63 = vadd.f32 %v2640_v15, %v2542_v7 }
 0x225   : > { %v2818_v44 = vadd.f32 %v2817_v54, %v2816_v51 }
 0x226   : > { %v2750_v9 = vadd.f32 %v2726_v30, %v2664_v63 }
 0x227   : > { %v2399_v45 = vpop.f32.mrf.mxu2 }
 0x228   : > { %v2762_v22 = vmul.f32 %v4530_v36, %v2750_v9  ;;  %3463 = vst.msk [vmem:[%s4392_s7 + $0x80] sm:$0xff] %vm830_vm2, %v2750_v9  ;;  %v2422_v49 = vadd.f32 %v2399_v45, %v4856_v6 }
 0x229   : > { %v2523_v46 = vpop.f32.mrf.mxu3 }
 0x22a   : > { %v2777_v35 = vsel %vm830_vm2, %v2762_v22, 0.0  ;;  %v2804_v31 = vmul.f32 %v2762_v22, %v2750_v9  ;;  %v2543_v3 = vadd.f32 %v2520_v25, %v2422_v49  ;;  %v2645_v60 = vpop.f32.mrf.mxu0 }
 0x22b   : > { %v2778_v16 = vadd.f32 %v2777_v35, %v2776_v27  ;;  %v2733_v12 = vpop.f32.mrf.mxu1 }
 0x22c   : > { %v2819_v41 = vsel %vm830_vm2, %v2804_v31, 0.0  ;;  %v2665_v47 = vadd.f32 %v2642_v23, %v2543_v3 }
 0x22d   : > { %v2820_v4 = vadd.f32 %v2819_v41, %v2818_v44 }
 0x22e   : > { %v2751_v18 = vadd.f32 %v2728_v50, %v2665_v47 }
 0x22f   : > { %v2402_v5 = vpop.f32.mrf.mxu2 }
 0x230   : > { %v2763_v36 = vmul.f32 %v4535_v0, %v2751_v18  ;;  %3464 = vst.msk [vmem:[%s4392_s7 + $0x88] sm:$0xff] %vm830_vm2, %v2751_v18  ;;  %v2423_v6 = vadd.f32 %v2402_v5, %v4859_v53 }
 0x231   : > { %v2525_v42 = vpop.f32.mrf.mxu3 }
 0x232   : > { %v2779_v40 = vsel %vm830_vm2, %v2763_v36, 0.0  ;;  %v2805_v39 = vmul.f32 %v2763_v36, %v2751_v18  ;;  %v2544_v55 = vadd.f32 %v2523_v46, %v2423_v6  ;;  %v2647_v30 = vpop.f32.mrf.mxu0 }
 0x233   : > { %v2780_v20 = vadd.f32 %v2779_v40, %v2778_v16  ;;  %v2736_v50 = vpop.f32.mrf.mxu1 }
 0x234   : > { %v2821_v21 = vsel %vm830_vm2, %v2805_v39, 0.0  ;;  %v2666_v11 = vadd.f32 %v2645_v60, %v2544_v55 }
 0x235   : > { %v2822_v59 = vadd.f32 %v2821_v21, %v2820_v4 }
 0x236   : > { %v2752_v52 = vadd.f32 %v2731_v37, %v2666_v11 }
 0x237   : > { %v2404_v1 = vpop.f32.mrf.mxu2 }
 0x238   : > { %v2764_v0 = vmul.f32 %v4604_v58, %v2752_v52  ;;  %3465 = vst.msk [vmem:[%s4392_s7 + $0x90] sm:$0xff] %vm830_vm2, %v2752_v52  ;;  %v2424_v53 = vadd.f32 %v2404_v1, %v4862_v26 }
 0x239   : > { %v2528_v51 = vpop.f32.mrf.mxu3 }
 0x23a   : > { %v2781_v15 = vsel %vm830_vm2, %v2764_v0, 0.0  ;;  %v2806_v2 = vmul.f32 %v2764_v0, %v2752_v52  ;;  %v2545_v24 = vadd.f32 %v2525_v42, %v2424_v53  ;;  %v2650_v62 = vpop.f32.mrf.mxu0  ;;  %v1733_v0 = vrot.slane %v4785_v33, 4 }
 0x23b   : > { %v2782_v13 = vadd.f32 %v2781_v15, %v2780_v20  ;;  %v2738_v46 = vpop.f32.mrf.mxu1 }
 0x23c   : > { %v2823_v28 = vsel %vm830_vm2, %v2806_v2, 0.0  ;;  %v2667_v61 = vadd.f32 %v2647_v30, %v2545_v24 }
 0x23d   : > { %v2824_v48 = vadd.f32 %v2823_v28, %v2822_v59 }
 0x23e   : > { %v2753_v25 = vadd.f32 %v2733_v12, %v2667_v61 }
 0x23f   : > { %v2407_v43 = vpop.f32.mrf.mxu2 }
 0x240   : > { %v2765_v58 = vmul.f32 %v4650_v17, %v2753_v25  ;;  %3466 = vst.msk [vmem:[%s4392_s7 + $0x98] sm:$0xff] %vm830_vm2, %v2753_v25  ;;  %v2425_v26 = vadd.f32 %v2407_v43, %v4865_v19 }
 0x241   : > { %v2530_v9 = vpop.f32.mrf.mxu3 }
 0x242   : > { %v2783_v56 = vsel %vm830_vm2, %v2765_v58, 0.0  ;;  %v2807_v7 = vmul.f32 %v2765_v58, %v2753_v25  ;;  %v2546_v23 = vadd.f32 %v2528_v51, %v2425_v26  ;;  %v2652_v22 = vpop.f32.mrf.mxu0 }
 0x243   : > { %v2784_v27 = vadd.f32 %v2783_v56, %v2782_v13  ;;  %v2741_v39 = vpop.f32.mrf.mxu1  ;;  %v1775_v13 = vrot.slane %v4793_v29, 4 }
 0x244   : > { %v2825_v54 = vsel %vm830_vm2, %v2807_v7, 0.0  ;;  %v2668_v63 = vadd.f32 %v2650_v62, %v2546_v23 }
 0x245   : > { %v2826_v44 = vadd.f32 %v2825_v54, %v2824_v48  ;;  %v1776_v48 = vadd.f32 %v1775_v13, %v4793_v29 }
 0x246   : > { %v2754_v45 = vadd.f32 %v2736_v50, %v2668_v63 }
 0x247   : > { %v2409_v49 = vpop.f32.mrf.mxu2  ;;  %v1777_v26 = vrot.slane %v1776_v48, 2 }
 0x248   : > { %v2766_v17 = vmul.f32 %v4668_v38, %v2754_v45  ;;  %3467 = vst.msk [vmem:[%s4392_s7 + $0xa0] sm:$0xff] %vm830_vm2, %v2754_v45  ;;  %v2426_v19 = vadd.f32 %v2409_v49, %v4868_v57 }
 0x249   : > { %v2533_v4 = vpop.f32.mrf.mxu3 }
 0x24a   : > { %v2785_v35 = vsel %vm830_vm2, %v2766_v17, 0.0  ;;  %v2808_v31 = vmul.f32 %v2766_v17, %v2754_v45  ;;  %v2547_v3 = vadd.f32 %v2530_v9, %v2426_v19  ;;  %v2655_v5 = vpop.f32.mrf.mxu0 }
 0x24b   : > { %v2786_v60 = vadd.f32 %v2785_v35, %v2784_v27  ;;  %v2743_v51 = vpop.f32.mrf.mxu1  ;;  %v2855_v35 = vld [vmem:[#allocation3] sm:$0x1] }
 0x24c   : > { %v2827_v16 = vsel %vm830_vm2, %v2808_v31, 0.0  ;;  %v2669_v37 = vadd.f32 %v2652_v22, %v2547_v3 }
 0x24d   : > { %v2828_v41 = vadd.f32 %v2827_v16, %v2826_v44  ;;  %v2859_v16 = vld [vmem:[#allocation4] sm:$0x1] }
 0x24e   : > { %v2755_v47 = vadd.f32 %v2738_v46, %v2669_v37 }
 0x24f   : > { %v2412_v18 = vpop.f32.mrf.mxu2 }
 0x250   : > { %v2767_v38 = vmul.f32 %v4718_v32, %v2755_v47  ;;  %3468 = vst.msk [vmem:[%s4392_s7 + $0xa8] sm:$0xff] %vm830_vm2, %v2755_v47  ;;  %v2427_v57 = vadd.f32 %v2412_v18, %v4874_v34 }
 0x251   : > { %v2535_v34 = vpop.f32.mrf.mxu3 }
 0x252   : > { %v2787_v36 = vsel %vm830_vm2, %v2767_v38, 0.0  ;;  %v2809_v6 = vmul.f32 %v2767_v38, %v2755_v47  ;;  %v2548_v42 = vadd.f32 %v2533_v4, %v2427_v57  ;;  %v2657_v15 = vpop.f32.mrf.mxu0 }
 0x253   : > { %v2788_v40 = vadd.f32 %v2787_v36, %v2786_v60 }
 0x254   : > { %v2829_v55 = vsel %vm830_vm2, %v2809_v6, 0.0  ;;  %v2670_v20 = vadd.f32 %v2655_v5, %v2548_v42 }
 0x255   : > { %v2830_v30 = vadd.f32 %v2829_v55, %v2828_v41 }
 0x256   : > { %v2756_v21 = vadd.f32 %v2741_v39, %v2670_v20 }
 0x257   : > { %v2414_v11 = vpop.f32.mrf.mxu2 }
 0x258   : > { %v2768_v59 = vmul.f32 %v4747_v8, %v2756_v21  ;;  %3469 = vst.msk [vmem:[%s4392_s7 + $0xb0] sm:$0xff] %vm830_vm2, %v2756_v21  ;;  %v2428_v32 = vadd.f32 %v2414_v11, %v4884_v10  ;;  %v1734_v10 = vadd.f32 %v1733_v0, %v4785_v33  ;;  %v1778_v33 = vadd.f32 %v1777_v26, %v1776_v48 }
 0x25a   : > { %v2789_v12 = vsel %vm830_vm2, %v2768_v59, 0.0  ;;  %v2810_v52 = vmul.f32 %v2768_v59, %v2756_v21  ;;  %v2549_v1 = vadd.f32 %v2535_v34, %v2428_v32  ;;  %v1735_v50 = vrot.slane %v1734_v10, 2 }
 0x25b   : > { %v2790_v53 = vadd.f32 %v2789_v12, %v2788_v40  ;;  %v1779_v29 = vrot.slane %v1778_v33, 1 }
 0x25c   : > { %v2831_v2 = vsel %vm830_vm2, %v2810_v52, 0.0  ;;  %v2671_v24 = vadd.f32 %v2657_v15, %v2549_v1  ;;  %v1736_v23 = vadd.f32 %v1735_v50, %v1734_v10 }
 0x25d   : > { %v2832_v8 = vadd.f32 %v2831_v2, %v2830_v30  ;;  %v1780_v31 = vadd.f32 %v1779_v29, %v1778_v33 }
 0x25e   : > { %v2757_v28 = vadd.f32 %v2743_v51, %v2671_v24  ;;  %v1737_v44 = vrot.slane %v1736_v23, 1 }
 0x260   : > { %v2769_v61 = vmul.f32 %v4777_v14, %v2757_v28  ;;  %3470 = vst.msk [vmem:[%s4392_s7 + $0xb8] sm:$0xff] %vm830_vm2, %v2757_v28  ;;  %v1738_v17 = vadd.f32 %v1737_v44, %v1736_v23 }
 0x262   : > { %v2791_v62 = vsel %vm830_vm2, %v2769_v61, 0.0  ;;  %v2811_v25 = vmul.f32 %v2769_v61, %v2757_v28 }
 0x263   : > { %v2792_v43 = vadd.f32 %v2791_v62, %v2790_v53 }
 0x264   : > { %v2833_v58 = vsel %vm830_vm2, %v2811_v25, 0.0  ;;  %vm2857_vm2 = vcmask 24576  }
 0x265   : > { %v2793_v56 = vrot.slane %v2792_v43, 4  ;;  %v2834_v7 = vadd.f32 %v2833_v58, %v2832_v8 }
 0x267   : > { %v2794_v27 = vadd.f32 %v2793_v56, %v2792_v43  ;;  %v2835_v54 = vrot.slane %v2834_v7, 4 }
 0x269   : > { %v2795_v63 = vrot.slane %v2794_v27, 2  ;;  %v2836_v14 = vadd.f32 %v2835_v54, %v2834_v7 }
 0x26b   : > { %v2796_v9 = vadd.f32 %v2795_v63, %v2794_v27  ;;  %v2837_v45 = vrot.slane %v2836_v14, 2 }
 0x26d   : > { %v2797_v22 = vrot.slane %v2796_v9, 1  ;;  %v2838_v49 = vadd.f32 %v2837_v45, %v2836_v14 }
 0x26f   : > { %v2798_v19 = vadd.f32 %v2797_v22, %v2796_v9  ;;  %v2839_v46 = vrot.slane %v2838_v49, 1 }
 0x271   : > { %v2799_v3 = vadd.f32 %v2798_v19, %v1738_v17  ;;  %v2840_v60 = vadd.f32 %v2839_v46, %v2838_v49 }
 0x273   : > { %v2841_v37 = vadd.f32 %v2840_v60, %v1780_v31  ;;  %v2856_v41 = vadd.f32 %v2855_v35, %v2799_v3 }
 0x275   : > { %2858 = vst.msk [vmem:[#allocation3] sm:$0x1] %vm2857_vm2, %v2856_v41  ;;  %v2860_v47 = vadd.f32 %v2859_v16, %v2841_v37 }
 0x277   : > { %2861 = vst.msk [vmem:[#allocation4] sm:$0x1] %vm2857_vm2, %v2860_v47 }
 0x278 PF: > { %p3471_p10 = scmp.ne.s32.totalorder %s3641_s13, 1 }
 0x279   : > { %s4953_s13 = scalar_lea.vmem (!%p3471_p10), [#allocation2], %s3735_s23 }
 0x27a   : > { %2865 = sbr.rel (%p3471_p10) target bundleno = 692 (0x2b4), region = 44 }
 0x27f   : > { %v2866_v4 = vld [vmem:[#allocation3] sm:$0x1]  ;;  %v2868_v18 = vld [vmem:[#allocation4] sm:$0x1]  ;;  %v2886_v11 = vld [vmem:[%s4953_s13 + $0x8] sm:$0xff]  ;;  %vm2945_vm13 = vcmask 31744  }
 0x280   : > { %v2867_v38 = vmul.f32 0.00390625, %v2866_v4  ;;  %v2869_v57 = vmul.f32 0.00390625, %v2868_v18  ;;  %v2885_v21 = vld [vmem:[%s4953_s13] sm:$0xff]  ;;  %v2887_v59 = vld [vmem:[%s4953_s13 + $0x18] sm:$0xff]  ;;  %v2889_v12 = vld [vmem:[%s4953_s13 + $0x30] sm:$0xff] }
 0x281   : > { %v2888_v34 = vld [vmem:[%s4953_s13 + $0x20] sm:$0xff]  ;;  %v2890_v52 = vld [vmem:[%s4953_s13 + $0x38] sm:$0xff]  ;;  %v2891_v0 = vld [vmem:[%s4953_s13 + $0x48] sm:$0xff] }
 0x282   : > { %v2870_v5 = vmul.f32 %v2867_v38, %v2867_v38  ;;  %v4950_v30 = vperm.slane %v2867_v38, 0  ;;  %v2892_v53 = vld [vmem:[%s4953_s13 + $0x50] sm:$0xff]  ;;  %v2893_v24 = vld [vmem:[%s4953_s13 + $0x60] sm:$0xff]  ;;  %v2894_v13 = vld [vmem:[%s4953_s13 + $0x68] sm:$0xff] }
 0x283   : > { %v2895_v61 = vld [vmem:[%s4953_s13 + $0x78] sm:$0xff]  ;;  %v2896_v48 = vld [vmem:[%s4953_s13 + $0x80] sm:$0xff]  ;;  %v2897_v62 = vld [vmem:[%s4953_s13 + $0x90] sm:$0xff] }
 0x284   : > { %v2871_v36 = vsub.f32 %v2869_v57, %v2870_v5  ;;  %v2904_v2 = vsub.f32 %v2885_v21, %v4950_v30  ;;  %v2905_v8 = vsub.f32 %v2886_v11, %v4950_v30  ;;  %v2906_v51 = vsub.f32 %v2887_v59, %v4950_v30  ;;  %v2939_v56 = vld [vmem:[%s3745_s8] sm:$0xff]  ;;  %v2940_v7 = vld [vmem:[%s3745_s8 + $0x8] sm:$0xff]  ;;  %v3472_v27 = vld [vmem:[%s3745_s8 + $0x10] sm:$0xff] }
 0x285   : > { %v2907_v28 = vsub.f32 %v2888_v34, %v4950_v30  ;;  %v2908_v10 = vsub.f32 %v2889_v12, %v4950_v30  ;;  %v2909_v50 = vsub.f32 %v2890_v52, %v4950_v30  ;;  %v2910_v43 = vsub.f32 %v2891_v0, %v4950_v30  ;;  %v3473_v54 = vld [vmem:[%s3745_s8 + $0x18] sm:$0xff]  ;;  %v3476_v33 = vld [vmem:[%s3745_s8 + $0x20] sm:$0xff]  ;;  %v3477_v17 = vld [vmem:[%s3745_s8 + $0x28] sm:$0xff] }
 0x286   : > { %v2872_v6 = vmax.f32 %v2871_v36, 0.0  ;;  %v2911_v58 = vsub.f32 %v2892_v53, %v4950_v30  ;;  %v2912_v23 = vsub.f32 %v2893_v24, %v4950_v30  ;;  %v2913_v63 = vsub.f32 %v2894_v13, %v4950_v30  ;;  %v3480_v19 = vld [vmem:[%s3745_s8 + $0x30] sm:$0xff]  ;;  %v2898_v46 = vld [vmem:[%s4953_s13 + $0x98] sm:$0xff]  ;;  %v2899_v16 = vld [vmem:[%s4953_s13 + $0xa8] sm:$0xff] }
 0x287   : > { %v2914_v14 = vsub.f32 %v2895_v61, %v4950_v30  ;;  %v2915_v44 = vsub.f32 %v2896_v48, %v4950_v30  ;;  %v2916_v9 = vsub.f32 %v2897_v62, %v4950_v30  ;;  %v3481_v18 = vld [vmem:[%s3745_s8 + $0x38] sm:$0xff]  ;;  %v2900_v38 = vld [vmem:[%s4953_s13 + $0xb0] sm:$0xff]  ;;  %v3484_v59 = vld [vmem:[%s3745_s8 + $0x40] sm:$0xff] }
 0x288   : > { %v2873_v42 = vadd.f32 1e-05, %v2872_v6  ;;  %v2917_v6 = vsub.f32 %v2898_v46, %v4950_v30  ;;  %v3488_v34 = vld [vmem:[%s3745_s8 + $0x50] sm:$0xff]  ;;  %v2919_v12 = vsub.f32 %v2900_v38, %v4950_v30  ;;  %v3492_v13 = vld [vmem:[%s3745_s8 + $0x60] sm:$0xff]  ;;  %v3493_v61 = vld [vmem:[%s3745_s8 + $0x68] sm:$0xff] }
 0x28a   : > { %3605 = vrsqrt.f32 %v2873_v42  ;;  %vm2880_vm3 = vweird.f32 %v2873_v42 }
 0x290   : > { %v3606_v40 = vpop.eup %3605 }
 0x291   : > { %v2875_v39 = vmul.f32 %v3606_v40, %v2873_v42  ;;  %vm2881_vm4 = vweird.f32 %v3606_v40 }
 0x292   : > { %vm4961_vm12 = vmor %vm2880_vm3, %vm2881_vm4 }
 0x293   : > { %v2876_v55 = vmul.f32 %v3606_v40, %v2875_v39 }
 0x295   : > { %v2877_v20 = vmul.f32 0.5, %v2876_v55  ;;  %v2918_v55 = vsub.f32 %v2899_v16, %v4950_v30 }
 0x297   : > { %v2878_v32 = vsub.f32 1.5, %v2877_v20 }
 0x299   : > { %v2879_v15 = vmul.f32 %v3606_v40, %v2878_v32  ;;  %v3485_v32 = vld [vmem:[%s3745_s8 + $0x48] sm:$0xff] }
 0x29b   : > { %v2883_v25 = vsel %vm4961_vm12, %v3606_v40, %v2879_v15  ;;  %v3489_v15 = vld [vmem:[%s3745_s8 + $0x58] sm:$0xff] }
 0x29c   : > { %v4982_v26 = vperm.slane %v2883_v25, 0 }
 0x29e   : > { %v2923_v45 = vmul.f32 %v4982_v26, %v2904_v2  ;;  %v2924_v29 = vmul.f32 %v4982_v26, %v2905_v8  ;;  %v2925_v22 = vmul.f32 %v4982_v26, %v2906_v51  ;;  %v2926_v49 = vmul.f32 %v4982_v26, %v2907_v28 }
 0x29f   : > { %v2927_v35 = vmul.f32 %v4982_v26, %v2908_v10  ;;  %v2928_v31 = vmul.f32 %v4982_v26, %v2909_v50  ;;  %v2929_v3 = vmul.f32 %v4982_v26, %v2910_v43  ;;  %v2930_v60 = vmul.f32 %v4982_v26, %v2911_v58  ;;  %v3496_v50 = vld [vmem:[%s3745_s8 + $0x70] sm:$0xff] }
 0x2a0   : > { %v2941_v37 = vadd.f32 %v2939_v56, %v2923_v45  ;;  %v2942_v41 = vadd.f32 %v2940_v7, %v2924_v29  ;;  %v2951_v47 = vadd.f32 %v3472_v27, %v2925_v22  ;;  %v2952_v4 = vadd.f32 %v3473_v54, %v2926_v49  ;;  %v3497_v7 = vld [vmem:[%s3745_s8 + $0x78] sm:$0xff] }
 0x2a1   : > { %v2961_v57 = vadd.f32 %v3476_v33, %v2927_v35  ;;  %v2962_v5 = vadd.f32 %v3477_v17, %v2928_v31  ;;  %v2971_v36 = vadd.f32 %v3480_v19, %v2929_v3  ;;  %v2972_v11 = vadd.f32 %v3481_v18, %v2930_v60 }
 0x2a2   : > { %v2943_v42 = vmax.f32 %v2941_v37, 0.0  ;;  %v2944_v40 = vmax.f32 %v2942_v41, 0.0  ;;  %v2953_v39 = vmax.f32 %v2951_v47, 0.0  ;;  %v2954_v20 = vmax.f32 %v2952_v4, 0.0 }
 0x2a3   : > { %v2963_v21 = vmax.f32 %v2961_v57, 0.0  ;;  %v2931_v52 = vmul.f32 %v4982_v26, %v2912_v23  ;;  %v2932_v1 = vmul.f32 %v4982_v26, %v2913_v63  ;;  %v2933_v0 = vmul.f32 %v4982_v26, %v2914_v14 }
 0x2a4   : > { %2946 = vst.msk [vmem:[%s3750_s11] sm:$0xff] %vm2945_vm13, %v2943_v42  ;;  %v2934_v53 = vmul.f32 %v4982_v26, %v2915_v44  ;;  %v2964_v2 = vmax.f32 %v2962_v5, 0.0  ;;  %v2973_v24 = vmax.f32 %v2971_v36, 0.0  ;;  %v2935_v30 = vmul.f32 %v4982_v26, %v2916_v9 }
 0x2a5   : > { %2947 = vst.msk [vmem:[%s3750_s11 + $0x8] sm:$0xff] %vm2945_vm13, %v2944_v40  ;;  %v2936_v8 = vmul.f32 %v4982_v26, %v2917_v6  ;;  %v2981_v51 = vadd.f32 %v3484_v59, %v2931_v52  ;;  %v2982_v28 = vadd.f32 %v3485_v32, %v2932_v1  ;;  %v2991_v10 = vadd.f32 %v3488_v34, %v2933_v0 }
 0x2a6   : > { %3474 = vst.msk [vmem:[%s3750_s11 + $0x10] sm:$0xff] %vm2945_vm13, %v2953_v39  ;;  %v2937_v48 = vmul.f32 %v4982_v26, %v2918_v55  ;;  %v2974_v62 = vmax.f32 %v2972_v11, 0.0  ;;  %v2992_v25 = vadd.f32 %v3489_v15, %v2934_v53  ;;  %v2938_v43 = vmul.f32 %v4982_v26, %v2919_v12 }
 0x2a7   : > { %3475 = vst.msk [vmem:[%s3750_s11 + $0x18] sm:$0xff] %vm2945_vm13, %v2954_v20  ;;  %v2983_v58 = vmax.f32 %v2981_v51, 0.0  ;;  %v3001_v56 = vadd.f32 %v3492_v13, %v2935_v30  ;;  %v2984_v23 = vmax.f32 %v2982_v28, 0.0  ;;  %v3002_v27 = vadd.f32 %v3493_v61, %v2936_v8 }
 0x2a8   : > { %3478 = vst.msk [vmem:[%s3750_s11 + $0x20] sm:$0xff] %vm2945_vm13, %v2963_v21  ;;  %v2993_v54 = vmax.f32 %v2991_v10, 0.0  ;;  %v3011_v26 = vadd.f32 %v3496_v50, %v2937_v48  ;;  %v2994_v33 = vmax.f32 %v2992_v25, 0.0  ;;  %v3012_v63 = vadd.f32 %v3497_v7, %v2938_v43 }
 0x2a9   : > { %3479 = vst.msk [vmem:[%s3750_s11 + $0x28] sm:$0xff] %vm2945_vm13, %v2964_v2  ;;  %v3003_v14 = vmax.f32 %v3001_v56, 0.0  ;;  %v3004_v44 = vmax.f32 %v3002_v27, 0.0 }
 0x2aa   : > { %3482 = vst.msk [vmem:[%s3750_s11 + $0x30] sm:$0xff] %vm2945_vm13, %v2973_v24  ;;  %v3013_v9 = vmax.f32 %v3011_v26, 0.0  ;;  %v3014_v45 = vmax.f32 %v3012_v63, 0.0 }
 0x2ab   : > { %3483 = vst.msk [vmem:[%s3750_s11 + $0x38] sm:$0xff] %vm2945_vm13, %v2974_v62 }
 0x2ac   : > { %3486 = vst.msk [vmem:[%s3750_s11 + $0x40] sm:$0xff] %vm2945_vm13, %v2983_v58 }
 0x2ad   : > { %3487 = vst.msk [vmem:[%s3750_s11 + $0x48] sm:$0xff] %vm2945_vm13, %v2984_v23 }
 0x2ae   : > { %3490 = vst.msk [vmem:[%s3750_s11 + $0x50] sm:$0xff] %vm2945_vm13, %v2993_v54 }
 0x2af   : > { %3491 = vst.msk [vmem:[%s3750_s11 + $0x58] sm:$0xff] %vm2945_vm13, %v2994_v33 }
 0x2b0   : > { %3494 = vst.msk [vmem:[%s3750_s11 + $0x60] sm:$0xff] %vm2945_vm13, %v3003_v14 }
 0x2b1   : > { %3495 = vst.msk [vmem:[%s3750_s11 + $0x68] sm:$0xff] %vm2945_vm13, %v3004_v44 }
 0x2b2   : > { %3498 = vst.msk [vmem:[%s3750_s11 + $0x70] sm:$0xff] %vm2945_vm13, %v3013_v9 }
 0x2b3   : > { %3499 = vst.msk [vmem:[%s3750_s11 + $0x78] sm:$0xff] %vm2945_vm13, %v3014_v45 }
 0x2b4 PF: > { %s13_s18 = sadd.s32 1, %s3661_s18   ;;  %s5139_s12 = smov %s3649_s15 }
 0x2b5   : > { %p10_p11 = scmp.ge.s32.totalorder %s13_s18, 10   ;;  %s5140_s13 = smov %s3653_s16 }
 0x2b6   : > { %s5141_s14 = smov %s3657_s17  ;;  %s5142_s15 = smov %s5146_s19 }
 0x2b7   : > { %s5143_s16 = smov %s5150_s20  ;;  %s5144_s17 = smov %s5154_s21 }
 0x2b8   :  { %12 = sbr.rel (!%p10_p11) target bundleno = 4 (0x4), region = 108 }

</bundles_post_ra>
